<compile_context>
chip_gen: v7x
topology: tpu7x:2x2x1
jax: 0.10.0
libtpu: 0.0.40
codegen_flags: <defaults>
</compile_context>

<pallas_src>
import functools

import numpy as np
import jax
import jax.numpy as jnp
from jax import lax
from jax.experimental import pallas as pl
from jax.experimental.pallas import tpu as pltpu

EPS = 1e-5        # PyTorch BatchNorm default eps
NEG_SLOPE = 0.01  # F.leaky_relu_ default negative_slope
VMEM_LIMIT = 32 * 1024 * 1024


# ---------------------------------------------------------------------------
# Constant 0/1 selection matrices ("gather by matmul").
# Row layout of every activation matrix: m = (n*H + i)*W + j, columns = C.
# ---------------------------------------------------------------------------
def _sel_conv_matrix(batch, h, stride):
    """(9*Mout, Min) 0/1 matrix: row t*Mout + m_out selects the input pixel read
    by 3x3 tap t = 3*dh+dw (all-zero row where the tap falls in the padding)."""
    ho = h // stride
    mo, mi = batch * ho * ho, batch * h * h
    s = np.zeros((9, mo, mi), np.float32)
    for dh in range(3):
        for dw in range(3):
            t = dh * 3 + dw
            for n in range(batch):
                for i in range(ho):
                    ii = stride * i + dh - 1
                    if not 0 <= ii < h:
                        continue
                    for j in range(ho):
                        jj = stride * j + dw - 1
                        if 0 <= jj < h:
                            s[t, (n * ho + i) * ho + j, (n * h + ii) * h + jj] = 1.0
    return s.reshape(9 * mo, mi)


# ---------------------------------------------------------------------------
# The single fused kernel
# ---------------------------------------------------------------------------
def _disc_kernel(*refs, n_cells):
    """Entire Discriminator forward on the resident batch (single invocation)."""
    o_ref = refs[-1]
    it = iter(refs[:-1])

    def bn_lrelu(y, g_ref, b_ref):
        # BatchNorm2d, training mode: batch stats over all rows (N*H*W),
        # biased variance, eps=1e-5; then leaky_relu(0.01).  f32 throughout.
        inv = 1.0 / float(y.shape[0])
        mean = jnp.sum(y, axis=0, keepdims=True) * inv
        var = jnp.maximum(
            jnp.sum(y * y, axis=0, keepdims=True) * inv - mean * mean, 0.0)
        scale = lax.rsqrt(var + EPS) * g_ref[...]
        shift = b_ref[...] - mean * scale
        z = y * scale + shift
        return jnp.where(z >= 0.0, z, NEG_SLOPE * z)

    def conv(a, s_ref, w_ref):
        # 3x3 conv (stride-1 'same' or stride-2 pad-1, encoded in s_ref):
        #   one (9*Mo, Mi) selection matmul gathers all 9 tap windows at once
        #   (exact copy; zero rows implement the padding), then 9 accumulated
        #   bf16 MXU matmuls with f32 accumulation.
        a16 = a.astype(jnp.bfloat16)                    # single cast per layer
        mo = s_ref.shape[0] // 9
        cout = w_ref.shape[2]
        lhs = jnp.dot(s_ref[...], a16,
                      preferred_element_type=jnp.float32).astype(jnp.bfloat16)
        acc = jnp.zeros((mo, cout), jnp.float32)
        for t in range(9):
            acc = acc + jnp.dot(lhs[t * mo:(t + 1) * mo, :], w_ref[t],
                                preferred_element_type=jnp.float32)
        return acc

    # --- cell 0, conv1: taps pre-folded into K=9 by the wrapper -> one matmul.
    t0, w0, g, b = (next(it) for _ in range(4))
    y = jnp.dot(t0[...], w0[...], preferred_element_type=jnp.float32)
    a = bn_lrelu(y, g, b)
    sp, w2, g, b = (next(it) for _ in range(4))
    a = bn_lrelu(conv(a, sp, w2), g, b)

    # --- remaining cells: stride-2 conv1 + BN + lrelu, stride-1 conv2 + BN + lrelu.
    for _ in range(1, n_cells):
        s1, w1, g, b = (next(it) for _ in range(4))
        a = bn_lrelu(conv(a, s1, w1), g, b)
        sp, w2, g, b = (next(it) for _ in range(4))
        a = bn_lrelu(conv(a, sp, w2), g, b)

    # --- head: flatten + Linear + BatchNorm1d (batch stats) + sigmoid.
    # Linear weight is pre-permuted to (S*S, C) (NHWC flatten order) and tiled
    # over the batch; per-sample row-group sums use a tiny 0/1 matmul.
    lwt, gsum, hg, hb = (next(it) for _ in range(4))
    u = a * lwt[...]                                                 # (Mf, C) f32
    zc = jnp.dot(gsum[...], u, preferred_element_type=jnp.float32)   # (N, C)
    z = jnp.sum(zc, axis=1, keepdims=True)                           # (N, 1)
    inv_n = 1.0 / float(z.shape[0])
    m = jnp.sum(z, axis=0, keepdims=True) * inv_n
    v = jnp.maximum(jnp.sum(z * z, axis=0, keepdims=True) * inv_n - m * m, 0.0)
    o_ref[...] = jax.nn.sigmoid((z - m) * lax.rsqrt(v + EPS) * hg[...] + hb[...])


# ---------------------------------------------------------------------------
# Forward pass (single pallas_call)
# ---------------------------------------------------------------------------
def discriminator_forward(x_nchw, params):
    """x_nchw: (N, 1, L, L) float32 (PyTorch NCHW input convention)."""
    n, _, L, _ = x_nchw.shape
    cells = params["cells"]
    n_cells = len(cells)

    # First-conv LHS: fold the 3x3 stride-2 taps of the single-channel input
    # into the contraction dim -> (N*Ho*Wo, 9).  Done once, on the raw input.
    ho = L // 2
    xp = jnp.pad(x_nchw[:, 0, :, :], ((0, 0), (1, 1), (1, 1)))
    taps = [xp[:, dh:dh + 2 * ho:2, dw:dw + 2 * ho:2]
            for dh in range(3) for dw in range(3)]
    t0 = jnp.stack(taps, axis=-1).reshape(n * ho * ho, 9).astype(jnp.bfloat16)

    c0 = cells[0]
    args = [t0, c0["w1"], c0["g1"], c0["be1"]]
    s = ho
    args += [jnp.asarray(_sel_conv_matrix(n, s, 1), jnp.bfloat16),
             c0["w2"], c0["g2"], c0["be2"]]
    for c in range(1, n_cells):
        cc = cells[c]
        args += [jnp.asarray(_sel_conv_matrix(n, s, 2), jnp.bfloat16),
                 cc["w1"], cc["g1"], cc["be1"]]
        s //= 2
        args += [jnp.asarray(_sel_conv_matrix(n, s, 1), jnp.bfloat16),
                 cc["w2"], cc["g2"], cc["be2"]]

    lwt = jnp.tile(params["lw"], (n, 1))                   # (N*S*S, C) f32
    gsum = np.zeros((n, n * s * s), np.float32)
    for bi in range(n):
        gsum[bi, bi * s * s:(bi + 1) * s * s] = 1.0
    args += [lwt, jnp.asarray(gsum), params["hg"], params["hb"]]

    vm = pl.BlockSpec(memory_space=pltpu.MemorySpace.VMEM)
    return pl.pallas_call(
        functools.partial(_disc_kernel, n_cells=n_cells),
        in_specs=[vm] * len(args),
        out_specs=vm,
        out_shape=jax.ShapeDtypeStruct((n, 1), jnp.float32),
        compiler_params=pltpu.CompilerParams(vmem_limit_bytes=VMEM_LIMIT),
    )(*args)


# ---------------------------------------------------------------------------
# Deterministic parameter init (shapes follow the PyTorch module; conv/linear
# biases are omitted because they cancel exactly under batch-statistics BN).
# ---------------------------------------------------------------------------
def init_params(key, lattice_size, n_conv_cells):
    dims = [(1, 64)] + [(64 * 2 ** i, 64 * 2 ** (i + 1)) for i in range(n_conv_cells)]
    cells = []
    for li, (cin, cout) in enumerate(dims):
        key, k1, k2, k3, k4, k5, k6 = jax.random.split(key, 7)
        if li == 0:
            w1 = jax.random.normal(k1, (9, cout), jnp.float32) / 3.0      # fan_in = 9
        else:
            w1 = jax.random.normal(k1, (9, cin, cout), jnp.float32) / jnp.sqrt(9.0 * cin)
        w2 = jax.random.normal(k4, (9, cout, cout), jnp.float32) / jnp.sqrt(9.0 * cout)
        cells.append(dict(
            w1=w1.astype(jnp.bfloat16),       # tap-major t = 3*dh + dw
            g1=1.0 + 0.1 * jax.random.normal(k2, (1, cout), jnp.float32),
            be1=0.1 * jax.random.normal(k3, (1, cout), jnp.float32),
            w2=w2.astype(jnp.bfloat16),
            g2=1.0 + 0.1 * jax.random.normal(k5, (1, cout), jnp.float32),
            be2=0.1 * jax.random.normal(k6, (1, cout), jnp.float32),
        ))
    final_c = 64 * 2 ** n_conv_cells
    final_s = lattice_size // (2 ** (n_conv_cells + 1))
    feat = final_c * final_s * final_s        # == Discriminator._get_dimension()
    key, k1, k2, k3 = jax.random.split(key, 4)
    # torch Linear weight is (1, feat) over an NCHW flatten (c, h, w); stored
    # pre-permuted as (h*w, c): lw[s, c] == torch_w[0, c*S*S + s].
    lw = (jax.random.normal(k1, (final_s * final_s, final_c), jnp.float32)
          / jnp.sqrt(float(feat)))
    return dict(
        cells=cells,
        lw=lw,
        hg=1.0 + 0.1 * jax.random.normal(k2, (1, 1), jnp.float32),
        hb=0.1 * jax.random.normal(k3, (1, 1), jnp.float32),
    )


if __name__ == "__main__":
    # Small shapes consistent with the module: batch=2, 1 input channel,
    # lattice_size=16, n_conv_cells=2 (3 ConvCells: 1->64->128->256, spatial 16->8->4->2).
    LATTICE = 16
    N_CELLS = 2
    BATCH = 2

    key = jax.random.PRNGKey(0)
    kp, kx = jax.random.split(key)
    params = init_params(kp, LATTICE, N_CELLS)
    x = jax.random.normal(kx, (BATCH, 1, LATTICE, LATTICE), jnp.float32)

    fwd = jax.jit(lambda inp: discriminator_forward(inp, params))
    out = fwd(x)
    jax.block_until_ready(out)

    assert out.shape == (BATCH, 1), out.shape
    assert out.dtype == jnp.float32
    assert bool(jnp.all(jnp.isfinite(out)))
    assert bool(jnp.all((out > 0.0) & (out < 1.0)))
    print("KERNEL_OK")
</pallas_src>

<mosaic_0001>
module attributes {stable_mosaic.version = 11 : i64} {
  func.func @_disc_kernel(%arg0: memref<128x9xbf16, #tpu.memory_space<vmem>>, %arg1: memref<9x64xbf16, #tpu.memory_space<vmem>>, %arg2: memref<1x64xf32, #tpu.memory_space<vmem>>, %arg3: memref<1x64xf32, #tpu.memory_space<vmem>>, %arg4: memref<1152x128xbf16, #tpu.memory_space<vmem>>, %arg5: memref<9x64x64xbf16, #tpu.memory_space<vmem>>, %arg6: memref<1x64xf32, #tpu.memory_space<vmem>>, %arg7: memref<1x64xf32, #tpu.memory_space<vmem>>, %arg8: memref<288x128xbf16, #tpu.memory_space<vmem>>, %arg9: memref<9x64x128xbf16, #tpu.memory_space<vmem>>, %arg10: memref<1x128xf32, #tpu.memory_space<vmem>>, %arg11: memref<1x128xf32, #tpu.memory_space<vmem>>, %arg12: memref<288x32xbf16, #tpu.memory_space<vmem>>, %arg13: memref<9x128x128xbf16, #tpu.memory_space<vmem>>, %arg14: memref<1x128xf32, #tpu.memory_space<vmem>>, %arg15: memref<1x128xf32, #tpu.memory_space<vmem>>, %arg16: memref<72x32xbf16, #tpu.memory_space<vmem>>, %arg17: memref<9x128x256xbf16, #tpu.memory_space<vmem>>, %arg18: memref<1x256xf32, #tpu.memory_space<vmem>>, %arg19: memref<1x256xf32, #tpu.memory_space<vmem>>, %arg20: memref<72x8xbf16, #tpu.memory_space<vmem>>, %arg21: memref<9x256x256xbf16, #tpu.memory_space<vmem>>, %arg22: memref<1x256xf32, #tpu.memory_space<vmem>>, %arg23: memref<1x256xf32, #tpu.memory_space<vmem>>, %arg24: memref<8x256xf32, #tpu.memory_space<vmem>>, %arg25: memref<2x8xf32, #tpu.memory_space<vmem>>, %arg26: memref<1x1xf32, #tpu.memory_space<vmem>>, %arg27: memref<1x1xf32, #tpu.memory_space<vmem>>, %arg28: memref<2x1xf32, #tpu.memory_space<vmem>>) attributes {dimension_semantics = [], scalar_prefetch = 0 : i64, scratch_operands = 0 : i64, tpu.core_type = #tpu.core_type<tc>} {
    %c0 = arith.constant 0 : index
    %c0_0 = arith.constant 0 : index
    %0 = vector.load %arg0[%c0, %c0_0] : memref<128x9xbf16, #tpu.memory_space<vmem>>, vector<128x9xbf16>
    %c0_1 = arith.constant 0 : index
    %c0_2 = arith.constant 0 : index
    %1 = vector.load %arg1[%c0_1, %c0_2] : memref<9x64xbf16, #tpu.memory_space<vmem>>, vector<9x64xbf16>
    %cst = arith.constant dense<0.000000e+00> : vector<128x64xf32>
    %2 = tpu.matmul %0, %1, %cst {dimension_numbers = #tpu.dot_dimension_numbers<[1], [0], [0], [1], [0, 0, 1, 1], [], []>} : vector<128x9xbf16>, vector<9x64xbf16>, vector<128x64xf32> -> vector<128x64xf32>
    %cst_3 = arith.constant dense<0.000000e+00> : vector<64xf32>
    %3 = vector.multi_reduction <add>, %2, %cst_3 [0] : vector<128x64xf32> to vector<64xf32>
    %4 = vector.shape_cast %3 : vector<64xf32> to vector<1x64xf32>
    %cst_4 = arith.constant 7.812500e-03 : f32
    %5 = vector.broadcast %cst_4 : f32 to vector<1x64xf32>
    %6 = arith.mulf %4, %5 : vector<1x64xf32>
    %7 = arith.mulf %2, %2 : vector<128x64xf32>
    %cst_5 = arith.constant dense<0.000000e+00> : vector<64xf32>
    %8 = vector.multi_reduction <add>, %7, %cst_5 [0] : vector<128x64xf32> to vector<64xf32>
    %9 = vector.shape_cast %8 : vector<64xf32> to vector<1x64xf32>
    %cst_6 = arith.constant 7.812500e-03 : f32
    %10 = vector.broadcast %cst_6 : f32 to vector<1x64xf32>
    %11 = arith.mulf %9, %10 : vector<1x64xf32>
    %12 = arith.mulf %6, %6 : vector<1x64xf32>
    %13 = arith.subf %11, %12 : vector<1x64xf32>
    %cst_7 = arith.constant 0.000000e+00 : f32
    %14 = vector.broadcast %cst_7 : f32 to vector<1x64xf32>
    %15 = arith.maximumf %13, %14 : vector<1x64xf32>
    %cst_8 = arith.constant 9.99999974E-6 : f32
    %16 = vector.broadcast %cst_8 : f32 to vector<1x64xf32>
    %17 = arith.addf %15, %16 : vector<1x64xf32>
    %18 = math.rsqrt %17 : vector<1x64xf32>
    %c0_9 = arith.constant 0 : index
    %c0_10 = arith.constant 0 : index
    %19 = vector.load %arg2[%c0_9, %c0_10] : memref<1x64xf32, #tpu.memory_space<vmem>>, vector<1x64xf32>
    %20 = arith.mulf %18, %19 : vector<1x64xf32>
    %c0_11 = arith.constant 0 : index
    %c0_12 = arith.constant 0 : index
    %21 = vector.load %arg3[%c0_11, %c0_12] : memref<1x64xf32, #tpu.memory_space<vmem>>, vector<1x64xf32>
    %22 = arith.mulf %6, %20 : vector<1x64xf32>
    %23 = arith.subf %21, %22 : vector<1x64xf32>
    %24 = vector.broadcast %20 : vector<1x64xf32> to vector<128x64xf32>
    %25 = arith.mulf %2, %24 : vector<128x64xf32>
    %26 = vector.broadcast %23 : vector<1x64xf32> to vector<128x64xf32>
    %27 = arith.addf %25, %26 : vector<128x64xf32>
    %cst_13 = arith.constant 0.000000e+00 : f32
    %28 = vector.broadcast %cst_13 : f32 to vector<128x64xf32>
    %29 = arith.cmpf oge, %27, %28 : vector<128x64xf32>
    %cst_14 = arith.constant 0.00999999977 : f32
    %30 = vector.broadcast %cst_14 : f32 to vector<128x64xf32>
    %31 = arith.mulf %30, %27 : vector<128x64xf32>
    %32 = arith.select %29, %27, %31 : vector<128x64xi1>, vector<128x64xf32>
    %33 = arith.truncf %32 : vector<128x64xf32> to vector<128x64xbf16>
    %c0_15 = arith.constant 0 : index
    %c0_16 = arith.constant 0 : index
    %34 = vector.load %arg4[%c0_15, %c0_16] : memref<1152x128xbf16, #tpu.memory_space<vmem>>, vector<1152x128xbf16>
    %cst_17 = arith.constant dense<0.000000e+00> : vector<1152x64xf32>
    %35 = tpu.matmul %34, %33, %cst_17 {dimension_numbers = #tpu.dot_dimension_numbers<[1], [0], [0], [1], [0, 0, 1, 1], [], []>} : vector<1152x128xbf16>, vector<128x64xbf16>, vector<1152x64xf32> -> vector<1152x64xf32>
    %36 = arith.truncf %35 : vector<1152x64xf32> to vector<1152x64xbf16>
    %cst_18 = arith.constant 0.000000e+00 : f32
    %37 = vector.broadcast %cst_18 : f32 to vector<128x64xf32>
    %38 = vector.extract_strided_slice %36 {offsets = [0, 0], sizes = [128, 64], strides = [1, 1]} : vector<1152x64xbf16> to vector<128x64xbf16>
    %c0_19 = arith.constant 0 : index
    %c0_20 = arith.constant 0 : index
    %c0_21 = arith.constant 0 : index
    %39 = vector.load %arg5[%c0_19, %c0_20, %c0_21] : memref<9x64x64xbf16, #tpu.memory_space<vmem>>, vector<1x64x64xbf16>
    %40 = vector.shape_cast %39 : vector<1x64x64xbf16> to vector<64x64xbf16>
    %cst_22 = arith.constant dense<0.000000e+00> : vector<128x64xf32>
    %41 = tpu.matmul %38, %40, %cst_22 {dimension_numbers = #tpu.dot_dimension_numbers<[1], [0], [0], [1], [0, 0, 1, 1], [], []>} : vector<128x64xbf16>, vector<64x64xbf16>, vector<128x64xf32> -> vector<128x64xf32>
    %42 = arith.addf %37, %41 : vector<128x64xf32>
    %43 = vector.extract_strided_slice %36 {offsets = [128, 0], sizes = [128, 64], strides = [1, 1]} : vector<1152x64xbf16> to vector<128x64xbf16>
    %c1 = arith.constant 1 : index
    %c0_23 = arith.constant 0 : index
    %c0_24 = arith.constant 0 : index
    %44 = vector.load %arg5[%c1, %c0_23, %c0_24] : memref<9x64x64xbf16, #tpu.memory_space<vmem>>, vector<1x64x64xbf16>
    %45 = vector.shape_cast %44 : vector<1x64x64xbf16> to vector<64x64xbf16>
    %cst_25 = arith.constant dense<0.000000e+00> : vector<128x64xf32>
    %46 = tpu.matmul %43, %45, %cst_25 {dimension_numbers = #tpu.dot_dimension_numbers<[1], [0], [0], [1], [0, 0, 1, 1], [], []>} : vector<128x64xbf16>, vector<64x64xbf16>, vector<128x64xf32> -> vector<128x64xf32>
    %47 = arith.addf %42, %46 : vector<128x64xf32>
    %48 = vector.extract_strided_slice %36 {offsets = [256, 0], sizes = [128, 64], strides = [1, 1]} : vector<1152x64xbf16> to vector<128x64xbf16>
    %c2 = arith.constant 2 : index
    %c0_26 = arith.constant 0 : index
    %c0_27 = arith.constant 0 : index
    %49 = vector.load %arg5[%c2, %c0_26, %c0_27] : memref<9x64x64xbf16, #tpu.memory_space<vmem>>, vector<1x64x64xbf16>
    %50 = vector.shape_cast %49 : vector<1x64x64xbf16> to vector<64x64xbf16>
    %cst_28 = arith.constant dense<0.000000e+00> : vector<128x64xf32>
    %51 = tpu.matmul %48, %50, %cst_28 {dimension_numbers = #tpu.dot_dimension_numbers<[1], [0], [0], [1], [0, 0, 1, 1], [], []>} : vector<128x64xbf16>, vector<64x64xbf16>, vector<128x64xf32> -> vector<128x64xf32>
    %52 = arith.addf %47, %51 : vector<128x64xf32>
    %53 = vector.extract_strided_slice %36 {offsets = [384, 0], sizes = [128, 64], strides = [1, 1]} : vector<1152x64xbf16> to vector<128x64xbf16>
    %c3 = arith.constant 3 : index
    %c0_29 = arith.constant 0 : index
    %c0_30 = arith.constant 0 : index
    %54 = vector.load %arg5[%c3, %c0_29, %c0_30] : memref<9x64x64xbf16, #tpu.memory_space<vmem>>, vector<1x64x64xbf16>
    %55 = vector.shape_cast %54 : vector<1x64x64xbf16> to vector<64x64xbf16>
    %cst_31 = arith.constant dense<0.000000e+00> : vector<128x64xf32>
    %56 = tpu.matmul %53, %55, %cst_31 {dimension_numbers = #tpu.dot_dimension_numbers<[1], [0], [0], [1], [0, 0, 1, 1], [], []>} : vector<128x64xbf16>, vector<64x64xbf16>, vector<128x64xf32> -> vector<128x64xf32>
    %57 = arith.addf %52, %56 : vector<128x64xf32>
    %58 = vector.extract_strided_slice %36 {offsets = [512, 0], sizes = [128, 64], strides = [1, 1]} : vector<1152x64xbf16> to vector<128x64xbf16>
    %c4 = arith.constant 4 : index
    %c0_32 = arith.constant 0 : index
    %c0_33 = arith.constant 0 : index
    %59 = vector.load %arg5[%c4, %c0_32, %c0_33] : memref<9x64x64xbf16, #tpu.memory_space<vmem>>, vector<1x64x64xbf16>
    %60 = vector.shape_cast %59 : vector<1x64x64xbf16> to vector<64x64xbf16>
    %cst_34 = arith.constant dense<0.000000e+00> : vector<128x64xf32>
    %61 = tpu.matmul %58, %60, %cst_34 {dimension_numbers = #tpu.dot_dimension_numbers<[1], [0], [0], [1], [0, 0, 1, 1], [], []>} : vector<128x64xbf16>, vector<64x64xbf16>, vector<128x64xf32> -> vector<128x64xf32>
    %62 = arith.addf %57, %61 : vector<128x64xf32>
    %63 = vector.extract_strided_slice %36 {offsets = [640, 0], sizes = [128, 64], strides = [1, 1]} : vector<1152x64xbf16> to vector<128x64xbf16>
    %c5 = arith.constant 5 : index
    %c0_35 = arith.constant 0 : index
    %c0_36 = arith.constant 0 : index
    %64 = vector.load %arg5[%c5, %c0_35, %c0_36] : memref<9x64x64xbf16, #tpu.memory_space<vmem>>, vector<1x64x64xbf16>
    %65 = vector.shape_cast %64 : vector<1x64x64xbf16> to vector<64x64xbf16>
    %cst_37 = arith.constant dense<0.000000e+00> : vector<128x64xf32>
    %66 = tpu.matmul %63, %65, %cst_37 {dimension_numbers = #tpu.dot_dimension_numbers<[1], [0], [0], [1], [0, 0, 1, 1], [], []>} : vector<128x64xbf16>, vector<64x64xbf16>, vector<128x64xf32> -> vector<128x64xf32>
    %67 = arith.addf %62, %66 : vector<128x64xf32>
    %68 = vector.extract_strided_slice %36 {offsets = [768, 0], sizes = [128, 64], strides = [1, 1]} : vector<1152x64xbf16> to vector<128x64xbf16>
    %c6 = arith.constant 6 : index
    %c0_38 = arith.constant 0 : index
    %c0_39 = arith.constant 0 : index
    %69 = vector.load %arg5[%c6, %c0_38, %c0_39] : memref<9x64x64xbf16, #tpu.memory_space<vmem>>, vector<1x64x64xbf16>
    %70 = vector.shape_cast %69 : vector<1x64x64xbf16> to vector<64x64xbf16>
    %cst_40 = arith.constant dense<0.000000e+00> : vector<128x64xf32>
    %71 = tpu.matmul %68, %70, %cst_40 {dimension_numbers = #tpu.dot_dimension_numbers<[1], [0], [0], [1], [0, 0, 1, 1], [], []>} : vector<128x64xbf16>, vector<64x64xbf16>, vector<128x64xf32> -> vector<128x64xf32>
    %72 = arith.addf %67, %71 : vector<128x64xf32>
    %73 = vector.extract_strided_slice %36 {offsets = [896, 0], sizes = [128, 64], strides = [1, 1]} : vector<1152x64xbf16> to vector<128x64xbf16>
    %c7 = arith.constant 7 : index
    %c0_41 = arith.constant 0 : index
    %c0_42 = arith.constant 0 : index
    %74 = vector.load %arg5[%c7, %c0_41, %c0_42] : memref<9x64x64xbf16, #tpu.memory_space<vmem>>, vector<1x64x64xbf16>
    %75 = vector.shape_cast %74 : vector<1x64x64xbf16> to vector<64x64xbf16>
    %cst_43 = arith.constant dense<0.000000e+00> : vector<128x64xf32>
    %76 = tpu.matmul %73, %75, %cst_43 {dimension_numbers = #tpu.dot_dimension_numbers<[1], [0], [0], [1], [0, 0, 1, 1], [], []>} : vector<128x64xbf16>, vector<64x64xbf16>, vector<128x64xf32> -> vector<128x64xf32>
    %77 = arith.addf %72, %76 : vector<128x64xf32>
    %78 = vector.extract_strided_slice %36 {offsets = [1024, 0], sizes = [128, 64], strides = [1, 1]} : vector<1152x64xbf16> to vector<128x64xbf16>
    %c8 = arith.constant 8 : index
    %c0_44 = arith.constant 0 : index
    %c0_45 = arith.constant 0 : index
    %79 = vector.load %arg5[%c8, %c0_44, %c0_45] : memref<9x64x64xbf16, #tpu.memory_space<vmem>>, vector<1x64x64xbf16>
    %80 = vector.shape_cast %79 : vector<1x64x64xbf16> to vector<64x64xbf16>
    %cst_46 = arith.constant dense<0.000000e+00> : vector<128x64xf32>
    %81 = tpu.matmul %78, %80, %cst_46 {dimension_numbers = #tpu.dot_dimension_numbers<[1], [0], [0], [1], [0, 0, 1, 1], [], []>} : vector<128x64xbf16>, vector<64x64xbf16>, vector<128x64xf32> -> vector<128x64xf32>
    %82 = arith.addf %77, %81 : vector<128x64xf32>
    %cst_47 = arith.constant dense<0.000000e+00> : vector<64xf32>
    %83 = vector.multi_reduction <add>, %82, %cst_47 [0] : vector<128x64xf32> to vector<64xf32>
    %84 = vector.shape_cast %83 : vector<64xf32> to vector<1x64xf32>
    %cst_48 = arith.constant 7.812500e-03 : f32
    %85 = vector.broadcast %cst_48 : f32 to vector<1x64xf32>
    %86 = arith.mulf %84, %85 : vector<1x64xf32>
    %87 = arith.mulf %82, %82 : vector<128x64xf32>
    %cst_49 = arith.constant dense<0.000000e+00> : vector<64xf32>
    %88 = vector.multi_reduction <add>, %87, %cst_49 [0] : vector<128x64xf32> to vector<64xf32>
    %89 = vector.shape_cast %88 : vector<64xf32> to vector<1x64xf32>
    %cst_50 = arith.constant 7.812500e-03 : f32
    %90 = vector.broadcast %cst_50 : f32 to vector<1x64xf32>
    %91 = arith.mulf %89, %90 : vector<1x64xf32>
    %92 = arith.mulf %86, %86 : vector<1x64xf32>
    %93 = arith.subf %91, %92 : vector<1x64xf32>
    %cst_51 = arith.constant 0.000000e+00 : f32
    %94 = vector.broadcast %cst_51 : f32 to vector<1x64xf32>
    %95 = arith.maximumf %93, %94 : vector<1x64xf32>
    %cst_52 = arith.constant 9.99999974E-6 : f32
    %96 = vector.broadcast %cst_52 : f32 to vector<1x64xf32>
    %97 = arith.addf %95, %96 : vector<1x64xf32>
    %98 = math.rsqrt %97 : vector<1x64xf32>
    %c0_53 = arith.constant 0 : index
    %c0_54 = arith.constant 0 : index
    %99 = vector.load %arg6[%c0_53, %c0_54] : memref<1x64xf32, #tpu.memory_space<vmem>>, vector<1x64xf32>
    %100 = arith.mulf %98, %99 : vector<1x64xf32>
    %c0_55 = arith.constant 0 : index
    %c0_56 = arith.constant 0 : index
    %101 = vector.load %arg7[%c0_55, %c0_56] : memref<1x64xf32, #tpu.memory_space<vmem>>, vector<1x64xf32>
    %102 = arith.mulf %86, %100 : vector<1x64xf32>
    %103 = arith.subf %101, %102 : vector<1x64xf32>
    %104 = vector.broadcast %100 : vector<1x64xf32> to vector<128x64xf32>
    %105 = arith.mulf %82, %104 : vector<128x64xf32>
    %106 = vector.broadcast %103 : vector<1x64xf32> to vector<128x64xf32>
    %107 = arith.addf %105, %106 : vector<128x64xf32>
    %cst_57 = arith.constant 0.000000e+00 : f32
    %108 = vector.broadcast %cst_57 : f32 to vector<128x64xf32>
    %109 = arith.cmpf oge, %107, %108 : vector<128x64xf32>
    %cst_58 = arith.constant 0.00999999977 : f32
    %110 = vector.broadcast %cst_58 : f32 to vector<128x64xf32>
    %111 = arith.mulf %110, %107 : vector<128x64xf32>
    %112 = arith.select %109, %107, %111 : vector<128x64xi1>, vector<128x64xf32>
    %113 = arith.truncf %112 : vector<128x64xf32> to vector<128x64xbf16>
    %c0_59 = arith.constant 0 : index
    %c0_60 = arith.constant 0 : index
    %114 = vector.load %arg8[%c0_59, %c0_60] : memref<288x128xbf16, #tpu.memory_space<vmem>>, vector<288x128xbf16>
    %cst_61 = arith.constant dense<0.000000e+00> : vector<288x64xf32>
    %115 = tpu.matmul %114, %113, %cst_61 {dimension_numbers = #tpu.dot_dimension_numbers<[1], [0], [0], [1], [0, 0, 1, 1], [], []>} : vector<288x128xbf16>, vector<128x64xbf16>, vector<288x64xf32> -> vector<288x64xf32>
    %116 = arith.truncf %115 : vector<288x64xf32> to vector<288x64xbf16>
    %cst_62 = arith.constant 0.000000e+00 : f32
    %117 = vector.broadcast %cst_62 : f32 to vector<32x128xf32>
    %118 = vector.extract_strided_slice %116 {offsets = [0, 0], sizes = [32, 64], strides = [1, 1]} : vector<288x64xbf16> to vector<32x64xbf16>
    %c0_63 = arith.constant 0 : index
    %c0_64 = arith.constant 0 : index
    %c0_65 = arith.constant 0 : index
    %119 = vector.load %arg9[%c0_63, %c0_64, %c0_65] : memref<9x64x128xbf16, #tpu.memory_space<vmem>>, vector<1x64x128xbf16>
    %120 = vector.shape_cast %119 : vector<1x64x128xbf16> to vector<64x128xbf16>
    %cst_66 = arith.constant dense<0.000000e+00> : vector<32x128xf32>
    %121 = tpu.matmul %118, %120, %cst_66 {dimension_numbers = #tpu.dot_dimension_numbers<[1], [0], [0], [1], [0, 0, 1, 1], [], []>} : vector<32x64xbf16>, vector<64x128xbf16>, vector<32x128xf32> -> vector<32x128xf32>
    %122 = arith.addf %117, %121 : vector<32x128xf32>
    %123 = vector.extract_strided_slice %116 {offsets = [32, 0], sizes = [32, 64], strides = [1, 1]} : vector<288x64xbf16> to vector<32x64xbf16>
    %c1_67 = arith.constant 1 : index
    %c0_68 = arith.constant 0 : index
    %c0_69 = arith.constant 0 : index
    %124 = vector.load %arg9[%c1_67, %c0_68, %c0_69] : memref<9x64x128xbf16, #tpu.memory_space<vmem>>, vector<1x64x128xbf16>
    %125 = vector.shape_cast %124 : vector<1x64x128xbf16> to vector<64x128xbf16>
    %cst_70 = arith.constant dense<0.000000e+00> : vector<32x128xf32>
    %126 = tpu.matmul %123, %125, %cst_70 {dimension_numbers = #tpu.dot_dimension_numbers<[1], [0], [0], [1], [0, 0, 1, 1], [], []>} : vector<32x64xbf16>, vector<64x128xbf16>, vector<32x128xf32> -> vector<32x128xf32>
    %127 = arith.addf %122, %126 : vector<32x128xf32>
    %128 = vector.extract_strided_slice %116 {offsets = [64, 0], sizes = [32, 64], strides = [1, 1]} : vector<288x64xbf16> to vector<32x64xbf16>
    %c2_71 = arith.constant 2 : index
    %c0_72 = arith.constant 0 : index
    %c0_73 = arith.constant 0 : index
    %129 = vector.load %arg9[%c2_71, %c0_72, %c0_73] : memref<9x64x128xbf16, #tpu.memory_space<vmem>>, vector<1x64x128xbf16>
    %130 = vector.shape_cast %129 : vector<1x64x128xbf16> to vector<64x128xbf16>
    %cst_74 = arith.constant dense<0.000000e+00> : vector<32x128xf32>
    %131 = tpu.matmul %128, %130, %cst_74 {dimension_numbers = #tpu.dot_dimension_numbers<[1], [0], [0], [1], [0, 0, 1, 1], [], []>} : vector<32x64xbf16>, vector<64x128xbf16>, vector<32x128xf32> -> vector<32x128xf32>
    %132 = arith.addf %127, %131 : vector<32x128xf32>
    %133 = vector.extract_strided_slice %116 {offsets = [96, 0], sizes = [32, 64], strides = [1, 1]} : vector<288x64xbf16> to vector<32x64xbf16>
    %c3_75 = arith.constant 3 : index
    %c0_76 = arith.constant 0 : index
    %c0_77 = arith.constant 0 : index
    %134 = vector.load %arg9[%c3_75, %c0_76, %c0_77] : memref<9x64x128xbf16, #tpu.memory_space<vmem>>, vector<1x64x128xbf16>
    %135 = vector.shape_cast %134 : vector<1x64x128xbf16> to vector<64x128xbf16>
    %cst_78 = arith.constant dense<0.000000e+00> : vector<32x128xf32>
    %136 = tpu.matmul %133, %135, %cst_78 {dimension_numbers = #tpu.dot_dimension_numbers<[1], [0], [0], [1], [0, 0, 1, 1], [], []>} : vector<32x64xbf16>, vector<64x128xbf16>, vector<32x128xf32> -> vector<32x128xf32>
    %137 = arith.addf %132, %136 : vector<32x128xf32>
    %138 = vector.extract_strided_slice %116 {offsets = [128, 0], sizes = [32, 64], strides = [1, 1]} : vector<288x64xbf16> to vector<32x64xbf16>
    %c4_79 = arith.constant 4 : index
    %c0_80 = arith.constant 0 : index
    %c0_81 = arith.constant 0 : index
    %139 = vector.load %arg9[%c4_79, %c0_80, %c0_81] : memref<9x64x128xbf16, #tpu.memory_space<vmem>>, vector<1x64x128xbf16>
    %140 = vector.shape_cast %139 : vector<1x64x128xbf16> to vector<64x128xbf16>
    %cst_82 = arith.constant dense<0.000000e+00> : vector<32x128xf32>
    %141 = tpu.matmul %138, %140, %cst_82 {dimension_numbers = #tpu.dot_dimension_numbers<[1], [0], [0], [1], [0, 0, 1, 1], [], []>} : vector<32x64xbf16>, vector<64x128xbf16>, vector<32x128xf32> -> vector<32x128xf32>
    %142 = arith.addf %137, %141 : vector<32x128xf32>
    %143 = vector.extract_strided_slice %116 {offsets = [160, 0], sizes = [32, 64], strides = [1, 1]} : vector<288x64xbf16> to vector<32x64xbf16>
    %c5_83 = arith.constant 5 : index
    %c0_84 = arith.constant 0 : index
    %c0_85 = arith.constant 0 : index
    %144 = vector.load %arg9[%c5_83, %c0_84, %c0_85] : memref<9x64x128xbf16, #tpu.memory_space<vmem>>, vector<1x64x128xbf16>
    %145 = vector.shape_cast %144 : vector<1x64x128xbf16> to vector<64x128xbf16>
    %cst_86 = arith.constant dense<0.000000e+00> : vector<32x128xf32>
    %146 = tpu.matmul %143, %145, %cst_86 {dimension_numbers = #tpu.dot_dimension_numbers<[1], [0], [0], [1], [0, 0, 1, 1], [], []>} : vector<32x64xbf16>, vector<64x128xbf16>, vector<32x128xf32> -> vector<32x128xf32>
    %147 = arith.addf %142, %146 : vector<32x128xf32>
    %148 = vector.extract_strided_slice %116 {offsets = [192, 0], sizes = [32, 64], strides = [1, 1]} : vector<288x64xbf16> to vector<32x64xbf16>
    %c6_87 = arith.constant 6 : index
    %c0_88 = arith.constant 0 : index
    %c0_89 = arith.constant 0 : index
    %149 = vector.load %arg9[%c6_87, %c0_88, %c0_89] : memref<9x64x128xbf16, #tpu.memory_space<vmem>>, vector<1x64x128xbf16>
    %150 = vector.shape_cast %149 : vector<1x64x128xbf16> to vector<64x128xbf16>
    %cst_90 = arith.constant dense<0.000000e+00> : vector<32x128xf32>
    %151 = tpu.matmul %148, %150, %cst_90 {dimension_numbers = #tpu.dot_dimension_numbers<[1], [0], [0], [1], [0, 0, 1, 1], [], []>} : vector<32x64xbf16>, vector<64x128xbf16>, vector<32x128xf32> -> vector<32x128xf32>
    %152 = arith.addf %147, %151 : vector<32x128xf32>
    %153 = vector.extract_strided_slice %116 {offsets = [224, 0], sizes = [32, 64], strides = [1, 1]} : vector<288x64xbf16> to vector<32x64xbf16>
    %c7_91 = arith.constant 7 : index
    %c0_92 = arith.constant 0 : index
    %c0_93 = arith.constant 0 : index
    %154 = vector.load %arg9[%c7_91, %c0_92, %c0_93] : memref<9x64x128xbf16, #tpu.memory_space<vmem>>, vector<1x64x128xbf16>
    %155 = vector.shape_cast %154 : vector<1x64x128xbf16> to vector<64x128xbf16>
    %cst_94 = arith.constant dense<0.000000e+00> : vector<32x128xf32>
    %156 = tpu.matmul %153, %155, %cst_94 {dimension_numbers = #tpu.dot_dimension_numbers<[1], [0], [0], [1], [0, 0, 1, 1], [], []>} : vector<32x64xbf16>, vector<64x128xbf16>, vector<32x128xf32> -> vector<32x128xf32>
    %157 = arith.addf %152, %156 : vector<32x128xf32>
    %158 = vector.extract_strided_slice %116 {offsets = [256, 0], sizes = [32, 64], strides = [1, 1]} : vector<288x64xbf16> to vector<32x64xbf16>
    %c8_95 = arith.constant 8 : index
    %c0_96 = arith.constant 0 : index
    %c0_97 = arith.constant 0 : index
    %159 = vector.load %arg9[%c8_95, %c0_96, %c0_97] : memref<9x64x128xbf16, #tpu.memory_space<vmem>>, vector<1x64x128xbf16>
    %160 = vector.shape_cast %159 : vector<1x64x128xbf16> to vector<64x128xbf16>
    %cst_98 = arith.constant dense<0.000000e+00> : vector<32x128xf32>
    %161 = tpu.matmul %158, %160, %cst_98 {dimension_numbers = #tpu.dot_dimension_numbers<[1], [0], [0], [1], [0, 0, 1, 1], [], []>} : vector<32x64xbf16>, vector<64x128xbf16>, vector<32x128xf32> -> vector<32x128xf32>
    %162 = arith.addf %157, %161 : vector<32x128xf32>
    %cst_99 = arith.constant dense<0.000000e+00> : vector<128xf32>
    %163 = vector.multi_reduction <add>, %162, %cst_99 [0] : vector<32x128xf32> to vector<128xf32>
    %164 = vector.shape_cast %163 : vector<128xf32> to vector<1x128xf32>
    %cst_100 = arith.constant 3.125000e-02 : f32
    %165 = vector.broadcast %cst_100 : f32 to vector<1x128xf32>
    %166 = arith.mulf %164, %165 : vector<1x128xf32>
    %167 = arith.mulf %162, %162 : vector<32x128xf32>
    %cst_101 = arith.constant dense<0.000000e+00> : vector<128xf32>
    %168 = vector.multi_reduction <add>, %167, %cst_101 [0] : vector<32x128xf32> to vector<128xf32>
    %169 = vector.shape_cast %168 : vector<128xf32> to vector<1x128xf32>
    %cst_102 = arith.constant 3.125000e-02 : f32
    %170 = vector.broadcast %cst_102 : f32 to vector<1x128xf32>
    %171 = arith.mulf %169, %170 : vector<1x128xf32>
    %172 = arith.mulf %166, %166 : vector<1x128xf32>
    %173 = arith.subf %171, %172 : vector<1x128xf32>
    %cst_103 = arith.constant 0.000000e+00 : f32
    %174 = vector.broadcast %cst_103 : f32 to vector<1x128xf32>
    %175 = arith.maximumf %173, %174 : vector<1x128xf32>
    %cst_104 = arith.constant 9.99999974E-6 : f32
    %176 = vector.broadcast %cst_104 : f32 to vector<1x128xf32>
    %177 = arith.addf %175, %176 : vector<1x128xf32>
    %178 = math.rsqrt %177 : vector<1x128xf32>
    %c0_105 = arith.constant 0 : index
    %c0_106 = arith.constant 0 : index
    %179 = vector.load %arg10[%c0_105, %c0_106] : memref<1x128xf32, #tpu.memory_space<vmem>>, vector<1x128xf32>
    %180 = arith.mulf %178, %179 : vector<1x128xf32>
    %c0_107 = arith.constant 0 : index
    %c0_108 = arith.constant 0 : index
    %181 = vector.load %arg11[%c0_107, %c0_108] : memref<1x128xf32, #tpu.memory_space<vmem>>, vector<1x128xf32>
    %182 = arith.mulf %166, %180 : vector<1x128xf32>
    %183 = arith.subf %181, %182 : vector<1x128xf32>
    %184 = vector.broadcast %180 : vector<1x128xf32> to vector<32x128xf32>
    %185 = arith.mulf %162, %184 : vector<32x128xf32>
    %186 = vector.broadcast %183 : vector<1x128xf32> to vector<32x128xf32>
    %187 = arith.addf %185, %186 : vector<32x128xf32>
    %cst_109 = arith.constant 0.000000e+00 : f32
    %188 = vector.broadcast %cst_109 : f32 to vector<32x128xf32>
    %189 = arith.cmpf oge, %187, %188 : vector<32x128xf32>
    %cst_110 = arith.constant 0.00999999977 : f32
    %190 = vector.broadcast %cst_110 : f32 to vector<32x128xf32>
    %191 = arith.mulf %190, %187 : vector<32x128xf32>
    %192 = arith.select %189, %187, %191 : vector<32x128xi1>, vector<32x128xf32>
    %193 = arith.truncf %192 : vector<32x128xf32> to vector<32x128xbf16>
    %c0_111 = arith.constant 0 : index
    %c0_112 = arith.constant 0 : index
    %194 = vector.load %arg12[%c0_111, %c0_112] : memref<288x32xbf16, #tpu.memory_space<vmem>>, vector<288x32xbf16>
    %cst_113 = arith.constant dense<0.000000e+00> : vector<288x128xf32>
    %195 = tpu.matmul %194, %193, %cst_113 {dimension_numbers = #tpu.dot_dimension_numbers<[1], [0], [0], [1], [0, 0, 1, 1], [], []>} : vector<288x32xbf16>, vector<32x128xbf16>, vector<288x128xf32> -> vector<288x128xf32>
    %196 = arith.truncf %195 : vector<288x128xf32> to vector<288x128xbf16>
    %cst_114 = arith.constant 0.000000e+00 : f32
    %197 = vector.broadcast %cst_114 : f32 to vector<32x128xf32>
    %198 = vector.extract_strided_slice %196 {offsets = [0, 0], sizes = [32, 128], strides = [1, 1]} : vector<288x128xbf16> to vector<32x128xbf16>
    %c0_115 = arith.constant 0 : index
    %c0_116 = arith.constant 0 : index
    %c0_117 = arith.constant 0 : index
    %199 = vector.load %arg13[%c0_115, %c0_116, %c0_117] : memref<9x128x128xbf16, #tpu.memory_space<vmem>>, vector<1x128x128xbf16>
    %200 = vector.shape_cast %199 : vector<1x128x128xbf16> to vector<128x128xbf16>
    %cst_118 = arith.constant dense<0.000000e+00> : vector<32x128xf32>
    %201 = tpu.matmul %198, %200, %cst_118 {dimension_numbers = #tpu.dot_dimension_numbers<[1], [0], [0], [1], [0, 0, 1, 1], [], []>} : vector<32x128xbf16>, vector<128x128xbf16>, vector<32x128xf32> -> vector<32x128xf32>
    %202 = arith.addf %197, %201 : vector<32x128xf32>
    %203 = vector.extract_strided_slice %196 {offsets = [32, 0], sizes = [32, 128], strides = [1, 1]} : vector<288x128xbf16> to vector<32x128xbf16>
    %c1_119 = arith.constant 1 : index
    %c0_120 = arith.constant 0 : index
    %c0_121 = arith.constant 0 : index
    %204 = vector.load %arg13[%c1_119, %c0_120, %c0_121] : memref<9x128x128xbf16, #tpu.memory_space<vmem>>, vector<1x128x128xbf16>
    %205 = vector.shape_cast %204 : vector<1x128x128xbf16> to vector<128x128xbf16>
    %cst_122 = arith.constant dense<0.000000e+00> : vector<32x128xf32>
    %206 = tpu.matmul %203, %205, %cst_122 {dimension_numbers = #tpu.dot_dimension_numbers<[1], [0], [0], [1], [0, 0, 1, 1], [], []>} : vector<32x128xbf16>, vector<128x128xbf16>, vector<32x128xf32> -> vector<32x128xf32>
    %207 = arith.addf %202, %206 : vector<32x128xf32>
    %208 = vector.extract_strided_slice %196 {offsets = [64, 0], sizes = [32, 128], strides = [1, 1]} : vector<288x128xbf16> to vector<32x128xbf16>
    %c2_123 = arith.constant 2 : index
    %c0_124 = arith.constant 0 : index
    %c0_125 = arith.constant 0 : index
    %209 = vector.load %arg13[%c2_123, %c0_124, %c0_125] : memref<9x128x128xbf16, #tpu.memory_space<vmem>>, vector<1x128x128xbf16>
    %210 = vector.shape_cast %209 : vector<1x128x128xbf16> to vector<128x128xbf16>
    %cst_126 = arith.constant dense<0.000000e+00> : vector<32x128xf32>
    %211 = tpu.matmul %208, %210, %cst_126 {dimension_numbers = #tpu.dot_dimension_numbers<[1], [0], [0], [1], [0, 0, 1, 1], [], []>} : vector<32x128xbf16>, vector<128x128xbf16>, vector<32x128xf32> -> vector<32x128xf32>
    %212 = arith.addf %207, %211 : vector<32x128xf32>
    %213 = vector.extract_strided_slice %196 {offsets = [96, 0], sizes = [32, 128], strides = [1, 1]} : vector<288x128xbf16> to vector<32x128xbf16>
    %c3_127 = arith.constant 3 : index
    %c0_128 = arith.constant 0 : index
    %c0_129 = arith.constant 0 : index
    %214 = vector.load %arg13[%c3_127, %c0_128, %c0_129] : memref<9x128x128xbf16, #tpu.memory_space<vmem>>, vector<1x128x128xbf16>
    %215 = vector.shape_cast %214 : vector<1x128x128xbf16> to vector<128x128xbf16>
    %cst_130 = arith.constant dense<0.000000e+00> : vector<32x128xf32>
    %216 = tpu.matmul %213, %215, %cst_130 {dimension_numbers = #tpu.dot_dimension_numbers<[1], [0], [0], [1], [0, 0, 1, 1], [], []>} : vector<32x128xbf16>, vector<128x128xbf16>, vector<32x128xf32> -> vector<32x128xf32>
    %217 = arith.addf %212, %216 : vector<32x128xf32>
    %218 = vector.extract_strided_slice %196 {offsets = [128, 0], sizes = [32, 128], strides = [1, 1]} : vector<288x128xbf16> to vector<32x128xbf16>
    %c4_131 = arith.constant 4 : index
    %c0_132 = arith.constant 0 : index
    %c0_133 = arith.constant 0 : index
    %219 = vector.load %arg13[%c4_131, %c0_132, %c0_133] : memref<9x128x128xbf16, #tpu.memory_space<vmem>>, vector<1x128x128xbf16>
    %220 = vector.shape_cast %219 : vector<1x128x128xbf16> to vector<128x128xbf16>
    %cst_134 = arith.constant dense<0.000000e+00> : vector<32x128xf32>
    %221 = tpu.matmul %218, %220, %cst_134 {dimension_numbers = #tpu.dot_dimension_numbers<[1], [0], [0], [1], [0, 0, 1, 1], [], []>} : vector<32x128xbf16>, vector<128x128xbf16>, vector<32x128xf32> -> vector<32x128xf32>
    %222 = arith.addf %217, %221 : vector<32x128xf32>
    %223 = vector.extract_strided_slice %196 {offsets = [160, 0], sizes = [32, 128], strides = [1, 1]} : vector<288x128xbf16> to vector<32x128xbf16>
    %c5_135 = arith.constant 5 : index
    %c0_136 = arith.constant 0 : index
    %c0_137 = arith.constant 0 : index
    %224 = vector.load %arg13[%c5_135, %c0_136, %c0_137] : memref<9x128x128xbf16, #tpu.memory_space<vmem>>, vector<1x128x128xbf16>
    %225 = vector.shape_cast %224 : vector<1x128x128xbf16> to vector<128x128xbf16>
    %cst_138 = arith.constant dense<0.000000e+00> : vector<32x128xf32>
    %226 = tpu.matmul %223, %225, %cst_138 {dimension_numbers = #tpu.dot_dimension_numbers<[1], [0], [0], [1], [0, 0, 1, 1], [], []>} : vector<32x128xbf16>, vector<128x128xbf16>, vector<32x128xf32> -> vector<32x128xf32>
    %227 = arith.addf %222, %226 : vector<32x128xf32>
    %228 = vector.extract_strided_slice %196 {offsets = [192, 0], sizes = [32, 128], strides = [1, 1]} : vector<288x128xbf16> to vector<32x128xbf16>
    %c6_139 = arith.constant 6 : index
    %c0_140 = arith.constant 0 : index
    %c0_141 = arith.constant 0 : index
    %229 = vector.load %arg13[%c6_139, %c0_140, %c0_141] : memref<9x128x128xbf16, #tpu.memory_space<vmem>>, vector<1x128x128xbf16>
    %230 = vector.shape_cast %229 : vector<1x128x128xbf16> to vector<128x128xbf16>
    %cst_142 = arith.constant dense<0.000000e+00> : vector<32x128xf32>
    %231 = tpu.matmul %228, %230, %cst_142 {dimension_numbers = #tpu.dot_dimension_numbers<[1], [0], [0], [1], [0, 0, 1, 1], [], []>} : vector<32x128xbf16>, vector<128x128xbf16>, vector<32x128xf32> -> vector<32x128xf32>
    %232 = arith.addf %227, %231 : vector<32x128xf32>
    %233 = vector.extract_strided_slice %196 {offsets = [224, 0], sizes = [32, 128], strides = [1, 1]} : vector<288x128xbf16> to vector<32x128xbf16>
    %c7_143 = arith.constant 7 : index
    %c0_144 = arith.constant 0 : index
    %c0_145 = arith.constant 0 : index
    %234 = vector.load %arg13[%c7_143, %c0_144, %c0_145] : memref<9x128x128xbf16, #tpu.memory_space<vmem>>, vector<1x128x128xbf16>
    %235 = vector.shape_cast %234 : vector<1x128x128xbf16> to vector<128x128xbf16>
    %cst_146 = arith.constant dense<0.000000e+00> : vector<32x128xf32>
    %236 = tpu.matmul %233, %235, %cst_146 {dimension_numbers = #tpu.dot_dimension_numbers<[1], [0], [0], [1], [0, 0, 1, 1], [], []>} : vector<32x128xbf16>, vector<128x128xbf16>, vector<32x128xf32> -> vector<32x128xf32>
    %237 = arith.addf %232, %236 : vector<32x128xf32>
    %238 = vector.extract_strided_slice %196 {offsets = [256, 0], sizes = [32, 128], strides = [1, 1]} : vector<288x128xbf16> to vector<32x128xbf16>
    %c8_147 = arith.constant 8 : index
    %c0_148 = arith.constant 0 : index
    %c0_149 = arith.constant 0 : index
    %239 = vector.load %arg13[%c8_147, %c0_148, %c0_149] : memref<9x128x128xbf16, #tpu.memory_space<vmem>>, vector<1x128x128xbf16>
    %240 = vector.shape_cast %239 : vector<1x128x128xbf16> to vector<128x128xbf16>
    %cst_150 = arith.constant dense<0.000000e+00> : vector<32x128xf32>
    %241 = tpu.matmul %238, %240, %cst_150 {dimension_numbers = #tpu.dot_dimension_numbers<[1], [0], [0], [1], [0, 0, 1, 1], [], []>} : vector<32x128xbf16>, vector<128x128xbf16>, vector<32x128xf32> -> vector<32x128xf32>
    %242 = arith.addf %237, %241 : vector<32x128xf32>
    %cst_151 = arith.constant dense<0.000000e+00> : vector<128xf32>
    %243 = vector.multi_reduction <add>, %242, %cst_151 [0] : vector<32x128xf32> to vector<128xf32>
    %244 = vector.shape_cast %243 : vector<128xf32> to vector<1x128xf32>
    %cst_152 = arith.constant 3.125000e-02 : f32
    %245 = vector.broadcast %cst_152 : f32 to vector<1x128xf32>
    %246 = arith.mulf %244, %245 : vector<1x128xf32>
    %247 = arith.mulf %242, %242 : vector<32x128xf32>
    %cst_153 = arith.constant dense<0.000000e+00> : vector<128xf32>
    %248 = vector.multi_reduction <add>, %247, %cst_153 [0] : vector<32x128xf32> to vector<128xf32>
    %249 = vector.shape_cast %248 : vector<128xf32> to vector<1x128xf32>
    %cst_154 = arith.constant 3.125000e-02 : f32
    %250 = vector.broadcast %cst_154 : f32 to vector<1x128xf32>
    %251 = arith.mulf %249, %250 : vector<1x128xf32>
    %252 = arith.mulf %246, %246 : vector<1x128xf32>
    %253 = arith.subf %251, %252 : vector<1x128xf32>
    %cst_155 = arith.constant 0.000000e+00 : f32
    %254 = vector.broadcast %cst_155 : f32 to vector<1x128xf32>
    %255 = arith.maximumf %253, %254 : vector<1x128xf32>
    %cst_156 = arith.constant 9.99999974E-6 : f32
    %256 = vector.broadcast %cst_156 : f32 to vector<1x128xf32>
    %257 = arith.addf %255, %256 : vector<1x128xf32>
    %258 = math.rsqrt %257 : vector<1x128xf32>
    %c0_157 = arith.constant 0 : index
    %c0_158 = arith.constant 0 : index
    %259 = vector.load %arg14[%c0_157, %c0_158] : memref<1x128xf32, #tpu.memory_space<vmem>>, vector<1x128xf32>
    %260 = arith.mulf %258, %259 : vector<1x128xf32>
    %c0_159 = arith.constant 0 : index
    %c0_160 = arith.constant 0 : index
    %261 = vector.load %arg15[%c0_159, %c0_160] : memref<1x128xf32, #tpu.memory_space<vmem>>, vector<1x128xf32>
    %262 = arith.mulf %246, %260 : vector<1x128xf32>
    %263 = arith.subf %261, %262 : vector<1x128xf32>
    %264 = vector.broadcast %260 : vector<1x128xf32> to vector<32x128xf32>
    %265 = arith.mulf %242, %264 : vector<32x128xf32>
    %266 = vector.broadcast %263 : vector<1x128xf32> to vector<32x128xf32>
    %267 = arith.addf %265, %266 : vector<32x128xf32>
    %cst_161 = arith.constant 0.000000e+00 : f32
    %268 = vector.broadcast %cst_161 : f32 to vector<32x128xf32>
    %269 = arith.cmpf oge, %267, %268 : vector<32x128xf32>
    %cst_162 = arith.constant 0.00999999977 : f32
    %270 = vector.broadcast %cst_162 : f32 to vector<32x128xf32>
    %271 = arith.mulf %270, %267 : vector<32x128xf32>
    %272 = arith.select %269, %267, %271 : vector<32x128xi1>, vector<32x128xf32>
    %273 = arith.truncf %272 : vector<32x128xf32> to vector<32x128xbf16>
    %c0_163 = arith.constant 0 : index
    %c0_164 = arith.constant 0 : index
    %274 = vector.load %arg16[%c0_163, %c0_164] : memref<72x32xbf16, #tpu.memory_space<vmem>>, vector<72x32xbf16>
    %cst_165 = arith.constant dense<0.000000e+00> : vector<72x128xf32>
    %275 = tpu.matmul %274, %273, %cst_165 {dimension_numbers = #tpu.dot_dimension_numbers<[1], [0], [0], [1], [0, 0, 1, 1], [], []>} : vector<72x32xbf16>, vector<32x128xbf16>, vector<72x128xf32> -> vector<72x128xf32>
    %276 = arith.truncf %275 : vector<72x128xf32> to vector<72x128xbf16>
    %cst_166 = arith.constant 0.000000e+00 : f32
    %277 = vector.broadcast %cst_166 : f32 to vector<8x256xf32>
    %278 = vector.extract_strided_slice %276 {offsets = [0, 0], sizes = [8, 128], strides = [1, 1]} : vector<72x128xbf16> to vector<8x128xbf16>
    %c0_167 = arith.constant 0 : index
    %c0_168 = arith.constant 0 : index
    %c0_169 = arith.constant 0 : index
    %279 = vector.load %arg17[%c0_167, %c0_168, %c0_169] : memref<9x128x256xbf16, #tpu.memory_space<vmem>>, vector<1x128x256xbf16>
    %280 = vector.shape_cast %279 : vector<1x128x256xbf16> to vector<128x256xbf16>
    %cst_170 = arith.constant dense<0.000000e+00> : vector<8x256xf32>
    %281 = tpu.matmul %278, %280, %cst_170 {dimension_numbers = #tpu.dot_dimension_numbers<[1], [0], [0], [1], [0, 0, 1, 1], [], []>} : vector<8x128xbf16>, vector<128x256xbf16>, vector<8x256xf32> -> vector<8x256xf32>
    %282 = arith.addf %277, %281 : vector<8x256xf32>
    %283 = vector.extract_strided_slice %276 {offsets = [8, 0], sizes = [8, 128], strides = [1, 1]} : vector<72x128xbf16> to vector<8x128xbf16>
    %c1_171 = arith.constant 1 : index
    %c0_172 = arith.constant 0 : index
    %c0_173 = arith.constant 0 : index
    %284 = vector.load %arg17[%c1_171, %c0_172, %c0_173] : memref<9x128x256xbf16, #tpu.memory_space<vmem>>, vector<1x128x256xbf16>
    %285 = vector.shape_cast %284 : vector<1x128x256xbf16> to vector<128x256xbf16>
    %cst_174 = arith.constant dense<0.000000e+00> : vector<8x256xf32>
    %286 = tpu.matmul %283, %285, %cst_174 {dimension_numbers = #tpu.dot_dimension_numbers<[1], [0], [0], [1], [0, 0, 1, 1], [], []>} : vector<8x128xbf16>, vector<128x256xbf16>, vector<8x256xf32> -> vector<8x256xf32>
    %287 = arith.addf %282, %286 : vector<8x256xf32>
    %288 = vector.extract_strided_slice %276 {offsets = [16, 0], sizes = [8, 128], strides = [1, 1]} : vector<72x128xbf16> to vector<8x128xbf16>
    %c2_175 = arith.constant 2 : index
    %c0_176 = arith.constant 0 : index
    %c0_177 = arith.constant 0 : index
    %289 = vector.load %arg17[%c2_175, %c0_176, %c0_177] : memref<9x128x256xbf16, #tpu.memory_space<vmem>>, vector<1x128x256xbf16>
    %290 = vector.shape_cast %289 : vector<1x128x256xbf16> to vector<128x256xbf16>
    %cst_178 = arith.constant dense<0.000000e+00> : vector<8x256xf32>
    %291 = tpu.matmul %288, %290, %cst_178 {dimension_numbers = #tpu.dot_dimension_numbers<[1], [0], [0], [1], [0, 0, 1, 1], [], []>} : vector<8x128xbf16>, vector<128x256xbf16>, vector<8x256xf32> -> vector<8x256xf32>
    %292 = arith.addf %287, %291 : vector<8x256xf32>
    %293 = vector.extract_strided_slice %276 {offsets = [24, 0], sizes = [8, 128], strides = [1, 1]} : vector<72x128xbf16> to vector<8x128xbf16>
    %c3_179 = arith.constant 3 : index
    %c0_180 = arith.constant 0 : index
    %c0_181 = arith.constant 0 : index
    %294 = vector.load %arg17[%c3_179, %c0_180, %c0_181] : memref<9x128x256xbf16, #tpu.memory_space<vmem>>, vector<1x128x256xbf16>
    %295 = vector.shape_cast %294 : vector<1x128x256xbf16> to vector<128x256xbf16>
    %cst_182 = arith.constant dense<0.000000e+00> : vector<8x256xf32>
    %296 = tpu.matmul %293, %295, %cst_182 {dimension_numbers = #tpu.dot_dimension_numbers<[1], [0], [0], [1], [0, 0, 1, 1], [], []>} : vector<8x128xbf16>, vector<128x256xbf16>, vector<8x256xf32> -> vector<8x256xf32>
    %297 = arith.addf %292, %296 : vector<8x256xf32>
    %298 = vector.extract_strided_slice %276 {offsets = [32, 0], sizes = [8, 128], strides = [1, 1]} : vector<72x128xbf16> to vector<8x128xbf16>
    %c4_183 = arith.constant 4 : index
    %c0_184 = arith.constant 0 : index
    %c0_185 = arith.constant 0 : index
    %299 = vector.load %arg17[%c4_183, %c0_184, %c0_185] : memref<9x128x256xbf16, #tpu.memory_space<vmem>>, vector<1x128x256xbf16>
    %300 = vector.shape_cast %299 : vector<1x128x256xbf16> to vector<128x256xbf16>
    %cst_186 = arith.constant dense<0.000000e+00> : vector<8x256xf32>
    %301 = tpu.matmul %298, %300, %cst_186 {dimension_numbers = #tpu.dot_dimension_numbers<[1], [0], [0], [1], [0, 0, 1, 1], [], []>} : vector<8x128xbf16>, vector<128x256xbf16>, vector<8x256xf32> -> vector<8x256xf32>
    %302 = arith.addf %297, %301 : vector<8x256xf32>
    %303 = vector.extract_strided_slice %276 {offsets = [40, 0], sizes = [8, 128], strides = [1, 1]} : vector<72x128xbf16> to vector<8x128xbf16>
    %c5_187 = arith.constant 5 : index
    %c0_188 = arith.constant 0 : index
    %c0_189 = arith.constant 0 : index
    %304 = vector.load %arg17[%c5_187, %c0_188, %c0_189] : memref<9x128x256xbf16, #tpu.memory_space<vmem>>, vector<1x128x256xbf16>
    %305 = vector.shape_cast %304 : vector<1x128x256xbf16> to vector<128x256xbf16>
    %cst_190 = arith.constant dense<0.000000e+00> : vector<8x256xf32>
    %306 = tpu.matmul %303, %305, %cst_190 {dimension_numbers = #tpu.dot_dimension_numbers<[1], [0], [0], [1], [0, 0, 1, 1], [], []>} : vector<8x128xbf16>, vector<128x256xbf16>, vector<8x256xf32> -> vector<8x256xf32>
    %307 = arith.addf %302, %306 : vector<8x256xf32>
    %308 = vector.extract_strided_slice %276 {offsets = [48, 0], sizes = [8, 128], strides = [1, 1]} : vector<72x128xbf16> to vector<8x128xbf16>
    %c6_191 = arith.constant 6 : index
    %c0_192 = arith.constant 0 : index
    %c0_193 = arith.constant 0 : index
    %309 = vector.load %arg17[%c6_191, %c0_192, %c0_193] : memref<9x128x256xbf16, #tpu.memory_space<vmem>>, vector<1x128x256xbf16>
    %310 = vector.shape_cast %309 : vector<1x128x256xbf16> to vector<128x256xbf16>
    %cst_194 = arith.constant dense<0.000000e+00> : vector<8x256xf32>
    %311 = tpu.matmul %308, %310, %cst_194 {dimension_numbers = #tpu.dot_dimension_numbers<[1], [0], [0], [1], [0, 0, 1, 1], [], []>} : vector<8x128xbf16>, vector<128x256xbf16>, vector<8x256xf32> -> vector<8x256xf32>
    %312 = arith.addf %307, %311 : vector<8x256xf32>
    %313 = vector.extract_strided_slice %276 {offsets = [56, 0], sizes = [8, 128], strides = [1, 1]} : vector<72x128xbf16> to vector<8x128xbf16>
    %c7_195 = arith.constant 7 : index
    %c0_196 = arith.constant 0 : index
    %c0_197 = arith.constant 0 : index
    %314 = vector.load %arg17[%c7_195, %c0_196, %c0_197] : memref<9x128x256xbf16, #tpu.memory_space<vmem>>, vector<1x128x256xbf16>
    %315 = vector.shape_cast %314 : vector<1x128x256xbf16> to vector<128x256xbf16>
    %cst_198 = arith.constant dense<0.000000e+00> : vector<8x256xf32>
    %316 = tpu.matmul %313, %315, %cst_198 {dimension_numbers = #tpu.dot_dimension_numbers<[1], [0], [0], [1], [0, 0, 1, 1], [], []>} : vector<8x128xbf16>, vector<128x256xbf16>, vector<8x256xf32> -> vector<8x256xf32>
    %317 = arith.addf %312, %316 : vector<8x256xf32>
    %318 = vector.extract_strided_slice %276 {offsets = [64, 0], sizes = [8, 128], strides = [1, 1]} : vector<72x128xbf16> to vector<8x128xbf16>
    %c8_199 = arith.constant 8 : index
    %c0_200 = arith.constant 0 : index
    %c0_201 = arith.constant 0 : index
    %319 = vector.load %arg17[%c8_199, %c0_200, %c0_201] : memref<9x128x256xbf16, #tpu.memory_space<vmem>>, vector<1x128x256xbf16>
    %320 = vector.shape_cast %319 : vector<1x128x256xbf16> to vector<128x256xbf16>
    %cst_202 = arith.constant dense<0.000000e+00> : vector<8x256xf32>
    %321 = tpu.matmul %318, %320, %cst_202 {dimension_numbers = #tpu.dot_dimension_numbers<[1], [0], [0], [1], [0, 0, 1, 1], [], []>} : vector<8x128xbf16>, vector<128x256xbf16>, vector<8x256xf32> -> vector<8x256xf32>
    %322 = arith.addf %317, %321 : vector<8x256xf32>
    %cst_203 = arith.constant dense<0.000000e+00> : vector<256xf32>
    %323 = vector.multi_reduction <add>, %322, %cst_203 [0] : vector<8x256xf32> to vector<256xf32>
    %324 = vector.shape_cast %323 : vector<256xf32> to vector<1x256xf32>
    %cst_204 = arith.constant 1.250000e-01 : f32
    %325 = vector.broadcast %cst_204 : f32 to vector<1x256xf32>
    %326 = arith.mulf %324, %325 : vector<1x256xf32>
    %327 = arith.mulf %322, %322 : vector<8x256xf32>
    %cst_205 = arith.constant dense<0.000000e+00> : vector<256xf32>
    %328 = vector.multi_reduction <add>, %327, %cst_205 [0] : vector<8x256xf32> to vector<256xf32>
    %329 = vector.shape_cast %328 : vector<256xf32> to vector<1x256xf32>
    %cst_206 = arith.constant 1.250000e-01 : f32
    %330 = vector.broadcast %cst_206 : f32 to vector<1x256xf32>
    %331 = arith.mulf %329, %330 : vector<1x256xf32>
    %332 = arith.mulf %326, %326 : vector<1x256xf32>
    %333 = arith.subf %331, %332 : vector<1x256xf32>
    %cst_207 = arith.constant 0.000000e+00 : f32
    %334 = vector.broadcast %cst_207 : f32 to vector<1x256xf32>
    %335 = arith.maximumf %333, %334 : vector<1x256xf32>
    %cst_208 = arith.constant 9.99999974E-6 : f32
    %336 = vector.broadcast %cst_208 : f32 to vector<1x256xf32>
    %337 = arith.addf %335, %336 : vector<1x256xf32>
    %338 = math.rsqrt %337 : vector<1x256xf32>
    %c0_209 = arith.constant 0 : index
    %c0_210 = arith.constant 0 : index
    %339 = vector.load %arg18[%c0_209, %c0_210] : memref<1x256xf32, #tpu.memory_space<vmem>>, vector<1x256xf32>
    %340 = arith.mulf %338, %339 : vector<1x256xf32>
    %c0_211 = arith.constant 0 : index
    %c0_212 = arith.constant 0 : index
    %341 = vector.load %arg19[%c0_211, %c0_212] : memref<1x256xf32, #tpu.memory_space<vmem>>, vector<1x256xf32>
    %342 = arith.mulf %326, %340 : vector<1x256xf32>
    %343 = arith.subf %341, %342 : vector<1x256xf32>
    %344 = vector.broadcast %340 : vector<1x256xf32> to vector<8x256xf32>
    %345 = arith.mulf %322, %344 : vector<8x256xf32>
    %346 = vector.broadcast %343 : vector<1x256xf32> to vector<8x256xf32>
    %347 = arith.addf %345, %346 : vector<8x256xf32>
    %cst_213 = arith.constant 0.000000e+00 : f32
    %348 = vector.broadcast %cst_213 : f32 to vector<8x256xf32>
    %349 = arith.cmpf oge, %347, %348 : vector<8x256xf32>
    %cst_214 = arith.constant 0.00999999977 : f32
    %350 = vector.broadcast %cst_214 : f32 to vector<8x256xf32>
    %351 = arith.mulf %350, %347 : vector<8x256xf32>
    %352 = arith.select %349, %347, %351 : vector<8x256xi1>, vector<8x256xf32>
    %353 = arith.truncf %352 : vector<8x256xf32> to vector<8x256xbf16>
    %c0_215 = arith.constant 0 : index
    %c0_216 = arith.constant 0 : index
    %354 = vector.load %arg20[%c0_215, %c0_216] : memref<72x8xbf16, #tpu.memory_space<vmem>>, vector<72x8xbf16>
    %cst_217 = arith.constant dense<0.000000e+00> : vector<72x256xf32>
    %355 = tpu.matmul %354, %353, %cst_217 {dimension_numbers = #tpu.dot_dimension_numbers<[1], [0], [0], [1], [0, 0, 1, 1], [], []>} : vector<72x8xbf16>, vector<8x256xbf16>, vector<72x256xf32> -> vector<72x256xf32>
    %356 = arith.truncf %355 : vector<72x256xf32> to vector<72x256xbf16>
    %cst_218 = arith.constant 0.000000e+00 : f32
    %357 = vector.broadcast %cst_218 : f32 to vector<8x256xf32>
    %358 = vector.extract_strided_slice %356 {offsets = [0, 0], sizes = [8, 256], strides = [1, 1]} : vector<72x256xbf16> to vector<8x256xbf16>
    %c0_219 = arith.constant 0 : index
    %c0_220 = arith.constant 0 : index
    %c0_221 = arith.constant 0 : index
    %359 = vector.load %arg21[%c0_219, %c0_220, %c0_221] : memref<9x256x256xbf16, #tpu.memory_space<vmem>>, vector<1x256x256xbf16>
    %360 = vector.shape_cast %359 : vector<1x256x256xbf16> to vector<256x256xbf16>
    %cst_222 = arith.constant dense<0.000000e+00> : vector<8x256xf32>
    %361 = tpu.matmul %358, %360, %cst_222 {dimension_numbers = #tpu.dot_dimension_numbers<[1], [0], [0], [1], [0, 0, 1, 1], [], []>} : vector<8x256xbf16>, vector<256x256xbf16>, vector<8x256xf32> -> vector<8x256xf32>
    %362 = arith.addf %357, %361 : vector<8x256xf32>
    %363 = vector.extract_strided_slice %356 {offsets = [8, 0], sizes = [8, 256], strides = [1, 1]} : vector<72x256xbf16> to vector<8x256xbf16>
    %c1_223 = arith.constant 1 : index
    %c0_224 = arith.constant 0 : index
    %c0_225 = arith.constant 0 : index
    %364 = vector.load %arg21[%c1_223, %c0_224, %c0_225] : memref<9x256x256xbf16, #tpu.memory_space<vmem>>, vector<1x256x256xbf16>
    %365 = vector.shape_cast %364 : vector<1x256x256xbf16> to vector<256x256xbf16>
    %cst_226 = arith.constant dense<0.000000e+00> : vector<8x256xf32>
    %366 = tpu.matmul %363, %365, %cst_226 {dimension_numbers = #tpu.dot_dimension_numbers<[1], [0], [0], [1], [0, 0, 1, 1], [], []>} : vector<8x256xbf16>, vector<256x256xbf16>, vector<8x256xf32> -> vector<8x256xf32>
    %367 = arith.addf %362, %366 : vector<8x256xf32>
    %368 = vector.extract_strided_slice %356 {offsets = [16, 0], sizes = [8, 256], strides = [1, 1]} : vector<72x256xbf16> to vector<8x256xbf16>
    %c2_227 = arith.constant 2 : index
    %c0_228 = arith.constant 0 : index
    %c0_229 = arith.constant 0 : index
    %369 = vector.load %arg21[%c2_227, %c0_228, %c0_229] : memref<9x256x256xbf16, #tpu.memory_space<vmem>>, vector<1x256x256xbf16>
    %370 = vector.shape_cast %369 : vector<1x256x256xbf16> to vector<256x256xbf16>
    %cst_230 = arith.constant dense<0.000000e+00> : vector<8x256xf32>
    %371 = tpu.matmul %368, %370, %cst_230 {dimension_numbers = #tpu.dot_dimension_numbers<[1], [0], [0], [1], [0, 0, 1, 1], [], []>} : vector<8x256xbf16>, vector<256x256xbf16>, vector<8x256xf32> -> vector<8x256xf32>
    %372 = arith.addf %367, %371 : vector<8x256xf32>
    %373 = vector.extract_strided_slice %356 {offsets = [24, 0], sizes = [8, 256], strides = [1, 1]} : vector<72x256xbf16> to vector<8x256xbf16>
    %c3_231 = arith.constant 3 : index
    %c0_232 = arith.constant 0 : index
    %c0_233 = arith.constant 0 : index
    %374 = vector.load %arg21[%c3_231, %c0_232, %c0_233] : memref<9x256x256xbf16, #tpu.memory_space<vmem>>, vector<1x256x256xbf16>
    %375 = vector.shape_cast %374 : vector<1x256x256xbf16> to vector<256x256xbf16>
    %cst_234 = arith.constant dense<0.000000e+00> : vector<8x256xf32>
    %376 = tpu.matmul %373, %375, %cst_234 {dimension_numbers = #tpu.dot_dimension_numbers<[1], [0], [0], [1], [0, 0, 1, 1], [], []>} : vector<8x256xbf16>, vector<256x256xbf16>, vector<8x256xf32> -> vector<8x256xf32>
    %377 = arith.addf %372, %376 : vector<8x256xf32>
    %378 = vector.extract_strided_slice %356 {offsets = [32, 0], sizes = [8, 256], strides = [1, 1]} : vector<72x256xbf16> to vector<8x256xbf16>
    %c4_235 = arith.constant 4 : index
    %c0_236 = arith.constant 0 : index
    %c0_237 = arith.constant 0 : index
    %379 = vector.load %arg21[%c4_235, %c0_236, %c0_237] : memref<9x256x256xbf16, #tpu.memory_space<vmem>>, vector<1x256x256xbf16>
    %380 = vector.shape_cast %379 : vector<1x256x256xbf16> to vector<256x256xbf16>
    %cst_238 = arith.constant dense<0.000000e+00> : vector<8x256xf32>
    %381 = tpu.matmul %378, %380, %cst_238 {dimension_numbers = #tpu.dot_dimension_numbers<[1], [0], [0], [1], [0, 0, 1, 1], [], []>} : vector<8x256xbf16>, vector<256x256xbf16>, vector<8x256xf32> -> vector<8x256xf32>
    %382 = arith.addf %377, %381 : vector<8x256xf32>
    %383 = vector.extract_strided_slice %356 {offsets = [40, 0], sizes = [8, 256], strides = [1, 1]} : vector<72x256xbf16> to vector<8x256xbf16>
    %c5_239 = arith.constant 5 : index
    %c0_240 = arith.constant 0 : index
    %c0_241 = arith.constant 0 : index
    %384 = vector.load %arg21[%c5_239, %c0_240, %c0_241] : memref<9x256x256xbf16, #tpu.memory_space<vmem>>, vector<1x256x256xbf16>
    %385 = vector.shape_cast %384 : vector<1x256x256xbf16> to vector<256x256xbf16>
    %cst_242 = arith.constant dense<0.000000e+00> : vector<8x256xf32>
    %386 = tpu.matmul %383, %385, %cst_242 {dimension_numbers = #tpu.dot_dimension_numbers<[1], [0], [0], [1], [0, 0, 1, 1], [], []>} : vector<8x256xbf16>, vector<256x256xbf16>, vector<8x256xf32> -> vector<8x256xf32>
    %387 = arith.addf %382, %386 : vector<8x256xf32>
    %388 = vector.extract_strided_slice %356 {offsets = [48, 0], sizes = [8, 256], strides = [1, 1]} : vector<72x256xbf16> to vector<8x256xbf16>
    %c6_243 = arith.constant 6 : index
    %c0_244 = arith.constant 0 : index
    %c0_245 = arith.constant 0 : index
    %389 = vector.load %arg21[%c6_243, %c0_244, %c0_245] : memref<9x256x256xbf16, #tpu.memory_space<vmem>>, vector<1x256x256xbf16>
    %390 = vector.shape_cast %389 : vector<1x256x256xbf16> to vector<256x256xbf16>
    %cst_246 = arith.constant dense<0.000000e+00> : vector<8x256xf32>
    %391 = tpu.matmul %388, %390, %cst_246 {dimension_numbers = #tpu.dot_dimension_numbers<[1], [0], [0], [1], [0, 0, 1, 1], [], []>} : vector<8x256xbf16>, vector<256x256xbf16>, vector<8x256xf32> -> vector<8x256xf32>
    %392 = arith.addf %387, %391 : vector<8x256xf32>
    %393 = vector.extract_strided_slice %356 {offsets = [56, 0], sizes = [8, 256], strides = [1, 1]} : vector<72x256xbf16> to vector<8x256xbf16>
    %c7_247 = arith.constant 7 : index
    %c0_248 = arith.constant 0 : index
    %c0_249 = arith.constant 0 : index
    %394 = vector.load %arg21[%c7_247, %c0_248, %c0_249] : memref<9x256x256xbf16, #tpu.memory_space<vmem>>, vector<1x256x256xbf16>
    %395 = vector.shape_cast %394 : vector<1x256x256xbf16> to vector<256x256xbf16>
    %cst_250 = arith.constant dense<0.000000e+00> : vector<8x256xf32>
    %396 = tpu.matmul %393, %395, %cst_250 {dimension_numbers = #tpu.dot_dimension_numbers<[1], [0], [0], [1], [0, 0, 1, 1], [], []>} : vector<8x256xbf16>, vector<256x256xbf16>, vector<8x256xf32> -> vector<8x256xf32>
    %397 = arith.addf %392, %396 : vector<8x256xf32>
    %398 = vector.extract_strided_slice %356 {offsets = [64, 0], sizes = [8, 256], strides = [1, 1]} : vector<72x256xbf16> to vector<8x256xbf16>
    %c8_251 = arith.constant 8 : index
    %c0_252 = arith.constant 0 : index
    %c0_253 = arith.constant 0 : index
    %399 = vector.load %arg21[%c8_251, %c0_252, %c0_253] : memref<9x256x256xbf16, #tpu.memory_space<vmem>>, vector<1x256x256xbf16>
    %400 = vector.shape_cast %399 : vector<1x256x256xbf16> to vector<256x256xbf16>
    %cst_254 = arith.constant dense<0.000000e+00> : vector<8x256xf32>
    %401 = tpu.matmul %398, %400, %cst_254 {dimension_numbers = #tpu.dot_dimension_numbers<[1], [0], [0], [1], [0, 0, 1, 1], [], []>} : vector<8x256xbf16>, vector<256x256xbf16>, vector<8x256xf32> -> vector<8x256xf32>
    %402 = arith.addf %397, %401 : vector<8x256xf32>
    %cst_255 = arith.constant dense<0.000000e+00> : vector<256xf32>
    %403 = vector.multi_reduction <add>, %402, %cst_255 [0] : vector<8x256xf32> to vector<256xf32>
    %404 = vector.shape_cast %403 : vector<256xf32> to vector<1x256xf32>
    %cst_256 = arith.constant 1.250000e-01 : f32
    %405 = vector.broadcast %cst_256 : f32 to vector<1x256xf32>
    %406 = arith.mulf %404, %405 : vector<1x256xf32>
    %407 = arith.mulf %402, %402 : vector<8x256xf32>
    %cst_257 = arith.constant dense<0.000000e+00> : vector<256xf32>
    %408 = vector.multi_reduction <add>, %407, %cst_257 [0] : vector<8x256xf32> to vector<256xf32>
    %409 = vector.shape_cast %408 : vector<256xf32> to vector<1x256xf32>
    %cst_258 = arith.constant 1.250000e-01 : f32
    %410 = vector.broadcast %cst_258 : f32 to vector<1x256xf32>
    %411 = arith.mulf %409, %410 : vector<1x256xf32>
    %412 = arith.mulf %406, %406 : vector<1x256xf32>
    %413 = arith.subf %411, %412 : vector<1x256xf32>
    %cst_259 = arith.constant 0.000000e+00 : f32
    %414 = vector.broadcast %cst_259 : f32 to vector<1x256xf32>
    %415 = arith.maximumf %413, %414 : vector<1x256xf32>
    %cst_260 = arith.constant 9.99999974E-6 : f32
    %416 = vector.broadcast %cst_260 : f32 to vector<1x256xf32>
    %417 = arith.addf %415, %416 : vector<1x256xf32>
    %418 = math.rsqrt %417 : vector<1x256xf32>
    %c0_261 = arith.constant 0 : index
    %c0_262 = arith.constant 0 : index
    %419 = vector.load %arg22[%c0_261, %c0_262] : memref<1x256xf32, #tpu.memory_space<vmem>>, vector<1x256xf32>
    %420 = arith.mulf %418, %419 : vector<1x256xf32>
    %c0_263 = arith.constant 0 : index
    %c0_264 = arith.constant 0 : index
    %421 = vector.load %arg23[%c0_263, %c0_264] : memref<1x256xf32, #tpu.memory_space<vmem>>, vector<1x256xf32>
    %422 = arith.mulf %406, %420 : vector<1x256xf32>
    %423 = arith.subf %421, %422 : vector<1x256xf32>
    %424 = vector.broadcast %420 : vector<1x256xf32> to vector<8x256xf32>
    %425 = arith.mulf %402, %424 : vector<8x256xf32>
    %426 = vector.broadcast %423 : vector<1x256xf32> to vector<8x256xf32>
    %427 = arith.addf %425, %426 : vector<8x256xf32>
    %cst_265 = arith.constant 0.000000e+00 : f32
    %428 = vector.broadcast %cst_265 : f32 to vector<8x256xf32>
    %429 = arith.cmpf oge, %427, %428 : vector<8x256xf32>
    %cst_266 = arith.constant 0.00999999977 : f32
    %430 = vector.broadcast %cst_266 : f32 to vector<8x256xf32>
    %431 = arith.mulf %430, %427 : vector<8x256xf32>
    %432 = arith.select %429, %427, %431 : vector<8x256xi1>, vector<8x256xf32>
    %c0_267 = arith.constant 0 : index
    %c0_268 = arith.constant 0 : index
    %433 = vector.load %arg24[%c0_267, %c0_268] : memref<8x256xf32, #tpu.memory_space<vmem>>, vector<8x256xf32>
    %434 = arith.mulf %432, %433 : vector<8x256xf32>
    %c0_269 = arith.constant 0 : index
    %c0_270 = arith.constant 0 : index
    %435 = vector.load %arg25[%c0_269, %c0_270] : memref<2x8xf32, #tpu.memory_space<vmem>>, vector<2x8xf32>
    %cst_271 = arith.constant dense<0.000000e+00> : vector<2x256xf32>
    %436 = tpu.matmul %435, %434, %cst_271 {dimension_numbers = #tpu.dot_dimension_numbers<[1], [0], [0], [1], [0, 0, 1, 1], [], []>} : vector<2x8xf32>, vector<8x256xf32>, vector<2x256xf32> -> vector<2x256xf32>
    %cst_272 = arith.constant dense<0.000000e+00> : vector<2xf32>
    %437 = vector.multi_reduction <add>, %436, %cst_272 [1] : vector<2x256xf32> to vector<2xf32>
    %438 = vector.shape_cast %437 : vector<2xf32> to vector<2x1xf32>
    %cst_273 = arith.constant dense<0.000000e+00> : vector<1xf32>
    %439 = vector.multi_reduction <add>, %438, %cst_273 [0] : vector<2x1xf32> to vector<1xf32>
    %440 = vector.shape_cast %439 : vector<1xf32> to vector<1x1xf32>
    %cst_274 = arith.constant 5.000000e-01 : f32
    %441 = vector.broadcast %cst_274 : f32 to vector<1x1xf32>
    %442 = arith.mulf %440, %441 : vector<1x1xf32>
    %443 = arith.mulf %438, %438 : vector<2x1xf32>
    %cst_275 = arith.constant dense<0.000000e+00> : vector<1xf32>
    %444 = vector.multi_reduction <add>, %443, %cst_275 [0] : vector<2x1xf32> to vector<1xf32>
    %445 = vector.shape_cast %444 : vector<1xf32> to vector<1x1xf32>
    %cst_276 = arith.constant 5.000000e-01 : f32
    %446 = vector.broadcast %cst_276 : f32 to vector<1x1xf32>
    %447 = arith.mulf %445, %446 : vector<1x1xf32>
    %448 = arith.mulf %442, %442 : vector<1x1xf32>
    %449 = arith.subf %447, %448 : vector<1x1xf32>
    %cst_277 = arith.constant 0.000000e+00 : f32
    %450 = vector.broadcast %cst_277 : f32 to vector<1x1xf32>
    %451 = arith.maximumf %449, %450 : vector<1x1xf32>
    %452 = vector.broadcast %442 : vector<1x1xf32> to vector<2x1xf32>
    %453 = arith.subf %438, %452 : vector<2x1xf32>
    %cst_278 = arith.constant 9.99999974E-6 : f32
    %454 = vector.broadcast %cst_278 : f32 to vector<1x1xf32>
    %455 = arith.addf %451, %454 : vector<1x1xf32>
    %456 = math.rsqrt %455 : vector<1x1xf32>
    %457 = vector.broadcast %456 : vector<1x1xf32> to vector<2x1xf32>
    %458 = arith.mulf %453, %457 : vector<2x1xf32>
    %c0_279 = arith.constant 0 : index
    %c0_280 = arith.constant 0 : index
    %459 = vector.load %arg26[%c0_279, %c0_280] : memref<1x1xf32, #tpu.memory_space<vmem>>, vector<1x1xf32>
    %460 = vector.broadcast %459 : vector<1x1xf32> to vector<2x1xf32>
    %461 = arith.mulf %458, %460 : vector<2x1xf32>
    %c0_281 = arith.constant 0 : index
    %c0_282 = arith.constant 0 : index
    %462 = vector.load %arg27[%c0_281, %c0_282] : memref<1x1xf32, #tpu.memory_space<vmem>>, vector<1x1xf32>
    %463 = vector.broadcast %462 : vector<1x1xf32> to vector<2x1xf32>
    %464 = arith.addf %461, %463 : vector<2x1xf32>
    %465 = arith.negf %464 : vector<2x1xf32>
    %466 = math.exp %465 : vector<2x1xf32>
    %cst_283 = arith.constant 1.000000e+00 : f32
    %467 = vector.broadcast %cst_283 : f32 to vector<2x1xf32>
    %468 = arith.addf %467, %466 : vector<2x1xf32>
    %469 = arith.divf %467, %468 : vector<2x1xf32>
    %c0_284 = arith.constant 0 : index
    %c0_285 = arith.constant 0 : index
    %470 = vector.load %arg28[%c0_284, %c0_285] : memref<2x1xf32, #tpu.memory_space<vmem>>, vector<2x1xf32>
    tpu.vector_store %arg28[%c0_284, %c0_285], %469 {strides = array<i32>} : memref<2x1xf32, #tpu.memory_space<vmem>>, vector<2x1xf32>,
    return
  }
}

</mosaic_0001>

<bundles_post_ra>
// kernel: tile.7
= control target key start
LH: loop header
LB: loop body
LE: loop exit
PB: predicated region body
PF: predicated region fallthrough
CT: control target
= control target key end

     0   :  { %s76_s0 = inlined_call_operand.vmem [shape: f32[2,4,256], index: 0, kind: input, shape index: {}]   ;;  %s77_s1 = inlined_call_operand.vmem [shape: f32[8,256], index: 1, kind: output, shape index: {}]  }
   0x1   :  { %v36_v0 = vld [vmem:[%s76_s0 + $0xc] sm:$0xf]  ;;  %v37_v1 = vld [vmem:[%s76_s0 + $0x8] sm:$0xf]  ;;  %v38_v2 = vld [vmem:[%s76_s0 + $0x4] sm:$0xf] }
   0x2   :  { %8 = vst [vmem:[#allocation0 + $0x18] sm:$0xf] %v36_v0  ;;  %13 = vst [vmem:[#allocation0 + $0x10] sm:$0xf] %v37_v1  ;;  %v18_v3 = vld [vmem:[%s76_s0] sm:$0xf] }
   0x3   :  { %17 = vst [vmem:[#allocation0 + $0x8] sm:$0xf] %v38_v2  ;;  %19 = vst [vmem:[#allocation0] sm:$0xf] %v18_v3 }
   0x9   :  { %v27_v5 = vld [vmem:[#allocation0 + $0x10] sm:$0xf]   ;;  %v31_v6 = vld [vmem:[#allocation0 + $0x18] sm:$0xf]  }
   0xa   :  { %v23_v4 = vld [vmem:[#allocation0 + $0x8] sm:$0xf]   ;;  %v20_v7 = vld [vmem:[#allocation0] sm:$0xf]   ;;  %40 = vst [vmem:[%s77_s1 + $0x4] sm:$0xf] %v27_v5  }
   0xb   :  { %39 = vst [vmem:[%s77_s1 + $0x8] sm:$0xf] %v23_v4   ;;  %41 = vst [vmem:[%s77_s1 + $0xc] sm:$0xf] %v31_v6  }
   0xc   :  { %21 = vst [vmem:[%s77_s1] sm:$0xf] %v20_v7  }

// kernel: _lambda_.1
= control target key start
LH: loop header
LB: loop body
LE: loop exit
PB: predicated region body
PF: predicated region fallthrough
CT: control target
= control target key end

     0   :  { %vm182_vm0 = vcmask 1043456   ;;  %vm183_vm1 = vcmask 1044480   ;;  %vm157_vm2 = vcmask 72704   ;;  %v14060_v1 = vmov 65535   ;;  %s17366_s1 = inlined_call_operand.vmem [shape: bf16[9,64], index: 1, kind: input, shape index: {}]   ;;  %s17367_s0 = inlined_call_operand.vmem [shape: bf16[128,9], index: 0, kind: input, shape index: {}]   ;;  %s17368_s4 = inlined_call_operand.vmem [shape: bf16[1152,128], index: 4, kind: input, shape index: {}]   ;;  %s17369_s5 = inlined_call_operand.vmem [shape: bf16[9,64,64], index: 5, kind: input, shape index: {}]   ;;  %s17370_s2 = inlined_call_operand.vmem [shape: f32[1,64], index: 2, kind: input, shape index: {}]   ;;  %s17371_s3 = inlined_call_operand.vmem [shape: f32[1,64], index: 3, kind: input, shape index: {}]   ;;  %s17372_s8 = inlined_call_operand.vmem [shape: bf16[288,128], index: 8, kind: input, shape index: {}]   ;;  %s17373_s9 = inlined_call_operand.vmem [shape: bf16[9,64,128], index: 9, kind: input, shape index: {}]   ;;  %s17374_s6 = inlined_call_operand.vmem [shape: f32[1,64], index: 6, kind: input, shape index: {}]   ;;  %s17375_s7 = inlined_call_operand.vmem [shape: f32[1,64], index: 7, kind: input, shape index: {}]   ;;  %s17376_s12 = inlined_call_operand.vmem [shape: bf16[288,32], index: 12, kind: input, shape index: {}]   ;;  %s17377_s13 = inlined_call_operand.vmem [shape: bf16[9,128,128], index: 13, kind: input, shape index: {}]   ;;  %s17378_s10 = inlined_call_operand.vmem [shape: f32[1,128], index: 10, kind: input, shape index: {}]   ;;  %s17379_s11 = inlined_call_operand.vmem [shape: f32[1,128], index: 11, kind: input, shape index: {}]   ;;  %s17380_s16 = inlined_call_operand.vmem [shape: bf16[72,32], index: 16, kind: input, shape index: {}]   ;;  %s17381_s17 = inlined_call_operand.vmem [shape: bf16[9,128,256], index: 17, kind: input, shape index: {}]   ;;  %s17382_s14 = inlined_call_operand.vmem [shape: f32[1,128], index: 14, kind: input, shape index: {}]   ;;  %s17383_s15 = inlined_call_operand.vmem [shape: f32[1,128], index: 15, kind: input, shape index: {}]   ;;  %s17384_s20 = inlined_call_operand.vmem [shape: bf16[72,8], index: 20, kind: input, shape index: {}]   ;;  %s17385_s21 = inlined_call_operand.vmem [shape: bf16[9,256,256], index: 21, kind: input, shape index: {}]   ;;  %s17386_s18 = inlined_call_operand.vmem [shape: f32[1,256], index: 18, kind: input, shape index: {}]   ;;  %s17387_s19 = inlined_call_operand.vmem [shape: f32[1,256], index: 19, kind: input, shape index: {}]   ;;  %s17388_s22 = inlined_call_operand.vmem [shape: f32[1,256], index: 22, kind: input, shape index: {}]   ;;  %s17389_s23 = inlined_call_operand.vmem [shape: f32[1,256], index: 23, kind: input, shape index: {}]   ;;  %s17390_s24 = inlined_call_operand.vmem [shape: f32[8,256], index: 24, kind: input, shape index: {}]   ;;  %s17391_s25 = inlined_call_operand.vmem [shape: f32[2,8], index: 25, kind: input, shape index: {}]   ;;  %s17392_s26 = inlined_call_operand.<no memory space> [shape: f32[1,1], index: 26, kind: input, shape index: {}]   ;;  %s17393_s27 = inlined_call_operand.<no memory space> [shape: f32[1,1], index: 27, kind: input, shape index: {}]   ;;  %s17394_s28 = inlined_call_operand.vmem [shape: f32[2,1], index: 28, kind: output, shape index: {}]  }
   0x1   :  { %17402 = sst [smem:[#allocation4_spill]] %s17366_s1  ;;  %v184_v2 = vsel %vm182_vm0, 4294967295, %v14060_v1  ;;  %vm286_vm3 = vcmask 523264  }
   0x2   :  { %17403 = sst [smem:[#allocation5_spill]] %s17367_s0  ;;  %v185_v4 = vsel %vm183_vm1, %v184_v2, 0 }
   0x3   :  { %17404 = sst [smem:[#allocation6_spill]] %s17368_s4 }
   0x4   :  { %17405 = sst [smem:[#allocation7_spill]] %s17369_s5 }
   0x5   :  { %17406 = sst [smem:[#allocation8_spill]] %s17370_s2 }
   0x6   :  { %17407 = sst [smem:[#allocation9_spill]] %s17371_s3  ;;  %s17418_s2 = sld [smem:[#allocation8_spill]] }
   0x7   :  { %17408 = sst [smem:[#allocation10_spill]] %s17372_s8  ;;  %s17416_s8 = sld [smem:[#allocation5_spill]] }
   0x8   :  { %17409 = sst [smem:[#allocation11_spill]] %s17373_s9  ;;  %s17419_s1 = sld [smem:[#allocation9_spill]] }
   0x9   :  { %17410 = sst [smem:[#allocation12_spill]] %s17374_s6  ;;  %s17420_s3 = sld [smem:[#allocation7_spill]] }
   0xa   :  { %17411 = sst [smem:[#allocation13_spill]] %s17375_s7  ;;  %s17415_s7 = sld [smem:[#allocation4_spill]] }
   0xb   :  { %17412 = sst [smem:[#allocation14_spill]] %s17376_s12  ;;  %s17421_s30 = sld [smem:[#allocation10_spill]] }
   0xc   :  { %17413 = sst [smem:[#allocation15_spill]] %s17377_s13  ;;  %s17417_s13 = sld [smem:[#allocation6_spill]] }
   0xd   :  { %17414 = sst [smem:[#allocation16_spill]] %s17378_s10  ;;  %v13120_v3 = vld [vmem:[%s17416_s8] sm:$0xff]   ;;  %v13121_v6 = vld [vmem:[%s17416_s8 + $0x8] sm:$0xff]   ;;  %v13122_v7 = vld [vmem:[%s17416_s8 + $0x10] sm:$0xff]   ;;  %s17422_s12 = sld [smem:[#allocation11_spill]] }
   0xe   :  { %12058 = vmatprep.mubr.msk.bf16.mxu0 %vm157_vm2, %v13120_v3  ;;  %v13123_v8 = vld [vmem:[%s17416_s8 + $0x18] sm:$0xff]   ;;  %v13124_v9 = vld [vmem:[%s17416_s8 + $0x20] sm:$0xff]   ;;  %v13125_v10 = vld [vmem:[%s17416_s8 + $0x28] sm:$0xff]   ;;  %s17423_s29 = sld [smem:[#allocation12_spill]]  ;;  %s17424_s10 = sld [smem:[#allocation13_spill]] }
   0xf   :  { %v13126_v11 = vld [vmem:[%s17416_s8 + $0x30] sm:$0xff]   ;;  %v13127_v12 = vld [vmem:[%s17416_s8 + $0x38] sm:$0xff]  }
  0x10   :  { %v13119_v0 = vld [vmem:[%s17415_s7] sm:$0x1f]   ;;  %s17427_s7 = sld [smem:[#allocation15_spill]] }
  0x11   :  { %v187_v5 = vand.u32 %v13119_v0, %v185_v4 }
  0x12   :  { %v13128_v13 = vld [vmem:[%s17417_s13] sm:$0xff]  }
  0x13   :  { %12056 = vmatprep.subr.bf16.mxu0 %v187_v5 }
  0x14   :  { %12057 = vmatpush3.bf16.msra.mxu0 %v187_v5 }
  0x17   :  { %12059 = vmatmul.mubr.msk.bf16.vlgmr.msra.gmra.mrb[0].mxu0 %vm157_vm2, %v13121_v6 }
  0x18   :  { %12062 = vmatprep.mubr.msk.bf16.mxu0 %vm157_vm2, %v13122_v7 }
  0x1f   :  { %12063 = vmatmul.mubr.msk.bf16.gmra.mrb[4].mxu0 %vm157_vm2, %v13123_v8 }
  0x20   :  { %12066 = vmatprep.mubr.msk.bf16.mxu0 %vm157_vm2, %v13124_v9 }
  0x27   :  { %12067 = vmatmul.mubr.msk.bf16.gmra.mrb[8].mxu0 %vm157_vm2, %v13125_v10 }
  0x28   :  { %12070 = vmatprep.mubr.msk.bf16.mxu0 %vm157_vm2, %v13126_v11 }
  0x2f   :  { %12071 = vmatmul.mubr.msk.bf16.gmra.mrb[12].mxu0 %vm157_vm2, %v13127_v12 }
  0x30   :  { %12090 = vmatprep.mubr.bf16.mxu0 %v13128_v13 }
  0xea   :  { %v14249_v14 = vpop.f32.mrb[0].mxu0 }
  0xeb   :  { %v327_v15 = vmul.f32 %v14249_v14, %v14249_v14  ;;  %v14253_v16 = vpop.f32.mrb[1].mxu0  ;;  %v290_v23 = vsel %vm286_vm3, %v14249_v14, 0.0 }
  0xec   :  { %v325_v17 = vmul.f32 %v14253_v16, %v14253_v16  ;;  %v14257_v18 = vpop.f32.mrb[2].mxu0  ;;  %v287_v20 = vsel %vm286_vm3, %v14253_v16, 0.0 }
  0xed   :  { %v14259_v19 = vpop.f32.mrb[3].mxu0  ;;  %v344_v24 = vsel %vm286_vm3, %v327_v15, 0.0  ;;  %v328_v25 = vmul.f32 %v14257_v18, %v14257_v18  ;;  %v292_v31 = vsel %vm286_vm3, %v14257_v18, 0.0 }
  0xee   :  { %v288_v21 = vsel %vm286_vm3, %v14259_v19, 0.0  ;;  %v326_v22 = vmul.f32 %v14259_v19, %v14259_v19  ;;  %v341_v27 = vsel %vm286_vm3, %v325_v17, 0.0 }
  0xef   :  { %v289_v26 = vadd.f32 %v288_v21, %v287_v20  ;;  %v346_v33 = vsel %vm286_vm3, %v328_v25, 0.0 }
  0xf0   :  { %v342_v28 = vsel %vm286_vm3, %v326_v22, 0.0 }
  0xf1   :  { %v291_v29 = vadd.f32 %v290_v23, %v289_v26  ;;  %v343_v30 = vadd.f32 %v342_v28, %v341_v27 }
  0xf2   :  { %v14276_v32 = vpop.f32.mrb[4].mxu0 }
  0xf3   :  { %v345_v34 = vadd.f32 %v344_v24, %v343_v30  ;;  %v14279_v35 = vpop.f32.mrb[5].mxu0  ;;  %v293_v36 = vadd.f32 %v292_v31, %v291_v29  ;;  %v331_v37 = vmul.f32 %v14276_v32, %v14276_v32  ;;  %v298_v44 = vsel %vm286_vm3, %v14276_v32, 0.0 }
  0xf4   :  { %v294_v38 = vsel %vm286_vm3, %v14279_v35, 0.0  ;;  %v329_v39 = vmul.f32 %v14279_v35, %v14279_v35  ;;  %v14287_v40 = vpop.f32.mrb[6].mxu0 }
  0xf5   :  { %v295_v41 = vadd.f32 %v294_v38, %v293_v36  ;;  %v347_v42 = vadd.f32 %v346_v33, %v345_v34  ;;  %v14289_v43 = vpop.f32.mrb[7].mxu0  ;;  %v332_v49 = vmul.f32 %v14287_v40, %v14287_v40  ;;  %v352_v51 = vsel %vm286_vm3, %v331_v37, 0.0 }
  0xf6   :  { %v348_v45 = vsel %vm286_vm3, %v329_v39, 0.0  ;;  %v296_v46 = vsel %vm286_vm3, %v14289_v43, 0.0  ;;  %v330_v47 = vmul.f32 %v14289_v43, %v14289_v43  ;;  %v300_v55 = vsel %vm286_vm3, %v14287_v40, 0.0 }
  0xf7   :  { %v349_v48 = vadd.f32 %v348_v45, %v347_v42  ;;  %v297_v50 = vadd.f32 %v296_v46, %v295_v41  ;;  %v354_v57 = vsel %vm286_vm3, %v332_v49, 0.0 }
  0xf8   :  { %v350_v52 = vsel %vm286_vm3, %v330_v47, 0.0 }
  0xf9   :  { %v299_v53 = vadd.f32 %v298_v44, %v297_v50  ;;  %v351_v54 = vadd.f32 %v350_v52, %v349_v48 }
  0xfa   :  { %v14304_v56 = vpop.f32.mrb[8].mxu0 }
  0xfb   :  { %v353_v58 = vadd.f32 %v352_v51, %v351_v54  ;;  %v335_v59 = vmul.f32 %v14304_v56, %v14304_v56  ;;  %v14309_v60 = vpop.f32.mrb[9].mxu0  ;;  %v301_v61 = vadd.f32 %v300_v55, %v299_v53  ;;  %v306_v1 = vsel %vm286_vm3, %v14304_v56, 0.0 }
  0xfc   :  { %v302_v62 = vsel %vm286_vm3, %v14309_v60, 0.0  ;;  %v333_v63 = vmul.f32 %v14309_v60, %v14309_v60  ;;  %v14315_v0 = vpop.f32.mrb[10].mxu0 }
  0xfd   :  { %v360_v2 = vsel %vm286_vm3, %v335_v59, 0.0  ;;  %v303_v3 = vadd.f32 %v302_v62, %v301_v61  ;;  %v355_v4 = vadd.f32 %v354_v57, %v353_v58  ;;  %v14320_v5 = vpop.f32.mrb[11].mxu0  ;;  %v336_v7 = vmul.f32 %v14315_v0, %v14315_v0 }
  0xfe   :  { %v356_v6 = vsel %vm286_vm3, %v333_v63, 0.0  ;;  %v304_v8 = vsel %vm286_vm3, %v14320_v5, 0.0  ;;  %v334_v9 = vmul.f32 %v14320_v5, %v14320_v5  ;;  %v308_v12 = vsel %vm286_vm3, %v14315_v0, 0.0 }
  0xff   :  { %v357_v10 = vadd.f32 %v356_v6, %v355_v4  ;;  %v305_v11 = vadd.f32 %v304_v8, %v303_v3  ;;  %v362_v20 = vsel %vm286_vm3, %v336_v7, 0.0  ;;  %v389_v7 = vlaneseq }
 0x100   :  { %v358_v13 = vsel %vm286_vm3, %v334_v9, 0.0 }
 0x101   :  { %v307_v15 = vadd.f32 %v306_v1, %v305_v11  ;;  %v359_v17 = vadd.f32 %v358_v13, %v357_v10  ;;  %v14356_v10 = vshrl.u32 %v389_v7, 7  ;;  %v384_v13 = vld [vmem:[%s17418_s2] sm:$0x1]  ;;  %s17425_s2 = sld [smem:[#allocation14_spill]] }
 0x102   :  { %v14333_v21 = vpop.f32.mrb[12].mxu0 }
 0x103   :  { %v361_v22 = vadd.f32 %v360_v2, %v359_v17  ;;  %v314_v23 = vsel %vm286_vm3, %v14333_v21, 0.0  ;;  %v339_v24 = vmul.f32 %v14333_v21, %v14333_v21  ;;  %v14339_v25 = vpop.f32.mrb[13].mxu0  ;;  %v309_v26 = vadd.f32 %v308_v12, %v307_v15 }
 0x104   :  { %v310_v27 = vsel %vm286_vm3, %v14339_v25, 0.0  ;;  %v337_v28 = vmul.f32 %v14339_v25, %v14339_v25  ;;  %v14345_v29 = vpop.f32.mrb[14].mxu0  ;;  %v14359_v12 = vsub.s32 0, %v14356_v10 }
 0x105   :  { %v368_v30 = vsel %vm286_vm3, %v339_v24, 0.0  ;;  %v311_v31 = vadd.f32 %v310_v27, %v309_v26  ;;  %v363_v33 = vadd.f32 %v362_v20, %v361_v22  ;;  %v316_v34 = vsel %vm286_vm3, %v14345_v29, 0.0  ;;  %v274_v36 = vpop.f32.mrb[15].mxu0  ;;  %v386_v20 = vld [vmem:[%s17419_s1] sm:$0x1] }
 0x106   :  { %v364_v37 = vsel %vm286_vm3, %v337_v28, 0.0  ;;  %v340_v38 = vmul.f32 %v14345_v29, %v14345_v29  ;;  %v312_v39 = vsel %vm286_vm3, %v274_v36, 0.0  ;;  %v338_v41 = vmul.f32 %v274_v36, %v274_v36 }
 0x107   :  { %v365_v42 = vadd.f32 %v364_v37, %v363_v33  ;;  %v313_v44 = vadd.f32 %v312_v39, %v311_v31 }
 0x108   :  { %v370_v45 = vsel %vm286_vm3, %v340_v38, 0.0  ;;  %v366_v46 = vsel %vm286_vm3, %v338_v41, 0.0 }
 0x109   :  { %v315_v47 = vadd.f32 %v314_v23, %v313_v44  ;;  %v367_v48 = vadd.f32 %v366_v46, %v365_v42 }
 0x10b   :  { %v317_v49 = vadd.f32 %v316_v34, %v315_v47  ;;  %v369_v50 = vadd.f32 %v368_v30, %v367_v48 }
 0x10d   :  { %v318_v51 = vrot.slane %v317_v49, 4  ;;  %v371_v52 = vadd.f32 %v370_v45, %v369_v50 }
 0x10f   :  { %v319_v53 = vadd.f32 %v318_v51, %v317_v49  ;;  %v372_v54 = vrot.slane %v371_v52, 4 }
 0x111   :  { %v320_v55 = vrot.slane %v319_v53, 2  ;;  %v373_v57 = vadd.f32 %v372_v54, %v371_v52 }
 0x113   :  { %v321_v58 = vadd.f32 %v320_v55, %v319_v53  ;;  %v374_v59 = vrot.slane %v373_v57, 2 }
 0x115   :  { %v322_v61 = vrot.slane %v321_v58, 1  ;;  %v375_v62 = vadd.f32 %v374_v59, %v373_v57 }
 0x117   :  { %v323_v63 = vadd.f32 %v322_v61, %v321_v58  ;;  %v376_v1 = vrot.slane %v375_v62, 1 }
 0x119   :  { %v324_v2 = vmul.f32 0.0078125, %v323_v63  ;;  %v377_v3 = vadd.f32 %v376_v1, %v375_v62 }
 0x11b   :  { %v378_v4 = vmul.f32 0.0078125, %v377_v3  ;;  %v379_v6 = vmul.f32 %v324_v2, %v324_v2 }
 0x11d   :  { %v380_v8 = vsub.f32 %v378_v4, %v379_v6 }
 0x11f   :  { %v381_v9 = vmax.f32 %v380_v8, 0.0 }
 0x121   :  { %v382_v11 = vadd.f32 1e-05, %v381_v9 }
 0x123   :  { %14038 = vrsqrt.f32 %v382_v11 }
 0x12d   :  { %v14039_v15 = vpop.eup %14038 }
 0x12e   :  { %v385_v17 = vmul.f32 %v14039_v15, %v384_v13 }
 0x130   :  { %v387_v22 = vmul.f32 %v385_v17, %v324_v2  ;;  %v14368_v23 = vrot.slane %v385_v17, %v14359_v12 }
 0x132   :  { %v388_v24 = vsub.f32 %v386_v20, %v387_v22  ;;  %v406_v26 = vmul.f32 %v14368_v23, %v274_v36  ;;  %v393_v27 = vmul.f32 %v14368_v23, %v14253_v16  ;;  %v394_v28 = vmul.f32 %v14368_v23, %v14259_v19 }
 0x133   :  { %v395_v30 = vmul.f32 %v14249_v14, %v14368_v23  ;;  %v396_v31 = vmul.f32 %v14257_v18, %v14368_v23  ;;  %v397_v33 = vmul.f32 %v14368_v23, %v14279_v35  ;;  %v398_v34 = vmul.f32 %v14368_v23, %v14289_v43 }
 0x134   :  { %v14384_v36 = vrot.slane %v388_v24, %v14359_v12  ;;  %v399_v16 = vmul.f32 %v14276_v32, %v14368_v23  ;;  %v400_v19 = vmul.f32 %v14287_v40, %v14368_v23  ;;  %v401_v14 = vmul.f32 %v14368_v23, %v14309_v60 }
 0x135   :  { %v402_v18 = vmul.f32 %v14368_v23, %v14320_v5  ;;  %v403_v35 = vmul.f32 %v14304_v56, %v14368_v23  ;;  %v404_v43 = vmul.f32 %v14315_v0, %v14368_v23  ;;  %v405_v37 = vmul.f32 %v14368_v23, %v14339_v25 }
 0x136   :  { %v14401_v32 = vadd.f32 %v14384_v36, %v406_v26  ;;  %v415_v40 = vadd.f32 %v14384_v36, %v393_v27  ;;  %v416_v38 = vadd.f32 %v14384_v36, %v394_v28  ;;  %v417_v60 = vadd.f32 %v14384_v36, %v395_v30 }
 0x137   :  { %v418_v5 = vadd.f32 %v14384_v36, %v396_v31  ;;  %v419_v39 = vadd.f32 %v14384_v36, %v397_v33  ;;  %v420_v56 = vadd.f32 %v14384_v36, %v398_v34  ;;  %v421_v0 = vadd.f32 %v14384_v36, %v399_v16 }
 0x138   :  { %vm431_vm4 = vcmp.ge.f32.partialorder %v415_v40, 0.0  ;;  %vm432_vm5 = vcmp.ge.f32.partialorder %v416_v38, 0.0  ;;  %v447_v25 = vmul.f32 0.01, %v415_v40  ;;  %v448_v41 = vmul.f32 0.01, %v416_v38 }
 0x139   :  { %vm433_vm6 = vcmp.ge.f32.partialorder %v417_v60, 0.0  ;;  %vm434_vm7 = vcmp.ge.f32.partialorder %v418_v5, 0.0  ;;  %v449_v42 = vmul.f32 0.01, %v417_v60  ;;  %v450_v44 = vmul.f32 0.01, %v418_v5 }
 0x13a   :  { %v463_v45 = vsel %vm431_vm4, %v415_v40, %v447_v25  ;;  %v464_v46 = vsel %vm432_vm5, %v416_v38, %v448_v41  ;;  %vm435_vm8 = vcmp.ge.f32.partialorder %v419_v39, 0.0  ;;  %vm436_vm9 = vcmp.ge.f32.partialorder %v420_v56, 0.0  ;;  %v13165_v40 = vld [vmem:[%s17420_s3 + $0x8] sm:$0xff]   ;;  %v13139_v25 = vld [vmem:[%s17417_s13 + $0x58] sm:$0xff]   ;;  %v13140_v41 = vld [vmem:[%s17417_s13 + $0x60] sm:$0xff]  }
 0x13b   :  { %v479_v47 = vpack.c.bf16 %v464_v46, %v463_v45  ;;  %v465_v48 = vsel %vm433_vm6, %v417_v60, %v449_v42  ;;  %v466_v49 = vsel %vm434_vm7, %v418_v5, %v450_v44  ;;  %v451_v50 = vmul.f32 0.01, %v419_v39  ;;  %v13133_v38 = vld [vmem:[%s17417_s13 + $0x28] sm:$0xff]   ;;  %v13134_v60 = vld [vmem:[%s17417_s13 + $0x30] sm:$0xff]   ;;  %v13135_v5 = vld [vmem:[%s17417_s13 + $0x38] sm:$0xff]  }
 0x13c   :  { %v480_v51 = vpack.c.bf16 %v466_v49, %v465_v48  ;;  %v452_v52 = vmul.f32 0.01, %v420_v56  ;;  %v422_v53 = vadd.f32 %v14384_v36, %v400_v19  ;;  %vm437_vm10 = vcmp.ge.f32.partialorder %v421_v0, 0.0  ;;  %v13141_v42 = vld [vmem:[%s17417_s13 + $0x68] sm:$0xff]   ;;  %v13142_v44 = vld [vmem:[%s17417_s13 + $0x70] sm:$0xff]   ;;  %v13143_v45 = vld [vmem:[%s17417_s13 + $0x78] sm:$0xff]  }
 0x13d   :  { %12074 = vmatprep.subr.bf16.mxu0 %v479_v47  ;;  %v467_v54 = vsel %vm435_vm8, %v419_v39, %v451_v50  ;;  %v453_v55 = vmul.f32 0.01, %v421_v0  ;;  %v423_v57 = vadd.f32 %v14384_v36, %v401_v14  ;;  %v424_v58 = vadd.f32 %v14384_v36, %v402_v18  ;;  %v13136_v39 = vld [vmem:[%s17417_s13 + $0x40] sm:$0xff]   ;;  %v13147_v48 = vld [vmem:[%s17417_s13 + $0x90] sm:$0xff]   ;;  %v13148_v49 = vld [vmem:[%s17417_s13 + $0x98] sm:$0xff]  }
 0x13e   :  { %12075 = vmatpush3.bf16.msra.mxu0 %v479_v47  ;;  %v468_v59 = vsel %vm436_vm9, %v420_v56, %v452_v52  ;;  %vm438_vm11 = vcmp.ge.f32.partialorder %v422_v53, 0.0  ;;  %v454_v61 = vmul.f32 0.01, %v422_v53  ;;  %v425_v62 = vadd.f32 %v14384_v36, %v403_v35  ;;  %v13137_v56 = vld [vmem:[%s17417_s13 + $0x48] sm:$0xff]   ;;  %v13144_v46 = vld [vmem:[%s17417_s13 + $0x80] sm:$0xff]   ;;  %v13151_v52 = vld [vmem:[%s17417_s13 + $0xb0] sm:$0xff]  }
 0x13f   :  { %12076 = vmatprep.subr.bf16.mxu0 %v480_v51  ;;  %v481_v63 = vpack.c.bf16 %v468_v59, %v467_v54  ;;  %v469_v1 = vsel %vm437_vm10, %v421_v0, %v453_v55  ;;  %vm439_vm12 = vcmp.ge.f32.partialorder %v423_v57, 0.0  ;;  %vm440_vm13 = vcmp.ge.f32.partialorder %v424_v58, 0.0  ;;  %v13138_v0 = vld [vmem:[%s17417_s13 + $0x50] sm:$0xff]   ;;  %v13145_v47 = vld [vmem:[%s17417_s13 + $0x88] sm:$0xff]   ;;  %v13149_v50 = vld [vmem:[%s17417_s13 + $0xa0] sm:$0xff]  }
 0x140   :  { %v470_v2 = vsel %vm438_vm11, %v422_v53, %v454_v61  ;;  %v455_v3 = vmul.f32 0.01, %v423_v57  ;;  %v456_v4 = vmul.f32 0.01, %v424_v58  ;;  %v426_v6 = vadd.f32 %v14384_v36, %v404_v43  ;;  %v13184_v53 = vld [vmem:[%s17420_s3 + $0x10] sm:$0xff]   ;;  %v13152_v54 = vld [vmem:[%s17417_s13 + $0xb8] sm:$0xff]  }
 0x141   :  { %v482_v7 = vpack.c.bf16 %v470_v2, %v469_v1  ;;  %vm441_vm14 = vcmp.ge.f32.partialorder %v425_v62, 0.0  ;;  %v457_v8 = vmul.f32 0.01, %v425_v62  ;;  %v427_v9 = vadd.f32 %v14384_v36, %v405_v37  ;;  %v13131_v37 = vld [vmem:[%s17417_s13 + $0x18] sm:$0xff]   ;;  %v13153_v55 = vld [vmem:[%s17417_s13 + $0xc0] sm:$0xff]   ;;  %v13159_v1 = vld [vmem:[%s17417_s13 + $0xf0] sm:$0xff]  }
 0x142   :  { %12077 = vmatpush3.bf16.msra.mxu0 %v480_v51  ;;  %v471_v11 = vsel %vm439_vm12, %v423_v57, %v455_v3  ;;  %v472_v13 = vsel %vm440_vm13, %v424_v58, %v456_v4  ;;  %vm442_vm15 = vcmp.ge.f32.partialorder %v426_v6, 0.0  ;;  %v458_v15 = vmul.f32 0.01, %v426_v6  ;;  %v13150_v51 = vld [vmem:[%s17417_s13 + $0xa8] sm:$0xff]   ;;  %v13155_v58 = vld [vmem:[%s17417_s13 + $0xd0] sm:$0xff]   ;;  %v13156_v59 = vld [vmem:[%s17417_s13 + $0xd8] sm:$0xff]  }
 0x143   :  { %12078 = vmatprep.subr.bf16.mxu0 %v481_v63  ;;  %v483_v17 = vpack.c.bf16 %v472_v13, %v471_v11  ;;  %v473_v20 = vsel %vm441_vm14, %v425_v62, %v457_v8  ;;  %vm443_vm1 = vcmp.ge.f32.partialorder %v427_v9, 0.0  ;;  %vm444_vm2 = vcmp.ge.f32.partialorder %v14401_v32, 0.0  ;;  %v13154_v57 = vld [vmem:[%s17417_s13 + $0xc8] sm:$0xff]   ;;  %v13157_v61 = vld [vmem:[%s17417_s13 + $0xe0] sm:$0xff]   ;;  %v13195_v3 = vld [vmem:[%s17420_s3 + $0x30] sm:$0xff]  }
 0x144   :  { %v474_v22 = vsel %vm442_vm15, %v426_v6, %v458_v15  ;;  %v459_v24 = vmul.f32 0.01, %v427_v9  ;;  %v460_v26 = vmul.f32 0.01, %v14401_v32  ;;  %v407_v27 = vmul.f32 %v14333_v21, %v14368_v23  ;;  %v13191_v62 = vld [vmem:[%s17420_s3 + $0x20] sm:$0xff]   ;;  %v13192_v2 = vld [vmem:[%s17420_s3 + $0x28] sm:$0xff]  }
 0x145   :  { %v484_v28 = vpack.c.bf16 %v474_v22, %v473_v20  ;;  %v408_v30 = vmul.f32 %v14345_v29, %v14368_v23  ;;  %v13146_v29 = vld [vmem:[%s17420_s3] sm:$0xff]   ;;  %v13129_v23 = vld [vmem:[%s17417_s13 + $0x8] sm:$0xff]   ;;  %12234 = vmatprep.subr.bf16.mxu1 %v13191_v62  ;;  %v13160_v4 = vld [vmem:[%s17417_s13 + $0xf8] sm:$0xff]  }
 0x146   :  { %12079 = vmatpush3.bf16.msra.mxu0 %v481_v63  ;;  %v475_v31 = vsel %vm443_vm1, %v427_v9, %v459_v24  ;;  %v476_v33 = vsel %vm444_vm2, %v14401_v32, %v460_v26  ;;  %v429_v34 = vadd.f32 %v14384_v36, %v407_v27  ;;  %v13132_v32 = vld [vmem:[%s17417_s13 + $0x20] sm:$0xff]   ;;  %12235 = vmatpush3.bf16.msra.mxu1 %v13191_v62  ;;  %v13158_v63 = vld [vmem:[%s17417_s13 + $0xe8] sm:$0xff]   ;;  %v13163_v9 = vld [vmem:[%s17417_s13 + $0x110] sm:$0xff]  }
 0x147   :  { %12080 = vmatprep.subr.bf16.mxu0 %v482_v7  ;;  %v485_v16 = vpack.c.bf16 %v476_v33, %v475_v31  ;;  %v430_v19 = vadd.f32 %v14384_v36, %v408_v30  ;;  %v13130_v36 = vld [vmem:[%s17417_s13 + $0x10] sm:$0xff]   ;;  %12236 = vmatprep.subr.bf16.mxu1 %v13192_v2  ;;  %v13161_v6 = vld [vmem:[%s17417_s13 + $0x100] sm:$0xff]   ;;  %v13162_v8 = vld [vmem:[%s17417_s13 + $0x108] sm:$0xff]  }
 0x148   :  { %vm445_vm4 = vcmp.ge.f32.partialorder %v429_v34, 0.0  ;;  %v461_v14 = vmul.f32 0.01, %v429_v34  ;;  %v13164_v11 = vld [vmem:[%s17417_s13 + $0x118] sm:$0xff]   ;;  %v13166_v13 = vld [vmem:[%s17417_s13 + $0x120] sm:$0xff]   ;;  %v13167_v15 = vld [vmem:[%s17417_s13 + $0x128] sm:$0xff]  }
 0x149   :  { %vm446_vm5 = vcmp.ge.f32.partialorder %v430_v19, 0.0  ;;  %v462_v18 = vmul.f32 0.01, %v430_v19  ;;  %v13169_v20 = vld [vmem:[%s17417_s13 + $0x138] sm:$0xff]   ;;  %v13170_v22 = vld [vmem:[%s17417_s13 + $0x140] sm:$0xff]   ;;  %v13171_v26 = vld [vmem:[%s17417_s13 + $0x148] sm:$0xff]  }
 0x14a   :  { %12081 = vmatpush3.bf16.msra.mxu0 %v482_v7  ;;  %v477_v21 = vsel %vm445_vm4, %v429_v34, %v461_v14  ;;  %12237 = vmatpush3.bf16.msra.mxu1 %v13192_v2  ;;  %v13196_v7 = vld [vmem:[%s17420_s3 + $0x38] sm:$0xff]   ;;  %v13172_v27 = vld [vmem:[%s17417_s13 + $0x150] sm:$0xff]   ;;  %v13174_v30 = vld [vmem:[%s17417_s13 + $0x160] sm:$0xff]  }
 0x14b   :  { %12082 = vmatprep.subr.bf16.mxu0 %v483_v17  ;;  %v478_v35 = vsel %vm446_vm5, %v430_v19, %v462_v18  ;;  %12238 = vmatprep.subr.bf16.mxu1 %v13195_v3  ;;  %v13207_v24 = vld [vmem:[%s17420_s3 + $0x18] sm:$0xff]   ;;  %v13175_v31 = vld [vmem:[%s17417_s13 + $0x168] sm:$0xff]   ;;  %v13176_v33 = vld [vmem:[%s17417_s13 + $0x170] sm:$0xff]  }
 0x14c   :  { %v486_v43 = vpack.c.bf16 %v478_v35, %v477_v21  ;;  %v14590_v34 = vld [vmem:[%s17420_s3 + $0x40] sm:$0xff]   ;;  %v13179_v14 = vld [vmem:[%s17417_s13 + $0x188] sm:$0xff]   ;;  %v13180_v18 = vld [vmem:[%s17417_s13 + $0x190] sm:$0xff]  }
 0x14d   :  { %v13178_v19 = vld [vmem:[%s17417_s13 + $0x180] sm:$0xff]   ;;  %v13181_v21 = vld [vmem:[%s17417_s13 + $0x198] sm:$0xff]  }
 0x14e   :  { %12083 = vmatpush3.bf16.msra.mxu0 %v483_v17  ;;  %12239 = vmatpush3.bf16.msra.mxu1 %v13195_v3  ;;  %v13168_v17 = vld [vmem:[%s17417_s13 + $0x130] sm:$0xff]   ;;  %v13182_v35 = vld [vmem:[%s17417_s13 + $0x1a0] sm:$0xff]   ;;  %v13198_v3 = vld [vmem:[%s17417_s13 + $0x1f8] sm:$0xff]  }
 0x14f   :  { %12084 = vmatprep.subr.bf16.mxu0 %v484_v28  ;;  %12240 = vmatprep.subr.bf16.mxu1 %v13196_v7 }
 0x152   :  { %12085 = vmatpush3.bf16.msra.mxu0 %v484_v28  ;;  %12241 = vmatpush3.bf16.msra.mxu1 %v13196_v7  ;;  %v13173_v28 = vld [vmem:[%s17417_s13 + $0x158] sm:$0xff]  }
 0x153   :  { %12086 = vmatprep.subr.bf16.mxu0 %v485_v16 }
 0x156   :  { %12087 = vmatpush3.bf16.msra.mxu0 %v485_v16  ;;  %v13177_v16 = vld [vmem:[%s17417_s13 + $0x178] sm:$0xff]  }
 0x157   :  { %12088 = vmatprep.subr.bf16.mxu0 %v486_v43 }
 0x15a   :  { %12089 = vmatpush3.bf16.msra.mxu0 %v486_v43  ;;  %v13183_v43 = vld [vmem:[%s17417_s13 + $0x1a8] sm:$0xff]  }
 0x15b   :  { %12258 = vmatprep.subr.bf16.mxu0 %v13146_v29 }
 0x15d   :  { %12091 = vmatmul.mubr.bf16.vlgmr.msra.gmra.mrb[16].mxu0 %v13129_v23 }
 0x15e   :  { %12094 = vmatprep.mubr.bf16.mxu0 %v13130_v36  ;;  %12259 = vmatpush3.bf16.msra.mxu0 %v13146_v29  ;;  %v13185_v29 = vld [vmem:[%s17417_s13 + $0x1b0] sm:$0xff]  }
 0x15f   :  { %12260 = vmatprep.subr.bf16.mxu0 %v13165_v40 }
 0x162   :  { %12261 = vmatpush3.bf16.msra.mxu0 %v13165_v40  ;;  %v13187_v40 = vld [vmem:[%s17417_s13 + $0x1c0] sm:$0xff]  }
 0x163   :  { %12262 = vmatprep.subr.bf16.mxu0 %v13184_v53 }
 0x165   :  { %12095 = vmatmul.mubr.bf16.gmra.mrb[20].mxu0 %v13131_v37  ;;  %v13186_v37 = vld [vmem:[%s17417_s13 + $0x1b8] sm:$0xff]  }
 0x166   :  { %12098 = vmatprep.mubr.bf16.mxu0 %v13132_v32  ;;  %12263 = vmatpush3.bf16.msra.mxu0 %v13184_v53 }
 0x167   :  { %12264 = vmatprep.subr.bf16.mxu0 %v13207_v24 }
 0x16a   :  { %12265 = vmatpush3.bf16.msra.mxu0 %v13207_v24 }
 0x16b   :  { %12282 = vmatprep.subr.bf16.mxu0 %v14590_v34 }
 0x16d   :  { %12099 = vmatmul.mubr.bf16.gmra.mrb[24].mxu0 %v13133_v38 }
 0x16e   :  { %12102 = vmatprep.mubr.bf16.mxu0 %v13134_v60 }
 0x175   :  { %12103 = vmatmul.mubr.bf16.gmra.mrb[28].mxu0 %v13135_v5 }
 0x176   :  { %12106 = vmatprep.mubr.bf16.mxu0 %v13136_v39 }
 0x17d   :  { %12107 = vmatmul.mubr.bf16.gmra.mrb[32].mxu0 %v13137_v56 }
 0x17e   :  { %12110 = vmatprep.mubr.bf16.mxu0 %v13138_v0  ;;  %v13188_v0 = vld [vmem:[%s17417_s13 + $0x1c8] sm:$0xff]  }
 0x185   :  { %12111 = vmatmul.mubr.bf16.gmra.mrb[36].mxu0 %v13139_v25 }
 0x186   :  { %12114 = vmatprep.mubr.bf16.mxu0 %v13140_v41  ;;  %v13189_v41 = vld [vmem:[%s17417_s13 + $0x1d0] sm:$0xff]  }
 0x18d   :  { %12115 = vmatmul.mubr.bf16.gmra.mrb[40].mxu0 %v13141_v42 }
 0x18e   :  { %12118 = vmatprep.mubr.bf16.mxu0 %v13142_v44 }
 0x195   :  { %12119 = vmatmul.mubr.bf16.gmra.mrb[44].mxu0 %v13143_v45 }
 0x196   :  { %12122 = vmatprep.mubr.bf16.mxu0 %v13144_v46 }
 0x19d   :  { %12123 = vmatmul.mubr.bf16.gmra.mrb[48].mxu0 %v13145_v47 }
 0x19e   :  { %12126 = vmatprep.mubr.bf16.mxu0 %v13147_v48  ;;  %v13190_v48 = vld [vmem:[%s17417_s13 + $0x1d8] sm:$0xff]  }
 0x1a5   :  { %12127 = vmatmul.mubr.bf16.gmra.mrb[52].mxu0 %v13148_v49 }
 0x1a6   :  { %12130 = vmatprep.mubr.bf16.mxu0 %v13149_v50  ;;  %v13193_v50 = vld [vmem:[%s17417_s13 + $0x1e0] sm:$0xff]  }
 0x1ad   :  { %12131 = vmatmul.mubr.bf16.gmra.mrb[56].mxu0 %v13150_v51 }
 0x1ae   :  { %12134 = vmatprep.mubr.bf16.mxu0 %v13151_v52 }
 0x1b5   :  { %12135 = vmatmul.mubr.bf16.gmra.mrb[60].mxu0 %v13152_v54 }
 0x1b6   :  { %12138 = vmatprep.mubr.bf16.mxu0 %v13153_v55 }
 0x1bd   :  { %12139 = vmatmul.mubr.bf16.gmra.mrb[64].mxu0 %v13154_v57  ;;  %v13194_v57 = vld [vmem:[%s17417_s13 + $0x1e8] sm:$0xff]  }
 0x1be   :  { %12142 = vmatprep.mubr.bf16.mxu0 %v13155_v58 }
 0x1c5   :  { %12143 = vmatmul.mubr.bf16.gmra.mrb[68].mxu0 %v13156_v59  ;;  %v13197_v59 = vld [vmem:[%s17417_s13 + $0x1f0] sm:$0xff]  }
 0x1c6   :  { %12146 = vmatprep.mubr.bf16.mxu0 %v13157_v61 }
 0x1cd   :  { %12147 = vmatmul.mubr.bf16.gmra.mrb[72].mxu0 %v13158_v63 }
 0x1ce   :  { %12150 = vmatprep.mubr.bf16.mxu0 %v13159_v1 }
 0x1d5   :  { %12151 = vmatmul.mubr.bf16.gmra.mrb[76].mxu0 %v13160_v4 }
 0x1d6   :  { %12154 = vmatprep.mubr.bf16.mxu0 %v13161_v6  ;;  %v13199_v6 = vld [vmem:[%s17417_s13 + $0x200] sm:$0xff]  }
 0x1dd   :  { %12155 = vmatmul.mubr.bf16.gmra.mrb[80].mxu0 %v13162_v8 }
 0x1de   :  { %12158 = vmatprep.mubr.bf16.mxu0 %v13163_v9 }
 0x1e5   :  { %12159 = vmatmul.mubr.bf16.gmra.mrb[84].mxu0 %v13164_v11 }
 0x1e6   :  { %12162 = vmatprep.mubr.bf16.mxu0 %v13166_v13 }
 0x1ed   :  { %12163 = vmatmul.mubr.bf16.gmra.mrb[88].mxu0 %v13167_v15  ;;  %v13200_v15 = vld [vmem:[%s17417_s13 + $0x208] sm:$0xff]  }
 0x1ee   :  { %12166 = vmatprep.mubr.bf16.mxu0 %v13168_v17 }
 0x1f5   :  { %12167 = vmatmul.mubr.bf16.gmra.mrb[92].mxu0 %v13169_v20  ;;  %v13201_v20 = vld [vmem:[%s17417_s13 + $0x210] sm:$0xff]  }
 0x1f6   :  { %12170 = vmatprep.mubr.bf16.mxu0 %v13170_v22 }
 0x1fd   :  { %12171 = vmatmul.mubr.bf16.gmra.mrb[96].mxu0 %v13171_v26 }
 0x1fe   :  { %12174 = vmatprep.mubr.bf16.mxu0 %v13172_v27 }
 0x205   :  { %12175 = vmatmul.mubr.bf16.gmra.mrb[100].mxu0 %v13173_v28 }
 0x206   :  { %12178 = vmatprep.mubr.bf16.mxu0 %v13174_v30  ;;  %v13202_v30 = vld [vmem:[%s17417_s13 + $0x218] sm:$0xff]  }
 0x20d   :  { %12179 = vmatmul.mubr.bf16.gmra.mrb[104].mxu0 %v13175_v31 }
 0x20e   :  { %12182 = vmatprep.mubr.bf16.mxu0 %v13176_v33  ;;  %v13203_v33 = vld [vmem:[%s17417_s13 + $0x220] sm:$0xff]  }
 0x215   :  { %12183 = vmatmul.mubr.bf16.gmra.mrb[108].mxu0 %v13177_v16 }
 0x216   :  { %12186 = vmatprep.mubr.bf16.mxu0 %v13178_v19 }
 0x21d   :  { %12187 = vmatmul.mubr.bf16.gmra.mrb[112].mxu0 %v13179_v14 }
 0x21e   :  { %12190 = vmatprep.mubr.bf16.mxu0 %v13180_v18 }
 0x225   :  { %12191 = vmatmul.mubr.bf16.gmra.mrb[116].mxu0 %v13181_v21 }
 0x226   :  { %12194 = vmatprep.mubr.bf16.mxu0 %v13182_v35  ;;  %v13204_v35 = vld [vmem:[%s17417_s13 + $0x228] sm:$0xff]  }
 0x22d   :  { %12195 = vmatmul.mubr.bf16.gmra.mrb[120].mxu0 %v13183_v43 }
 0x22e   :  { %12198 = vmatprep.mubr.bf16.mxu0 %v13185_v29  ;;  %v13205_v29 = vld [vmem:[%s17417_s13 + $0x230] sm:$0xff]  }
 0x230   :  { %v14617_v23 = vpop.f32.mrb[16].mxu0 }
 0x231   :  { %v14619_v36 = vpop.f32.mrb[17].mxu0 }
 0x232   :  { %v14624_v32 = vpop.f32.mrb[18].mxu0 }
 0x233   :  { %v1673_v38 = vpack.c.bf16 %v14624_v32, %v14617_v23  ;;  %v14631_v60 = vpop.f32.mrb[19].mxu0 }
 0x234   :  { %v1672_v5 = vpack.c.bf16 %v14631_v60, %v14619_v36  ;;  %v13210_v36 = vld [vmem:[%s17420_s3 + $0x50] sm:$0xff]  }
 0x235   :  { %12199 = vmatmul.mubr.bf16.gmra.mrb[124].mxu0 %v13186_v37 }
 0x236   :  { %12202 = vmatprep.mubr.bf16.mxu0 %v13187_v40 }
 0x238   :  { %v14635_v39 = vpop.f32.mrb[20].mxu0 }
 0x239   :  { %v14637_v56 = vpop.f32.mrb[21].mxu0 }
 0x23a   :  { %v14642_v25 = vpop.f32.mrb[22].mxu0 }
 0x23b   :  { %v1675_v42 = vpack.c.bf16 %v14642_v25, %v14635_v39  ;;  %v14649_v44 = vpop.f32.mrb[23].mxu0 }
 0x23c   :  { %v1674_v45 = vpack.c.bf16 %v14649_v44, %v14637_v56  ;;  %v13212_v56 = vld [vmem:[%s17420_s3 + $0x60] sm:$0xff]  }
 0x23d   :  { %12203 = vmatmul.mubr.bf16.gmra.mrb[128].mxu0 %v13188_v0 }
 0x23e   :  { %12206 = vmatprep.mubr.bf16.mxu0 %v13189_v41 }
 0x240   :  { %v14653_v46 = vpop.f32.mrb[24].mxu0 }
 0x241   :  { %v14655_v47 = vpop.f32.mrb[25].mxu0 }
 0x242   :  { %v14660_v49 = vpop.f32.mrb[26].mxu0 }
 0x243   :  { %v1677_v51 = vpack.c.bf16 %v14660_v49, %v14653_v46  ;;  %v14667_v52 = vpop.f32.mrb[27].mxu0 }
 0x244   :  { %v1676_v53 = vpack.c.bf16 %v14667_v52, %v14655_v47 }
 0x245   :  { %12207 = vmatmul.mubr.bf16.gmra.mrb[132].mxu0 %v13190_v48 }
 0x246   :  { %12210 = vmatprep.mubr.bf16.mxu0 %v13193_v50  ;;  %v13206_v50 = vld [vmem:[%s17417_s13 + $0x238] sm:$0xff]  }
 0x248   :  { %v14671_v54 = vpop.f32.mrb[28].mxu0 }
 0x249   :  { %v14673_v55 = vpop.f32.mrb[29].mxu0 }
 0x24a   :  { %v14678_v58 = vpop.f32.mrb[30].mxu0 }
 0x24b   :  { %v1679_v61 = vpack.c.bf16 %v14678_v58, %v14671_v54  ;;  %v14685_v62 = vpop.f32.mrb[31].mxu0  ;;  %v13214_v54 = vld [vmem:[%s17420_s3 + $0x70] sm:$0xff]  }
 0x24c   :  { %v1678_v63 = vpack.c.bf16 %v14685_v62, %v14673_v55 }
 0x24d   :  { %12211 = vmatmul.mubr.bf16.gmra.mrb[136].mxu0 %v13194_v57 }
 0x24e   :  { %12214 = vmatprep.mubr.bf16.mxu0 %v13197_v59 }
 0x250   :  { %v12108_v1 = vpop.f32.mrb[32].mxu0 }
 0x251   :  { %v1161_v2 = vpop.f32.mrb[33].mxu0 }
 0x252   :  { %v12109_v4 = vpop.f32.mrb[34].mxu0 }
 0x253   :  { %v1681_v7 = vpack.c.bf16 %v12109_v4, %v12108_v1  ;;  %v1164_v8 = vpop.f32.mrb[35].mxu0 }
 0x254   :  { %v1680_v9 = vpack.c.bf16 %v1164_v8, %v1161_v2 }
 0x255   :  { %12215 = vmatmul.mubr.bf16.gmra.mrb[140].mxu0 %v13198_v3 }
 0x256   :  { %12242 = vmatprep.mubr.msk.bf16.mxu1 %vm286_vm3, %v1680_v9  ;;  %12218 = vmatprep.mubr.bf16.mxu0 %v13199_v6  ;;  %v13209_v9 = vld [vmem:[%s17420_s3 + $0x48] sm:$0xff]  }
 0x257   :  { %12243 = vmatmul.mubr.msk.bf16.vlgmr.msra.gmra.mrb[0].mxu1 %vm286_vm3, %v1681_v7 }
 0x258   :  { %v12112_v11 = vpop.f32.mrb[36].mxu0 }
 0x259   :  { %v1177_v13 = vpop.f32.mrb[37].mxu0 }
 0x25a   :  { %v12113_v17 = vpop.f32.mrb[38].mxu0 }
 0x25b   :  { %v1683_v22 = vpack.c.bf16 %v12113_v17, %v12112_v11  ;;  %v1180_v24 = vpop.f32.mrb[39].mxu0 }
 0x25c   :  { %v1682_v26 = vpack.c.bf16 %v1180_v24, %v1177_v13 }
 0x25d   :  { %12219 = vmatmul.mubr.bf16.gmra.mrb[144].mxu0 %v13200_v15 }
 0x25e   :  { %12246 = vmatprep.mubr.msk.bf16.mxu1 %vm286_vm3, %v1682_v26  ;;  %12222 = vmatprep.mubr.bf16.mxu0 %v13201_v20 }
 0x25f   :  { %12247 = vmatmul.mubr.msk.bf16.gmra.mrb[4].mxu1 %vm286_vm3, %v1683_v22 }
 0x260   :  { %v12116_v27 = vpop.f32.mrb[40].mxu0 }
 0x261   :  { %v1193_v28 = vpop.f32.mrb[41].mxu0 }
 0x262   :  { %v12117_v31 = vpop.f32.mrb[42].mxu0 }
 0x263   :  { %v1685_v16 = vpack.c.bf16 %v12117_v31, %v12116_v27  ;;  %v1196_v19 = vpop.f32.mrb[43].mxu0 }
 0x264   :  { %v1684_v14 = vpack.c.bf16 %v1196_v19, %v1193_v28 }
 0x265   :  { %12223 = vmatmul.mubr.bf16.gmra.mrb[148].mxu0 %v13202_v30  ;;  %v13215_v30 = vld [vmem:[%s17420_s3 + $0x78] sm:$0xff]  }
 0x266   :  { %12250 = vmatprep.mubr.msk.bf16.mxu1 %vm286_vm3, %v1684_v14  ;;  %12226 = vmatprep.mubr.bf16.mxu0 %v13203_v33  ;;  %v13216_v33 = vld [vmem:[%s17420_s3 + $0x80] sm:$0xff]  }
 0x267   :  { %12251 = vmatmul.mubr.msk.bf16.gmra.mrb[8].mxu1 %vm286_vm3, %v1685_v16 }
 0x268   :  { %v12120_v18 = vpop.f32.mrb[44].mxu0 }
 0x269   :  { %v1209_v21 = vpop.f32.mrb[45].mxu0 }
 0x26a   :  { %v12121_v43 = vpop.f32.mrb[46].mxu0 }
 0x26b   :  { %v1687_v37 = vpack.c.bf16 %v12121_v43, %v12120_v18  ;;  %v1212_v40 = vpop.f32.mrb[47].mxu0 }
 0x26c   :  { %v1686_v0 = vpack.c.bf16 %v1212_v40, %v1209_v21 }
 0x26d   :  { %12227 = vmatmul.mubr.bf16.gmra.mrb[152].mxu0 %v13204_v35 }
 0x26e   :  { %12254 = vmatprep.mubr.msk.bf16.mxu1 %vm286_vm3, %v1686_v0  ;;  %12230 = vmatprep.mubr.bf16.mxu0 %v13205_v29 }
 0x26f   :  { %12255 = vmatmul.mubr.msk.bf16.gmra.mrb[12].mxu1 %vm286_vm3, %v1687_v37 }
 0x270   :  { %v12124_v41 = vpop.f32.mrb[48].mxu0 }
 0x271   :  { %v1225_v48 = vpop.f32.mrb[49].mxu0 }
 0x272   :  { %v12125_v57 = vpop.f32.mrb[50].mxu0 }
 0x273   :  { %v1689_v59 = vpack.c.bf16 %v12125_v57, %v12124_v41  ;;  %v1228_v1 = vpop.f32.mrb[51].mxu0 }
 0x274   :  { %v1688_v2 = vpack.c.bf16 %v1228_v1, %v1225_v48 }
 0x275   :  { %12231 = vmatmul.mubr.bf16.gmra.mrb[156].mxu0 %v13206_v50 }
 0x276   :  { %12266 = vmatprep.mubr.msk.bf16.mxu0 %vm286_vm3, %v1672_v5 }
 0x278   :  { %v14728_v3 = vpop.f32.mrb[52].mxu0 }
 0x279   :  { %v1241_v4 = vpop.f32.mrb[53].mxu0 }
 0x27a   :  { %v14730_v6 = vpop.f32.mrb[54].mxu0 }
 0x27b   :  { %v1691_v7 = vpack.c.bf16 %v14730_v6, %v14728_v3  ;;  %v1244_v8 = vpop.f32.mrb[55].mxu0 }
 0x27c   :  { %v1690_v11 = vpack.c.bf16 %v1244_v8, %v1241_v4  ;;  %v13218_v4 = vld [vmem:[%s17420_s3 + $0x90] sm:$0xff]  }
 0x27d   :  { %12267 = vmatmul.mubr.msk.bf16.vlgmr.msra.gmra.mrb[160].mxu0 %vm286_vm3, %v1673_v38 }
 0x27e   :  { %12270 = vmatprep.mubr.msk.bf16.mxu0 %vm286_vm3, %v1674_v45  ;;  %12283 = vmatpush3.bf16.msra.mxu0 %v14590_v34  ;;  %v13211_v34 = vld [vmem:[%s17420_s3 + $0x58] sm:$0xff]  }
 0x27f   :  { %12284 = vmatprep.subr.bf16.mxu0 %v13209_v9 }
 0x280   :  { %v14749_v60 = vpop.f32.mrb[56].mxu0 }
 0x281   :  { %v1257_v5 = vpop.f32.mrb[57].mxu0 }
 0x282   :  { %v14751_v13 = vpop.f32.mrb[58].mxu0  ;;  %12285 = vmatpush3.bf16.msra.mxu0 %v13209_v9 }
 0x283   :  { %v1693_v23 = vpack.c.bf16 %v14751_v13, %v14749_v60  ;;  %v1260_v32 = vpop.f32.mrb[59].mxu0  ;;  %12286 = vmatprep.subr.bf16.mxu0 %v13210_v36 }
 0x284   :  { %v1692_v38 = vpack.c.bf16 %v1260_v32, %v1257_v5  ;;  %v13220_v5 = vld [vmem:[%s17420_s3 + $0xa0] sm:$0xff]  }
 0x285   :  { %12271 = vmatmul.mubr.msk.bf16.gmra.mrb[164].mxu0 %vm286_vm3, %v1675_v42 }
 0x286   :  { %12274 = vmatprep.mubr.msk.bf16.mxu0 %vm286_vm3, %v1676_v53  ;;  %12287 = vmatpush3.bf16.msra.mxu0 %v13210_v36  ;;  %v13219_v36 = vld [vmem:[%s17420_s3 + $0x98] sm:$0xff]  }
 0x287   :  { %12288 = vmatprep.subr.bf16.mxu0 %v13211_v34 }
 0x288   :  { %v12136_v44 = vpop.f32.mrb[60].mxu0 }
 0x289   :  { %v1273_v45 = vpop.f32.mrb[61].mxu0 }
 0x28a   :  { %v12137_v15 = vpop.f32.mrb[62].mxu0  ;;  %12289 = vmatpush3.bf16.msra.mxu0 %v13211_v34 }
 0x28b   :  { %v1695_v17 = vpack.c.bf16 %v12137_v15, %v12136_v44  ;;  %v1276_v20 = vpop.f32.mrb[63].mxu0  ;;  %12306 = vmatprep.subr.bf16.mxu0 %v13212_v56 }
 0x28c   :  { %v1694_v39 = vpack.c.bf16 %v1276_v20, %v1273_v45 }
 0x28d   :  { %12275 = vmatmul.mubr.msk.bf16.gmra.mrb[168].mxu0 %vm286_vm3, %v1677_v51 }
 0x28e   :  { %12278 = vmatprep.mubr.msk.bf16.mxu0 %vm286_vm3, %v1678_v63  ;;  %v13213_v63 = vld [vmem:[%s17420_s3 + $0x68] sm:$0xff]  }
 0x290   :  { %v12140_v25 = vpop.f32.mrb[64].mxu0 }
 0x291   :  { %v1289_v42 = vpop.f32.mrb[65].mxu0 }
 0x292   :  { %v12141_v47 = vpop.f32.mrb[66].mxu0 }
 0x293   :  { %v1697_v52 = vpack.c.bf16 %v12141_v47, %v12140_v25  ;;  %v1292_v53 = vpop.f32.mrb[67].mxu0 }
 0x294   :  { %v1696_v22 = vpack.c.bf16 %v1292_v53, %v1289_v42 }
 0x295   :  { %12279 = vmatmul.mubr.msk.bf16.gmra.mrb[172].mxu0 %vm286_vm3, %v1679_v61 }
 0x296   :  { %12290 = vmatprep.mubr.msk.bf16.mxu0 %vm286_vm3, %v1688_v2  ;;  %v13217_v2 = vld [vmem:[%s17420_s3 + $0x88] sm:$0xff]  }
 0x298   :  { %v14782_v46 = vpop.f32.mrb[68].mxu0 }
 0x299   :  { %v1305_v49 = vpop.f32.mrb[69].mxu0 }
 0x29a   :  { %v14784_v51 = vpop.f32.mrb[70].mxu0 }
 0x29b   :  { %v1699_v55 = vpack.c.bf16 %v14784_v51, %v14782_v46  ;;  %v1308_v62 = vpop.f32.mrb[71].mxu0 }
 0x29c   :  { %v1698_v24 = vpack.c.bf16 %v1308_v62, %v1305_v49  ;;  %v13222_v49 = vld [vmem:[%s17420_s3 + $0xb0] sm:$0xff]  }
 0x29d   :  { %12291 = vmatmul.mubr.msk.bf16.vlgmr.msra.gmra.mrb[160].mxu0 %vm286_vm3, %v1689_v59 }
 0x29e   :  { %12294 = vmatprep.mubr.msk.bf16.mxu0 %vm286_vm3, %v1690_v11  ;;  %12307 = vmatpush3.bf16.msra.mxu0 %v13212_v56 }
 0x29f   :  { %12308 = vmatprep.subr.bf16.mxu0 %v13213_v63 }
 0x2a0   :  { %v14796_v58 = vpop.f32.mrb[72].mxu0 }
 0x2a1   :  { %v1321_v61 = vpop.f32.mrb[73].mxu0 }
 0x2a2   :  { %v14798_v26 = vpop.f32.mrb[74].mxu0  ;;  %12309 = vmatpush3.bf16.msra.mxu0 %v13213_v63 }
 0x2a3   :  { %v1701_v27 = vpack.c.bf16 %v14798_v26, %v14796_v58  ;;  %v1324_v28 = vpop.f32.mrb[75].mxu0  ;;  %12310 = vmatprep.subr.bf16.mxu0 %v13214_v54 }
 0x2a4   :  { %v1700_v31 = vpack.c.bf16 %v1324_v28, %v1321_v61  ;;  %v13224_v61 = vld [vmem:[%s17420_s3 + $0xc0] sm:$0xff]  }
 0x2a5   :  { %12295 = vmatmul.mubr.msk.bf16.gmra.mrb[164].mxu0 %vm286_vm3, %v1691_v7 }
 0x2a6   :  { %12298 = vmatprep.mubr.msk.bf16.mxu0 %vm286_vm3, %v1692_v38  ;;  %12311 = vmatpush3.bf16.msra.mxu0 %v13214_v54  ;;  %v13223_v54 = vld [vmem:[%s17420_s3 + $0xb8] sm:$0xff]  }
 0x2a7   :  { %12312 = vmatprep.subr.bf16.mxu0 %v13215_v30 }
 0x2a8   :  { %v12152_v16 = vpop.f32.mrb[76].mxu0 }
 0x2a9   :  { %v1337_v19 = vpop.f32.mrb[77].mxu0 }
 0x2aa   :  { %v12153_v14 = vpop.f32.mrb[78].mxu0  ;;  %12313 = vmatpush3.bf16.msra.mxu0 %v13215_v30 }
 0x2ab   :  { %v1703_v18 = vpack.c.bf16 %v12153_v14, %v12152_v16  ;;  %v1340_v21 = vpop.f32.mrb[79].mxu0  ;;  %12330 = vmatprep.subr.bf16.mxu0 %v13216_v33 }
 0x2ac   :  { %v1702_v35 = vpack.c.bf16 %v1340_v21, %v1337_v19 }
 0x2ad   :  { %12299 = vmatmul.mubr.msk.bf16.gmra.mrb[168].mxu0 %vm286_vm3, %v1693_v23 }
 0x2ae   :  { %12302 = vmatprep.mubr.msk.bf16.mxu0 %vm286_vm3, %v1694_v39 }
 0x2b0   :  { %v12156_v43 = vpop.f32.mrb[80].mxu0 }
 0x2b1   :  { %v1353_v29 = vpop.f32.mrb[81].mxu0 }
 0x2b2   :  { %v12157_v37 = vpop.f32.mrb[82].mxu0 }
 0x2b3   :  { %v1705_v40 = vpack.c.bf16 %v12157_v37, %v12156_v43  ;;  %v1356_v0 = vpop.f32.mrb[83].mxu0 }
 0x2b4   :  { %v1704_v41 = vpack.c.bf16 %v1356_v0, %v1353_v29 }
 0x2b5   :  { %12303 = vmatmul.mubr.msk.bf16.gmra.mrb[172].mxu0 %vm286_vm3, %v1695_v17 }
 0x2b6   :  { %12314 = vmatprep.mubr.msk.bf16.mxu0 %vm286_vm3, %v1696_v22  ;;  %v13221_v22 = vld [vmem:[%s17420_s3 + $0xa8] sm:$0xff]  }
 0x2b8   :  { %v14814_v48 = vpop.f32.mrb[84].mxu0 }
 0x2b9   :  { %v1369_v50 = vpop.f32.mrb[85].mxu0 }
 0x2ba   :  { %v14816_v57 = vpop.f32.mrb[86].mxu0 }
 0x2bb   :  { %v1707_v59 = vpack.c.bf16 %v14816_v57, %v14814_v48  ;;  %v1372_v1 = vpop.f32.mrb[87].mxu0 }
 0x2bc   :  { %v1706_v3 = vpack.c.bf16 %v1372_v1, %v1369_v50  ;;  %v13226_v50 = vld [vmem:[%s17420_s3 + $0xd0] sm:$0xff]  }
 0x2bd   :  { %12315 = vmatmul.mubr.msk.bf16.vlgmr.msra.gmra.mrb[160].mxu0 %vm286_vm3, %v1697_v52 }
 0x2be   :  { %12318 = vmatprep.mubr.msk.bf16.mxu0 %vm286_vm3, %v1698_v24  ;;  %12331 = vmatpush3.bf16.msra.mxu0 %v13216_v33 }
 0x2bf   :  { %12332 = vmatprep.subr.bf16.mxu0 %v13217_v2 }
 0x2c0   :  { %v14828_v6 = vpop.f32.mrb[88].mxu0 }
 0x2c1   :  { %v1385_v7 = vpop.f32.mrb[89].mxu0 }
 0x2c2   :  { %v14830_v8 = vpop.f32.mrb[90].mxu0  ;;  %12333 = vmatpush3.bf16.msra.mxu0 %v13217_v2 }
 0x2c3   :  { %v1709_v9 = vpack.c.bf16 %v14830_v8, %v14828_v6  ;;  %v1388_v11 = vpop.f32.mrb[91].mxu0  ;;  %12334 = vmatprep.subr.bf16.mxu0 %v13218_v4 }
 0x2c4   :  { %v1708_v60 = vpack.c.bf16 %v1388_v11, %v1385_v7  ;;  %v13228_v7 = vld [vmem:[%s17420_s3 + $0xe0] sm:$0xff]  }
 0x2c5   :  { %12319 = vmatmul.mubr.msk.bf16.gmra.mrb[164].mxu0 %vm286_vm3, %v1699_v55 }
 0x2c6   :  { %12322 = vmatprep.mubr.msk.bf16.mxu0 %vm286_vm3, %v1700_v31  ;;  %12335 = vmatpush3.bf16.msra.mxu0 %v13218_v4  ;;  %v13227_v4 = vld [vmem:[%s17420_s3 + $0xd8] sm:$0xff]  }
 0x2c7   :  { %12336 = vmatprep.subr.bf16.mxu0 %v13219_v36 }
 0x2c8   :  { %v12168_v13 = vpop.f32.mrb[92].mxu0 }
 0x2c9   :  { %v1401_v23 = vpop.f32.mrb[93].mxu0 }
 0x2ca   :  { %v12169_v32 = vpop.f32.mrb[94].mxu0  ;;  %12337 = vmatpush3.bf16.msra.mxu0 %v13219_v36 }
 0x2cb   :  { %v1711_v34 = vpack.c.bf16 %v12169_v32, %v12168_v13  ;;  %v1404_v38 = vpop.f32.mrb[95].mxu0  ;;  %12354 = vmatprep.subr.bf16.mxu0 %v13220_v5 }
 0x2cc   :  { %v1710_v56 = vpack.c.bf16 %v1404_v38, %v1401_v23 }
 0x2cd   :  { %12323 = vmatmul.mubr.msk.bf16.gmra.mrb[168].mxu0 %vm286_vm3, %v1701_v27 }
 0x2ce   :  { %12326 = vmatprep.mubr.msk.bf16.mxu0 %vm286_vm3, %v1702_v35 }
 0x2d0   :  { %v12172_v44 = vpop.f32.mrb[96].mxu0 }
 0x2d1   :  { %v1417_v45 = vpop.f32.mrb[97].mxu0 }
 0x2d2   :  { %v12173_v15 = vpop.f32.mrb[98].mxu0 }
 0x2d3   :  { %v1713_v17 = vpack.c.bf16 %v12173_v15, %v12172_v44  ;;  %v1420_v20 = vpop.f32.mrb[99].mxu0 }
 0x2d4   :  { %v1712_v39 = vpack.c.bf16 %v1420_v20, %v1417_v45 }
 0x2d5   :  { %12327 = vmatmul.mubr.msk.bf16.gmra.mrb[172].mxu0 %vm286_vm3, %v1703_v18 }
 0x2d6   :  { %12338 = vmatprep.mubr.msk.bf16.mxu0 %vm286_vm3, %v1704_v41  ;;  %v13225_v41 = vld [vmem:[%s17420_s3 + $0xc8] sm:$0xff]  }
 0x2d8   :  { %v14846_v25 = vpop.f32.mrb[100].mxu0 }
 0x2d9   :  { %v1433_v42 = vpop.f32.mrb[101].mxu0 }
 0x2da   :  { %v14848_v47 = vpop.f32.mrb[102].mxu0 }
 0x2db   :  { %v1715_v52 = vpack.c.bf16 %v14848_v47, %v14846_v25  ;;  %v1436_v53 = vpop.f32.mrb[103].mxu0 }
 0x2dc   :  { %v1714_v46 = vpack.c.bf16 %v1436_v53, %v1433_v42  ;;  %v13230_v42 = vld [vmem:[%s17420_s3 + $0xf0] sm:$0xff]  }
 0x2dd   :  { %12339 = vmatmul.mubr.msk.bf16.vlgmr.msra.gmra.mrb[160].mxu0 %vm286_vm3, %v1705_v40 }
 0x2de   :  { %12342 = vmatprep.mubr.msk.bf16.mxu0 %vm286_vm3, %v1706_v3  ;;  %12355 = vmatpush3.bf16.msra.mxu0 %v13220_v5 }
 0x2df   :  { %12356 = vmatprep.subr.bf16.mxu0 %v13221_v22 }
 0x2e0   :  { %v14860_v51 = vpop.f32.mrb[104].mxu0 }
 0x2e1   :  { %v1449_v55 = vpop.f32.mrb[105].mxu0 }
 0x2e2   :  { %v14862_v62 = vpop.f32.mrb[106].mxu0  ;;  %12357 = vmatpush3.bf16.msra.mxu0 %v13221_v22 }
 0x2e3   :  { %v1717_v63 = vpack.c.bf16 %v14862_v62, %v14860_v51  ;;  %v1452_v24 = vpop.f32.mrb[107].mxu0  ;;  %12358 = vmatprep.subr.bf16.mxu0 %v13222_v49 }
 0x2e4   :  { %v1716_v58 = vpack.c.bf16 %v1452_v24, %v1449_v55  ;;  %v13232_v55 = vld [vmem:[%s17420_s3 + $0x100] sm:$0xff]  }
 0x2e5   :  { %12343 = vmatmul.mubr.msk.bf16.gmra.mrb[164].mxu0 %vm286_vm3, %v1707_v59 }
 0x2e6   :  { %12346 = vmatprep.mubr.msk.bf16.mxu0 %vm286_vm3, %v1708_v60  ;;  %12359 = vmatpush3.bf16.msra.mxu0 %v13222_v49  ;;  %v13231_v49 = vld [vmem:[%s17420_s3 + $0xf8] sm:$0xff]  }
 0x2e7   :  { %12360 = vmatprep.subr.bf16.mxu0 %v13223_v54 }
 0x2e8   :  { %v12184_v26 = vpop.f32.mrb[108].mxu0 }
 0x2e9   :  { %v1465_v27 = vpop.f32.mrb[109].mxu0 }
 0x2ea   :  { %v12185_v28 = vpop.f32.mrb[110].mxu0  ;;  %12361 = vmatpush3.bf16.msra.mxu0 %v13223_v54 }
 0x2eb   :  { %v1719_v30 = vpack.c.bf16 %v12185_v28, %v12184_v26  ;;  %v1468_v31 = vpop.f32.mrb[111].mxu0  ;;  %12378 = vmatprep.subr.bf16.mxu0 %v13224_v61 }
 0x2ec   :  { %v1718_v33 = vpack.c.bf16 %v1468_v31, %v1465_v27 }
 0x2ed   :  { %12347 = vmatmul.mubr.msk.bf16.gmra.mrb[168].mxu0 %vm286_vm3, %v1709_v9 }
 0x2ee   :  { %12350 = vmatprep.mubr.msk.bf16.mxu0 %vm286_vm3, %v1710_v56 }
 0x2f0   :  { %v12188_v16 = vpop.f32.mrb[112].mxu0 }
 0x2f1   :  { %v1481_v19 = vpop.f32.mrb[113].mxu0 }
 0x2f2   :  { %v12189_v14 = vpop.f32.mrb[114].mxu0 }
 0x2f3   :  { %v1721_v18 = vpack.c.bf16 %v12189_v14, %v12188_v16  ;;  %v1484_v21 = vpop.f32.mrb[115].mxu0 }
 0x2f4   :  { %v1720_v35 = vpack.c.bf16 %v1484_v21, %v1481_v19 }
 0x2f5   :  { %12351 = vmatmul.mubr.msk.bf16.gmra.mrb[172].mxu0 %vm286_vm3, %v1711_v34 }
 0x2f6   :  { %12362 = vmatprep.mubr.msk.bf16.mxu0 %vm286_vm3, %v1712_v39  ;;  %v13229_v39 = vld [vmem:[%s17420_s3 + $0xe8] sm:$0xff]  }
 0x2f8   :  { %v14878_v43 = vpop.f32.mrb[116].mxu0 }
 0x2f9   :  { %v1497_v29 = vpop.f32.mrb[117].mxu0 }
 0x2fa   :  { %v14880_v37 = vpop.f32.mrb[118].mxu0 }
 0x2fb   :  { %v1723_v40 = vpack.c.bf16 %v14880_v37, %v14878_v43  ;;  %v1500_v0 = vpop.f32.mrb[119].mxu0 }
 0x2fc   :  { %v1722_v48 = vpack.c.bf16 %v1500_v0, %v1497_v29 }
 0x2fd   :  { %12363 = vmatmul.mubr.msk.bf16.vlgmr.msra.gmra.mrb[160].mxu0 %vm286_vm3, %v1713_v17 }
 0x2fe   :  { %12366 = vmatprep.mubr.msk.bf16.mxu0 %vm286_vm3, %v1714_v46  ;;  %12379 = vmatpush3.bf16.msra.mxu0 %v13224_v61 }
 0x2ff   :  { %12380 = vmatprep.subr.bf16.mxu0 %v13225_v41 }
 0x300   :  { %v14892_v57 = vpop.f32.mrb[120].mxu0 }
 0x301   :  { %v1513_v59 = vpop.f32.mrb[121].mxu0 }
 0x302   :  { %v14894_v1 = vpop.f32.mrb[122].mxu0  ;;  %12381 = vmatpush3.bf16.msra.mxu0 %v13225_v41 }
 0x303   :  { %v1725_v2 = vpack.c.bf16 %v14894_v1, %v14892_v57  ;;  %v1516_v3 = vpop.f32.mrb[123].mxu0  ;;  %12382 = vmatprep.subr.bf16.mxu0 %v13226_v50 }
 0x304   :  { %v1724_v6 = vpack.c.bf16 %v1516_v3, %v1513_v59  ;;  %v13233_v59 = vld [vmem:[%s17420_s3 + $0x108] sm:$0xff]  }
 0x305   :  { %12367 = vmatmul.mubr.msk.bf16.gmra.mrb[164].mxu0 %vm286_vm3, %v1715_v52 }
 0x306   :  { %12370 = vmatprep.mubr.msk.bf16.mxu0 %vm286_vm3, %v1716_v58  ;;  %12383 = vmatpush3.bf16.msra.mxu0 %v13226_v50 }
 0x307   :  { %12384 = vmatprep.subr.bf16.mxu0 %v13227_v4 }
 0x308   :  { %v14906_v8 = vpop.f32.mrb[124].mxu0 }
 0x309   :  { %v1529_v9 = vpop.f32.mrb[125].mxu0 }
 0x30a   :  { %v14908_v11 = vpop.f32.mrb[126].mxu0  ;;  %12385 = vmatpush3.bf16.msra.mxu0 %v13227_v4  ;;  %v13234_v4 = vld [vmem:[%s17420_s3 + $0x110] sm:$0xff]  }
 0x30b   :  { %v1727_v36 = vpack.c.bf16 %v14908_v11, %v14906_v8  ;;  %v1532_v60 = vpop.f32.mrb[127].mxu0  ;;  %12402 = vmatprep.subr.bf16.mxu0 %v13228_v7 }
 0x30c   :  { %v1726_v5 = vpack.c.bf16 %v1532_v60, %v1529_v9 }
 0x30d   :  { %12371 = vmatmul.mubr.msk.bf16.gmra.mrb[168].mxu0 %vm286_vm3, %v1717_v63 }
 0x30e   :  { %12374 = vmatprep.mubr.msk.bf16.mxu0 %vm286_vm3, %v1718_v33 }
 0x310   :  { %v14914_v13 = vpop.f32.mrb[128].mxu0 }
 0x311   :  { %v1545_v23 = vpop.f32.mrb[129].mxu0 }
 0x312   :  { %v14916_v32 = vpop.f32.mrb[130].mxu0 }
 0x313   :  { %v1729_v34 = vpack.c.bf16 %v14916_v32, %v14914_v13  ;;  %v1548_v38 = vpop.f32.mrb[131].mxu0 }
 0x314   :  { %v1728_v56 = vpack.c.bf16 %v1548_v38, %v1545_v23 }
 0x315   :  { %12375 = vmatmul.mubr.msk.bf16.gmra.mrb[172].mxu0 %vm286_vm3, %v1719_v30 }
 0x316   :  { %12386 = vmatprep.mubr.msk.bf16.mxu0 %vm286_vm3, %v1720_v35 }
 0x318   :  { %v14922_v44 = vpop.f32.mrb[132].mxu0 }
 0x319   :  { %v14924_v45 = vpop.f32.mrb[133].mxu0 }
 0x31a   :  { %v14926_v15 = vpop.f32.mrb[134].mxu0 }
 0x31b   :  { %v1731_v17 = vpack.c.bf16 %v14926_v15, %v14922_v44  ;;  %v1564_v20 = vpop.f32.mrb[135].mxu0  ;;  %v13236_v44 = vld [vmem:[%s17421_s30] sm:$0xff]  }
 0x31c   :  { %v1730_v25 = vpack.c.bf16 %v1564_v20, %v14924_v45  ;;  %12466 = vmatprep.mubr.bf16.mxu1 %v13236_v44 }
 0x31d   :  { %12387 = vmatmul.mubr.msk.bf16.vlgmr.msra.gmra.mrb[160].mxu0 %vm286_vm3, %v1721_v18 }
 0x31e   :  { %12390 = vmatprep.mubr.msk.bf16.mxu0 %vm286_vm3, %v1722_v48  ;;  %12403 = vmatpush3.bf16.msra.mxu0 %v13228_v7 }
 0x31f   :  { %12404 = vmatprep.subr.bf16.mxu0 %v13229_v39 }
 0x320   :  { %v14939_v47 = vpop.f32.mrb[136].mxu0 }
 0x321   :  { %v14941_v52 = vpop.f32.mrb[137].mxu0 }
 0x322   :  { %v14943_v53 = vpop.f32.mrb[138].mxu0  ;;  %12405 = vmatpush3.bf16.msra.mxu0 %v13229_v39 }
 0x323   :  { %v1733_v22 = vpack.c.bf16 %v14943_v53, %v14939_v47  ;;  %v14947_v46 = vpop.f32.mrb[139].mxu0  ;;  %12406 = vmatprep.subr.bf16.mxu0 %v13230_v42 }
 0x324   :  { %v1732_v51 = vpack.c.bf16 %v14947_v46, %v14941_v52 }
 0x325   :  { %12391 = vmatmul.mubr.msk.bf16.gmra.mrb[164].mxu0 %vm286_vm3, %v1723_v40 }
 0x326   :  { %12394 = vmatprep.mubr.msk.bf16.mxu0 %vm286_vm3, %v1724_v6  ;;  %12407 = vmatpush3.bf16.msra.mxu0 %v13230_v42 }
 0x327   :  { %12408 = vmatprep.subr.bf16.mxu0 %v13231_v49 }
 0x328   :  { %v14959_v62 = vpop.f32.mrb[140].mxu0 }
 0x329   :  { %v14961_v63 = vpop.f32.mrb[141].mxu0 }
 0x32a   :  { %v14963_v24 = vpop.f32.mrb[142].mxu0  ;;  %v14965_v54 = vpop.f32.mrb[0].mxu1  ;;  %12409 = vmatpush3.bf16.msra.mxu0 %v13231_v49 }
 0x32b   :  { %v1735_v58 = vpack.c.bf16 %v14963_v24, %v14959_v62  ;;  %v1596_v61 = vpop.f32.mrb[143].mxu0  ;;  %v14969_v26 = vpop.f32.mrb[1].mxu1  ;;  %12426 = vmatprep.subr.bf16.mxu0 %v13232_v55 }
 0x32c   :  { %v1734_v27 = vpack.c.bf16 %v1596_v61, %v14961_v63  ;;  %v14972_v28 = vpop.f32.mrb[2].mxu1 }
 0x32d   :  { %v14974_v30 = vpop.f32.mrb[3].mxu1  ;;  %12395 = vmatmul.mubr.msk.bf16.gmra.mrb[168].mxu0 %vm286_vm3, %v1725_v2 }
 0x32e   :  { %12398 = vmatprep.mubr.msk.bf16.mxu0 %vm286_vm3, %v1726_v5  ;;  %v13235_v5 = vld [vmem:[%s17420_s3 + $0x118] sm:$0xff]  }
 0x330   :  { %v12220_v31 = vpop.f32.mrb[144].mxu0 }
 0x331   :  { %v1609_v33 = vpop.f32.mrb[145].mxu0 }
 0x332   :  { %v12221_v16 = vpop.f32.mrb[146].mxu0  ;;  %v14981_v19 = vpop.f32.mrb[4].mxu1 }
 0x333   :  { %v1737_v14 = vpack.c.bf16 %v12221_v16, %v12220_v31  ;;  %v1612_v18 = vpop.f32.mrb[147].mxu0  ;;  %v14983_v21 = vpop.f32.mrb[5].mxu1 }
 0x334   :  { %v1736_v35 = vpack.c.bf16 %v1612_v18, %v1609_v33  ;;  %v14985_v43 = vpop.f32.mrb[6].mxu1 }
 0x335   :  { %v14987_v29 = vpop.f32.mrb[7].mxu1  ;;  %12399 = vmatmul.mubr.msk.bf16.gmra.mrb[172].mxu0 %vm286_vm3, %v1727_v36 }
 0x336   :  { %12410 = vmatprep.mubr.msk.bf16.mxu0 %vm286_vm3, %v1728_v56 }
 0x338   :  { %v12224_v37 = vpop.f32.mrb[148].mxu0 }
 0x339   :  { %v1625_v40 = vpop.f32.mrb[149].mxu0 }
 0x33a   :  { %v12225_v0 = vpop.f32.mrb[150].mxu0  ;;  %v14994_v41 = vpop.f32.mrb[8].mxu1 }
 0x33b   :  { %v1739_v48 = vpack.c.bf16 %v12225_v0, %v12224_v37  ;;  %v1628_v50 = vpop.f32.mrb[151].mxu0  ;;  %v14996_v57 = vpop.f32.mrb[9].mxu1 }
 0x33c   :  { %v1738_v1 = vpack.c.bf16 %v1628_v50, %v1625_v40  ;;  %v15001_v2 = vpop.f32.mrb[10].mxu1 }
 0x33d   :  { %v15003_v3 = vpop.f32.mrb[11].mxu1  ;;  %12411 = vmatmul.mubr.msk.bf16.vlgmr.msra.gmra.mrb[160].mxu0 %vm286_vm3, %v1729_v34 }
 0x33e   :  { %12414 = vmatprep.mubr.msk.bf16.mxu0 %vm286_vm3, %v1730_v25  ;;  %12427 = vmatpush3.bf16.msra.mxu0 %v13232_v55 }
 0x33f   :  { %12428 = vmatprep.subr.bf16.mxu0 %v13233_v59 }
 0x340   :  { %v12228_v6 = vpop.f32.mrb[152].mxu0 }
 0x341   :  { %v1641_v7 = vpop.f32.mrb[153].mxu0 }
 0x342   :  { %v12229_v8 = vpop.f32.mrb[154].mxu0  ;;  %v15013_v9 = vpop.f32.mrb[12].mxu1  ;;  %12429 = vmatpush3.bf16.msra.mxu0 %v13233_v59 }
 0x343   :  { %v1741_v11 = vpack.c.bf16 %v12229_v8, %v12228_v6  ;;  %v1644_v36 = vpop.f32.mrb[155].mxu0  ;;  %v15015_v60 = vpop.f32.mrb[13].mxu1  ;;  %12430 = vmatprep.subr.bf16.mxu0 %v13234_v4 }
 0x344   :  { %v1740_v13 = vpack.c.bf16 %v1644_v36, %v1641_v7  ;;  %v15020_v23 = vpop.f32.mrb[14].mxu1 }
 0x345   :  { %v15022_v32 = vpop.f32.mrb[15].mxu1  ;;  %12415 = vmatmul.mubr.msk.bf16.gmra.mrb[164].mxu0 %vm286_vm3, %v1731_v17 }
 0x346   :  { %12418 = vmatprep.mubr.msk.bf16.mxu0 %vm286_vm3, %v1732_v51  ;;  %12431 = vmatpush3.bf16.msra.mxu0 %v13234_v4 }
 0x347   :  { %12432 = vmatprep.subr.bf16.mxu0 %v13235_v5 }
 0x348   :  { %v12232_v34 = vpop.f32.mrb[156].mxu0 }
 0x349   :  { %v1657_v38 = vpop.f32.mrb[157].mxu0 }
 0x34a   :  { %v12233_v56 = vpop.f32.mrb[158].mxu0  ;;  %12433 = vmatpush3.bf16.msra.mxu0 %v13235_v5 }
 0x34b   :  { %v1743_v45 = vpack.c.bf16 %v12233_v56, %v12232_v34  ;;  %v1660_v20 = vpop.f32.mrb[159].mxu0 }
 0x34c   :  { %v1742_v39 = vpack.c.bf16 %v1660_v20, %v1657_v38 }
 0x34d   :  { %12419 = vmatmul.mubr.msk.bf16.gmra.mrb[168].mxu0 %vm286_vm3, %v1733_v22 }
 0x34e   :  { %12422 = vmatprep.mubr.msk.bf16.mxu0 %vm286_vm3, %v1734_v27 }
 0x355   :  { %12423 = vmatmul.mubr.msk.bf16.gmra.mrb[172].mxu0 %vm286_vm3, %v1735_v58 }
 0x356   :  { %12434 = vmatprep.mubr.msk.bf16.mxu0 %vm286_vm3, %v1736_v35 }
 0x35d   :  { %12435 = vmatmul.mubr.msk.bf16.vlgmr.msra.gmra.mrb[160].mxu0 %vm286_vm3, %v1737_v14 }
 0x35e   :  { %12438 = vmatprep.mubr.msk.bf16.mxu0 %vm286_vm3, %v1738_v1 }
 0x365   :  { %12439 = vmatmul.mubr.msk.bf16.gmra.mrb[164].mxu0 %vm286_vm3, %v1739_v48 }
 0x366   :  { %12442 = vmatprep.mubr.msk.bf16.mxu0 %vm286_vm3, %v1740_v13 }
 0x36d   :  { %12443 = vmatmul.mubr.msk.bf16.gmra.mrb[168].mxu0 %vm286_vm3, %v1741_v11 }
 0x36e   :  { %12446 = vmatprep.mubr.msk.bf16.mxu0 %vm286_vm3, %v1742_v39 }
 0x375   :  { %12447 = vmatmul.mubr.msk.bf16.gmra.mrb[172].mxu0 %vm286_vm3, %v1743_v45 }
 0x430   :  { %v12436_v15 = vpop.f32.mrb[160].mxu0 }
 0x431   :  { %v15050_v17 = vadd.f32 %v12436_v15, %v14965_v54  ;;  %v3162_v25 = vpop.f32.mrb[161].mxu0 }
 0x432   :  { %v15053_v42 = vadd.f32 %v3162_v25, %v14969_v26  ;;  %v12437_v47 = vpop.f32.mrb[162].mxu0 }
 0x433   :  { %v15056_v52 = vadd.f32 %v12437_v47, %v14972_v28  ;;  %v3165_v53 = vpop.f32.mrb[163].mxu0  ;;  %v3281_v49 = vmul.f32 %v15050_v17, %v15050_v17  ;;  %v3244_v54 = vsel %vm286_vm3, %v15050_v17, 0.0 }
 0x434   :  { %v3279_v22 = vmul.f32 %v15053_v42, %v15053_v42  ;;  %v15061_v46 = vadd.f32 %v3165_v53, %v14974_v30  ;;  %v3241_v51 = vsel %vm286_vm3, %v15053_v42, 0.0 }
 0x435   :  { %v3282_v63 = vmul.f32 %v15056_v52, %v15056_v52  ;;  %v3298_v33 = vsel %vm286_vm3, %v3281_v49, 0.0  ;;  %v3246_v16 = vsel %vm286_vm3, %v15056_v52, 0.0 }
 0x436   :  { %v3242_v55 = vsel %vm286_vm3, %v15061_v46, 0.0  ;;  %v3280_v62 = vmul.f32 %v15061_v46, %v15061_v46  ;;  %v3295_v58 = vsel %vm286_vm3, %v3279_v22, 0.0 }
 0x437   :  { %v3243_v24 = vadd.f32 %v3242_v55, %v3241_v51  ;;  %v3300_v35 = vsel %vm286_vm3, %v3282_v63, 0.0 }
 0x438   :  { %v3296_v61 = vsel %vm286_vm3, %v3280_v62, 0.0  ;;  %v12440_v26 = vpop.f32.mrb[164].mxu0 }
 0x439   :  { %v3245_v27 = vadd.f32 %v3244_v54, %v3243_v24  ;;  %v3297_v28 = vadd.f32 %v3296_v61, %v3295_v58  ;;  %v15078_v30 = vadd.f32 %v12440_v26, %v14981_v19  ;;  %v3178_v31 = vpop.f32.mrb[165].mxu0 }
 0x43a   :  { %v15084_v14 = vadd.f32 %v3178_v31, %v14983_v21  ;;  %v12441_v18 = vpop.f32.mrb[166].mxu0 }
 0x43b   :  { %v3299_v37 = vadd.f32 %v3298_v33, %v3297_v28  ;;  %v3247_v40 = vadd.f32 %v3246_v16, %v3245_v27  ;;  %v3181_v0 = vpop.f32.mrb[167].mxu0  ;;  %v15092_v50 = vadd.f32 %v12441_v18, %v14985_v43  ;;  %v3285_v7 = vmul.f32 %v15078_v30, %v15078_v30 }
 0x43c   :  { %v3248_v48 = vsel %vm286_vm3, %v15084_v14, 0.0  ;;  %v3283_v19 = vmul.f32 %v15084_v14, %v15084_v14  ;;  %v15095_v59 = vadd.f32 %v3181_v0, %v14987_v29  ;;  %v3252_v43 = vsel %vm286_vm3, %v15078_v30, 0.0 }
 0x43d   :  { %v3249_v21 = vadd.f32 %v3248_v48, %v3247_v40  ;;  %v3301_v1 = vadd.f32 %v3300_v35, %v3299_v37  ;;  %v3286_v5 = vmul.f32 %v15092_v50, %v15092_v50  ;;  %v3254_v45 = vsel %vm286_vm3, %v15092_v50, 0.0 }
 0x43e   :  { %v3302_v4 = vsel %vm286_vm3, %v3283_v19, 0.0  ;;  %v3250_v6 = vsel %vm286_vm3, %v15095_v59, 0.0  ;;  %v3284_v36 = vmul.f32 %v15095_v59, %v15095_v59  ;;  %v3306_v15 = vsel %vm286_vm3, %v3285_v7, 0.0 }
 0x43f   :  { %v3303_v8 = vadd.f32 %v3302_v4, %v3301_v1  ;;  %v3251_v11 = vadd.f32 %v3250_v6, %v3249_v21 }
 0x440   :  { %v12444_v29 = vpop.f32.mrb[168].mxu0  ;;  %v3304_v34 = vsel %vm286_vm3, %v3284_v36, 0.0 }
 0x441   :  { %v3253_v13 = vadd.f32 %v3252_v43, %v3251_v11  ;;  %v15110_v38 = vadd.f32 %v12444_v29, %v14994_v41  ;;  %v3194_v56 = vpop.f32.mrb[169].mxu0  ;;  %v3305_v20 = vadd.f32 %v3304_v34, %v3303_v8 }
 0x442   :  { %v15115_v39 = vadd.f32 %v3194_v56, %v14996_v57  ;;  %v12445_v44 = vpop.f32.mrb[170].mxu0  ;;  %v3308_v57 = vsel %vm286_vm3, %v3286_v5, 0.0 }
 0x443   :  { %v3255_v25 = vadd.f32 %v3254_v45, %v3253_v13  ;;  %v15119_v47 = vadd.f32 %v12445_v44, %v15001_v2  ;;  %v3197_v53 = vpop.f32.mrb[171].mxu0  ;;  %v3307_v22 = vadd.f32 %v3306_v15, %v3305_v20  ;;  %v3289_v54 = vmul.f32 %v15110_v38, %v15110_v38 }
 0x444   :  { %v3256_v41 = vsel %vm286_vm3, %v15115_v39, 0.0  ;;  %v3287_v49 = vmul.f32 %v15115_v39, %v15115_v39  ;;  %v15126_v51 = vadd.f32 %v3197_v53, %v15003_v3  ;;  %v3260_v3 = vsel %vm286_vm3, %v15110_v38, 0.0 }
 0x445   :  { %v3257_v55 = vadd.f32 %v3256_v41, %v3255_v25  ;;  %v3309_v62 = vadd.f32 %v3308_v57, %v3307_v22  ;;  %v3290_v28 = vmul.f32 %v15119_v47, %v15119_v47  ;;  %v3262_v18 = vsel %vm286_vm3, %v15119_v47, 0.0 }
 0x446   :  { %v3310_v63 = vsel %vm286_vm3, %v3287_v49, 0.0  ;;  %v3258_v2 = vsel %vm286_vm3, %v15126_v51, 0.0  ;;  %v3288_v24 = vmul.f32 %v15126_v51, %v15126_v51  ;;  %v3314_v0 = vsel %vm286_vm3, %v3289_v54, 0.0 }
 0x447   :  { %v3259_v58 = vadd.f32 %v3258_v2, %v3257_v55  ;;  %v3311_v61 = vadd.f32 %v3310_v63, %v3309_v62 }
 0x448   :  { %v3312_v26 = vsel %vm286_vm3, %v3288_v24, 0.0  ;;  %v12448_v27 = vpop.f32.mrb[172].mxu0 }
 0x449   :  { %v3261_v31 = vadd.f32 %v3260_v3, %v3259_v58  ;;  %v15142_v33 = vadd.f32 %v12448_v27, %v15013_v9  ;;  %v3210_v16 = vpop.f32.mrb[173].mxu0  ;;  %v3313_v35 = vadd.f32 %v3312_v26, %v3311_v61 }
 0x44a   :  { %v15147_v37 = vadd.f32 %v3210_v16, %v15015_v60  ;;  %v12449_v40 = vpop.f32.mrb[174].mxu0  ;;  %v3316_v60 = vsel %vm286_vm3, %v3290_v28, 0.0  ;;  %v13254_v16 = vld [vmem:[%s17422_s12 + $0x20] sm:$0xff]  }
 0x44b   :  { %v3263_v48 = vadd.f32 %v3262_v18, %v3261_v31  ;;  %v15151_v19 = vadd.f32 %v12449_v40, %v15020_v23  ;;  %v3213_v21 = vpop.f32.mrb[175].mxu0  ;;  %v3315_v1 = vadd.f32 %v3314_v0, %v3313_v35  ;;  %v3293_v43 = vmul.f32 %v15142_v33, %v15142_v33  ;;  %12502 = vmatprep.subr.bf16.mxu0 %v13254_v16  ;;  %v3338_v40 = vld [vmem:[%s17423_s29] sm:$0x1] }
 0x44c   :  { %v3264_v9 = vsel %vm286_vm3, %v15147_v37, 0.0  ;;  %v3291_v4 = vmul.f32 %v15147_v37, %v15147_v37  ;;  %v12873_v6 = vadd.f32 %v3213_v21, %v15022_v32  ;;  %v3268_v5 = vsel %vm286_vm3, %v15142_v33, 0.0  ;;  %12503 = vmatpush3.bf16.msra.mxu0 %v13254_v16 }
 0x44d   :  { %v3265_v7 = vadd.f32 %v3264_v9, %v3263_v48  ;;  %v3317_v8 = vadd.f32 %v3316_v60, %v3315_v1  ;;  %v3294_v32 = vmul.f32 %v15151_v19, %v15151_v19  ;;  %v3270_v45 = vsel %vm286_vm3, %v15151_v19, 0.0  ;;  %v3340_v48 = vld [vmem:[%s17424_s10] sm:$0x1] }
 0x44e   :  { %v3318_v11 = vsel %vm286_vm3, %v3291_v4, 0.0  ;;  %v3266_v36 = vsel %vm286_vm3, %v12873_v6, 0.0  ;;  %v3292_v23 = vmul.f32 %v12873_v6, %v12873_v6  ;;  %v3322_v44 = vsel %vm286_vm3, %v3293_v43, 0.0 }
 0x44f   :  { %v3267_v29 = vadd.f32 %v3266_v36, %v3265_v7  ;;  %v3319_v13 = vadd.f32 %v3318_v11, %v3317_v8  ;;  %v3324_v53 = vsel %vm286_vm3, %v3294_v32, 0.0 }
 0x450   :  { %v3320_v34 = vsel %vm286_vm3, %v3292_v23, 0.0 }
 0x451   :  { %v3269_v56 = vadd.f32 %v3268_v5, %v3267_v29  ;;  %v3321_v20 = vadd.f32 %v3320_v34, %v3319_v13 }
 0x453   :  { %v3271_v15 = vadd.f32 %v3270_v45, %v3269_v56  ;;  %v3323_v25 = vadd.f32 %v3322_v44, %v3321_v20 }
 0x455   :  { %v3272_v22 = vrot.slane %v3271_v15, 4  ;;  %v3325_v41 = vadd.f32 %v3324_v53, %v3323_v25 }
 0x457   :  { %v3273_v49 = vadd.f32 %v3272_v22, %v3271_v15  ;;  %v3326_v57 = vrot.slane %v3325_v41, 4 }
 0x459   :  { %v3274_v55 = vrot.slane %v3273_v49, 2  ;;  %v3327_v62 = vadd.f32 %v3326_v57, %v3325_v41 }
 0x45b   :  { %v3275_v63 = vadd.f32 %v3274_v55, %v3273_v49  ;;  %v3328_v2 = vrot.slane %v3327_v62, 2 }
 0x45d   :  { %v3276_v24 = vrot.slane %v3275_v63, 1  ;;  %v3329_v54 = vadd.f32 %v3328_v2, %v3327_v62 }
 0x45f   :  { %v3277_v58 = vadd.f32 %v3276_v24, %v3275_v63  ;;  %v3330_v3 = vrot.slane %v3329_v54, 1 }
 0x461   :  { %v3278_v61 = vmul.f32 0.0078125, %v3277_v58  ;;  %v3331_v26 = vadd.f32 %v3330_v3, %v3329_v54 }
 0x463   :  { %v3333_v27 = vmul.f32 %v3278_v61, %v3278_v61  ;;  %v3332_v28 = vmul.f32 0.0078125, %v3331_v26 }
 0x465   :  { %v3334_v31 = vsub.f32 %v3332_v28, %v3333_v27 }
 0x467   :  { %v3335_v18 = vmax.f32 %v3334_v31, 0.0 }
 0x469   :  { %v3336_v35 = vadd.f32 1e-05, %v3335_v18 }
 0x46b   :  { %14040 = vrsqrt.f32 %v3336_v35 }
 0x475   :  { %v14041_v0 = vpop.eup %14040 }
 0x476   :  { %v3339_v21 = vmul.f32 %v14041_v0, %v3338_v40 }
 0x478   :  { %v3341_v1 = vmul.f32 %v3339_v21, %v3278_v61  ;;  %v15182_v9 = vrot.slane %v3339_v21, %v14359_v12 }
 0x47a   :  { %v3342_v4 = vsub.f32 %v3340_v48, %v3341_v1  ;;  %v3360_v60 = vmul.f32 %v12873_v6, %v15182_v9  ;;  %v3347_v7 = vmul.f32 %v15053_v42, %v15182_v9  ;;  %v3348_v8 = vmul.f32 %v15061_v46, %v15182_v9 }
 0x47b   :  { %v3349_v11 = vmul.f32 %v15050_v17, %v15182_v9  ;;  %v3350_v36 = vmul.f32 %v15056_v52, %v15182_v9  ;;  %v3351_v23 = vmul.f32 %v15084_v14, %v15182_v9  ;;  %v3352_v43 = vmul.f32 %v15095_v59, %v15182_v9 }
 0x47c   :  { %v15198_v6 = vrot.slane %v3342_v4, %v14359_v12  ;;  %v3353_v42 = vmul.f32 %v15078_v30, %v15182_v9  ;;  %v3354_v46 = vmul.f32 %v15092_v50, %v15182_v9  ;;  %v3355_v17 = vmul.f32 %v15115_v39, %v15182_v9 }
 0x47d   :  { %v3356_v52 = vmul.f32 %v15126_v51, %v15182_v9  ;;  %v3357_v14 = vmul.f32 %v15110_v38, %v15182_v9  ;;  %v3358_v59 = vmul.f32 %v15119_v47, %v15182_v9  ;;  %v3359_v29 = vmul.f32 %v15147_v37, %v15182_v9 }
 0x47e   :  { %v15215_v30 = vadd.f32 %v15198_v6, %v3360_v60  ;;  %v3369_v50 = vadd.f32 %v15198_v6, %v3347_v7  ;;  %v3370_v5 = vadd.f32 %v15198_v6, %v3348_v8  ;;  %v3371_v39 = vadd.f32 %v15198_v6, %v3349_v11 }
 0x47f   :  { %v3372_v51 = vadd.f32 %v15198_v6, %v3350_v36  ;;  %v3373_v13 = vadd.f32 %v15198_v6, %v3351_v23  ;;  %v3374_v38 = vadd.f32 %v15198_v6, %v3352_v43  ;;  %v3375_v47 = vadd.f32 %v15198_v6, %v3353_v42 }
 0x480   :  { %vm3385_vm6 = vcmp.ge.f32.partialorder %v3369_v50, 0.0  ;;  %vm3386_vm7 = vcmp.ge.f32.partialorder %v3370_v5, 0.0  ;;  %v3401_v37 = vmul.f32 0.01, %v3369_v50  ;;  %v3402_v34 = vmul.f32 0.01, %v3370_v5 }
 0x481   :  { %vm3387_vm8 = vcmp.ge.f32.partialorder %v3371_v39, 0.0  ;;  %vm3388_vm9 = vcmp.ge.f32.partialorder %v3372_v51, 0.0  ;;  %v3403_v32 = vmul.f32 0.01, %v3371_v39  ;;  %v3404_v56 = vmul.f32 0.01, %v3372_v51 }
 0x482   :  { %v3417_v45 = vsel %vm3385_vm6, %v3369_v50, %v3401_v37  ;;  %v3418_v20 = vsel %vm3386_vm7, %v3370_v5, %v3402_v34  ;;  %vm3389_vm10 = vcmp.ge.f32.partialorder %v3373_v13, 0.0  ;;  %vm3390_vm11 = vcmp.ge.f32.partialorder %v3374_v38, 0.0  ;;  %v13242_v50 = vld [vmem:[%s17421_s30 + $0x30] sm:$0xff]   ;;  %v13243_v5 = vld [vmem:[%s17421_s30 + $0x38] sm:$0xff]   ;;  %v13249_v37 = vld [vmem:[%s17421_s30 + $0x68] sm:$0xff]  }
 0x483   :  { %v3433_v44 = vpack.c.bf16 %v3418_v20, %v3417_v45  ;;  %v3419_v15 = vsel %vm3387_vm8, %v3371_v39, %v3403_v32  ;;  %v3420_v25 = vsel %vm3388_vm9, %v3372_v51, %v3404_v56  ;;  %v3405_v53 = vmul.f32 0.01, %v3373_v13  ;;  %v13244_v39 = vld [vmem:[%s17421_s30 + $0x40] sm:$0xff]   ;;  %v13245_v51 = vld [vmem:[%s17421_s30 + $0x48] sm:$0xff]   ;;  %v13250_v34 = vld [vmem:[%s17421_s30 + $0x70] sm:$0xff]  }
 0x484   :  { %v3434_v22 = vpack.c.bf16 %v3420_v25, %v3419_v15  ;;  %v3406_v41 = vmul.f32 0.01, %v3374_v38  ;;  %v3376_v49 = vadd.f32 %v15198_v6, %v3354_v46  ;;  %vm3391_vm12 = vcmp.ge.f32.partialorder %v3375_v47, 0.0  ;;  %v13251_v32 = vld [vmem:[%s17421_s30 + $0x78] sm:$0xff]   ;;  %v13252_v56 = vld [vmem:[%s17421_s30 + $0x80] sm:$0xff]   ;;  %v13253_v45 = vld [vmem:[%s17421_s30 + $0x88] sm:$0xff]  }
 0x485   :  { %12450 = vmatprep.subr.bf16.mxu1 %v3433_v44  ;;  %v3421_v57 = vsel %vm3389_vm10, %v3373_v13, %v3405_v53  ;;  %v3407_v55 = vmul.f32 0.01, %v3375_v47  ;;  %v3377_v62 = vadd.f32 %v15198_v6, %v3355_v17  ;;  %v3378_v63 = vadd.f32 %v15198_v6, %v3356_v52  ;;  %v13246_v13 = vld [vmem:[%s17421_s30 + $0x50] sm:$0xff]   ;;  %v13255_v20 = vld [vmem:[%s17422_s12 + $0x28] sm:$0xff]   ;;  %v13257_v15 = vld [vmem:[%s17422_s12 + $0x38] sm:$0xff]  }
 0x486   :  { %12451 = vmatpush3.bf16.msra.mxu1 %v3433_v44  ;;  %v3422_v2 = vsel %vm3390_vm11, %v3374_v38, %v3406_v41  ;;  %vm3392_vm13 = vcmp.ge.f32.partialorder %v3376_v49, 0.0  ;;  %v3408_v24 = vmul.f32 0.01, %v3376_v49  ;;  %v3379_v54 = vadd.f32 %v15198_v6, %v3357_v14  ;;  %v13247_v38 = vld [vmem:[%s17421_s30 + $0x58] sm:$0xff]   ;;  %v13256_v44 = vld [vmem:[%s17422_s12 + $0x30] sm:$0xff]   ;;  %12504 = vmatprep.subr.bf16.mxu0 %v13255_v20  ;;  %v13258_v25 = vld [vmem:[%s17422_s12] sm:$0xff]  }
 0x487   :  { %12452 = vmatprep.subr.bf16.mxu1 %v3434_v22  ;;  %v3435_v58 = vpack.c.bf16 %v3422_v2, %v3421_v57  ;;  %v3423_v3 = vsel %vm3391_vm12, %v3375_v47, %v3407_v55  ;;  %vm3393_vm14 = vcmp.ge.f32.partialorder %v3377_v62, 0.0  ;;  %vm3394_vm15 = vcmp.ge.f32.partialorder %v3378_v63, 0.0  ;;  %v13248_v47 = vld [vmem:[%s17421_s30 + $0x60] sm:$0xff]   ;;  %12505 = vmatpush3.bf16.msra.mxu0 %v13255_v20 }
 0x488   :  { %v3424_v61 = vsel %vm3392_vm13, %v3376_v49, %v3408_v24  ;;  %v3409_v26 = vmul.f32 0.01, %v3377_v62  ;;  %v3410_v27 = vmul.f32 0.01, %v3378_v63  ;;  %v3380_v28 = vadd.f32 %v15198_v6, %v3358_v59  ;;  %12506 = vmatprep.subr.bf16.mxu0 %v13256_v44 }
 0x489   :  { %v3436_v31 = vpack.c.bf16 %v3424_v61, %v3423_v3  ;;  %vm3395_vm1 = vcmp.ge.f32.partialorder %v3379_v54, 0.0  ;;  %v3411_v16 = vmul.f32 0.01, %v3379_v54  ;;  %v3381_v18 = vadd.f32 %v15198_v6, %v3359_v29  ;;  %v13240_v29 = vld [vmem:[%s17421_s30 + $0x20] sm:$0xff]   ;;  %v13259_v3 = vld [vmem:[%s17422_s12 + $0x8] sm:$0xff]  }
 0x48a   :  { %12453 = vmatpush3.bf16.msra.mxu1 %v3434_v22  ;;  %v3425_v35 = vsel %vm3393_vm14, %v3377_v62, %v3409_v26  ;;  %v3426_v40 = vsel %vm3394_vm15, %v3378_v63, %v3410_v27  ;;  %vm3396_vm2 = vcmp.ge.f32.partialorder %v3380_v28, 0.0  ;;  %v3412_v0 = vmul.f32 0.01, %v3380_v28  ;;  %v13260_v26 = vld [vmem:[%s17422_s12 + $0x10] sm:$0xff]  }
 0x48b   :  { %12454 = vmatprep.subr.bf16.mxu1 %v3435_v58  ;;  %v3437_v48 = vpack.c.bf16 %v3426_v40, %v3425_v35  ;;  %v3427_v21 = vsel %vm3395_vm1, %v3379_v54, %v3411_v16  ;;  %vm3397_vm4 = vcmp.ge.f32.partialorder %v3381_v18, 0.0  ;;  %vm3398_vm5 = vcmp.ge.f32.partialorder %v15215_v30, 0.0  ;;  %12507 = vmatpush3.bf16.msra.mxu0 %v13256_v44  ;;  %v13261_v35 = vld [vmem:[%s17422_s12 + $0x18] sm:$0xff]  }
 0x48c   :  { %v3428_v1 = vsel %vm3396_vm2, %v3380_v28, %v3412_v0  ;;  %v3413_v4 = vmul.f32 0.01, %v3381_v18  ;;  %v3414_v60 = vmul.f32 0.01, %v15215_v30  ;;  %v3361_v7 = vmul.f32 %v15142_v33, %v15182_v9  ;;  %12508 = vmatprep.subr.bf16.mxu0 %v13257_v15  ;;  %v13262_v0 = vld [vmem:[%s17422_s12 + $0x40] sm:$0xff]  }
 0x48d   :  { %v3438_v8 = vpack.c.bf16 %v3428_v1, %v3427_v21  ;;  %v3362_v11 = vmul.f32 %v15151_v19, %v15182_v9  ;;  %v13237_v19 = vld [vmem:[%s17421_s30 + $0x8] sm:$0xff]   ;;  %v13238_v9 = vld [vmem:[%s17421_s30 + $0x10] sm:$0xff]   ;;  %vm4791_vm8 = vcmask 261120   ;;  %vm14062_vm12 = vmmov 0  }
 0x48e   :  { %12455 = vmatpush3.bf16.msra.mxu1 %v3435_v58  ;;  %v3429_v36 = vsel %vm3397_vm4, %v3381_v18, %v3413_v4  ;;  %v3430_v23 = vsel %vm3398_vm5, %v15215_v30, %v3414_v60  ;;  %v3383_v43 = vadd.f32 %v15198_v6, %v3361_v7  ;;  %v13241_v30 = vld [vmem:[%s17421_s30 + $0x28] sm:$0xff]   ;;  %vm7690_vm5 = vcmask 64512  }
 0x48f   :  { %12456 = vmatprep.subr.bf16.mxu1 %v3436_v31  ;;  %v3439_v42 = vpack.c.bf16 %v3430_v23, %v3429_v36  ;;  %v3384_v46 = vadd.f32 %v15198_v6, %v3362_v11  ;;  %v13239_v6 = vld [vmem:[%s17421_s30 + $0x18] sm:$0xff]   ;;  %12509 = vmatpush3.bf16.msra.mxu0 %v13257_v15  ;;  %v13263_v7 = vld [vmem:[%s17422_s12 + $0x48] sm:$0xff]   ;;  %v13264_v11 = vld [vmem:[%s17422_s12 + $0x50] sm:$0xff]   ;;  %s17426_s30 = sld [smem:[#allocation16_spill]] }
 0x490   :  { %vm3399_vm6 = vcmp.ge.f32.partialorder %v3383_v43, 0.0  ;;  %v3415_v17 = vmul.f32 0.01, %v3383_v43  ;;  %12514 = vmatprep.subr.bf16.mxu0 %v13258_v25  ;;  %v13271_v15 = vld [vmem:[%s17422_s12 + $0x88] sm:$0xff]  }
 0x491   :  { %vm3400_vm7 = vcmp.ge.f32.partialorder %v3384_v46, 0.0  ;;  %v3416_v52 = vmul.f32 0.01, %v3384_v46 }
 0x492   :  { %12457 = vmatpush3.bf16.msra.mxu1 %v3436_v31  ;;  %v3431_v33 = vsel %vm3399_vm6, %v3383_v43, %v3415_v17  ;;  %v13265_v17 = vld [vmem:[%s17422_s12 + $0x58] sm:$0xff]  }
 0x493   :  { %12458 = vmatprep.subr.bf16.mxu1 %v3437_v48  ;;  %v3432_v14 = vsel %vm3400_vm7, %v3384_v46, %v3416_v52  ;;  %vm10130_vm7 = vcmask 1041408  }
 0x494   :  { %v3440_v59 = vpack.c.bf16 %v3432_v14, %v3431_v33  ;;  %v13266_v33 = vld [vmem:[%s17422_s12 + $0x60] sm:$0xff]  }
 0x496   :  { %12459 = vmatpush3.bf16.msra.mxu1 %v3437_v48 }
 0x497   :  { %12460 = vmatprep.subr.bf16.mxu1 %v3438_v8 }
 0x49a   :  { %12461 = vmatpush3.bf16.msra.mxu1 %v3438_v8 }
 0x49b   :  { %12462 = vmatprep.subr.bf16.mxu1 %v3439_v42 }
 0x49e   :  { %12463 = vmatpush3.bf16.msra.mxu1 %v3439_v42 }
 0x49f   :  { %12464 = vmatprep.subr.bf16.mxu1 %v3440_v59 }
 0x4a2   :  { %12465 = vmatpush3.bf16.msra.mxu1 %v3440_v59 }
 0x4a5   :  { %12467 = vmatmul.mubr.bf16.vlgmr.msra.gmra.mrb[16].mxu1 %v13237_v19 }
 0x4a6   :  { %12470 = vmatprep.mubr.bf16.mxu1 %v13238_v9 }
 0x4ad   :  { %12471 = vmatmul.mubr.bf16.gmra.mrb[20].mxu1 %v13239_v6 }
 0x4ae   :  { %12474 = vmatprep.mubr.bf16.mxu1 %v13240_v29  ;;  %v13267_v29 = vld [vmem:[%s17422_s12 + $0x68] sm:$0xff]  }
 0x4b5   :  { %12475 = vmatmul.mubr.bf16.gmra.mrb[24].mxu1 %v13241_v30 }
 0x4b6   :  { %12478 = vmatprep.mubr.bf16.mxu1 %v13242_v50  ;;  %v13268_v50 = vld [vmem:[%s17422_s12 + $0x70] sm:$0xff]  }
 0x4bd   :  { %12479 = vmatmul.mubr.bf16.gmra.mrb[28].mxu1 %v13243_v5 }
 0x4be   :  { %12482 = vmatprep.mubr.bf16.mxu1 %v13244_v39 }
 0x4c5   :  { %12483 = vmatmul.mubr.bf16.gmra.mrb[32].mxu1 %v13245_v51 }
 0x4c6   :  { %12486 = vmatprep.mubr.bf16.mxu1 %v13246_v13 }
 0x4cd   :  { %12487 = vmatmul.mubr.bf16.gmra.mrb[36].mxu1 %v13247_v38 }
 0x4ce   :  { %12490 = vmatprep.mubr.bf16.mxu1 %v13248_v47  ;;  %v13269_v47 = vld [vmem:[%s17422_s12 + $0x78] sm:$0xff]  }
 0x4d5   :  { %12491 = vmatmul.mubr.bf16.gmra.mrb[40].mxu1 %v13249_v37 }
 0x4d6   :  { %12494 = vmatprep.mubr.bf16.mxu1 %v13250_v34  ;;  %v13270_v34 = vld [vmem:[%s17422_s12 + $0x80] sm:$0xff]  }
 0x4dd   :  { %12495 = vmatmul.mubr.bf16.gmra.mrb[44].mxu1 %v13251_v32 }
 0x4de   :  { %12498 = vmatprep.mubr.bf16.mxu1 %v13252_v56 }
 0x4e5   :  { %12499 = vmatmul.mubr.bf16.gmra.mrb[48].mxu1 %v13253_v45 }
 0x578   :  { %v12468_v53 = vpop.f32.mrb[16].mxu1 }
 0x579   :  { %v3619_v22 = vpop.f32.mrb[17].mxu1 }
 0x57a   :  { %v12469_v41 = vpop.f32.mrb[18].mxu1 }
 0x57b   :  { %v3763_v49 = vpack.c.bf16 %v12469_v41, %v12468_v53  ;;  %v3622_v57 = vpop.f32.mrb[19].mxu1  ;;  %v13272_v53 = vld [vmem:[%s17422_s12 + $0x90] sm:$0xff]  }
 0x57c   :  { %v3762_v55 = vpack.c.bf16 %v3622_v57, %v3619_v22 }
 0x580   :  { %v12472_v62 = vpop.f32.mrb[20].mxu1 }
 0x581   :  { %v3635_v63 = vpop.f32.mrb[21].mxu1 }
 0x582   :  { %v12473_v2 = vpop.f32.mrb[22].mxu1 }
 0x583   :  { %v3765_v24 = vpack.c.bf16 %v12473_v2, %v12472_v62  ;;  %v3638_v54 = vpop.f32.mrb[23].mxu1  ;;  %v13273_v62 = vld [vmem:[%s17422_s12 + $0x98] sm:$0xff]   ;;  %v13275_v2 = vld [vmem:[%s17422_s12 + $0xa8] sm:$0xff]  }
 0x584   :  { %v3764_v58 = vpack.c.bf16 %v3638_v54, %v3635_v63  ;;  %v13274_v63 = vld [vmem:[%s17422_s12 + $0xa0] sm:$0xff]   ;;  %v13277_v54 = vld [vmem:[%s17422_s12 + $0xb8] sm:$0xff]  }
 0x586   :  { %12510 = vmatprep.mubr.msk.bf16.mxu0 %vm286_vm3, %v3764_v58  ;;  %v13278_v58 = vld [vmem:[%s17422_s12 + $0xc0] sm:$0xff]  }
 0x587   :  { %12511 = vmatmul.mubr.msk.bf16.vlgmr.msra.gmra.mrb[176].mxu0 %vm286_vm3, %v3765_v24  ;;  %v13276_v24 = vld [vmem:[%s17422_s12 + $0xb0] sm:$0xff]  }
 0x588   :  { %12515 = vmatpush3.bf16.msra.mxu0 %v13258_v25  ;;  %12522 = vmatprep.mubr.msk.bf16.mxu0 %vm286_vm3, %v3762_v55  ;;  %v12476_v61 = vpop.f32.mrb[24].mxu1 }
 0x589   :  { %12516 = vmatprep.subr.bf16.mxu0 %v13259_v3  ;;  %v3651_v27 = vpop.f32.mrb[25].mxu1 }
 0x58a   :  { %v12477_v28 = vpop.f32.mrb[26].mxu1 }
 0x58b   :  { %v3767_v31 = vpack.c.bf16 %v12477_v28, %v12476_v61  ;;  %v3654_v16 = vpop.f32.mrb[27].mxu1  ;;  %v13280_v61 = vld [vmem:[%s17422_s12 + $0xd0] sm:$0xff]   ;;  %v13283_v28 = vld [vmem:[%s17422_s12 + $0xe8] sm:$0xff]  }
 0x58c   :  { %12517 = vmatpush3.bf16.msra.mxu0 %v13259_v3  ;;  %v3766_v18 = vpack.c.bf16 %v3654_v16, %v3651_v27  ;;  %v13279_v3 = vld [vmem:[%s17422_s12 + $0xc8] sm:$0xff]   ;;  %v13282_v27 = vld [vmem:[%s17422_s12 + $0xe0] sm:$0xff]   ;;  %v13285_v16 = vld [vmem:[%s17422_s12 + $0xf8] sm:$0xff]  }
 0x58d   :  { %12518 = vmatprep.subr.bf16.mxu0 %v13260_v26 }
 0x590   :  { %12519 = vmatpush3.bf16.msra.mxu0 %v13260_v26  ;;  %v15314_v40 = vpop.f32.mrb[28].mxu1  ;;  %v13281_v26 = vld [vmem:[%s17422_s12 + $0xd8] sm:$0xff]  }
 0x591   :  { %12520 = vmatprep.subr.bf16.mxu0 %v13261_v35  ;;  %v3667_v48 = vpop.f32.mrb[29].mxu1 }
 0x592   :  { %v12481_v21 = vpop.f32.mrb[30].mxu1 }
 0x593   :  { %v3769_v1 = vpack.c.bf16 %v12481_v21, %v15314_v40  ;;  %v3670_v4 = vpop.f32.mrb[31].mxu1  ;;  %v13288_v40 = vld [vmem:[%s17422_s12 + $0x110] sm:$0xff]   ;;  %v13292_v21 = vld [vmem:[%s17425_s2] sm:$0xff]  }
 0x594   :  { %12521 = vmatpush3.bf16.msra.mxu0 %v13261_v35  ;;  %v3768_v60 = vpack.c.bf16 %v3670_v4, %v3667_v48  ;;  %v13287_v35 = vld [vmem:[%s17422_s12 + $0x108] sm:$0xff]   ;;  %v13290_v48 = vld [vmem:[%s17425_s2 + $0x10] sm:$0xff]  }
 0x595   :  { %12526 = vmatprep.subr.bf16.mxu0 %v13262_v0  ;;  %12618 = vmatprep.mubr.msk.bf16.mxu1 %vm4791_vm8, %v13290_v48  ;;  %v13293_v48 = vld [vmem:[%s17425_s2 + $0x8] sm:$0xff]  }
 0x597   :  { %12523 = vmatmul.mubr.msk.bf16.vlgmr.msra.gmra.mrb[176].mxu0 %vm286_vm3, %v3763_v49 }
 0x598   :  { %12527 = vmatpush3.bf16.msra.mxu0 %v13262_v0  ;;  %12534 = vmatprep.mubr.msk.bf16.mxu0 %vm286_vm3, %v3766_v18  ;;  %v15325_v8 = vpop.f32.mrb[32].mxu1  ;;  %v13286_v18 = vld [vmem:[%s17422_s12 + $0x100] sm:$0xff]   ;;  %v13289_v0 = vld [vmem:[%s17422_s12 + $0x118] sm:$0xff]  }
 0x599   :  { %12528 = vmatprep.subr.bf16.mxu0 %v13263_v7  ;;  %v3683_v36 = vpop.f32.mrb[33].mxu1 }
 0x59a   :  { %v15330_v23 = vpop.f32.mrb[34].mxu1 }
 0x59b   :  { %v3771_v43 = vpack.c.bf16 %v15330_v23, %v15325_v8  ;;  %v3686_v42 = vpop.f32.mrb[35].mxu1 }
 0x59c   :  { %12529 = vmatpush3.bf16.msra.mxu0 %v13263_v7  ;;  %v3770_v46 = vpack.c.bf16 %v3686_v42, %v3683_v36 }
 0x59d   :  { %12530 = vmatprep.subr.bf16.mxu0 %v13264_v11 }
 0x5a0   :  { %12531 = vmatpush3.bf16.msra.mxu0 %v13264_v11  ;;  %v15337_v52 = vpop.f32.mrb[36].mxu1 }
 0x5a1   :  { %12532 = vmatprep.subr.bf16.mxu0 %v13265_v17  ;;  %v3699_v14 = vpop.f32.mrb[37].mxu1 }
 0x5a2   :  { %v15342_v59 = vpop.f32.mrb[38].mxu1 }
 0x5a3   :  { %v3773_v19 = vpack.c.bf16 %v15342_v59, %v15337_v52  ;;  %v3702_v9 = vpop.f32.mrb[39].mxu1 }
 0x5a4   :  { %12533 = vmatpush3.bf16.msra.mxu0 %v13265_v17  ;;  %v3772_v6 = vpack.c.bf16 %v3702_v9, %v3699_v14 }
 0x5a5   :  { %12538 = vmatprep.subr.bf16.mxu0 %v13266_v33 }
 0x5a7   :  { %12535 = vmatmul.mubr.msk.bf16.vlgmr.msra.gmra.mrb[176].mxu0 %vm286_vm3, %v3767_v31  ;;  %v13284_v31 = vld [vmem:[%s17422_s12 + $0xf0] sm:$0xff]  }
 0x5a8   :  { %12539 = vmatpush3.bf16.msra.mxu0 %v13266_v33  ;;  %12546 = vmatprep.mubr.msk.bf16.mxu0 %vm286_vm3, %v3768_v60  ;;  %v15351_v30 = vpop.f32.mrb[40].mxu1 }
 0x5a9   :  { %12540 = vmatprep.subr.bf16.mxu0 %v13267_v29  ;;  %v3715_v5 = vpop.f32.mrb[41].mxu1 }
 0x5aa   :  { %v15356_v39 = vpop.f32.mrb[42].mxu1 }
 0x5ab   :  { %v3775_v51 = vpack.c.bf16 %v15356_v39, %v15351_v30  ;;  %v3718_v13 = vpop.f32.mrb[43].mxu1 }
 0x5ac   :  { %12541 = vmatpush3.bf16.msra.mxu0 %v13267_v29  ;;  %v3774_v38 = vpack.c.bf16 %v3718_v13, %v3715_v5 }
 0x5ad   :  { %12542 = vmatprep.subr.bf16.mxu0 %v13268_v50 }
 0x5b0   :  { %12543 = vmatpush3.bf16.msra.mxu0 %v13268_v50  ;;  %v15363_v37 = vpop.f32.mrb[44].mxu1 }
 0x5b1   :  { %12544 = vmatprep.subr.bf16.mxu0 %v13269_v47  ;;  %v3731_v32 = vpop.f32.mrb[45].mxu1 }
 0x5b2   :  { %v15368_v56 = vpop.f32.mrb[46].mxu1 }
 0x5b3   :  { %v3777_v45 = vpack.c.bf16 %v15368_v56, %v15363_v37  ;;  %v3734_v20 = vpop.f32.mrb[47].mxu1 }
 0x5b4   :  { %12545 = vmatpush3.bf16.msra.mxu0 %v13269_v47  ;;  %v3776_v44 = vpack.c.bf16 %v3734_v20, %v3731_v32 }
 0x5b5   :  { %12550 = vmatprep.subr.bf16.mxu0 %v13270_v34 }
 0x5b7   :  { %12547 = vmatmul.mubr.msk.bf16.vlgmr.msra.gmra.mrb[176].mxu0 %vm286_vm3, %v3769_v1 }
 0x5b8   :  { %12551 = vmatpush3.bf16.msra.mxu0 %v13270_v34  ;;  %12558 = vmatprep.mubr.msk.bf16.mxu0 %vm286_vm3, %v3770_v46  ;;  %v15377_v25 = vpop.f32.mrb[48].mxu1 }
 0x5b9   :  { %12552 = vmatprep.subr.bf16.mxu0 %v13271_v15  ;;  %v3747_v22 = vpop.f32.mrb[49].mxu1 }
 0x5ba   :  { %v15382_v41 = vpop.f32.mrb[50].mxu1 }
 0x5bb   :  { %v3779_v49 = vpack.c.bf16 %v15382_v41, %v15377_v25  ;;  %v3750_v57 = vpop.f32.mrb[51].mxu1 }
 0x5bc   :  { %12553 = vmatpush3.bf16.msra.mxu0 %v13271_v15  ;;  %v3778_v55 = vpack.c.bf16 %v3750_v57, %v3747_v22  ;;  %v4630_v15 = vld [vmem:[%s17379_s11] sm:$0x1] }
 0x5bd   :  { %12554 = vmatprep.subr.bf16.mxu0 %v13272_v53 }
 0x5c0   :  { %12555 = vmatpush3.bf16.msra.mxu0 %v13272_v53 }
 0x5c1   :  { %12556 = vmatprep.subr.bf16.mxu0 %v13273_v62 }
 0x5c4   :  { %12557 = vmatpush3.bf16.msra.mxu0 %v13273_v62 }
 0x5c5   :  { %12562 = vmatprep.subr.bf16.mxu0 %v13274_v63 }
 0x5c7   :  { %12559 = vmatmul.mubr.msk.bf16.vlgmr.msra.gmra.mrb[176].mxu0 %vm286_vm3, %v3771_v43 }
 0x5c8   :  { %12563 = vmatpush3.bf16.msra.mxu0 %v13274_v63  ;;  %12570 = vmatprep.mubr.msk.bf16.mxu0 %vm286_vm3, %v3772_v6 }
 0x5c9   :  { %12564 = vmatprep.subr.bf16.mxu0 %v13275_v2 }
 0x5cc   :  { %12565 = vmatpush3.bf16.msra.mxu0 %v13275_v2 }
 0x5cd   :  { %12566 = vmatprep.subr.bf16.mxu0 %v13276_v24 }
 0x5d0   :  { %12567 = vmatpush3.bf16.msra.mxu0 %v13276_v24 }
 0x5d1   :  { %12568 = vmatprep.subr.bf16.mxu0 %v13277_v54 }
 0x5d4   :  { %12569 = vmatpush3.bf16.msra.mxu0 %v13277_v54 }
 0x5d5   :  { %12574 = vmatprep.subr.bf16.mxu0 %v13278_v58 }
 0x5d7   :  { %12571 = vmatmul.mubr.msk.bf16.vlgmr.msra.gmra.mrb[176].mxu0 %vm286_vm3, %v3773_v19 }
 0x5d8   :  { %12575 = vmatpush3.bf16.msra.mxu0 %v13278_v58  ;;  %12582 = vmatprep.mubr.msk.bf16.mxu0 %vm286_vm3, %v3774_v38 }
 0x5d9   :  { %12576 = vmatprep.subr.bf16.mxu0 %v13279_v3 }
 0x5dc   :  { %12577 = vmatpush3.bf16.msra.mxu0 %v13279_v3 }
 0x5dd   :  { %12578 = vmatprep.subr.bf16.mxu0 %v13280_v61 }
 0x5e0   :  { %12579 = vmatpush3.bf16.msra.mxu0 %v13280_v61 }
 0x5e1   :  { %12580 = vmatprep.subr.bf16.mxu0 %v13281_v26 }
 0x5e4   :  { %12581 = vmatpush3.bf16.msra.mxu0 %v13281_v26 }
 0x5e5   :  { %12586 = vmatprep.subr.bf16.mxu0 %v13282_v27 }
 0x5e7   :  { %12583 = vmatmul.mubr.msk.bf16.vlgmr.msra.gmra.mrb[176].mxu0 %vm286_vm3, %v3775_v51 }
 0x5e8   :  { %12587 = vmatpush3.bf16.msra.mxu0 %v13282_v27  ;;  %12594 = vmatprep.mubr.msk.bf16.mxu0 %vm286_vm3, %v3776_v44 }
 0x5e9   :  { %12588 = vmatprep.subr.bf16.mxu0 %v13283_v28 }
 0x5ec   :  { %12589 = vmatpush3.bf16.msra.mxu0 %v13283_v28 }
 0x5ed   :  { %12590 = vmatprep.subr.bf16.mxu0 %v13284_v31 }
 0x5f0   :  { %12591 = vmatpush3.bf16.msra.mxu0 %v13284_v31 }
 0x5f1   :  { %12592 = vmatprep.subr.bf16.mxu0 %v13285_v16 }
 0x5f4   :  { %12593 = vmatpush3.bf16.msra.mxu0 %v13285_v16 }
 0x5f5   :  { %12598 = vmatprep.subr.bf16.mxu0 %v13286_v18 }
 0x5f7   :  { %12595 = vmatmul.mubr.msk.bf16.vlgmr.msra.gmra.mrb[176].mxu0 %vm286_vm3, %v3777_v45  ;;  %v4628_v45 = vld [vmem:[%s17426_s30] sm:$0x1] }
 0x5f8   :  { %12599 = vmatpush3.bf16.msra.mxu0 %v13286_v18  ;;  %12606 = vmatprep.mubr.msk.bf16.mxu0 %vm286_vm3, %v3778_v55 }
 0x5f9   :  { %12600 = vmatprep.subr.bf16.mxu0 %v13287_v35 }
 0x5fc   :  { %12601 = vmatpush3.bf16.msra.mxu0 %v13287_v35 }
 0x5fd   :  { %12602 = vmatprep.subr.bf16.mxu0 %v13288_v40 }
 0x600   :  { %12603 = vmatpush3.bf16.msra.mxu0 %v13288_v40  ;;  %v13302_v40 = vld [vmem:[%s17427_s7 + $0x40] sm:$0xff]  }
 0x601   :  { %12604 = vmatprep.subr.bf16.mxu0 %v13289_v0 }
 0x604   :  { %12605 = vmatpush3.bf16.msra.mxu0 %v13289_v0  ;;  %v13291_v0 = vld [vmem:[%s17425_s2 + $0x18] sm:$0xff]  }
 0x607   :  { %12607 = vmatmul.mubr.msk.bf16.vlgmr.msra.gmra.mrb[176].mxu0 %vm286_vm3, %v3779_v49 }
 0x608   :  { %12614 = vmatprep.mubr.msk.bf16.mxu0 %vm4791_vm8, %v13292_v21  ;;  %v13294_v21 = vld [vmem:[%s17425_s2 + $0x20] sm:$0xff]  }
 0x6da   :  { %v12608_v1 = vpop.f32.mrb[176].mxu0 }
 0x6db   :  { %v4580_v4 = vpop.f32.mrb[177].mxu0  ;;  %v4611_v23 = vmul.f32 %v12608_v1, %v12608_v1 }
 0x6dc   :  { %v12609_v60 = vpop.f32.mrb[178].mxu0  ;;  %v4609_v8 = vmul.f32 %v4580_v4, %v4580_v4 }
 0x6dd   :  { %v4583_v7 = vpop.f32.mrb[179].mxu0  ;;  %v4612_v46 = vmul.f32 %v12609_v60, %v12609_v60 }
 0x6de   :  { %v4599_v11 = vadd.f32 %v4583_v7, %v4580_v4  ;;  %v4610_v36 = vmul.f32 %v4583_v7, %v4583_v7 }
 0x6e0   :  { %v4600_v43 = vadd.f32 %v12608_v1, %v4599_v11  ;;  %v4613_v42 = vadd.f32 %v4610_v36, %v4609_v8  ;;  %v13307_v8 = vld [vmem:[%s17427_s7 + $0x58] sm:$0xff]   ;;  %v13309_v11 = vld [vmem:[%s17427_s7 + $0x60] sm:$0xff]  }
 0x6e1   :  { %v13297_v36 = vld [vmem:[%s17425_s2 + $0x38] sm:$0xff]  }
 0x6e2   :  { %v4601_v17 = vadd.f32 %v12609_v60, %v4600_v43  ;;  %v4614_v52 = vadd.f32 %v4613_v42, %v4611_v23  ;;  %v13298_v23 = vld [vmem:[%s17425_s2 + $0x40] sm:$0xff]   ;;  %v13311_v43 = vld [vmem:[%s17427_s7 + $0x68] sm:$0xff]   ;;  %v13313_v42 = vld [vmem:[%s17427_s7 + $0x70] sm:$0xff]  }
 0x6e4   :  { %v4602_v33 = vrot.slane %v4601_v17, 4  ;;  %v4615_v14 = vadd.f32 %v4614_v52, %v4612_v46  ;;  %v13299_v46 = vld [vmem:[%s17425_s2 + $0x48] sm:$0xff]   ;;  %v13301_v52 = vld [vmem:[%s17425_s2 + $0x58] sm:$0xff]  }
 0x6e6   :  { %v4603_v59 = vadd.f32 %v4602_v33, %v4601_v17  ;;  %v4616_v19 = vrot.slane %v4615_v14, 4  ;;  %v13300_v17 = vld [vmem:[%s17425_s2 + $0x50] sm:$0xff]   ;;  %v13304_v33 = vld [vmem:[%s17425_s2 + $0x60] sm:$0xff]  }
 0x6e8   :  { %v4604_v9 = vrot.slane %v4603_v59, 2  ;;  %v4617_v6 = vadd.f32 %v4616_v19, %v4615_v14  ;;  %v13305_v14 = vld [vmem:[%s17425_s2 + $0x68] sm:$0xff]   ;;  %v13310_v19 = vld [vmem:[%s17425_s2 + $0x78] sm:$0xff]  }
 0x6ea   :  { %v4605_v29 = vadd.f32 %v4604_v9, %v4603_v59  ;;  %v4618_v30 = vrot.slane %v4617_v6, 2  ;;  %v13308_v59 = vld [vmem:[%s17425_s2 + $0x70] sm:$0xff]   ;;  %v13312_v9 = vld [vmem:[%s17425_s2 + $0x80] sm:$0xff]  }
 0x6ec   :  { %v4606_v50 = vrot.slane %v4605_v29, 1  ;;  %v4619_v5 = vadd.f32 %v4618_v30, %v4617_v6  ;;  %v13314_v6 = vld [vmem:[%s17425_s2 + $0x88] sm:$0xff]   ;;  %v13316_v30 = vld [vmem:[%s17427_s7] sm:$0xff]  }
 0x6ee   :  { %v4607_v39 = vadd.f32 %v4606_v50, %v4605_v29  ;;  %v4620_v51 = vrot.slane %v4619_v5, 1  ;;  %v13315_v29 = vld [vmem:[%s17427_s7 + $0x78] sm:$0xff]  }
 0x6f0   :  { %v4608_v13 = vmul.f32 0.03125, %v4607_v39  ;;  %v4621_v38 = vadd.f32 %v4620_v51, %v4619_v5 }
 0x6f2   :  { %v4622_v47 = vmul.f32 0.03125, %v4621_v38  ;;  %v4623_v37 = vmul.f32 %v4608_v13, %v4608_v13 }
 0x6f4   :  { %v4624_v34 = vsub.f32 %v4622_v47, %v4623_v37 }
 0x6f6   :  { %v4625_v32 = vmax.f32 %v4624_v34, 0.0 }
 0x6f8   :  { %v4626_v56 = vadd.f32 1e-05, %v4625_v32 }
 0x6fa   :  { %14042 = vrsqrt.f32 %v4626_v56 }
 0x704   :  { %v14043_v20 = vpop.eup %14042 }
 0x705   :  { %v4629_v44 = vmul.f32 %v14043_v20, %v4628_v45  ;;  %v13317_v20 = vld [vmem:[%s17427_s7 + $0x8] sm:$0xff]  }
 0x707   :  { %v4631_v25 = vmul.f32 %v4629_v44, %v4608_v13  ;;  %v4636_v53 = vrot.slane %v4629_v44, %v14359_v12 }
 0x709   :  { %v4632_v22 = vsub.f32 %v4630_v15, %v4631_v25  ;;  %v4638_v41 = vmul.f32 %v4636_v53, %v4583_v7  ;;  %v4637_v49 = vmul.f32 %v4636_v53, %v4580_v4  ;;  %v4639_v57 = vmul.f32 %v12608_v1, %v4636_v53  ;;  %v13303_v1 = vld [vmem:[%s17427_s7 + $0x48] sm:$0xff]   ;;  %v13306_v4 = vld [vmem:[%s17427_s7 + $0x50] sm:$0xff]  }
 0x70a   :  { %v4640_v55 = vmul.f32 %v12609_v60, %v4636_v53  ;;  %v13295_v60 = vld [vmem:[%s17425_s2 + $0x28] sm:$0xff]   ;;  %v13296_v7 = vld [vmem:[%s17425_s2 + $0x30] sm:$0xff]  }
 0x70b   :  { %v4645_v62 = vrot.slane %v4632_v22, %v14359_v12  ;;  %v13318_v15 = vld [vmem:[%s17427_s7 + $0x10] sm:$0xff]  }
 0x70d   :  { %v4648_v63 = vadd.f32 %v4645_v62, %v4638_v41  ;;  %v4647_v2 = vadd.f32 %v4645_v62, %v4637_v49  ;;  %v4649_v24 = vadd.f32 %v4645_v62, %v4639_v57  ;;  %v4650_v54 = vadd.f32 %v4645_v62, %v4640_v55  ;;  %v13319_v57 = vld [vmem:[%s17427_s7 + $0x18] sm:$0xff]   ;;  %v13320_v62 = vld [vmem:[%s17427_s7 + $0x20] sm:$0xff]  }
 0x70f   :  { %vm4652_vm3 = vcmp.ge.f32.partialorder %v4648_v63, 0.0  ;;  %v4656_v58 = vmul.f32 0.01, %v4648_v63  ;;  %vm4651_vm9 = vcmp.ge.f32.partialorder %v4647_v2, 0.0  ;;  %v4655_v3 = vmul.f32 0.01, %v4647_v2 }
 0x710   :  { %vm4653_vm10 = vcmp.ge.f32.partialorder %v4649_v24, 0.0  ;;  %vm4654_vm11 = vcmp.ge.f32.partialorder %v4650_v54, 0.0  ;;  %v4657_v61 = vmul.f32 0.01, %v4649_v24  ;;  %v4658_v26 = vmul.f32 0.01, %v4650_v54 }
 0x711   :  { %v4659_v27 = vsel %vm4651_vm9, %v4647_v2, %v4655_v3  ;;  %v4660_v28 = vsel %vm4652_vm3, %v4648_v63, %v4656_v58  ;;  %v13321_v3 = vld [vmem:[%s17427_s7 + $0x28] sm:$0xff]  }
 0x712   :  { %v4663_v31 = vpack.c.bf16 %v4660_v28, %v4659_v27  ;;  %v4661_v16 = vsel %vm4653_vm10, %v4649_v24, %v4657_v61  ;;  %v4662_v18 = vsel %vm4654_vm11, %v4650_v54, %v4658_v26  ;;  %v13322_v26 = vld [vmem:[%s17427_s7 + $0x30] sm:$0xff]  }
 0x713   :  { %v4664_v35 = vpack.c.bf16 %v4662_v18, %v4661_v16 }
 0x714   :  { %12610 = vmatprep.subr.bf16.mxu0 %v4663_v31  ;;  %12854 = vmatprep.subr.bf16.mxu1 %v4663_v31 }
 0x715   :  { %12611 = vmatpush3.bf16.msra.mxu0 %v4663_v31  ;;  %12856 = vmatpush3.bf16.msra.mxu1 %v4663_v31 }
 0x716   :  { %12612 = vmatprep.subr.bf16.mxu0 %v4664_v35  ;;  %12855 = vmatprep.subr.bf16.mxu1 %v4664_v35 }
 0x719   :  { %12613 = vmatpush3.bf16.msra.mxu0 %v4664_v35  ;;  %12857 = vmatpush3.bf16.msra.mxu1 %v4664_v35  ;;  %v13323_v35 = vld [vmem:[%s17427_s7 + $0x38] sm:$0xff]  }
 0x71a   :  { %12650 = vmatprep.subr.bf16.mxu1 %v13302_v40 }
 0x71c   :  { %12619 = vmatmul.mubr.msk.bf16.vlgmr.msra.gmra.mrb[52].mxu1 %vm4791_vm8, %v13291_v0  ;;  %12615 = vmatmul.mubr.msk.bf16.vlgmr.msra.gmra.mrb[180].mxu0 %vm4791_vm8, %v13293_v48  ;;  %v13324_v0 = vld [vmem:[%s17427_s7 + $0x80] sm:$0xff]  }
 0x71d   :  { %12622 = vmatprep.mubr.msk.bf16.mxu1 %vm4791_vm8, %v13294_v21  ;;  %12651 = vmatpush3.bf16.msra.mxu1 %v13302_v40 }
 0x71e   :  { %12652 = vmatprep.subr.bf16.mxu1 %v13303_v1 }
 0x721   :  { %12653 = vmatpush3.bf16.msra.mxu1 %v13303_v1 }
 0x722   :  { %12654 = vmatprep.subr.bf16.mxu1 %v13306_v4 }
 0x724   :  { %12623 = vmatmul.mubr.msk.bf16.gmra.mrb[56].mxu1 %vm4791_vm8, %v13295_v60 }
 0x725   :  { %12626 = vmatprep.mubr.msk.bf16.mxu1 %vm4791_vm8, %v13296_v7  ;;  %12655 = vmatpush3.bf16.msra.mxu1 %v13306_v4  ;;  %v13325_v7 = vld [vmem:[%s17427_s7 + $0x88] sm:$0xff]  }
 0x726   :  { %12656 = vmatprep.subr.bf16.mxu1 %v13307_v8 }
 0x729   :  { %12657 = vmatpush3.bf16.msra.mxu1 %v13307_v8  ;;  %v13326_v8 = vld [vmem:[%s17427_s7 + $0x90] sm:$0xff]  }
 0x72a   :  { %12658 = vmatprep.subr.bf16.mxu1 %v13309_v11 }
 0x72c   :  { %12627 = vmatmul.mubr.msk.bf16.gmra.mrb[60].mxu1 %vm4791_vm8, %v13297_v36  ;;  %v13328_v36 = vld [vmem:[%s17427_s7 + $0xa0] sm:$0xff]  }
 0x72d   :  { %12630 = vmatprep.mubr.msk.bf16.mxu1 %vm4791_vm8, %v13298_v23  ;;  %12659 = vmatpush3.bf16.msra.mxu1 %v13309_v11  ;;  %v13327_v11 = vld [vmem:[%s17427_s7 + $0x98] sm:$0xff]   ;;  %v13329_v23 = vld [vmem:[%s17427_s7 + $0xa8] sm:$0xff]  }
 0x72e   :  { %12660 = vmatprep.subr.bf16.mxu1 %v13311_v43 }
 0x731   :  { %12661 = vmatpush3.bf16.msra.mxu1 %v13311_v43  ;;  %v13330_v43 = vld [vmem:[%s17427_s7 + $0xb0] sm:$0xff]  }
 0x732   :  { %12662 = vmatprep.subr.bf16.mxu1 %v13313_v42 }
 0x734   :  { %12631 = vmatmul.mubr.msk.bf16.gmra.mrb[64].mxu1 %vm4791_vm8, %v13299_v46 }
 0x735   :  { %12634 = vmatprep.mubr.msk.bf16.mxu1 %vm4791_vm8, %v13300_v17  ;;  %12663 = vmatpush3.bf16.msra.mxu1 %v13313_v42  ;;  %v13331_v42 = vld [vmem:[%s17427_s7 + $0xb8] sm:$0xff]   ;;  %v13332_v17 = vld [vmem:[%s17427_s7 + $0xc0] sm:$0xff]  }
 0x736   :  { %12664 = vmatprep.subr.bf16.mxu1 %v13315_v29 }
 0x739   :  { %12665 = vmatpush3.bf16.msra.mxu1 %v13315_v29  ;;  %v13335_v29 = vld [vmem:[%s17427_s7 + $0xd8] sm:$0xff]  }
 0x73a   :  { %12670 = vmatprep.subr.bf16.mxu1 %v13316_v30 }
 0x73c   :  { %12635 = vmatmul.mubr.msk.bf16.gmra.mrb[68].mxu1 %vm4791_vm8, %v13301_v52 }
 0x73d   :  { %12638 = vmatprep.mubr.msk.bf16.mxu1 %vm4791_vm8, %v13304_v33 }
 0x744   :  { %12639 = vmatmul.mubr.msk.bf16.gmra.mrb[72].mxu1 %vm4791_vm8, %v13305_v14 }
 0x745   :  { %12642 = vmatprep.mubr.msk.bf16.mxu1 %vm4791_vm8, %v13308_v59 }
 0x74c   :  { %12643 = vmatmul.mubr.msk.bf16.gmra.mrb[76].mxu1 %vm4791_vm8, %v13310_v19 }
 0x74d   :  { %12646 = vmatprep.mubr.msk.bf16.mxu1 %vm4791_vm8, %v13312_v9  ;;  %v13333_v9 = vld [vmem:[%s17427_s7 + $0xc8] sm:$0xff]  }
 0x754   :  { %12647 = vmatmul.mubr.msk.bf16.gmra.mrb[80].mxu1 %vm4791_vm8, %v13314_v6  ;;  %v13334_v6 = vld [vmem:[%s17427_s7 + $0xd0] sm:$0xff]  }
 0x7ef   :  { %v12620_v50 = vpop.f32.mrb[52].mxu1  ;;  %v15568_v5 = vpop.f32.mrb[180].mxu0 }
 0x7f0   :  { %v4896_v39 = vpop.f32.mrb[53].mxu1  ;;  %v4880_v51 = vpop.f32.mrb[181].mxu0 }
 0x7f1   :  { %v12621_v13 = vpop.f32.mrb[54].mxu1  ;;  %v12617_v38 = vpop.f32.mrb[182].mxu0 }
 0x7f2   :  { %v5026_v47 = vpack.c.bf16 %v12621_v13, %v12620_v50  ;;  %v4899_v37 = vpop.f32.mrb[55].mxu1  ;;  %v5024_v34 = vpack.c.bf16 %v12617_v38, %v15568_v5  ;;  %v4883_v32 = vpop.f32.mrb[183].mxu0  ;;  %v13337_v50 = vld [vmem:[%s17427_s7 + $0xe8] sm:$0xff]   ;;  %v13338_v5 = vld [vmem:[%s17427_s7 + $0xf0] sm:$0xff]  }
 0x7f3   :  { %v5025_v56 = vpack.c.bf16 %v4899_v37, %v4896_v39  ;;  %v5023_v45 = vpack.c.bf16 %v4883_v32, %v4880_v51  ;;  %v13340_v32 = vld [vmem:[%s17427_s7 + $0x100] sm:$0xff]  }
 0x7f5   :  { %12666 = vmatprep.mubr.bf16.mxu1 %v5025_v56 }
 0x7f6   :  { %12667 = vmatmul.mubr.bf16.vlgmr.msra.gmra.mrb[84].mxu1 %v5026_v47  ;;  %v13339_v47 = vld [vmem:[%s17427_s7 + $0xf8] sm:$0xff]  }
 0x7f7   :  { %12671 = vmatpush3.bf16.msra.mxu1 %v13316_v30  ;;  %12686 = vmatprep.mubr.bf16.mxu1 %v5023_v45  ;;  %v15574_v44 = vpop.f32.mrb[56].mxu1  ;;  %v13336_v30 = vld [vmem:[%s17427_s7 + $0xe0] sm:$0xff]  }
 0x7f8   :  { %12672 = vmatprep.subr.bf16.mxu1 %v13317_v20  ;;  %v4912_v25 = vpop.f32.mrb[57].mxu1 }
 0x7f9   :  { %v15579_v53 = vpop.f32.mrb[58].mxu1 }
 0x7fa   :  { %v5028_v22 = vpack.c.bf16 %v15579_v53, %v15574_v44  ;;  %v4915_v41 = vpop.f32.mrb[59].mxu1 }
 0x7fb   :  { %12673 = vmatpush3.bf16.msra.mxu1 %v13317_v20  ;;  %v5027_v49 = vpack.c.bf16 %v4915_v41, %v4912_v25  ;;  %v13343_v41 = vld [vmem:[%s17427_s7 + $0x118] sm:$0xff]  }
 0x7fc   :  { %12674 = vmatprep.subr.bf16.mxu1 %v13318_v15 }
 0x7ff   :  { %12675 = vmatpush3.bf16.msra.mxu1 %v13318_v15  ;;  %v15586_v55 = vpop.f32.mrb[60].mxu1  ;;  %v13341_v15 = vld [vmem:[%s17427_s7 + $0x108] sm:$0xff]  }
 0x800   :  { %12676 = vmatprep.subr.bf16.mxu1 %v13319_v57  ;;  %v15591_v63 = vpop.f32.mrb[61].mxu1 }
 0x801   :  { %v15593_v2 = vpop.f32.mrb[62].mxu1 }
 0x802   :  { %v5030_v24 = vpack.c.bf16 %v15593_v2, %v15586_v55  ;;  %v15597_v54 = vpop.f32.mrb[63].mxu1  ;;  %v13346_v55 = vld [vmem:[%s17427_s7 + $0x130] sm:$0xff]   ;;  %v13349_v2 = vld [vmem:[%s17427_s7 + $0x148] sm:$0xff]  }
 0x803   :  { %12677 = vmatpush3.bf16.msra.mxu1 %v13319_v57  ;;  %v5029_v58 = vpack.c.bf16 %v15597_v54, %v15591_v63  ;;  %v13345_v57 = vld [vmem:[%s17427_s7 + $0x128] sm:$0xff]   ;;  %v13348_v63 = vld [vmem:[%s17427_s7 + $0x140] sm:$0xff]   ;;  %v13351_v54 = vld [vmem:[%s17427_s7 + $0x158] sm:$0xff]  }
 0x804   :  { %12678 = vmatprep.subr.bf16.mxu1 %v13320_v62 }
 0x807   :  { %12679 = vmatpush3.bf16.msra.mxu1 %v13320_v62  ;;  %v15604_v61 = vpop.f32.mrb[64].mxu1  ;;  %v13347_v62 = vld [vmem:[%s17427_s7 + $0x138] sm:$0xff]  }
 0x808   :  { %12680 = vmatprep.subr.bf16.mxu1 %v13321_v3  ;;  %v15609_v27 = vpop.f32.mrb[65].mxu1 }
 0x809   :  { %v15611_v28 = vpop.f32.mrb[66].mxu1 }
 0x80a   :  { %v5032_v31 = vpack.c.bf16 %v15611_v28, %v15604_v61  ;;  %v15615_v16 = vpop.f32.mrb[67].mxu1  ;;  %v13354_v61 = vld [vmem:[%s17427_s7 + $0x170] sm:$0xff]   ;;  %v13357_v28 = vld [vmem:[%s17427_s7 + $0x188] sm:$0xff]  }
 0x80b   :  { %12681 = vmatpush3.bf16.msra.mxu1 %v13321_v3  ;;  %v5031_v18 = vpack.c.bf16 %v15615_v16, %v15609_v27  ;;  %v13353_v3 = vld [vmem:[%s17427_s7 + $0x168] sm:$0xff]   ;;  %v13356_v27 = vld [vmem:[%s17427_s7 + $0x180] sm:$0xff]   ;;  %v13359_v16 = vld [vmem:[%s17427_s7 + $0x198] sm:$0xff]  }
 0x80c   :  { %12682 = vmatprep.subr.bf16.mxu1 %v13322_v26 }
 0x80f   :  { %12683 = vmatpush3.bf16.msra.mxu1 %v13322_v26  ;;  %v15622_v40 = vpop.f32.mrb[68].mxu1  ;;  %v13355_v26 = vld [vmem:[%s17427_s7 + $0x178] sm:$0xff]  }
 0x810   :  { %12684 = vmatprep.subr.bf16.mxu1 %v13323_v35  ;;  %v15627_v48 = vpop.f32.mrb[69].mxu1 }
 0x811   :  { %v15629_v21 = vpop.f32.mrb[70].mxu1 }
 0x812   :  { %v5034_v1 = vpack.c.bf16 %v15629_v21, %v15622_v40  ;;  %v15633_v4 = vpop.f32.mrb[71].mxu1  ;;  %v13362_v40 = vld [vmem:[%s17427_s7 + $0x1b0] sm:$0xff]   ;;  %v13365_v21 = vld [vmem:[%s17427_s7 + $0x1c8] sm:$0xff]  }
 0x813   :  { %12685 = vmatpush3.bf16.msra.mxu1 %v13323_v35  ;;  %v5033_v60 = vpack.c.bf16 %v15633_v4, %v15627_v48  ;;  %v13361_v35 = vld [vmem:[%s17427_s7 + $0x1a8] sm:$0xff]   ;;  %v13364_v48 = vld [vmem:[%s17427_s7 + $0x1c0] sm:$0xff]   ;;  %v13367_v4 = vld [vmem:[%s17427_s7 + $0x1d8] sm:$0xff]  }
 0x814   :  { %12690 = vmatprep.subr.bf16.mxu1 %v13324_v0 }
 0x816   :  { %12687 = vmatmul.mubr.bf16.vlgmr.msra.gmra.mrb[84].mxu1 %v5024_v34 }
 0x817   :  { %12691 = vmatpush3.bf16.msra.mxu1 %v13324_v0  ;;  %12706 = vmatprep.mubr.bf16.mxu1 %v5027_v49  ;;  %v15658_v46 = vpop.f32.mrb[72].mxu1  ;;  %v13344_v49 = vld [vmem:[%s17427_s7 + $0x120] sm:$0xff]   ;;  %v13363_v0 = vld [vmem:[%s17427_s7 + $0x1b8] sm:$0xff]  }
 0x818   :  { %12692 = vmatprep.subr.bf16.mxu1 %v13325_v7  ;;  %v15663_v52 = vpop.f32.mrb[73].mxu1 }
 0x819   :  { %v15665_v33 = vpop.f32.mrb[74].mxu1 }
 0x81a   :  { %v5036_v14 = vpack.c.bf16 %v15665_v33, %v15658_v46  ;;  %v15669_v59 = vpop.f32.mrb[75].mxu1  ;;  %v13376_v46 = vld [vmem:[%s17427_s7 + $0x220] sm:$0xff]   ;;  %v13379_v33 = vld [vmem:[%s17427_s7 + $0x238] sm:$0xff]  }
 0x81b   :  { %12693 = vmatpush3.bf16.msra.mxu1 %v13325_v7  ;;  %v5035_v19 = vpack.c.bf16 %v15669_v59, %v15663_v52  ;;  %v13369_v7 = vld [vmem:[%s17427_s7 + $0x1e8] sm:$0xff]   ;;  %v13378_v52 = vld [vmem:[%s17427_s7 + $0x230] sm:$0xff]  }
 0x81c   :  { %12694 = vmatprep.subr.bf16.mxu1 %v13326_v8 }
 0x81f   :  { %12695 = vmatpush3.bf16.msra.mxu1 %v13326_v8  ;;  %v15694_v39 = vpop.f32.mrb[76].mxu1  ;;  %v13370_v8 = vld [vmem:[%s17427_s7 + $0x1f0] sm:$0xff]  }
 0x820   :  { %12696 = vmatprep.subr.bf16.mxu1 %v13327_v11  ;;  %v15696_v51 = vpop.f32.mrb[77].mxu1 }
 0x821   :  { %v15698_v13 = vpop.f32.mrb[78].mxu1 }
 0x822   :  { %v15700_v38 = vpop.f32.mrb[79].mxu1  ;;  %v5038_v37 = vpack.c.bf16 %v15698_v13, %v15694_v39 }
 0x823   :  { %12697 = vmatpush3.bf16.msra.mxu1 %v13327_v11  ;;  %v5037_v34 = vpack.c.bf16 %v15700_v38, %v15696_v51  ;;  %v13371_v11 = vld [vmem:[%s17427_s7 + $0x1f8] sm:$0xff]  }
 0x824   :  { %12698 = vmatprep.subr.bf16.mxu1 %v13328_v36 }
 0x827   :  { %12699 = vmatpush3.bf16.msra.mxu1 %v13328_v36  ;;  %v15712_v56 = vpop.f32.mrb[80].mxu1  ;;  %v13372_v36 = vld [vmem:[%s17427_s7 + $0x200] sm:$0xff]  }
 0x828   :  { %12700 = vmatprep.subr.bf16.mxu1 %v13329_v23  ;;  %v15714_v45 = vpop.f32.mrb[81].mxu1 }
 0x829   :  { %v15716_v20 = vpop.f32.mrb[82].mxu1 }
 0x82a   :  { %v15718_v44 = vpop.f32.mrb[83].mxu1  ;;  %v5040_v25 = vpack.c.bf16 %v15716_v20, %v15712_v56 }
 0x82b   :  { %12701 = vmatpush3.bf16.msra.mxu1 %v13329_v23  ;;  %v5039_v53 = vpack.c.bf16 %v15718_v44, %v15714_v45  ;;  %v13373_v23 = vld [vmem:[%s17427_s7 + $0x208] sm:$0xff]  }
 0x82c   :  { %12702 = vmatprep.subr.bf16.mxu1 %v13330_v43 }
 0x82f   :  { %12703 = vmatpush3.bf16.msra.mxu1 %v13330_v43  ;;  %v13374_v43 = vld [vmem:[%s17427_s7 + $0x210] sm:$0xff]  }
 0x830   :  { %12704 = vmatprep.subr.bf16.mxu1 %v13331_v42 }
 0x833   :  { %12705 = vmatpush3.bf16.msra.mxu1 %v13331_v42  ;;  %v13375_v42 = vld [vmem:[%s17427_s7 + $0x218] sm:$0xff]  }
 0x834   :  { %12710 = vmatprep.subr.bf16.mxu1 %v13332_v17 }
 0x836   :  { %12707 = vmatmul.mubr.bf16.vlgmr.msra.gmra.mrb[84].mxu1 %v5028_v22  ;;  %v13342_v22 = vld [vmem:[%s17427_s7 + $0x110] sm:$0xff]  }
 0x837   :  { %12711 = vmatpush3.bf16.msra.mxu1 %v13332_v17  ;;  %12726 = vmatprep.mubr.bf16.mxu1 %v5029_v58  ;;  %v13352_v58 = vld [vmem:[%s17427_s7 + $0x160] sm:$0xff]   ;;  %v13377_v17 = vld [vmem:[%s17427_s7 + $0x228] sm:$0xff]  }
 0x838   :  { %12712 = vmatprep.subr.bf16.mxu1 %v13333_v9 }
 0x83b   :  { %12713 = vmatpush3.bf16.msra.mxu1 %v13333_v9 }
 0x83c   :  { %12714 = vmatprep.subr.bf16.mxu1 %v13334_v6 }
 0x83f   :  { %12715 = vmatpush3.bf16.msra.mxu1 %v13334_v6 }
 0x840   :  { %12716 = vmatprep.subr.bf16.mxu1 %v13335_v29 }
 0x843   :  { %12717 = vmatpush3.bf16.msra.mxu1 %v13335_v29 }
 0x844   :  { %12718 = vmatprep.subr.bf16.mxu1 %v13336_v30 }
 0x847   :  { %12719 = vmatpush3.bf16.msra.mxu1 %v13336_v30 }
 0x848   :  { %12720 = vmatprep.subr.bf16.mxu1 %v13337_v50 }
 0x84b   :  { %12721 = vmatpush3.bf16.msra.mxu1 %v13337_v50 }
 0x84c   :  { %12722 = vmatprep.subr.bf16.mxu1 %v13338_v5 }
 0x84f   :  { %12723 = vmatpush3.bf16.msra.mxu1 %v13338_v5 }
 0x850   :  { %12724 = vmatprep.subr.bf16.mxu1 %v13339_v47 }
 0x853   :  { %12725 = vmatpush3.bf16.msra.mxu1 %v13339_v47 }
 0x854   :  { %12730 = vmatprep.subr.bf16.mxu1 %v13340_v32 }
 0x856   :  { %12727 = vmatmul.mubr.bf16.vlgmr.msra.gmra.mrb[84].mxu1 %v5030_v24  ;;  %v13350_v24 = vld [vmem:[%s17427_s7 + $0x150] sm:$0xff]  }
 0x857   :  { %12731 = vmatpush3.bf16.msra.mxu1 %v13340_v32  ;;  %12746 = vmatprep.mubr.bf16.mxu1 %v5031_v18  ;;  %v13360_v18 = vld [vmem:[%s17427_s7 + $0x1a0] sm:$0xff]  }
 0x858   :  { %12732 = vmatprep.subr.bf16.mxu1 %v13341_v15 }
 0x85b   :  { %12733 = vmatpush3.bf16.msra.mxu1 %v13341_v15 }
 0x85c   :  { %12734 = vmatprep.subr.bf16.mxu1 %v13342_v22 }
 0x85f   :  { %12735 = vmatpush3.bf16.msra.mxu1 %v13342_v22 }
 0x860   :  { %12736 = vmatprep.subr.bf16.mxu1 %v13343_v41 }
 0x863   :  { %12737 = vmatpush3.bf16.msra.mxu1 %v13343_v41 }
 0x864   :  { %12738 = vmatprep.subr.bf16.mxu1 %v13344_v49 }
 0x867   :  { %12739 = vmatpush3.bf16.msra.mxu1 %v13344_v49 }
 0x868   :  { %12740 = vmatprep.subr.bf16.mxu1 %v13345_v57 }
 0x86b   :  { %12741 = vmatpush3.bf16.msra.mxu1 %v13345_v57 }
 0x86c   :  { %12742 = vmatprep.subr.bf16.mxu1 %v13346_v55 }
 0x86f   :  { %12743 = vmatpush3.bf16.msra.mxu1 %v13346_v55 }
 0x870   :  { %12744 = vmatprep.subr.bf16.mxu1 %v13347_v62 }
 0x873   :  { %12745 = vmatpush3.bf16.msra.mxu1 %v13347_v62 }
 0x874   :  { %12750 = vmatprep.subr.bf16.mxu1 %v13348_v63 }
 0x876   :  { %12747 = vmatmul.mubr.bf16.vlgmr.msra.gmra.mrb[84].mxu1 %v5032_v31  ;;  %v13358_v31 = vld [vmem:[%s17427_s7 + $0x190] sm:$0xff]  }
 0x877   :  { %12751 = vmatpush3.bf16.msra.mxu1 %v13348_v63  ;;  %12766 = vmatprep.mubr.bf16.mxu1 %v5033_v60  ;;  %v13368_v60 = vld [vmem:[%s17427_s7 + $0x1e0] sm:$0xff]  }
 0x878   :  { %12752 = vmatprep.subr.bf16.mxu1 %v13349_v2 }
 0x87b   :  { %12753 = vmatpush3.bf16.msra.mxu1 %v13349_v2 }
 0x87c   :  { %12754 = vmatprep.subr.bf16.mxu1 %v13350_v24 }
 0x87f   :  { %12755 = vmatpush3.bf16.msra.mxu1 %v13350_v24 }
 0x880   :  { %12756 = vmatprep.subr.bf16.mxu1 %v13351_v54 }
 0x883   :  { %12757 = vmatpush3.bf16.msra.mxu1 %v13351_v54  ;;  %v6123_v54 = vld [vmem:[%s17382_s14] sm:$0x1] }
 0x884   :  { %12758 = vmatprep.subr.bf16.mxu1 %v13352_v58 }
 0x887   :  { %12759 = vmatpush3.bf16.msra.mxu1 %v13352_v58 }
 0x888   :  { %12760 = vmatprep.subr.bf16.mxu1 %v13353_v3 }
 0x88b   :  { %12761 = vmatpush3.bf16.msra.mxu1 %v13353_v3 }
 0x88c   :  { %12762 = vmatprep.subr.bf16.mxu1 %v13354_v61 }
 0x88f   :  { %12763 = vmatpush3.bf16.msra.mxu1 %v13354_v61  ;;  %v6125_v61 = vld [vmem:[%s17383_s15] sm:$0x1] }
 0x890   :  { %12764 = vmatprep.subr.bf16.mxu1 %v13355_v26 }
 0x893   :  { %12765 = vmatpush3.bf16.msra.mxu1 %v13355_v26 }
 0x894   :  { %12770 = vmatprep.subr.bf16.mxu1 %v13356_v27 }
 0x896   :  { %12767 = vmatmul.mubr.bf16.vlgmr.msra.gmra.mrb[84].mxu1 %v5034_v1  ;;  %v13366_v1 = vld [vmem:[%s17427_s7 + $0x1d0] sm:$0xff]  }
 0x897   :  { %12771 = vmatpush3.bf16.msra.mxu1 %v13356_v27  ;;  %12786 = vmatprep.mubr.bf16.mxu1 %v5035_v19 }
 0x898   :  { %12772 = vmatprep.subr.bf16.mxu1 %v13357_v28 }
 0x89b   :  { %12773 = vmatpush3.bf16.msra.mxu1 %v13357_v28 }
 0x89c   :  { %12774 = vmatprep.subr.bf16.mxu1 %v13358_v31 }
 0x89f   :  { %12775 = vmatpush3.bf16.msra.mxu1 %v13358_v31 }
 0x8a0   :  { %12776 = vmatprep.subr.bf16.mxu1 %v13359_v16 }
 0x8a3   :  { %12777 = vmatpush3.bf16.msra.mxu1 %v13359_v16 }
 0x8a4   :  { %12778 = vmatprep.subr.bf16.mxu1 %v13360_v18 }
 0x8a7   :  { %12779 = vmatpush3.bf16.msra.mxu1 %v13360_v18 }
 0x8a8   :  { %12780 = vmatprep.subr.bf16.mxu1 %v13361_v35 }
 0x8ab   :  { %12781 = vmatpush3.bf16.msra.mxu1 %v13361_v35 }
 0x8ac   :  { %12782 = vmatprep.subr.bf16.mxu1 %v13362_v40 }
 0x8af   :  { %12783 = vmatpush3.bf16.msra.mxu1 %v13362_v40 }
 0x8b0   :  { %12784 = vmatprep.subr.bf16.mxu1 %v13363_v0 }
 0x8b3   :  { %12785 = vmatpush3.bf16.msra.mxu1 %v13363_v0 }
 0x8b4   :  { %12790 = vmatprep.subr.bf16.mxu1 %v13364_v48 }
 0x8b6   :  { %12787 = vmatmul.mubr.bf16.vlgmr.msra.gmra.mrb[84].mxu1 %v5036_v14  ;;  %v14061_v14 = vmov 0.0  }
 0x8b7   :  { %12791 = vmatpush3.bf16.msra.mxu1 %v13364_v48  ;;  %12806 = vmatprep.mubr.bf16.mxu1 %v5037_v34 }
 0x8b8   :  { %12792 = vmatprep.subr.bf16.mxu1 %v13365_v21  ;;  %12830 = vmatprep.subr.bf16.mxu0 %v14061_v14 }
 0x8b9   :  { %12834 = vmatprep.mubr.msk.bf16.mxu0 %vm14062_vm12, %v14061_v14 }
 0x8bb   :  { %12793 = vmatpush3.bf16.msra.mxu1 %v13365_v21 }
 0x8bc   :  { %12794 = vmatprep.subr.bf16.mxu1 %v13366_v1 }
 0x8bf   :  { %12795 = vmatpush3.bf16.msra.mxu1 %v13366_v1 }
 0x8c0   :  { %12796 = vmatprep.subr.bf16.mxu1 %v13367_v4 }
 0x8c3   :  { %12797 = vmatpush3.bf16.msra.mxu1 %v13367_v4 }
 0x8c4   :  { %12798 = vmatprep.subr.bf16.mxu1 %v13368_v60 }
 0x8c7   :  { %12799 = vmatpush3.bf16.msra.mxu1 %v13368_v60 }
 0x8c8   :  { %12800 = vmatprep.subr.bf16.mxu1 %v13369_v7 }
 0x8cb   :  { %12801 = vmatpush3.bf16.msra.mxu1 %v13369_v7 }
 0x8cc   :  { %12802 = vmatprep.subr.bf16.mxu1 %v13370_v8 }
 0x8cf   :  { %12803 = vmatpush3.bf16.msra.mxu1 %v13370_v8 }
 0x8d0   :  { %12804 = vmatprep.subr.bf16.mxu1 %v13371_v11 }
 0x8d3   :  { %12805 = vmatpush3.bf16.msra.mxu1 %v13371_v11 }
 0x8d4   :  { %12810 = vmatprep.subr.bf16.mxu1 %v13372_v36 }
 0x8d6   :  { %12807 = vmatmul.mubr.bf16.vlgmr.msra.gmra.mrb[84].mxu1 %v5038_v37 }
 0x8d7   :  { %12811 = vmatpush3.bf16.msra.mxu1 %v13372_v36  ;;  %12826 = vmatprep.mubr.bf16.mxu1 %v5039_v53 }
 0x8d8   :  { %12812 = vmatprep.subr.bf16.mxu1 %v13373_v23 }
 0x8db   :  { %12813 = vmatpush3.bf16.msra.mxu1 %v13373_v23 }
 0x8dc   :  { %12814 = vmatprep.subr.bf16.mxu1 %v13374_v43 }
 0x8df   :  { %12815 = vmatpush3.bf16.msra.mxu1 %v13374_v43 }
 0x8e0   :  { %12816 = vmatprep.subr.bf16.mxu1 %v13375_v42 }
 0x8e3   :  { %12817 = vmatpush3.bf16.msra.mxu1 %v13375_v42 }
 0x8e4   :  { %12818 = vmatprep.subr.bf16.mxu1 %v13376_v46 }
 0x8e7   :  { %12819 = vmatpush3.bf16.msra.mxu1 %v13376_v46 }
 0x8e8   :  { %12820 = vmatprep.subr.bf16.mxu1 %v13377_v17 }
 0x8eb   :  { %12821 = vmatpush3.bf16.msra.mxu1 %v13377_v17  ;;  %v13385_v17 = vld [vmem:[%s17381_s17 + $0x84] ss:$8 sps:$4 sm:$0xff]  }
 0x8ec   :  { %12822 = vmatprep.subr.bf16.mxu1 %v13378_v52 }
 0x8ef   :  { %12823 = vmatpush3.bf16.msra.mxu1 %v13378_v52  ;;  %v13380_v52 = vld [vmem:[%s17380_s16] sm:$0xff]  }
 0x8f0   :  { %12824 = vmatprep.subr.bf16.mxu1 %v13379_v33 }
 0x8f3   :  { %12825 = vmatpush3.bf16.msra.mxu1 %v13379_v33  ;;  %v13383_v33 = vld [vmem:[%s17381_s17 + $0x80] ss:$8 sps:$4 sm:$0xff]  }
 0x8f6   :  { %12827 = vmatmul.mubr.bf16.vlgmr.msra.gmra.mrb[84].mxu1 %v5040_v25 }
 0x9c9   :  { %v12828_v59 = vpop.f32.mrb[84].mxu1 }
 0x9ca   :  { %v6075_v19 = vpop.f32.mrb[85].mxu1  ;;  %v6106_v5 = vmul.f32 %v12828_v59, %v12828_v59 }
 0x9cb   :  { %v12829_v9 = vpop.f32.mrb[86].mxu1  ;;  %v6104_v29 = vmul.f32 %v6075_v19, %v6075_v19 }
 0x9cc   :  { %v6078_v6 = vpop.f32.mrb[87].mxu1  ;;  %v6107_v13 = vmul.f32 %v12829_v9, %v12829_v9 }
 0x9cd   :  { %v6094_v30 = vadd.f32 %v6078_v6, %v6075_v19  ;;  %v6105_v50 = vmul.f32 %v6078_v6, %v6078_v6 }
 0x9cf   :  { %v6095_v39 = vadd.f32 %v12828_v59, %v6094_v30  ;;  %v6108_v51 = vadd.f32 %v6105_v50, %v6104_v29  ;;  %v13389_v29 = vld [vmem:[%s17381_s17 + $0xa0] ss:$8 sps:$4 sm:$0xff]   ;;  %v13395_v30 = vld [vmem:[%s17381_s17 + $0xb4] ss:$8 sps:$4 sm:$0xff]   ;;  %v13393_v50 = vld [vmem:[%s17381_s17 + $0xb0] ss:$8 sps:$4 sm:$0xff]  }
 0x9d1   :  { %v6096_v38 = vadd.f32 %v12829_v9, %v6095_v39  ;;  %v6109_v47 = vadd.f32 %v6108_v51, %v6106_v5  ;;  %v13398_v5 = vld [vmem:[%s17381_s17 + $0xc4] ss:$8 sps:$4 sm:$0xff]   ;;  %v13382_v39 = vld [vmem:[%s17380_s16 + $0x10] sm:$0xff]   ;;  %v13396_v51 = vld [vmem:[%s17381_s17 + $0xc0] ss:$8 sps:$4 sm:$0xff]  }
 0x9d3   :  { %v6097_v37 = vrot.slane %v6096_v38, 4  ;;  %v6110_v34 = vadd.f32 %v6109_v47, %v6107_v13  ;;  %v13401_v13 = vld [vmem:[%s17381_s17 + $0xd4] ss:$8 sps:$4 sm:$0xff]   ;;  %v13404_v47 = vld [vmem:[%s17381_s17 + $0xe4] ss:$8 sps:$4 sm:$0xff]  }
 0x9d5   :  { %v6098_v32 = vadd.f32 %v6097_v37, %v6096_v38  ;;  %v6111_v56 = vrot.slane %v6110_v34, 4  ;;  %v13399_v38 = vld [vmem:[%s17381_s17 + $0xd0] ss:$8 sps:$4 sm:$0xff]  }
 0x9d6   :  { %v13392_v37 = vld [vmem:[%s17380_s16 + $0x18] sm:$0xff]  }
 0x9d7   :  { %v6099_v45 = vrot.slane %v6098_v32, 2  ;;  %v6112_v20 = vadd.f32 %v6111_v56, %v6110_v34  ;;  %v13402_v34 = vld [vmem:[%s17381_s17 + $0xe0] ss:$8 sps:$4 sm:$0xff]   ;;  %v13406_v56 = vld [vmem:[%s17381_s17 + $0xf0] ss:$8 sps:$4 sm:$0xff]  }
 0x9d9   :  { %v6100_v44 = vadd.f32 %v6099_v45, %v6098_v32  ;;  %v6113_v15 = vrot.slane %v6112_v20, 2  ;;  %v13405_v32 = vld [vmem:[%s17380_s16 + $0x20] ss:$0 sps:$4 sm:$0xff]   ;;  %v13408_v45 = vld [vmem:[%s17381_s17 + $0xf4] ss:$8 sps:$4 sm:$0xff]  }
 0x9db   :  { %v6101_v25 = vrot.slane %v6100_v44, 1  ;;  %v6114_v53 = vadd.f32 %v6113_v15, %v6112_v20  ;;  %v14063_v20 = vmov 0  }
 0x9dc   :  { %7744 = vmatprep.mubr.bf16.mxu1 %v14063_v20 }
 0x9dd   :  { %v6102_v22 = vadd.f32 %v6101_v25, %v6100_v44  ;;  %v6115_v41 = vrot.slane %v6114_v53, 1  ;;  %v13411_v44 = vld [vmem:[%s17381_s17 + $0x4] ss:$8 sps:$4 sm:$0xff]  }
 0x9df   :  { %v6103_v49 = vmul.f32 0.03125, %v6102_v22  ;;  %v6116_v57 = vadd.f32 %v6115_v41, %v6114_v53 }
 0x9e1   :  { %v6117_v55 = vmul.f32 0.03125, %v6116_v57  ;;  %v6118_v62 = vmul.f32 %v6103_v49, %v6103_v49 }
 0x9e3   :  { %v6119_v63 = vsub.f32 %v6117_v55, %v6118_v62  ;;  %v13414_v55 = vld [vmem:[%s17381_s17 + $0x14] ss:$8 sps:$4 sm:$0xff]   ;;  %v13412_v62 = vld [vmem:[%s17381_s17 + $0x10] ss:$8 sps:$4 sm:$0xff]  }
 0x9e5   :  { %v6120_v2 = vmax.f32 %v6119_v63, 0.0 }
 0x9e7   :  { %v6121_v24 = vadd.f32 1e-05, %v6120_v2  ;;  %v13417_v2 = vld [vmem:[%s17381_s17 + $0x24] ss:$8 sps:$4 sm:$0xff]  }
 0x9e9   :  { %14044 = vrsqrt.f32 %v6121_v24 }
 0x9f3   :  { %v14045_v58 = vpop.eup %14044 }
 0x9f4   :  { %v6124_v3 = vmul.f32 %v14045_v58, %v6123_v54 }
 0x9f6   :  { %v6126_v26 = vmul.f32 %v6124_v3, %v6103_v49  ;;  %v6131_v27 = vrot.slane %v6124_v3, %v14359_v12  ;;  %v13409_v49 = vld [vmem:[%s17381_s17] ss:$8 sps:$4 sm:$0xff]  }
 0x9f8   :  { %v6127_v28 = vsub.f32 %v6125_v61, %v6126_v26  ;;  %v6133_v31 = vmul.f32 %v6131_v27, %v6078_v6  ;;  %v6132_v16 = vmul.f32 %v6131_v27, %v6075_v19  ;;  %v6134_v18 = vmul.f32 %v12828_v59, %v6131_v27  ;;  %v13388_v59 = vld [vmem:[%s17381_s17 + $0x94] ss:$8 sps:$4 sm:$0xff]   ;;  %v13386_v19 = vld [vmem:[%s17381_s17 + $0x90] ss:$8 sps:$4 sm:$0xff]   ;;  %v13381_v6 = vld [vmem:[%s17380_s16 + $0x8] sm:$0xff]  }
 0x9f9   :  { %v6135_v35 = vmul.f32 %v12829_v9, %v6131_v27  ;;  %v13391_v9 = vld [vmem:[%s17381_s17 + $0xa4] ss:$8 sps:$4 sm:$0xff]   ;;  %v13415_v61 = vld [vmem:[%s17381_s17 + $0x20] ss:$8 sps:$4 sm:$0xff]   ;;  %v13420_v26 = vld [vmem:[%s17381_s17 + $0x34] ss:$8 sps:$4 sm:$0xff]  }
 0x9fa   :  { %v6140_v40 = vrot.slane %v6127_v28, %v14359_v12  ;;  %v13418_v27 = vld [vmem:[%s17381_s17 + $0x30] ss:$8 sps:$4 sm:$0xff]  }
 0x9fc   :  { %v6143_v0 = vadd.f32 %v6140_v40, %v6133_v31  ;;  %v6142_v48 = vadd.f32 %v6140_v40, %v6132_v16  ;;  %v6144_v21 = vadd.f32 %v6140_v40, %v6134_v18  ;;  %v6145_v1 = vadd.f32 %v6140_v40, %v6135_v35  ;;  %v13423_v31 = vld [vmem:[%s17381_s17 + $0x44] ss:$8 sps:$4 sm:$0xff]  }
 0x9fe   :  { %vm6147_vm13 = vcmp.ge.f32.partialorder %v6143_v0, 0.0  ;;  %v6151_v4 = vmul.f32 0.01, %v6143_v0  ;;  %vm6146_vm14 = vcmp.ge.f32.partialorder %v6142_v48, 0.0  ;;  %v6150_v60 = vmul.f32 0.01, %v6142_v48 }
 0x9ff   :  { %vm6148_vm15 = vcmp.ge.f32.partialorder %v6144_v21, 0.0  ;;  %vm6149_vm1 = vcmp.ge.f32.partialorder %v6145_v1, 0.0  ;;  %v6152_v7 = vmul.f32 0.01, %v6144_v21  ;;  %v6153_v8 = vmul.f32 0.01, %v6145_v1 }
 0xa00   :  { %v6154_v11 = vsel %vm6146_vm14, %v6142_v48, %v6150_v60  ;;  %v6155_v36 = vsel %vm6147_vm13, %v6143_v0, %v6151_v4  ;;  %v13421_v0 = vld [vmem:[%s17381_s17 + $0x40] ss:$8 sps:$4 sm:$0xff]   ;;  %v13426_v48 = vld [vmem:[%s17381_s17 + $0x54] ss:$8 sps:$4 sm:$0xff]  }
 0xa01   :  { %v6158_v23 = vpack.c.bf16 %v6155_v36, %v6154_v11  ;;  %v6156_v43 = vsel %vm6148_vm15, %v6144_v21, %v6152_v7  ;;  %v6157_v42 = vsel %vm6149_vm1, %v6145_v1, %v6153_v8  ;;  %v13424_v21 = vld [vmem:[%s17381_s17 + $0x50] ss:$8 sps:$4 sm:$0xff]   ;;  %v13429_v1 = vld [vmem:[%s17381_s17 + $0x64] ss:$8 sps:$4 sm:$0xff]   ;;  %v13427_v4 = vld [vmem:[%s17381_s17 + $0x60] ss:$8 sps:$4 sm:$0xff]  }
 0xa02   :  { %v6159_v46 = vpack.c.bf16 %v6157_v42, %v6156_v43  ;;  %v13432_v60 = vld [vmem:[%s17381_s17 + $0x74] ss:$8 sps:$4 sm:$0xff]   ;;  %v13430_v7 = vld [vmem:[%s17381_s17 + $0x70] ss:$8 sps:$4 sm:$0xff]   ;;  %v13435_v8 = vld [vmem:[%s17381_s17 + $0x104] ss:$8 sps:$4 sm:$0xff]  }
 0xa03   :  { %12831 = vmatpush3.bf16.msra.mxu0 %v6158_v23  ;;  %v13433_v11 = vld [vmem:[%s17381_s17 + $0x100] ss:$8 sps:$4 sm:$0xff]   ;;  %v13438_v36 = vld [vmem:[%s17381_s17 + $0x114] ss:$8 sps:$4 sm:$0xff]   ;;  %v13436_v23 = vld [vmem:[%s17381_s17 + $0x110] ss:$8 sps:$4 sm:$0xff]  }
 0xa04   :  { %12832 = vmatprep.subr.bf16.mxu0 %v14061_v14  ;;  %v13441_v43 = vld [vmem:[%s17381_s17 + $0x124] ss:$8 sps:$4 sm:$0xff]   ;;  %v13439_v42 = vld [vmem:[%s17381_s17 + $0x120] ss:$8 sps:$4 sm:$0xff]  }
 0xa07   :  { %12833 = vmatpush3.bf16.msra.mxu0 %v6159_v46  ;;  %v13444_v46 = vld [vmem:[%s17381_s17 + $0x134] ss:$8 sps:$4 sm:$0xff]  }
 0xa08   :  { %6400 = vmatprep.subr.bf16.mxu0 %v13385_v17  ;;  %v13442_v17 = vld [vmem:[%s17381_s17 + $0x130] ss:$8 sps:$4 sm:$0xff]  }
 0xa0a   :  { %12835 = vmatmul.mubr.msk.bf16.vlgmr.msra.gmra.mrb[184].mxu0 %vm4791_vm8, %v13380_v52  ;;  %v13447_v52 = vld [vmem:[%s17381_s17 + $0x144] ss:$8 sps:$4 sm:$0xff]  }
 0xa0b   :  { %12838 = vmatprep.mubr.msk.bf16.mxu0 %vm14062_vm12, %v14061_v14  ;;  %6401 = vmatpush1.bf16.msra.mxu0 %v13383_v33  ;;  %v13445_v33 = vld [vmem:[%s17381_s17 + $0x140] ss:$8 sps:$4 sm:$0xff]  }
 0xa0c   :  { %6402 = vmatprep.subr.bf16.mxu0 %v13388_v59  ;;  %v13450_v59 = vld [vmem:[%s17381_s17 + $0x154] ss:$8 sps:$4 sm:$0xff]  }
 0xa0f   :  { %6403 = vmatpush1.bf16.msra.mxu0 %v13386_v19  ;;  %v13448_v19 = vld [vmem:[%s17381_s17 + $0x150] ss:$8 sps:$4 sm:$0xff]  }
 0xa10   :  { %6404 = vmatprep.subr.bf16.mxu0 %v13391_v9  ;;  %v13453_v9 = vld [vmem:[%s17381_s17 + $0x164] ss:$8 sps:$4 sm:$0xff]  }
 0xa12   :  { %12839 = vmatmul.mubr.msk.bf16.gmra.mrb[188].mxu0 %vm4791_vm8, %v13381_v6  ;;  %v13451_v6 = vld [vmem:[%s17381_s17 + $0x160] ss:$8 sps:$4 sm:$0xff]  }
 0xa13   :  { %12842 = vmatprep.mubr.msk.bf16.mxu0 %vm14062_vm12, %v14061_v14  ;;  %6405 = vmatpush1.bf16.msra.mxu0 %v13389_v29  ;;  %v13456_v29 = vld [vmem:[%s17381_s17 + $0x174] ss:$8 sps:$4 sm:$0xff]  }
 0xa14   :  { %6406 = vmatprep.subr.bf16.mxu0 %v13395_v30  ;;  %v13454_v30 = vld [vmem:[%s17381_s17 + $0x170] ss:$8 sps:$4 sm:$0xff]  }
 0xa17   :  { %6407 = vmatpush1.bf16.msra.mxu0 %v13393_v50 }
 0xa18   :  { %6408 = vmatprep.subr.bf16.mxu0 %v13398_v5  ;;  %v13459_v5 = vld [vmem:[%s17381_s17 + $0x184] ss:$8 sps:$4 sm:$0xff]  }
 0xa1a   :  { %12843 = vmatmul.mubr.msk.bf16.gmra.mrb[192].mxu0 %vm4791_vm8, %v13382_v39 }
 0xa1b   :  { %12846 = vmatprep.mubr.msk.bf16.mxu0 %vm14062_vm12, %v14061_v14  ;;  %6409 = vmatpush1.bf16.msra.mxu0 %v13396_v51  ;;  %v13457_v51 = vld [vmem:[%s17381_s17 + $0x180] ss:$8 sps:$4 sm:$0xff]  }
 0xa1c   :  { %6410 = vmatprep.subr.bf16.mxu0 %v13401_v13 }
 0xa1f   :  { %6411 = vmatpush1.bf16.msra.mxu0 %v13399_v38  ;;  %v13462_v38 = vld [vmem:[%s17381_s17 + $0x194] ss:$8 sps:$4 sm:$0xff]  }
 0xa20   :  { %6412 = vmatprep.subr.bf16.mxu0 %v13404_v47 }
 0xa22   :  { %12847 = vmatmul.mubr.msk.bf16.gmra.mrb[196].mxu0 %vm4791_vm8, %v13392_v37 }
 0xa23   :  { %12850 = vmatprep.mubr.msk.bf16.mxu0 %vm14062_vm12, %v14061_v14  ;;  %6413 = vmatpush1.bf16.msra.mxu0 %v13402_v34  ;;  %v13460_v34 = vld [vmem:[%s17381_s17 + $0x190] ss:$8 sps:$4 sm:$0xff]  }
 0xa24   :  { %6414 = vmatprep.subr.bf16.mxu0 %v13408_v45  ;;  %v13468_v45 = vld [vmem:[%s17381_s17 + $0x1b4] ss:$8 sps:$4 sm:$0xff]  }
 0xa27   :  { %6415 = vmatpush1.bf16.msra.mxu0 %v13406_v56  ;;  %v13463_v56 = vld [vmem:[%s17381_s17 + $0x1a0] ss:$8 sps:$4 sm:$0xff]  }
 0xa28   :  { %6521 = vmatprep.subr.bf16.mxu0 %v13411_v44  ;;  %v13466_v44 = vld [vmem:[%s17381_s17 + $0x1b0] ss:$8 sps:$4 sm:$0xff]  }
 0xa2a   :  { %12851 = vmatmul.mubr.msk.bf16.gmra.mrb[200].mxu0 %vm4791_vm8, %v13405_v32  ;;  %v13465_v32 = vld [vmem:[%s17381_s17 + $0x1a4] ss:$8 sps:$4 sm:$0xff]   ;;  %vm10182_vm8 = vcmask 1024  }
 0xa2b   :  { %6432 = vmatprep.mubr.bf16.mxu0 %v14063_v20 }
 0xadd   :  { %v6241_v15 = vpop.f32.mrb[184].mxu0 }
 0xade   :  { %v12836_v25 = vpop.f32.mrb[185].mxu0 }
 0xadf   :  { %v6244_v53 = vpop.f32.mrb[186].mxu0  ;;  %v13469_v25 = vld [vmem:[%s17381_s17 + $0x1c0] ss:$8 sps:$4 sm:$0xff]  }
 0xae0   :  { %v6279_v22 = vpack.c.bf16 %v6244_v53, %v6241_v15  ;;  %v12837_v41 = vpop.f32.mrb[187].mxu0  ;;  %v13471_v15 = vld [vmem:[%s17381_s17 + $0x1c4] ss:$8 sps:$4 sm:$0xff]   ;;  %v13474_v53 = vld [vmem:[%s17381_s17 + $0x1d4] ss:$8 sps:$4 sm:$0xff]  }
 0xae1   :  { %v13477_v41 = vld [vmem:[%s17381_s17 + $0x1e4] ss:$8 sps:$4 sm:$0xff]  }
 0xae2   :  { %v6318_v57 = vrot.slane %v6279_v22, 4 }
 0xae4   :  { %6433 = vmatmul.mubr.bf16.vlgmr.msra.gmra.mrb[204].mxu0 %v6318_v57  ;;  %v13480_v57 = vld [vmem:[%s17381_s17 + $0x1f4] ss:$8 sps:$4 sm:$0xff]  }
 0xae5   :  { %6522 = vmatpush1.bf16.msra.mxu0 %v13409_v49  ;;  %6553 = vmatprep.mubr.bf16.mxu0 %v14063_v20  ;;  %v6249_v63 = vpop.f32.mrb[188].mxu0  ;;  %v13475_v49 = vld [vmem:[%s17381_s17 + $0x1e0] ss:$8 sps:$4 sm:$0xff]  }
 0xae6   :  { %6523 = vmatprep.subr.bf16.mxu0 %v13414_v55  ;;  %v12840_v24 = vpop.f32.mrb[189].mxu0  ;;  %v13478_v55 = vld [vmem:[%s17381_s17 + $0x1f0] ss:$8 sps:$4 sm:$0xff]  }
 0xae7   :  { %v6252_v54 = vpop.f32.mrb[190].mxu0 }
 0xae8   :  { %v15980_v58 = vpack.c.bf16 %v6252_v54, %v6249_v63  ;;  %v12841_v3 = vpop.f32.mrb[191].mxu0  ;;  %v13483_v63 = vld [vmem:[%s17381_s17 + $0x204] ss:$8 sps:$4 sm:$0xff]  }
 0xae9   :  { %6524 = vmatpush1.bf16.msra.mxu0 %v13412_v62  ;;  %v13481_v3 = vld [vmem:[%s17381_s17 + $0x200] ss:$8 sps:$4 sm:$0xff]  }
 0xaea   :  { %6525 = vmatprep.subr.bf16.mxu0 %v13417_v2 }
 0xaed   :  { %6526 = vmatpush1.bf16.msra.mxu0 %v13415_v61  ;;  %v6257_v28 = vpop.f32.mrb[192].mxu0  ;;  %v6720_v61 = vrot.slane %v15980_v58, 4 }
 0xaee   :  { %6527 = vmatprep.subr.bf16.mxu0 %v13420_v26  ;;  %v12844_v16 = vpop.f32.mrb[193].mxu0  ;;  %v13486_v26 = vld [vmem:[%s17381_s17 + $0x214] ss:$8 sps:$4 sm:$0xff]  }
 0xaef   :  { %v6260_v18 = vpop.f32.mrb[194].mxu0  ;;  %v13490_v16 = vld [vmem:[%s17381_s17 + $0x230] ss:$8 sps:$4 sm:$0xff]  }
 0xaf0   :  { %v15994_v35 = vpack.c.bf16 %v6260_v18, %v6257_v28  ;;  %v12845_v40 = vpop.f32.mrb[195].mxu0  ;;  %v13489_v28 = vld [vmem:[%s17381_s17 + $0x224] ss:$8 sps:$4 sm:$0xff]  }
 0xaf1   :  { %6528 = vmatpush1.bf16.msra.mxu0 %v13418_v27  ;;  %v13484_v27 = vld [vmem:[%s17381_s17 + $0x210] ss:$8 sps:$4 sm:$0xff]   ;;  %v13495_v18 = vld [vmem:[%s17381_s17 + $0x244] ss:$8 sps:$4 sm:$0xff]   ;;  %v13493_v40 = vld [vmem:[%s17381_s17 + $0x240] ss:$8 sps:$4 sm:$0xff]  }
 0xaf2   :  { %6529 = vmatprep.subr.bf16.mxu0 %v13423_v31  ;;  %v13492_v31 = vld [vmem:[%s17381_s17 + $0x234] ss:$8 sps:$4 sm:$0xff]  }
 0xaf5   :  { %6530 = vmatpush1.bf16.msra.mxu0 %v13421_v0  ;;  %v6265_v50 = vpop.f32.mrb[196].mxu0  ;;  %v13498_v0 = vld [vmem:[%s17381_s17 + $0x254] ss:$8 sps:$4 sm:$0xff]  }
 0xaf6   :  { %6531 = vmatprep.subr.bf16.mxu0 %v13426_v48  ;;  %v12848_v39 = vpop.f32.mrb[197].mxu0  ;;  %v13496_v48 = vld [vmem:[%s17381_s17 + $0x250] ss:$8 sps:$4 sm:$0xff]  }
 0xaf7   :  { %v6268_v13 = vpop.f32.mrb[198].mxu0  ;;  %v13534_v39 = vld [vmem:[%s17381_s17 + $0x314] ss:$8 sps:$4 sm:$0xff]  }
 0xaf8   :  { %v16075_v47 = vpack.c.bf16 %v6268_v13, %v6265_v50  ;;  %v12849_v37 = vpop.f32.mrb[199].mxu0  ;;  %v13529_v50 = vld [vmem:[%s17381_s17 + $0x300] ss:$8 sps:$4 sm:$0xff]   ;;  %v13537_v13 = vld [vmem:[%s17381_s17 + $0x324] ss:$8 sps:$4 sm:$0xff]  }
 0xaf9   :  { %6532 = vmatpush1.bf16.msra.mxu0 %v13424_v21  ;;  %v13501_v21 = vld [vmem:[%s17381_s17 + $0x264] ss:$8 sps:$4 sm:$0xff]   ;;  %v13538_v37 = vld [vmem:[%s17381_s17 + $0x330] ss:$8 sps:$4 sm:$0xff]  }
 0xafa   :  { %6533 = vmatprep.subr.bf16.mxu0 %v13429_v1  ;;  %v13499_v1 = vld [vmem:[%s17381_s17 + $0x260] ss:$8 sps:$4 sm:$0xff]  }
 0xafd   :  { %6534 = vmatpush1.bf16.msra.mxu0 %v13427_v4  ;;  %v16118_v62 = vpop.f32.mrb[200].mxu0  ;;  %v13504_v4 = vld [vmem:[%s17381_s17 + $0x274] ss:$8 sps:$4 sm:$0xff]  }
 0xafe   :  { %6535 = vmatprep.subr.bf16.mxu0 %v13432_v60  ;;  %v12852_v2 = vpop.f32.mrb[201].mxu0  ;;  %v13502_v60 = vld [vmem:[%s17381_s17 + $0x270] ss:$8 sps:$4 sm:$0xff]  }
 0xaff   :  { %v6276_v24 = vpop.f32.mrb[202].mxu0  ;;  %v13564_v2 = vld [vmem:[%s17381_s17 + $0x3b4] ss:$8 sps:$4 sm:$0xff]  }
 0xb00   :  { %v12853_v54 = vpop.f32.mrb[203].mxu0  ;;  %v13562_v24 = vld [vmem:[%s17381_s17 + $0x3b0] ss:$8 sps:$4 sm:$0xff]  }
 0xb01   :  { %6536 = vmatpush1.bf16.msra.mxu0 %v13430_v7  ;;  %v13507_v7 = vld [vmem:[%s17381_s17 + $0x284] ss:$8 sps:$4 sm:$0xff]  }
 0xb02   :  { %6659 = vmatprep.subr.bf16.mxu0 %v13435_v8  ;;  %v13505_v8 = vld [vmem:[%s17381_s17 + $0x280] ss:$8 sps:$4 sm:$0xff]   ;;  %v13567_v54 = vld [vmem:[%s17381_s17 + $0x3c4] ss:$8 sps:$4 sm:$0xff]  }
 0xb04   :  { %6554 = vmatmul.mubr.bf16.vlgmr.msra.gmra.mrb[204].mxu0 %v6279_v22  ;;  %v13472_v22 = vld [vmem:[%s17381_s17 + $0x1d0] ss:$8 sps:$4 sm:$0xff]  }
 0xb05   :  { %6660 = vmatpush1.bf16.msra.mxu0 %v13433_v11  ;;  %6691 = vmatprep.mubr.bf16.mxu0 %v14063_v20  ;;  %v13510_v11 = vld [vmem:[%s17381_s17 + $0x294] ss:$8 sps:$4 sm:$0xff]  }
 0xb06   :  { %6661 = vmatprep.subr.bf16.mxu0 %v13438_v36  ;;  %v13508_v36 = vld [vmem:[%s17381_s17 + $0x290] ss:$8 sps:$4 sm:$0xff]  }
 0xb09   :  { %6662 = vmatpush1.bf16.msra.mxu0 %v13436_v23  ;;  %v13513_v23 = vld [vmem:[%s17381_s17 + $0x2a4] ss:$8 sps:$4 sm:$0xff]  }
 0xb0a   :  { %6663 = vmatprep.subr.bf16.mxu0 %v13441_v43  ;;  %v13511_v43 = vld [vmem:[%s17381_s17 + $0x2a0] ss:$8 sps:$4 sm:$0xff]  }
 0xb0d   :  { %6664 = vmatpush1.bf16.msra.mxu0 %v13439_v42  ;;  %v13516_v42 = vld [vmem:[%s17381_s17 + $0x2b4] ss:$8 sps:$4 sm:$0xff]  }
 0xb0e   :  { %6665 = vmatprep.subr.bf16.mxu0 %v13444_v46  ;;  %v13514_v46 = vld [vmem:[%s17381_s17 + $0x2b0] ss:$8 sps:$4 sm:$0xff]  }
 0xb11   :  { %6666 = vmatpush1.bf16.msra.mxu0 %v13442_v17  ;;  %v13519_v17 = vld [vmem:[%s17381_s17 + $0x2c4] ss:$8 sps:$4 sm:$0xff]  }
 0xb12   :  { %6667 = vmatprep.subr.bf16.mxu0 %v13447_v52  ;;  %v13517_v52 = vld [vmem:[%s17381_s17 + $0x2c0] ss:$8 sps:$4 sm:$0xff]  }
 0xb15   :  { %6668 = vmatpush1.bf16.msra.mxu0 %v13445_v33  ;;  %v13522_v33 = vld [vmem:[%s17381_s17 + $0x2d4] ss:$8 sps:$4 sm:$0xff]  }
 0xb16   :  { %6669 = vmatprep.subr.bf16.mxu0 %v13450_v59  ;;  %v13520_v59 = vld [vmem:[%s17381_s17 + $0x2d0] ss:$8 sps:$4 sm:$0xff]  }
 0xb19   :  { %6670 = vmatpush1.bf16.msra.mxu0 %v13448_v19  ;;  %v13525_v19 = vld [vmem:[%s17381_s17 + $0x2e4] ss:$8 sps:$4 sm:$0xff]  }
 0xb1a   :  { %6671 = vmatprep.subr.bf16.mxu0 %v13453_v9  ;;  %v13523_v9 = vld [vmem:[%s17381_s17 + $0x2e0] ss:$8 sps:$4 sm:$0xff]  }
 0xb1d   :  { %6672 = vmatpush1.bf16.msra.mxu0 %v13451_v6  ;;  %v13528_v6 = vld [vmem:[%s17381_s17 + $0x2f4] ss:$8 sps:$4 sm:$0xff]  }
 0xb1e   :  { %6673 = vmatprep.subr.bf16.mxu0 %v13456_v29  ;;  %v13526_v29 = vld [vmem:[%s17381_s17 + $0x2f0] ss:$8 sps:$4 sm:$0xff]  }
 0xb21   :  { %6674 = vmatpush1.bf16.msra.mxu0 %v13454_v30  ;;  %v13531_v30 = vld [vmem:[%s17381_s17 + $0x304] ss:$8 sps:$4 sm:$0xff]  }
 0xb22   :  { %6802 = vmatprep.subr.bf16.mxu0 %v13459_v5  ;;  %v7003_v5 = vrot.slane %v15994_v35, 4 }
 0xb24   :  { %6692 = vmatmul.mubr.bf16.vlgmr.msra.gmra.mrb[204].mxu0 %v15980_v58  ;;  %v13487_v58 = vld [vmem:[%s17381_s17 + $0x220] ss:$8 sps:$4 sm:$0xff]  }
 0xb25   :  { %6803 = vmatpush1.bf16.msra.mxu0 %v13457_v51  ;;  %6834 = vmatprep.mubr.bf16.mxu0 %v14063_v20  ;;  %v13532_v51 = vld [vmem:[%s17381_s17 + $0x310] ss:$8 sps:$4 sm:$0xff]  }
 0xb26   :  { %6804 = vmatprep.subr.bf16.mxu0 %v13462_v38  ;;  %v13540_v38 = vld [vmem:[%s17381_s17 + $0x334] ss:$8 sps:$4 sm:$0xff]  }
 0xb29   :  { %6805 = vmatpush1.bf16.msra.mxu0 %v13460_v34  ;;  %v13543_v34 = vld [vmem:[%s17381_s17 + $0x344] ss:$8 sps:$4 sm:$0xff]  }
 0xb2a   :  { %6806 = vmatprep.subr.bf16.mxu0 %v13465_v32  ;;  %v13541_v32 = vld [vmem:[%s17381_s17 + $0x340] ss:$8 sps:$4 sm:$0xff]  }
 0xb2d   :  { %6807 = vmatpush1.bf16.msra.mxu0 %v13463_v56  ;;  %v13546_v56 = vld [vmem:[%s17381_s17 + $0x354] ss:$8 sps:$4 sm:$0xff]  }
 0xb2e   :  { %6808 = vmatprep.subr.bf16.mxu0 %v13468_v45  ;;  %v13544_v45 = vld [vmem:[%s17381_s17 + $0x350] ss:$8 sps:$4 sm:$0xff]  }
 0xb31   :  { %6809 = vmatpush1.bf16.msra.mxu0 %v13466_v44  ;;  %v13549_v44 = vld [vmem:[%s17381_s17 + $0x364] ss:$8 sps:$4 sm:$0xff]  }
 0xb32   :  { %6810 = vmatprep.subr.bf16.mxu0 %v13471_v15  ;;  %v13547_v15 = vld [vmem:[%s17381_s17 + $0x360] ss:$8 sps:$4 sm:$0xff]  }
 0xb35   :  { %6811 = vmatpush1.bf16.msra.mxu0 %v13469_v25  ;;  %v13552_v25 = vld [vmem:[%s17381_s17 + $0x374] ss:$8 sps:$4 sm:$0xff]  }
 0xb36   :  { %6812 = vmatprep.subr.bf16.mxu0 %v13474_v53  ;;  %v13550_v53 = vld [vmem:[%s17381_s17 + $0x370] ss:$8 sps:$4 sm:$0xff]  }
 0xb39   :  { %6813 = vmatpush1.bf16.msra.mxu0 %v13472_v22  ;;  %v13555_v22 = vld [vmem:[%s17381_s17 + $0x384] ss:$8 sps:$4 sm:$0xff]  }
 0xb3a   :  { %6814 = vmatprep.subr.bf16.mxu0 %v13477_v41  ;;  %v13553_v41 = vld [vmem:[%s17381_s17 + $0x380] ss:$8 sps:$4 sm:$0xff]  }
 0xb3d   :  { %6815 = vmatpush1.bf16.msra.mxu0 %v13475_v49  ;;  %v13558_v49 = vld [vmem:[%s17381_s17 + $0x394] ss:$8 sps:$4 sm:$0xff]  }
 0xb3e   :  { %6816 = vmatprep.subr.bf16.mxu0 %v13480_v57  ;;  %v13556_v57 = vld [vmem:[%s17381_s17 + $0x390] ss:$8 sps:$4 sm:$0xff]  }
 0xb41   :  { %6817 = vmatpush1.bf16.msra.mxu0 %v13478_v55  ;;  %v13561_v55 = vld [vmem:[%s17381_s17 + $0x3a4] ss:$8 sps:$4 sm:$0xff]  }
 0xb42   :  { %6942 = vmatprep.subr.bf16.mxu0 %v13483_v63  ;;  %v13559_v63 = vld [vmem:[%s17381_s17 + $0x3a0] ss:$8 sps:$4 sm:$0xff]  }
 0xb44   :  { %6835 = vmatmul.mubr.bf16.vlgmr.msra.gmra.mrb[204].mxu0 %v6720_v61  ;;  %v13570_v61 = vld [vmem:[%s17381_s17 + $0x3d4] ss:$8 sps:$4 sm:$0xff]  }
 0xb45   :  { %6943 = vmatpush1.bf16.msra.mxu0 %v13481_v3  ;;  %6974 = vmatprep.mubr.bf16.mxu0 %v14063_v20  ;;  %v13565_v3 = vld [vmem:[%s17381_s17 + $0x3c0] ss:$8 sps:$4 sm:$0xff]  }
 0xb46   :  { %6944 = vmatprep.subr.bf16.mxu0 %v13486_v26  ;;  %v13568_v26 = vld [vmem:[%s17381_s17 + $0x3d0] ss:$8 sps:$4 sm:$0xff]  }
 0xb49   :  { %6945 = vmatpush1.bf16.msra.mxu0 %v13484_v27  ;;  %v13573_v27 = vld [vmem:[%s17381_s17 + $0x3e4] ss:$8 sps:$4 sm:$0xff]  }
 0xb4a   :  { %6946 = vmatprep.subr.bf16.mxu0 %v13489_v28  ;;  %v13571_v28 = vld [vmem:[%s17381_s17 + $0x3e0] ss:$8 sps:$4 sm:$0xff]  }
 0xb4d   :  { %6947 = vmatpush1.bf16.msra.mxu0 %v13487_v58  ;;  %v13576_v58 = vld [vmem:[%s17381_s17 + $0x3f4] ss:$8 sps:$4 sm:$0xff]  }
 0xb4e   :  { %6948 = vmatprep.subr.bf16.mxu0 %v13492_v31  ;;  %v13574_v31 = vld [vmem:[%s17381_s17 + $0x3f0] ss:$8 sps:$4 sm:$0xff]  }
 0xb51   :  { %6949 = vmatpush1.bf16.msra.mxu0 %v13490_v16  ;;  %v13579_v16 = vld [vmem:[%s17381_s17 + $0x404] ss:$8 sps:$4 sm:$0xff]  }
 0xb52   :  { %6950 = vmatprep.subr.bf16.mxu0 %v13495_v18  ;;  %v13577_v18 = vld [vmem:[%s17381_s17 + $0x400] ss:$8 sps:$4 sm:$0xff]  }
 0xb55   :  { %6951 = vmatpush1.bf16.msra.mxu0 %v13493_v40  ;;  %v7286_v40 = vrot.slane %v16075_v47, 4 }
 0xb56   :  { %6952 = vmatprep.subr.bf16.mxu0 %v13498_v0  ;;  %v13582_v0 = vld [vmem:[%s17381_s17 + $0x414] ss:$8 sps:$4 sm:$0xff]  }
 0xb59   :  { %6953 = vmatpush1.bf16.msra.mxu0 %v13496_v48  ;;  %v13580_v48 = vld [vmem:[%s17381_s17 + $0x410] ss:$8 sps:$4 sm:$0xff]  }
 0xb5a   :  { %6954 = vmatprep.subr.bf16.mxu0 %v13501_v21  ;;  %v13585_v21 = vld [vmem:[%s17381_s17 + $0x424] ss:$8 sps:$4 sm:$0xff]  }
 0xb5d   :  { %6955 = vmatpush1.bf16.msra.mxu0 %v13499_v1  ;;  %v13588_v1 = vld [vmem:[%s17381_s17 + $0x434] ss:$8 sps:$4 sm:$0xff]  }
 0xb5e   :  { %6956 = vmatprep.subr.bf16.mxu0 %v13504_v4  ;;  %v13586_v4 = vld [vmem:[%s17381_s17 + $0x430] ss:$8 sps:$4 sm:$0xff]  }
 0xb61   :  { %6957 = vmatpush1.bf16.msra.mxu0 %v13502_v60  ;;  %v13591_v60 = vld [vmem:[%s17381_s17 + $0x444] ss:$8 sps:$4 sm:$0xff]  }
 0xb62   :  { %7085 = vmatprep.subr.bf16.mxu0 %v13507_v7  ;;  %v13589_v7 = vld [vmem:[%s17381_s17 + $0x440] ss:$8 sps:$4 sm:$0xff]  }
 0xb64   :  { %6975 = vmatmul.mubr.bf16.vlgmr.msra.gmra.mrb[204].mxu0 %v15994_v35  ;;  %v13535_v35 = vld [vmem:[%s17381_s17 + $0x320] ss:$8 sps:$4 sm:$0xff]  }
 0xb65   :  { %7086 = vmatpush1.bf16.msra.mxu0 %v13505_v8  ;;  %7117 = vmatprep.mubr.bf16.mxu0 %v14063_v20  ;;  %v13594_v8 = vld [vmem:[%s17381_s17 + $0x454] ss:$8 sps:$4 sm:$0xff]  }
 0xb66   :  { %7087 = vmatprep.subr.bf16.mxu0 %v13510_v11  ;;  %v13592_v11 = vld [vmem:[%s17381_s17 + $0x450] ss:$8 sps:$4 sm:$0xff]  }
 0xb69   :  { %7088 = vmatpush1.bf16.msra.mxu0 %v13508_v36  ;;  %v13597_v36 = vld [vmem:[%s17381_s17 + $0x464] ss:$8 sps:$4 sm:$0xff]  }
 0xb6a   :  { %7089 = vmatprep.subr.bf16.mxu0 %v13513_v23  ;;  %v13595_v23 = vld [vmem:[%s17381_s17 + $0x460] ss:$8 sps:$4 sm:$0xff]  }
 0xb6d   :  { %7090 = vmatpush1.bf16.msra.mxu0 %v13511_v43  ;;  %v13600_v43 = vld [vmem:[%s17381_s17 + $0x474] ss:$8 sps:$4 sm:$0xff]  }
 0xb6e   :  { %7091 = vmatprep.subr.bf16.mxu0 %v13516_v42  ;;  %v13598_v42 = vld [vmem:[%s17381_s17 + $0x470] ss:$8 sps:$4 sm:$0xff]  }
 0xb71   :  { %7092 = vmatpush1.bf16.msra.mxu0 %v13514_v46  ;;  %v6283_v46 = vpack.c.bf16 %v16118_v62, %v16118_v62 }
 0xb72   :  { %7093 = vmatprep.subr.bf16.mxu0 %v13519_v17 }
 0xb75   :  { %7094 = vmatpush1.bf16.msra.mxu0 %v13517_v52 }
 0xb76   :  { %7095 = vmatprep.subr.bf16.mxu0 %v13522_v33 }
 0xb79   :  { %7096 = vmatpush1.bf16.msra.mxu0 %v13520_v59 }
 0xb7a   :  { %7097 = vmatprep.subr.bf16.mxu0 %v13525_v19 }
 0xb7d   :  { %7098 = vmatpush1.bf16.msra.mxu0 %v13523_v9 }
 0xb7e   :  { %7099 = vmatprep.subr.bf16.mxu0 %v13528_v6 }
 0xb81   :  { %7100 = vmatpush1.bf16.msra.mxu0 %v13526_v29 }
 0xb82   :  { %7225 = vmatprep.subr.bf16.mxu0 %v13531_v30 }
 0xb84   :  { %7118 = vmatmul.mubr.bf16.vlgmr.msra.gmra.mrb[204].mxu0 %v7003_v5 }
 0xb85   :  { %7226 = vmatpush1.bf16.msra.mxu0 %v13529_v50  ;;  %7257 = vmatprep.mubr.bf16.mxu0 %v14063_v20 }
 0xb86   :  { %7227 = vmatprep.subr.bf16.mxu0 %v13534_v39 }
 0xb89   :  { %7228 = vmatpush1.bf16.msra.mxu0 %v13532_v51 }
 0xb8a   :  { %7229 = vmatprep.subr.bf16.mxu0 %v13537_v13 }
 0xb8d   :  { %7230 = vmatpush1.bf16.msra.mxu0 %v13535_v35 }
 0xb8e   :  { %7231 = vmatprep.subr.bf16.mxu0 %v13540_v38 }
 0xb91   :  { %7232 = vmatpush1.bf16.msra.mxu0 %v13538_v37 }
 0xb92   :  { %7233 = vmatprep.subr.bf16.mxu0 %v13543_v34 }
 0xb95   :  { %7234 = vmatpush1.bf16.msra.mxu0 %v13541_v32 }
 0xb96   :  { %7235 = vmatprep.subr.bf16.mxu0 %v13546_v56 }
 0xb99   :  { %7236 = vmatpush1.bf16.msra.mxu0 %v13544_v45 }
 0xb9a   :  { %7237 = vmatprep.subr.bf16.mxu0 %v13549_v44 }
 0xb9d   :  { %7238 = vmatpush1.bf16.msra.mxu0 %v13547_v15 }
 0xb9e   :  { %7239 = vmatprep.subr.bf16.mxu0 %v13552_v25 }
 0xba1   :  { %7240 = vmatpush1.bf16.msra.mxu0 %v13550_v53 }
 0xba2   :  { %7368 = vmatprep.subr.bf16.mxu0 %v13555_v22 }
 0xba4   :  { %7258 = vmatmul.mubr.bf16.vlgmr.msra.gmra.mrb[204].mxu0 %v16075_v47  ;;  %v13583_v47 = vld [vmem:[%s17381_s17 + $0x420] ss:$8 sps:$4 sm:$0xff]  }
 0xba5   :  { %7369 = vmatpush1.bf16.msra.mxu0 %v13553_v41  ;;  %7400 = vmatprep.mubr.bf16.mxu0 %v14063_v20 }
 0xba6   :  { %7370 = vmatprep.subr.bf16.mxu0 %v13558_v49 }
 0xba9   :  { %7371 = vmatpush1.bf16.msra.mxu0 %v13556_v57 }
 0xbaa   :  { %7372 = vmatprep.subr.bf16.mxu0 %v13561_v55 }
 0xbad   :  { %7373 = vmatpush1.bf16.msra.mxu0 %v13559_v63 }
 0xbae   :  { %7374 = vmatprep.subr.bf16.mxu0 %v13564_v2 }
 0xbb1   :  { %7375 = vmatpush1.bf16.msra.mxu0 %v13562_v24 }
 0xbb2   :  { %7376 = vmatprep.subr.bf16.mxu0 %v13567_v54 }
 0xbb5   :  { %7377 = vmatpush1.bf16.msra.mxu0 %v13565_v3 }
 0xbb6   :  { %7378 = vmatprep.subr.bf16.mxu0 %v13570_v61 }
 0xbb9   :  { %7379 = vmatpush1.bf16.msra.mxu0 %v13568_v26 }
 0xbba   :  { %7380 = vmatprep.subr.bf16.mxu0 %v13573_v27 }
 0xbbd   :  { %7381 = vmatpush1.bf16.msra.mxu0 %v13571_v28 }
 0xbbe   :  { %7382 = vmatprep.subr.bf16.mxu0 %v13576_v58 }
 0xbc1   :  { %7383 = vmatpush1.bf16.msra.mxu0 %v13574_v31  ;;  %v7591_v31 = vld [vmem:[%s17386_s18] sm:$0x3] }
 0xbc2   :  { %7508 = vmatprep.subr.bf16.mxu0 %v13579_v16  ;;  %v16389_v16 = vsub.s32 1, %v14356_v10 }
 0xbc4   :  { %7401 = vmatmul.mubr.bf16.vlgmr.msra.gmra.mrb[204].mxu0 %v7286_v40 }
 0xbc5   :  { %7509 = vmatpush1.bf16.msra.mxu0 %v13577_v18  ;;  %7540 = vmatprep.mubr.bf16.mxu0 %v14063_v20  ;;  %v14064_v18 = vmov 1966171168  }
 0xbc6   :  { %7510 = vmatprep.subr.bf16.mxu0 %v13582_v0  ;;  %v7612_v40 = vunpack.c.l.s4 %v14064_v18  ;;  %v7596_v0 = vrot.slane %v7591_v31, %v14359_v12  ;;  %v13646_v18 = vld [vmem:[%s17385_s21 + $0x1d4] ss:$8 sps:$4 sm:$0xff]  }
 0xbc9   :  { %7511 = vmatpush1.bf16.msra.mxu0 %v13580_v48  ;;  %v7600_v48 = vrot.slane %v7591_v31, %v16389_v16  ;;  %v13640_v31 = vld [vmem:[%s17385_s21 + $0x1c0] ss:$8 sps:$4 sm:$0xff]  }
 0xbca   :  { %7512 = vmatprep.subr.bf16.mxu0 %v13585_v21 }
 0xbcd   :  { %7513 = vmatpush1.bf16.msra.mxu0 %v13583_v47  ;;  %v7613_v47 = vunpack.c.0.s8 %v7612_v40  ;;  %v13644_v40 = vld [vmem:[%s17385_s21 + $0x1d0] ss:$8 sps:$4 sm:$0xff]  }
 0xbce   :  { %7514 = vmatprep.subr.bf16.mxu0 %v13588_v1 }
 0xbd1   :  { %7515 = vmatpush1.bf16.msra.mxu0 %v13586_v4 }
 0xbd2   :  { %7516 = vmatprep.subr.bf16.mxu0 %v13591_v60 }
 0xbd5   :  { %7517 = vmatpush1.bf16.msra.mxu0 %v13589_v7 }
 0xbd6   :  { %7518 = vmatprep.subr.bf16.mxu0 %v13594_v8 }
 0xbd9   :  { %7519 = vmatpush1.bf16.msra.mxu0 %v13592_v11  ;;  %v16394_v11 = vsub.s32 %v7613_v47, %v14356_v10  ;;  %v13651_v47 = vld [vmem:[%s17385_s21 + $0x1f0] ss:$8 sps:$4 sm:$0xff]  }
 0xbda   :  { %7520 = vmatprep.subr.bf16.mxu0 %v13597_v36 }
 0xbdd   :  { %7521 = vmatpush1.bf16.msra.mxu0 %v13595_v23  ;;  %v7605_v23 = vld [vmem:[%s17387_s19] sm:$0x3] }
 0xbde   :  { %7522 = vmatprep.subr.bf16.mxu0 %v13600_v43 }
 0xbe1   :  { %7523 = vmatpush1.bf16.msra.mxu0 %v13598_v42 }
 0xbe4   :  { %7541 = vmatmul.mubr.bf16.vlgmr.msra.gmra.mrb[204].mxu0 %v6283_v46 }
 0xbe5   :  { %10123 = vmatprep.mubr.f32.mxu0 %v14061_v14 }
 0xcb7   :  { %v16373_v17 = vpop.f32.mrb[204].mxu0 }
 0xcb8   :  { %v7551_v52 = vrot.slane %v16373_v17, 4  ;;  %v7565_v33 = vmul.f32 %v16373_v17, %v16373_v17  ;;  %v16378_v59 = vpop.f32.mrb[205].mxu0 }
 0xcb9   :  { %v7557_v19 = vrot.slane %v16378_v59, 4  ;;  %v7566_v9 = vmul.f32 %v16378_v59, %v16378_v59  ;;  %v7546_v6 = vpop.f32.mrb[206].mxu0 }
 0xcba   :  { %v7552_v62 = vadd.f32 %v7551_v52, %v16373_v17  ;;  %v7567_v29 = vrot.slane %v7565_v33, 4  ;;  %v7547_v30 = vpop.f32.mrb[207].mxu0 }
 0xcbb   :  { %v7558_v14 = vadd.f32 %v7557_v19, %v16378_v59  ;;  %v7573_v50 = vrot.slane %v7566_v9, 4 }
 0xcbc   :  { %v7553_v5 = vrot.slane %v7552_v62, 2  ;;  %v7568_v39 = vadd.f32 %v7567_v29, %v7565_v33 }
 0xcbd   :  { %v7559_v51 = vrot.slane %v7558_v14, 2  ;;  %v7574_v13 = vadd.f32 %v7573_v50, %v7566_v9 }
 0xcbe   :  { %v7554_v35 = vadd.f32 %v7553_v5, %v7552_v62  ;;  %v7569_v38 = vrot.slane %v7568_v39, 2 }
 0xcbf   :  { %v7560_v37 = vadd.f32 %v7559_v51, %v7558_v14  ;;  %v7575_v34 = vrot.slane %v7574_v13, 2 }
 0xcc0   :  { %v7555_v32 = vrot.slane %v7554_v35, 1  ;;  %v7570_v56 = vadd.f32 %v7569_v38, %v7568_v39  ;;  %v13608_v38 = vld [vmem:[%s17385_s21 + $0x114] ss:$8 sps:$4 sm:$0xff]  }
 0xcc1   :  { %v7561_v45 = vrot.slane %v7560_v37, 1  ;;  %v7576_v44 = vadd.f32 %v7575_v34, %v7574_v13  ;;  %v13601_v13 = vld [vmem:[%s17384_s20] sm:$0xff]  }
 0xcc2   :  { %v7556_v15 = vadd.f32 %v7555_v32, %v7554_v35  ;;  %v7571_v25 = vrot.slane %v7570_v56, 1  ;;  %v13603_v35 = vld [vmem:[%s17385_s21 + $0x100] ss:$8 sps:$4 sm:$0xff]   ;;  %v13611_v34 = vld [vmem:[%s17385_s21 + $0x124] ss:$8 sps:$4 sm:$0xff]  }
 0xcc3   :  { %v7562_v53 = vadd.f32 %v7561_v45, %v7560_v37  ;;  %v7577_v22 = vrot.slane %v7576_v44, 1  ;;  %v13606_v37 = vld [vmem:[%s17385_s21 + $0x110] ss:$8 sps:$4 sm:$0xff]   ;;  %v13602_v32 = vld [vmem:[%s17384_s20 + $0x8] sm:$0xff]   ;;  %v13614_v45 = vld [vmem:[%s17385_s21 + $0x134] ss:$8 sps:$4 sm:$0xff]  }
 0xcc4   :  { %v7563_v41 = vmul.f32 0.125, %v7556_v15  ;;  %v7572_v49 = vadd.f32 %v7571_v25, %v7570_v56  ;;  %v13609_v56 = vld [vmem:[%s17385_s21 + $0x120] ss:$8 sps:$4 sm:$0xff]   ;;  %v13617_v15 = vld [vmem:[%s17385_s21 + $0x144] ss:$8 sps:$4 sm:$0xff]   ;;  %v13636_v25 = vld [vmem:[%s17384_s20 + $0x10] sm:$0xff]  }
 0xcc5   :  { %v7564_v57 = vmul.f32 0.125, %v7562_v53  ;;  %v7578_v55 = vadd.f32 %v7577_v22, %v7576_v44  ;;  %v13612_v44 = vld [vmem:[%s17385_s21 + $0x130] ss:$8 sps:$4 sm:$0xff]   ;;  %v13615_v53 = vld [vmem:[%s17385_s21 + $0x140] ss:$8 sps:$4 sm:$0xff]  }
 0xcc6   :  { %v7579_v63 = vmul.f32 0.125, %v7572_v49  ;;  %v7581_v2 = vmul.f32 %v7563_v41, %v7563_v41  ;;  %v13620_v22 = vld [vmem:[%s17385_s21 + $0x154] ss:$8 sps:$4 sm:$0xff]   ;;  %v13623_v49 = vld [vmem:[%s17385_s21 + $0x164] ss:$8 sps:$4 sm:$0xff]  }
 0xcc7   :  { %v7580_v24 = vmul.f32 0.125, %v7578_v55  ;;  %v7582_v54 = vmul.f32 %v7564_v57, %v7564_v57  ;;  %v13621_v55 = vld [vmem:[%s17385_s21 + $0x160] ss:$8 sps:$4 sm:$0xff]  }
 0xcc8   :  { %v7583_v3 = vsub.f32 %v7579_v63, %v7581_v2  ;;  %v13626_v63 = vld [vmem:[%s17385_s21 + $0x174] ss:$8 sps:$4 sm:$0xff]   ;;  %v13624_v2 = vld [vmem:[%s17385_s21 + $0x170] ss:$8 sps:$4 sm:$0xff]  }
 0xcc9   :  { %v7584_v61 = vsub.f32 %v7580_v24, %v7582_v54  ;;  %v13629_v24 = vld [vmem:[%s17385_s21 + $0x184] ss:$8 sps:$4 sm:$0xff]   ;;  %v13627_v54 = vld [vmem:[%s17385_s21 + $0x180] ss:$8 sps:$4 sm:$0xff]  }
 0xcca   :  { %v7585_v26 = vmax.f32 %v7583_v3, 0.0  ;;  %v13632_v3 = vld [vmem:[%s17385_s21 + $0x194] ss:$8 sps:$4 sm:$0xff]  }
 0xccb   :  { %v7586_v27 = vmax.f32 %v7584_v61, 0.0  ;;  %v13635_v61 = vld [vmem:[%s17385_s21 + $0x1a4] ss:$8 sps:$4 sm:$0xff]  }
 0xccc   :  { %v7587_v28 = vadd.f32 1e-05, %v7585_v26  ;;  %v13633_v26 = vld [vmem:[%s17385_s21 + $0x1a0] ss:$8 sps:$4 sm:$0xff]  }
 0xccd   :  { %v7588_v58 = vadd.f32 1e-05, %v7586_v27  ;;  %v13639_v27 = vld [vmem:[%s17385_s21 + $0x1b4] ss:$8 sps:$4 sm:$0xff]  }
 0xcce   :  { %14046 = vrsqrt.f32 %v7587_v28  ;;  %v13637_v28 = vld [vmem:[%s17385_s21 + $0x1b0] ss:$8 sps:$4 sm:$0xff]  }
 0xccf   :  { %14048 = vrsqrt.f32 %v7588_v58  ;;  %v13642_v58 = vld [vmem:[%s17385_s21 + $0x1c4] ss:$8 sps:$4 sm:$0xff]  }
 0xcd8   :  { %v14047_v21 = vpop.eup %14046 }
 0xcd9   :  { %v14049_v1 = vpop.eup %14048  ;;  %v7603_v4 = vmul.f32 %v14047_v21, %v7596_v0  ;;  %v13647_v0 = vld [vmem:[%s17385_s21 + $0x1e0] ss:$8 sps:$4 sm:$0xff]  }
 0xcda   :  { %v7604_v60 = vmul.f32 %v14049_v1, %v7600_v48  ;;  %v13649_v48 = vld [vmem:[%s17385_s21 + $0x1e4] ss:$8 sps:$4 sm:$0xff]   ;;  %v13650_v21 = vld [vmem:[%s17384_s20 + $0x20] ss:$0 sps:$4 sm:$0xff]   ;;  %v13653_v1 = vld [vmem:[%s17385_s21 + $0x1f4] ss:$8 sps:$4 sm:$0xff]  }
 0xcdb   :  { %v7606_v7 = vmul.f32 %v7603_v4, %v7563_v41  ;;  %v7630_v42 = vrot.slane %v7603_v4, %v14359_v12  ;;  %v13618_v41 = vld [vmem:[%s17385_s21 + $0x150] ss:$8 sps:$4 sm:$0xff]   ;;  %v13656_v4 = vld [vmem:[%s17385_s21 + $0x4] ss:$8 sps:$4 sm:$0xff]  }
 0xcdc   :  { %v7607_v8 = vmul.f32 %v7604_v60, %v7564_v57  ;;  %v7634_v52 = vrot.slane %v7604_v60, %v14359_v12  ;;  %v13643_v57 = vld [vmem:[%s17384_s20 + $0x18] sm:$0xff]  }
 0xcdd   :  { %v7635_v19 = vmul.f32 %v7630_v42, %v16373_v17  ;;  %v13605_v17 = vld [vmem:[%s17385_s21 + $0x104] ss:$8 sps:$4 sm:$0xff]  }
 0xcde   :  { %v7610_v36 = vcombine.low %v7606_v7, %v7607_v8  ;;  %v7636_v9 = vmul.f32 %v7634_v52, %v16378_v59 }
 0xce0   :  { %v7617_v43 = vrot.slane %v7610_v36, %v16394_v11 }
 0xce2   :  { %v7624_v46 = vrot.slane %v7617_v43, %v16394_v11 }
 0xce4   :  { %v7626_v33 = vsub.f32 %v7605_v23, %v7624_v46  ;;  %v13654_v46 = vld [vmem:[%s17385_s21] ss:$8 sps:$4 sm:$0xff]  }
 0xce6   :  { %v7645_v10 = vrot.slane %v7626_v33, %v16389_v16  ;;  %v7641_v6 = vrot.slane %v7626_v33, %v14359_v12  ;;  %v13659_v33 = vld [vmem:[%s17385_s21 + $0x14] ss:$8 sps:$4 sm:$0xff]  }
 0xce8   :  { %v7649_v62 = vadd.f32 %v7645_v10, %v7636_v9  ;;  %v7648_v29 = vadd.f32 %v7641_v6, %v7635_v19  ;;  %v13657_v10 = vld [vmem:[%s17385_s21 + $0x10] ss:$8 sps:$4 sm:$0xff]  }
 0xcea   :  { %vm7651_vm2 = vcmp.ge.f32.partialorder %v7649_v62, 0.0  ;;  %v7653_v30 = vmul.f32 0.01, %v7649_v62  ;;  %vm7650_vm4 = vcmp.ge.f32.partialorder %v7648_v29, 0.0  ;;  %v7652_v14 = vmul.f32 0.01, %v7648_v29 }
 0xcec   :  { %v7655_v50 = vsel %vm7651_vm2, %v7649_v62, %v7653_v30  ;;  %v7654_v5 = vsel %vm7650_vm4, %v7648_v29, %v7652_v14  ;;  %v13662_v62 = vld [vmem:[%s17385_s21 + $0x24] ss:$8 sps:$4 sm:$0xff]  }
 0xced   :  { %v7657_v39 = vpack.c.bf16 %v7655_v50, %v7655_v50  ;;  %v7656_v51 = vpack.c.bf16 %v7654_v5, %v7654_v5  ;;  %v13660_v50 = vld [vmem:[%s17385_s21 + $0x20] ss:$8 sps:$4 sm:$0xff]   ;;  %v13665_v5 = vld [vmem:[%s17385_s21 + $0x34] ss:$8 sps:$4 sm:$0xff]  }
 0xcef   :  { %11108 = vmatprep.subr.msk.bf16.mxu1 %vm182_vm0, %v7657_v39  ;;  %v7707_v59 = vsel %vm182_vm0, %v7656_v51, 0  ;;  %v13663_v39 = vld [vmem:[%s17385_s21 + $0x30] ss:$8 sps:$4 sm:$0xff]   ;;  %v13668_v51 = vld [vmem:[%s17385_s21 + $0x44] ss:$8 sps:$4 sm:$0xff]  }
 0xcf0   :  { %7713 = vmatpush1.bf16.msra.mxu1 %v7707_v59  ;;  %v13671_v59 = vld [vmem:[%s17385_s21 + $0x54] ss:$8 sps:$4 sm:$0xff]  }
 0xcf1   :  { %8034 = vmatprep.subr.bf16.mxu1 %v13605_v17  ;;  %v13666_v17 = vld [vmem:[%s17385_s21 + $0x40] ss:$8 sps:$4 sm:$0xff]  }
 0xcf3   :  { %11109 = vmatmul.mubr.msk.bf16.vlgmr.msra.gmra.mrb[88].mxu1 %vm7690_vm5, %v13601_v13  ;;  %v13669_v13 = vld [vmem:[%s17385_s21 + $0x50] ss:$8 sps:$4 sm:$0xff]  }
 0xcf4   :  { %7754 = vmatprep.mubr.bf16.mxu1 %v14063_v20  ;;  %8035 = vmatpush1.bf16.msra.mxu1 %v13603_v35  ;;  %v13674_v35 = vld [vmem:[%s17385_s21 + $0x64] ss:$8 sps:$4 sm:$0xff]  }
 0xcf5   :  { %8036 = vmatprep.subr.bf16.mxu1 %v13608_v38  ;;  %v13672_v38 = vld [vmem:[%s17385_s21 + $0x60] ss:$8 sps:$4 sm:$0xff]  }
 0xcf8   :  { %8037 = vmatpush1.bf16.msra.mxu1 %v13606_v37  ;;  %v13677_v37 = vld [vmem:[%s17385_s21 + $0x74] ss:$8 sps:$4 sm:$0xff]  }
 0xcf9   :  { %8038 = vmatprep.subr.bf16.mxu1 %v13611_v34  ;;  %v13675_v34 = vld [vmem:[%s17385_s21 + $0x70] ss:$8 sps:$4 sm:$0xff]  }
 0xcfb   :  { %11110 = vmatmul.mubr.msk.bf16.gmra.mrb[92].mxu1 %vm7690_vm5, %v13602_v32  ;;  %v13680_v32 = vld [vmem:[%s17385_s21 + $0x84] ss:$8 sps:$4 sm:$0xff]  }
 0xcfc   :  { %8039 = vmatpush1.bf16.msra.mxu1 %v13609_v56  ;;  %7764 = vmatprep.mubr.bf16.mxu1 %v14063_v20  ;;  %v13678_v56 = vld [vmem:[%s17385_s21 + $0x80] ss:$8 sps:$4 sm:$0xff]  }
 0xcfd   :  { %8040 = vmatprep.subr.bf16.mxu1 %v13614_v45  ;;  %v13683_v45 = vld [vmem:[%s17385_s21 + $0x94] ss:$8 sps:$4 sm:$0xff]  }
 0xd00   :  { %8041 = vmatpush1.bf16.msra.mxu1 %v13612_v44  ;;  %v13681_v44 = vld [vmem:[%s17385_s21 + $0x90] ss:$8 sps:$4 sm:$0xff]  }
 0xd01   :  { %8042 = vmatprep.subr.bf16.mxu1 %v13617_v15  ;;  %v13686_v15 = vld [vmem:[%s17385_s21 + $0xa4] ss:$8 sps:$4 sm:$0xff]  }
 0xd03   :  { %11111 = vmatmul.mubr.msk.bf16.gmra.mrb[96].mxu1 %vm7690_vm5, %v13636_v25  ;;  %v13684_v25 = vld [vmem:[%s17385_s21 + $0xa0] ss:$8 sps:$4 sm:$0xff]  }
 0xd04   :  { %8043 = vmatpush1.bf16.msra.mxu1 %v13615_v53  ;;  %7774 = vmatprep.mubr.bf16.mxu1 %v14063_v20  ;;  %v13689_v53 = vld [vmem:[%s17385_s21 + $0xb4] ss:$8 sps:$4 sm:$0xff]  }
 0xd05   :  { %8044 = vmatprep.subr.bf16.mxu1 %v13620_v22  ;;  %v13687_v22 = vld [vmem:[%s17385_s21 + $0xb0] ss:$8 sps:$4 sm:$0xff]  }
 0xd08   :  { %8045 = vmatpush1.bf16.msra.mxu1 %v13618_v41  ;;  %v13692_v41 = vld [vmem:[%s17385_s21 + $0xc4] ss:$8 sps:$4 sm:$0xff]  }
 0xd09   :  { %8046 = vmatprep.subr.bf16.mxu1 %v13623_v49  ;;  %v13690_v49 = vld [vmem:[%s17385_s21 + $0xc0] ss:$8 sps:$4 sm:$0xff]  }
 0xd0b   :  { %11112 = vmatmul.mubr.msk.bf16.gmra.mrb[100].mxu1 %vm7690_vm5, %v13643_v57  ;;  %v13695_v57 = vld [vmem:[%s17385_s21 + $0xd4] ss:$8 sps:$4 sm:$0xff]  }
 0xd0c   :  { %8047 = vmatpush1.bf16.msra.mxu1 %v13621_v55  ;;  %7784 = vmatprep.mubr.bf16.mxu1 %v14063_v20  ;;  %v13630_v20 = vld [vmem:[%s17385_s21 + $0x190] ss:$8 sps:$4 sm:$0xff]  }
 0xd0d   :  { %8048 = vmatprep.subr.bf16.mxu1 %v13626_v63  ;;  %v13693_v55 = vld [vmem:[%s17385_s21 + $0xd0] ss:$8 sps:$4 sm:$0xff]   ;;  %v13698_v63 = vld [vmem:[%s17385_s21 + $0xe4] ss:$8 sps:$4 sm:$0xff]  }
 0xd10   :  { %8049 = vmatpush1.bf16.msra.mxu1 %v13624_v2  ;;  %v13696_v2 = vld [vmem:[%s17385_s21 + $0xe0] ss:$8 sps:$4 sm:$0xff]  }
 0xd11   :  { %8050 = vmatprep.subr.bf16.mxu1 %v13629_v24  ;;  %v13701_v24 = vld [vmem:[%s17385_s21 + $0xf4] ss:$8 sps:$4 sm:$0xff]  }
 0xd13   :  { %11113 = vmatmul.mubr.msk.bf16.gmra.mrb[104].mxu1 %vm7690_vm5, %v13650_v21 }
 0xd14   :  { %8051 = vmatpush1.bf16.msra.mxu1 %v13627_v54  ;;  %v13699_v54 = vld [vmem:[%s17385_s21 + $0xf0] ss:$8 sps:$4 sm:$0xff]  }
 0xd15   :  { %8052 = vmatprep.subr.bf16.mxu1 %v13632_v3  ;;  %v13704_v3 = vld [vmem:[%s17385_s21 + $0x204] ss:$8 sps:$4 sm:$0xff]  }
 0xd18   :  { %8053 = vmatpush1.bf16.msra.mxu1 %v13630_v20  ;;  %v13702_v20 = vld [vmem:[%s17385_s21 + $0x200] ss:$8 sps:$4 sm:$0xff]  }
 0xd19   :  { %8054 = vmatprep.subr.bf16.mxu1 %v13635_v61  ;;  %v13707_v61 = vld [vmem:[%s17385_s21 + $0x214] ss:$8 sps:$4 sm:$0xff]  }
 0xd1c   :  { %8055 = vmatpush1.bf16.msra.mxu1 %v13633_v26  ;;  %v13705_v26 = vld [vmem:[%s17385_s21 + $0x210] ss:$8 sps:$4 sm:$0xff]  }
 0xd1d   :  { %8056 = vmatprep.subr.bf16.mxu1 %v13639_v27  ;;  %v13710_v27 = vld [vmem:[%s17385_s21 + $0x224] ss:$8 sps:$4 sm:$0xff]  }
 0xd20   :  { %8057 = vmatpush1.bf16.msra.mxu1 %v13637_v28  ;;  %v13708_v28 = vld [vmem:[%s17385_s21 + $0x220] ss:$8 sps:$4 sm:$0xff]  }
 0xd21   :  { %8058 = vmatprep.subr.bf16.mxu1 %v13642_v58  ;;  %v13713_v58 = vld [vmem:[%s17385_s21 + $0x234] ss:$8 sps:$4 sm:$0xff]  }
 0xd24   :  { %8059 = vmatpush1.bf16.msra.mxu1 %v13640_v31 }
 0xd25   :  { %8060 = vmatprep.subr.bf16.mxu1 %v13646_v18  ;;  %v13711_v18 = vld [vmem:[%s17385_s21 + $0x230] ss:$8 sps:$4 sm:$0xff]  }
 0xd28   :  { %8061 = vmatpush1.bf16.msra.mxu1 %v13644_v40 }
 0xd29   :  { %8062 = vmatprep.subr.bf16.mxu1 %v13649_v48 }
 0xd2c   :  { %8063 = vmatpush1.bf16.msra.mxu1 %v13647_v0  ;;  %v13716_v0 = vld [vmem:[%s17385_s21 + $0x244] ss:$8 sps:$4 sm:$0xff]  }
 0xd2d   :  { %8064 = vmatprep.subr.bf16.mxu1 %v13653_v1 }
 0xd30   :  { %8065 = vmatpush1.bf16.msra.mxu1 %v13651_v47 }
 0xd31   :  { %8235 = vmatprep.subr.bf16.mxu1 %v13656_v4  ;;  %v13714_v4 = vld [vmem:[%s17385_s21 + $0x240] ss:$8 sps:$4 sm:$0xff]  }
 0xdc6   :  { %v7746_v60 = vpop.f32.mrb[88].mxu1 }
 0xdc7   :  { %v7748_v7 = vpop.f32.mrb[89].mxu1 }
 0xdc8   :  { %v7750_v8 = vpop.f32.mrb[90].mxu1 }
 0xdc9   :  { %v16532_v36 = vpack.c.bf16 %v7750_v8, %v7746_v60  ;;  %v7752_v23 = vpop.f32.mrb[91].mxu1  ;;  %v13719_v60 = vld [vmem:[%s17385_s21 + $0x254] ss:$8 sps:$4 sm:$0xff]   ;;  %v13717_v8 = vld [vmem:[%s17385_s21 + $0x250] ss:$8 sps:$4 sm:$0xff]  }
 0xdca   :  { %v7794_v43 = vpack.c.bf16 %v7752_v23, %v7748_v7  ;;  %v13722_v23 = vld [vmem:[%s17385_s21 + $0x264] ss:$8 sps:$4 sm:$0xff]  }
 0xdcb   :  { %v7870_v52 = vrot.slane %v16532_v36, 4 }
 0xdcc   :  { %v7871_v42 = vrot.slane %v7794_v43, 4 }
 0xdce   :  { %8066 = vmatprep.mubr.bf16.mxu1 %v7871_v42  ;;  %v7756_v19 = vpop.f32.mrb[92].mxu1 }
 0xdcf   :  { %8067 = vmatmul.mubr.bf16.vlgmr.msra.gmra.mrb[108].mxu1 %v7870_v52  ;;  %v7758_v9 = vpop.f32.mrb[93].mxu1 }
 0xdd0   :  { %8236 = vmatpush1.bf16.msra.mxu1 %v13654_v46  ;;  %8267 = vmatprep.mubr.bf16.mxu1 %v7794_v43  ;;  %v7760_v6 = vpop.f32.mrb[94].mxu1 }
 0xdd1   :  { %8237 = vmatprep.subr.bf16.mxu1 %v13659_v33  ;;  %v16547_v29 = vpack.c.bf16 %v7760_v6, %v7756_v19  ;;  %v7762_v30 = vpop.f32.mrb[95].mxu1  ;;  %v13720_v33 = vld [vmem:[%s17385_s21 + $0x260] ss:$8 sps:$4 sm:$0xff]   ;;  %v13725_v19 = vld [vmem:[%s17385_s21 + $0x274] ss:$8 sps:$4 sm:$0xff]  }
 0xdd2   :  { %v16549_v14 = vpack.c.bf16 %v7762_v30, %v7758_v9 }
 0xdd4   :  { %8238 = vmatpush1.bf16.msra.mxu1 %v13657_v10  ;;  %v13723_v10 = vld [vmem:[%s17385_s21 + $0x270] ss:$8 sps:$4 sm:$0xff]  }
 0xdd5   :  { %8239 = vmatprep.subr.bf16.mxu1 %v13662_v62  ;;  %v13728_v62 = vld [vmem:[%s17385_s21 + $0x284] ss:$8 sps:$4 sm:$0xff]  }
 0xdd6   :  { %v7766_v31 = vpop.f32.mrb[96].mxu1 }
 0xdd7   :  { %v7768_v40 = vpop.f32.mrb[97].mxu1 }
 0xdd8   :  { %8240 = vmatpush1.bf16.msra.mxu1 %v13660_v50  ;;  %v7770_v48 = vpop.f32.mrb[98].mxu1 }
 0xdd9   :  { %8241 = vmatprep.subr.bf16.mxu1 %v13665_v5  ;;  %v7772_v21 = vpop.f32.mrb[99].mxu1  ;;  %v16661_v47 = vpack.c.bf16 %v7770_v48, %v7766_v31  ;;  %v13726_v5 = vld [vmem:[%s17385_s21 + $0x280] ss:$8 sps:$4 sm:$0xff]   ;;  %v13779_v31 = vld [vmem:[%s17385_s21 + $0x394] ss:$8 sps:$4 sm:$0xff]  }
 0xdda   :  { %v16663_v1 = vpack.c.bf16 %v7772_v21, %v7768_v40  ;;  %v13782_v40 = vld [vmem:[%s17385_s21 + $0x3a4] ss:$8 sps:$4 sm:$0xff]   ;;  %v13785_v48 = vld [vmem:[%s17385_s21 + $0x3b4] ss:$8 sps:$4 sm:$0xff]   ;;  %v13783_v21 = vld [vmem:[%s17385_s21 + $0x3b0] ss:$8 sps:$4 sm:$0xff]  }
 0xddc   :  { %8242 = vmatpush1.bf16.msra.mxu1 %v13663_v39  ;;  %v13731_v39 = vld [vmem:[%s17385_s21 + $0x294] ss:$8 sps:$4 sm:$0xff]  }
 0xddd   :  { %8243 = vmatprep.subr.bf16.mxu1 %v13668_v51  ;;  %v13729_v51 = vld [vmem:[%s17385_s21 + $0x290] ss:$8 sps:$4 sm:$0xff]  }
 0xdde   :  { %v7776_v7 = vpop.f32.mrb[100].mxu1 }
 0xde0   :  { %8244 = vmatpush1.bf16.msra.mxu1 %v13666_v17  ;;  %v13734_v17 = vld [vmem:[%s17385_s21 + $0x2a4] ss:$8 sps:$4 sm:$0xff]  }
 0xde1   :  { %8245 = vmatprep.subr.bf16.mxu1 %v13671_v59  ;;  %v13732_v59 = vld [vmem:[%s17385_s21 + $0x2a0] ss:$8 sps:$4 sm:$0xff]  }
 0xde4   :  { %8246 = vmatpush1.bf16.msra.mxu1 %v13669_v13  ;;  %v13737_v13 = vld [vmem:[%s17385_s21 + $0x2b4] ss:$8 sps:$4 sm:$0xff]  }
 0xde5   :  { %8247 = vmatprep.subr.bf16.mxu1 %v13674_v35  ;;  %v13735_v35 = vld [vmem:[%s17385_s21 + $0x2b0] ss:$8 sps:$4 sm:$0xff]  }
 0xde8   :  { %8248 = vmatpush1.bf16.msra.mxu1 %v13672_v38  ;;  %v13740_v38 = vld [vmem:[%s17385_s21 + $0x2c4] ss:$8 sps:$4 sm:$0xff]  }
 0xde9   :  { %8249 = vmatprep.subr.bf16.mxu1 %v13677_v37  ;;  %v13738_v37 = vld [vmem:[%s17385_s21 + $0x2c0] ss:$8 sps:$4 sm:$0xff]  }
 0xdec   :  { %8250 = vmatpush1.bf16.msra.mxu1 %v13675_v34  ;;  %v13743_v34 = vld [vmem:[%s17385_s21 + $0x2d4] ss:$8 sps:$4 sm:$0xff]  }
 0xded   :  { %8251 = vmatprep.subr.bf16.mxu1 %v13680_v32  ;;  %v13741_v32 = vld [vmem:[%s17385_s21 + $0x2d0] ss:$8 sps:$4 sm:$0xff]  }
 0xdf0   :  { %8252 = vmatpush1.bf16.msra.mxu1 %v13678_v56  ;;  %v13746_v56 = vld [vmem:[%s17385_s21 + $0x2e4] ss:$8 sps:$4 sm:$0xff]  }
 0xdf1   :  { %8253 = vmatprep.subr.bf16.mxu1 %v13683_v45  ;;  %v13744_v45 = vld [vmem:[%s17385_s21 + $0x2e0] ss:$8 sps:$4 sm:$0xff]  }
 0xdf4   :  { %8254 = vmatpush1.bf16.msra.mxu1 %v13681_v44  ;;  %v13749_v44 = vld [vmem:[%s17385_s21 + $0x2f4] ss:$8 sps:$4 sm:$0xff]  }
 0xdf5   :  { %8255 = vmatprep.subr.bf16.mxu1 %v13686_v15  ;;  %v13747_v15 = vld [vmem:[%s17385_s21 + $0x2f0] ss:$8 sps:$4 sm:$0xff]  }
 0xdf8   :  { %8256 = vmatpush1.bf16.msra.mxu1 %v13684_v25  ;;  %v13752_v25 = vld [vmem:[%s17385_s21 + $0x304] ss:$8 sps:$4 sm:$0xff]  }
 0xdf9   :  { %8257 = vmatprep.subr.bf16.mxu1 %v13689_v53  ;;  %v13750_v53 = vld [vmem:[%s17385_s21 + $0x300] ss:$8 sps:$4 sm:$0xff]  }
 0xdfc   :  { %8258 = vmatpush1.bf16.msra.mxu1 %v13687_v22  ;;  %v13755_v22 = vld [vmem:[%s17385_s21 + $0x314] ss:$8 sps:$4 sm:$0xff]  }
 0xdfd   :  { %8259 = vmatprep.subr.bf16.mxu1 %v13692_v41  ;;  %v8548_v41 = vrot.slane %v16549_v14, 4 }
 0xe00   :  { %8260 = vmatpush1.bf16.msra.mxu1 %v13690_v49  ;;  %v13753_v49 = vld [vmem:[%s17385_s21 + $0x310] ss:$8 sps:$4 sm:$0xff]  }
 0xe01   :  { %8261 = vmatprep.subr.bf16.mxu1 %v13695_v57  ;;  %v13758_v57 = vld [vmem:[%s17385_s21 + $0x324] ss:$8 sps:$4 sm:$0xff]  }
 0xe04   :  { %8262 = vmatpush1.bf16.msra.mxu1 %v13693_v55  ;;  %v13756_v55 = vld [vmem:[%s17385_s21 + $0x320] ss:$8 sps:$4 sm:$0xff]  }
 0xe05   :  { %8263 = vmatprep.subr.bf16.mxu1 %v13698_v63  ;;  %v13759_v63 = vld [vmem:[%s17385_s21 + $0x330] ss:$8 sps:$4 sm:$0xff]  }
 0xe08   :  { %8264 = vmatpush1.bf16.msra.mxu1 %v13696_v2  ;;  %v13764_v2 = vld [vmem:[%s17385_s21 + $0x344] ss:$8 sps:$4 sm:$0xff]  }
 0xe09   :  { %8265 = vmatprep.subr.bf16.mxu1 %v13701_v24  ;;  %v13762_v24 = vld [vmem:[%s17385_s21 + $0x340] ss:$8 sps:$4 sm:$0xff]  }
 0xe0c   :  { %8266 = vmatpush1.bf16.msra.mxu1 %v13699_v54  ;;  %v13767_v54 = vld [vmem:[%s17385_s21 + $0x354] ss:$8 sps:$4 sm:$0xff]  }
 0xe0d   :  { %8469 = vmatprep.subr.bf16.mxu1 %v13704_v3  ;;  %v13765_v3 = vld [vmem:[%s17385_s21 + $0x350] ss:$8 sps:$4 sm:$0xff]  }
 0xe0f   :  { %8268 = vmatmul.mubr.bf16.vlgmr.msra.gmra.mrb[108].mxu1 %v16532_v36  ;;  %v7778_v36 = vpop.f32.mrb[101].mxu1 }
 0xe10   :  { %8470 = vmatpush1.bf16.msra.mxu1 %v13702_v20  ;;  %8501 = vmatprep.mubr.bf16.mxu1 %v16549_v14  ;;  %v7780_v43 = vpop.f32.mrb[102].mxu1  ;;  %v13761_v14 = vld [vmem:[%s17385_s21 + $0x334] ss:$8 sps:$4 sm:$0xff]   ;;  %v13770_v20 = vld [vmem:[%s17385_s21 + $0x364] ss:$8 sps:$4 sm:$0xff]  }
 0xe11   :  { %8471 = vmatprep.subr.bf16.mxu1 %v13707_v61  ;;  %v7782_v42 = vpop.f32.mrb[103].mxu1  ;;  %v16677_v46 = vpack.c.bf16 %v7780_v43, %v7776_v7  ;;  %v13768_v61 = vld [vmem:[%s17385_s21 + $0x360] ss:$8 sps:$4 sm:$0xff]   ;;  %v13791_v7 = vld [vmem:[%s17385_s21 + $0x3d4] ss:$8 sps:$4 sm:$0xff]  }
 0xe12   :  { %v16679_v52 = vpack.c.bf16 %v7782_v42, %v7778_v36  ;;  %v16687_v9 = vpop.f32.mrb[104].mxu1  ;;  %v13794_v36 = vld [vmem:[%s17385_s21 + $0x3e4] ss:$8 sps:$4 sm:$0xff]   ;;  %v13797_v43 = vld [vmem:[%s17385_s21 + $0x3f4] ss:$8 sps:$4 sm:$0xff]  }
 0xe13   :  { %v16692_v6 = vpop.f32.mrb[105].mxu1  ;;  %v13795_v42 = vld [vmem:[%s17385_s21 + $0x3f0] ss:$8 sps:$4 sm:$0xff]  }
 0xe14   :  { %8472 = vmatpush1.bf16.msra.mxu1 %v13705_v26  ;;  %v7790_v30 = vpop.f32.mrb[106].mxu1  ;;  %v13773_v26 = vld [vmem:[%s17385_s21 + $0x374] ss:$8 sps:$4 sm:$0xff]  }
 0xe15   :  { %8473 = vmatprep.subr.bf16.mxu1 %v13710_v27  ;;  %v7791_v50 = vpop.f32.mrb[107].mxu1  ;;  %v13771_v27 = vld [vmem:[%s17385_s21 + $0x370] ss:$8 sps:$4 sm:$0xff]  }
 0xe16   :  { %v13801_v30 = vld [vmem:[%s17385_s21 + $0x410] ss:$8 sps:$4 sm:$0xff]   ;;  %v13806_v50 = vld [vmem:[%s17385_s21 + $0x424] ss:$8 sps:$4 sm:$0xff]  }
 0xe18   :  { %8474 = vmatpush1.bf16.msra.mxu1 %v13708_v28  ;;  %v13776_v28 = vld [vmem:[%s17385_s21 + $0x384] ss:$8 sps:$4 sm:$0xff]  }
 0xe19   :  { %8475 = vmatprep.subr.bf16.mxu1 %v13713_v58  ;;  %v13774_v58 = vld [vmem:[%s17385_s21 + $0x380] ss:$8 sps:$4 sm:$0xff]  }
 0xe1c   :  { %8476 = vmatpush1.bf16.msra.mxu1 %v13711_v18  ;;  %v13777_v18 = vld [vmem:[%s17385_s21 + $0x390] ss:$8 sps:$4 sm:$0xff]  }
 0xe1d   :  { %8477 = vmatprep.subr.bf16.mxu1 %v13716_v0  ;;  %v13780_v0 = vld [vmem:[%s17385_s21 + $0x3a0] ss:$8 sps:$4 sm:$0xff]  }
 0xe20   :  { %8478 = vmatpush1.bf16.msra.mxu1 %v13714_v4  ;;  %v13788_v4 = vld [vmem:[%s17385_s21 + $0x3c4] ss:$8 sps:$4 sm:$0xff]  }
 0xe21   :  { %8479 = vmatprep.subr.bf16.mxu1 %v13719_v60  ;;  %v13786_v60 = vld [vmem:[%s17385_s21 + $0x3c0] ss:$8 sps:$4 sm:$0xff]  }
 0xe24   :  { %8480 = vmatpush1.bf16.msra.mxu1 %v13717_v8  ;;  %v13789_v8 = vld [vmem:[%s17385_s21 + $0x3d0] ss:$8 sps:$4 sm:$0xff]  }
 0xe25   :  { %8481 = vmatprep.subr.bf16.mxu1 %v13722_v23  ;;  %v13792_v23 = vld [vmem:[%s17385_s21 + $0x3e0] ss:$8 sps:$4 sm:$0xff]  }
 0xe28   :  { %8482 = vmatpush1.bf16.msra.mxu1 %v13720_v33  ;;  %v13800_v33 = vld [vmem:[%s17385_s21 + $0x404] ss:$8 sps:$4 sm:$0xff]  }
 0xe29   :  { %8483 = vmatprep.subr.bf16.mxu1 %v13725_v19  ;;  %v13798_v19 = vld [vmem:[%s17385_s21 + $0x400] ss:$8 sps:$4 sm:$0xff]  }
 0xe2c   :  { %8484 = vmatpush1.bf16.msra.mxu1 %v13723_v10  ;;  %v8547_v10 = vrot.slane %v16547_v29, 4 }
 0xe2d   :  { %8485 = vmatprep.subr.bf16.mxu1 %v13728_v62  ;;  %v13803_v62 = vld [vmem:[%s17385_s21 + $0x414] ss:$8 sps:$4 sm:$0xff]  }
 0xe30   :  { %8486 = vmatpush1.bf16.msra.mxu1 %v13726_v5  ;;  %v13809_v5 = vld [vmem:[%s17385_s21 + $0x434] ss:$8 sps:$4 sm:$0xff]  }
 0xe31   :  { %8487 = vmatprep.subr.bf16.mxu1 %v13731_v39  ;;  %v13807_v39 = vld [vmem:[%s17385_s21 + $0x430] ss:$8 sps:$4 sm:$0xff]  }
 0xe34   :  { %8488 = vmatpush1.bf16.msra.mxu1 %v13729_v51  ;;  %v13812_v51 = vld [vmem:[%s17385_s21 + $0x444] ss:$8 sps:$4 sm:$0xff]  }
 0xe35   :  { %8489 = vmatprep.subr.bf16.mxu1 %v13734_v17  ;;  %v13810_v17 = vld [vmem:[%s17385_s21 + $0x440] ss:$8 sps:$4 sm:$0xff]  }
 0xe38   :  { %8490 = vmatpush1.bf16.msra.mxu1 %v13732_v59  ;;  %v13815_v59 = vld [vmem:[%s17385_s21 + $0x454] ss:$8 sps:$4 sm:$0xff]  }
 0xe39   :  { %8491 = vmatprep.subr.bf16.mxu1 %v13737_v13  ;;  %v13813_v13 = vld [vmem:[%s17385_s21 + $0x450] ss:$8 sps:$4 sm:$0xff]  }
 0xe3c   :  { %8492 = vmatpush1.bf16.msra.mxu1 %v13735_v35  ;;  %v13818_v35 = vld [vmem:[%s17385_s21 + $0x464] ss:$8 sps:$4 sm:$0xff]  }
 0xe3d   :  { %8493 = vmatprep.subr.bf16.mxu1 %v13740_v38  ;;  %v13816_v38 = vld [vmem:[%s17385_s21 + $0x460] ss:$8 sps:$4 sm:$0xff]  }
 0xe40   :  { %8494 = vmatpush1.bf16.msra.mxu1 %v13738_v37  ;;  %v13821_v37 = vld [vmem:[%s17385_s21 + $0x474] ss:$8 sps:$4 sm:$0xff]  }
 0xe41   :  { %8495 = vmatprep.subr.bf16.mxu1 %v13743_v34  ;;  %v13819_v34 = vld [vmem:[%s17385_s21 + $0x470] ss:$8 sps:$4 sm:$0xff]  }
 0xe44   :  { %8496 = vmatpush1.bf16.msra.mxu1 %v13741_v32  ;;  %v13824_v32 = vld [vmem:[%s17385_s21 + $0x484] ss:$8 sps:$4 sm:$0xff]  }
 0xe45   :  { %8497 = vmatprep.subr.bf16.mxu1 %v13746_v56  ;;  %v13822_v56 = vld [vmem:[%s17385_s21 + $0x480] ss:$8 sps:$4 sm:$0xff]  }
 0xe48   :  { %8498 = vmatpush1.bf16.msra.mxu1 %v13744_v45  ;;  %v13827_v45 = vld [vmem:[%s17385_s21 + $0x494] ss:$8 sps:$4 sm:$0xff]  }
 0xe49   :  { %8499 = vmatprep.subr.bf16.mxu1 %v13749_v44  ;;  %v13825_v44 = vld [vmem:[%s17385_s21 + $0x490] ss:$8 sps:$4 sm:$0xff]  }
 0xe4c   :  { %8500 = vmatpush1.bf16.msra.mxu1 %v13747_v15  ;;  %v13830_v15 = vld [vmem:[%s17385_s21 + $0x4a4] ss:$8 sps:$4 sm:$0xff]  }
 0xe4d   :  { %8711 = vmatprep.subr.bf16.mxu1 %v13752_v25  ;;  %v13828_v25 = vld [vmem:[%s17385_s21 + $0x4a0] ss:$8 sps:$4 sm:$0xff]  }
 0xe4f   :  { %8502 = vmatmul.mubr.bf16.vlgmr.msra.gmra.mrb[108].mxu1 %v16547_v29  ;;  %v13804_v29 = vld [vmem:[%s17385_s21 + $0x420] ss:$8 sps:$4 sm:$0xff]  }
 0xe50   :  { %8712 = vmatpush1.bf16.msra.mxu1 %v13750_v53  ;;  %8743 = vmatprep.mubr.bf16.mxu1 %v8548_v41  ;;  %v13833_v53 = vld [vmem:[%s17385_s21 + $0x4b4] ss:$8 sps:$4 sm:$0xff]   ;;  %v13836_v41 = vld [vmem:[%s17385_s21 + $0x4c4] ss:$8 sps:$4 sm:$0xff]  }
 0xe51   :  { %8713 = vmatprep.subr.bf16.mxu1 %v13755_v22  ;;  %v13831_v22 = vld [vmem:[%s17385_s21 + $0x4b0] ss:$8 sps:$4 sm:$0xff]  }
 0xe54   :  { %8714 = vmatpush1.bf16.msra.mxu1 %v13753_v49  ;;  %v13834_v49 = vld [vmem:[%s17385_s21 + $0x4c0] ss:$8 sps:$4 sm:$0xff]  }
 0xe55   :  { %8715 = vmatprep.subr.bf16.mxu1 %v13758_v57  ;;  %v13839_v57 = vld [vmem:[%s17385_s21 + $0x4d4] ss:$8 sps:$4 sm:$0xff]  }
 0xe58   :  { %8716 = vmatpush1.bf16.msra.mxu1 %v13756_v55  ;;  %v13837_v55 = vld [vmem:[%s17385_s21 + $0x4d0] ss:$8 sps:$4 sm:$0xff]  }
 0xe59   :  { %8717 = vmatprep.subr.bf16.mxu1 %v13761_v14  ;;  %v13842_v14 = vld [vmem:[%s17385_s21 + $0x4e4] ss:$8 sps:$4 sm:$0xff]  }
 0xe5c   :  { %8718 = vmatpush1.bf16.msra.mxu1 %v13759_v63  ;;  %v13840_v63 = vld [vmem:[%s17385_s21 + $0x4e0] ss:$8 sps:$4 sm:$0xff]  }
 0xe5d   :  { %8719 = vmatprep.subr.bf16.mxu1 %v13764_v2  ;;  %v13845_v2 = vld [vmem:[%s17385_s21 + $0x4f4] ss:$8 sps:$4 sm:$0xff]  }
 0xe60   :  { %8720 = vmatpush1.bf16.msra.mxu1 %v13762_v24  ;;  %v13843_v24 = vld [vmem:[%s17385_s21 + $0x4f0] ss:$8 sps:$4 sm:$0xff]  }
 0xe61   :  { %8721 = vmatprep.subr.bf16.mxu1 %v13767_v54  ;;  %v13848_v54 = vld [vmem:[%s17385_s21 + $0x504] ss:$8 sps:$4 sm:$0xff]  }
 0xe64   :  { %8722 = vmatpush1.bf16.msra.mxu1 %v13765_v3  ;;  %v13846_v3 = vld [vmem:[%s17385_s21 + $0x500] ss:$8 sps:$4 sm:$0xff]  }
 0xe65   :  { %8723 = vmatprep.subr.bf16.mxu1 %v13770_v20  ;;  %v13851_v20 = vld [vmem:[%s17385_s21 + $0x514] ss:$8 sps:$4 sm:$0xff]  }
 0xe68   :  { %8724 = vmatpush1.bf16.msra.mxu1 %v13768_v61  ;;  %v9026_v61 = vrot.slane %v16663_v1, 4 }
 0xe69   :  { %8725 = vmatprep.subr.bf16.mxu1 %v13773_v26  ;;  %v13849_v26 = vld [vmem:[%s17385_s21 + $0x510] ss:$8 sps:$4 sm:$0xff]  }
 0xe6c   :  { %8726 = vmatpush1.bf16.msra.mxu1 %v13771_v27  ;;  %v13854_v27 = vld [vmem:[%s17385_s21 + $0x524] ss:$8 sps:$4 sm:$0xff]  }
 0xe6d   :  { %8727 = vmatprep.subr.bf16.mxu1 %v13776_v28  ;;  %v13852_v28 = vld [vmem:[%s17385_s21 + $0x520] ss:$8 sps:$4 sm:$0xff]  }
 0xe70   :  { %8728 = vmatpush1.bf16.msra.mxu1 %v13774_v58  ;;  %v13855_v58 = vld [vmem:[%s17385_s21 + $0x530] ss:$8 sps:$4 sm:$0xff]  }
 0xe71   :  { %8729 = vmatprep.subr.bf16.mxu1 %v13779_v31  ;;  %v13860_v31 = vld [vmem:[%s17385_s21 + $0x544] ss:$8 sps:$4 sm:$0xff]  }
 0xe74   :  { %8730 = vmatpush1.bf16.msra.mxu1 %v13777_v18  ;;  %v13858_v18 = vld [vmem:[%s17385_s21 + $0x540] ss:$8 sps:$4 sm:$0xff]  }
 0xe75   :  { %8731 = vmatprep.subr.bf16.mxu1 %v13782_v40  ;;  %v13863_v40 = vld [vmem:[%s17385_s21 + $0x554] ss:$8 sps:$4 sm:$0xff]  }
 0xe78   :  { %8732 = vmatpush1.bf16.msra.mxu1 %v13780_v0  ;;  %v13861_v0 = vld [vmem:[%s17385_s21 + $0x550] ss:$8 sps:$4 sm:$0xff]  }
 0xe79   :  { %8733 = vmatprep.subr.bf16.mxu1 %v13785_v48  ;;  %v13866_v48 = vld [vmem:[%s17385_s21 + $0x564] ss:$8 sps:$4 sm:$0xff]  }
 0xe7c   :  { %8734 = vmatpush1.bf16.msra.mxu1 %v13783_v21  ;;  %v13864_v21 = vld [vmem:[%s17385_s21 + $0x560] ss:$8 sps:$4 sm:$0xff]  }
 0xe7d   :  { %8735 = vmatprep.subr.bf16.mxu1 %v13788_v4  ;;  %v13869_v4 = vld [vmem:[%s17385_s21 + $0x574] ss:$8 sps:$4 sm:$0xff]  }
 0xe80   :  { %8736 = vmatpush1.bf16.msra.mxu1 %v13786_v60  ;;  %v13867_v60 = vld [vmem:[%s17385_s21 + $0x570] ss:$8 sps:$4 sm:$0xff]  }
 0xe81   :  { %8737 = vmatprep.subr.bf16.mxu1 %v13791_v7  ;;  %v13872_v7 = vld [vmem:[%s17385_s21 + $0x584] ss:$8 sps:$4 sm:$0xff]  }
 0xe84   :  { %8738 = vmatpush1.bf16.msra.mxu1 %v13789_v8  ;;  %v13870_v8 = vld [vmem:[%s17385_s21 + $0x580] ss:$8 sps:$4 sm:$0xff]  }
 0xe85   :  { %8739 = vmatprep.subr.bf16.mxu1 %v13794_v36  ;;  %v13875_v36 = vld [vmem:[%s17385_s21 + $0x594] ss:$8 sps:$4 sm:$0xff]  }
 0xe88   :  { %8740 = vmatpush1.bf16.msra.mxu1 %v13792_v23  ;;  %v13873_v23 = vld [vmem:[%s17385_s21 + $0x590] ss:$8 sps:$4 sm:$0xff]  }
 0xe89   :  { %8741 = vmatprep.subr.bf16.mxu1 %v13797_v43  ;;  %v13878_v43 = vld [vmem:[%s17385_s21 + $0x5a4] ss:$8 sps:$4 sm:$0xff]  }
 0xe8c   :  { %8742 = vmatpush1.bf16.msra.mxu1 %v13795_v42  ;;  %v13876_v42 = vld [vmem:[%s17385_s21 + $0x5a0] ss:$8 sps:$4 sm:$0xff]  }
 0xe8d   :  { %8947 = vmatprep.subr.bf16.mxu1 %v13800_v33  ;;  %v13881_v33 = vld [vmem:[%s17385_s21 + $0x5b4] ss:$8 sps:$4 sm:$0xff]  }
 0xe8f   :  { %8744 = vmatmul.mubr.bf16.vlgmr.msra.gmra.mrb[108].mxu1 %v8547_v10  ;;  %v13884_v10 = vld [vmem:[%s17385_s21 + $0x5c4] ss:$8 sps:$4 sm:$0xff]  }
 0xe90   :  { %8948 = vmatpush1.bf16.msra.mxu1 %v13798_v19  ;;  %8979 = vmatprep.mubr.bf16.mxu1 %v16663_v1  ;;  %v13857_v1 = vld [vmem:[%s17385_s21 + $0x534] ss:$8 sps:$4 sm:$0xff]   ;;  %v13879_v19 = vld [vmem:[%s17385_s21 + $0x5b0] ss:$8 sps:$4 sm:$0xff]  }
 0xe91   :  { %8949 = vmatprep.subr.bf16.mxu1 %v13803_v62  ;;  %v13882_v62 = vld [vmem:[%s17385_s21 + $0x5c0] ss:$8 sps:$4 sm:$0xff]  }
 0xe94   :  { %8950 = vmatpush1.bf16.msra.mxu1 %v13801_v30  ;;  %v13887_v30 = vld [vmem:[%s17385_s21 + $0x5d4] ss:$8 sps:$4 sm:$0xff]  }
 0xe95   :  { %8951 = vmatprep.subr.bf16.mxu1 %v13806_v50  ;;  %v13885_v50 = vld [vmem:[%s17385_s21 + $0x5d0] ss:$8 sps:$4 sm:$0xff]  }
 0xe98   :  { %8952 = vmatpush1.bf16.msra.mxu1 %v13804_v29  ;;  %v13890_v29 = vld [vmem:[%s17385_s21 + $0x5e4] ss:$8 sps:$4 sm:$0xff]  }
 0xe99   :  { %8953 = vmatprep.subr.bf16.mxu1 %v13809_v5  ;;  %v13888_v5 = vld [vmem:[%s17385_s21 + $0x5e0] ss:$8 sps:$4 sm:$0xff]  }
 0xe9c   :  { %8954 = vmatpush1.bf16.msra.mxu1 %v13807_v39  ;;  %v13893_v39 = vld [vmem:[%s17385_s21 + $0x5f4] ss:$8 sps:$4 sm:$0xff]  }
 0xe9d   :  { %8955 = vmatprep.subr.bf16.mxu1 %v13812_v51  ;;  %v13891_v51 = vld [vmem:[%s17385_s21 + $0x5f0] ss:$8 sps:$4 sm:$0xff]  }
 0xea0   :  { %8956 = vmatpush1.bf16.msra.mxu1 %v13810_v17  ;;  %v13896_v17 = vld [vmem:[%s17385_s21 + $0x604] ss:$8 sps:$4 sm:$0xff]  }
 0xea1   :  { %8957 = vmatprep.subr.bf16.mxu1 %v13815_v59  ;;  %v13894_v59 = vld [vmem:[%s17385_s21 + $0x600] ss:$8 sps:$4 sm:$0xff]  }
 0xea4   :  { %8958 = vmatpush1.bf16.msra.mxu1 %v13813_v13  ;;  %v9025_v13 = vrot.slane %v16661_v47, 4 }
 0xea5   :  { %8959 = vmatprep.subr.bf16.mxu1 %v13818_v35  ;;  %v13899_v35 = vld [vmem:[%s17385_s21 + $0x614] ss:$8 sps:$4 sm:$0xff]  }
 0xea8   :  { %8960 = vmatpush1.bf16.msra.mxu1 %v13816_v38  ;;  %v13897_v38 = vld [vmem:[%s17385_s21 + $0x610] ss:$8 sps:$4 sm:$0xff]  }
 0xea9   :  { %8961 = vmatprep.subr.bf16.mxu1 %v13821_v37  ;;  %v13902_v37 = vld [vmem:[%s17385_s21 + $0x624] ss:$8 sps:$4 sm:$0xff]  }
 0xeac   :  { %8962 = vmatpush1.bf16.msra.mxu1 %v13819_v34  ;;  %v13905_v34 = vld [vmem:[%s17385_s21 + $0x634] ss:$8 sps:$4 sm:$0xff]  }
 0xead   :  { %8963 = vmatprep.subr.bf16.mxu1 %v13824_v32  ;;  %v13903_v32 = vld [vmem:[%s17385_s21 + $0x630] ss:$8 sps:$4 sm:$0xff]  }
 0xeb0   :  { %8964 = vmatpush1.bf16.msra.mxu1 %v13822_v56  ;;  %v13908_v56 = vld [vmem:[%s17385_s21 + $0x644] ss:$8 sps:$4 sm:$0xff]  }
 0xeb1   :  { %8965 = vmatprep.subr.bf16.mxu1 %v13827_v45  ;;  %v13906_v45 = vld [vmem:[%s17385_s21 + $0x640] ss:$8 sps:$4 sm:$0xff]  }
 0xeb4   :  { %8966 = vmatpush1.bf16.msra.mxu1 %v13825_v44  ;;  %v13911_v44 = vld [vmem:[%s17385_s21 + $0x654] ss:$8 sps:$4 sm:$0xff]  }
 0xeb5   :  { %8967 = vmatprep.subr.bf16.mxu1 %v13830_v15  ;;  %v13909_v15 = vld [vmem:[%s17385_s21 + $0x650] ss:$8 sps:$4 sm:$0xff]  }
 0xeb8   :  { %8968 = vmatpush1.bf16.msra.mxu1 %v13828_v25  ;;  %v13914_v25 = vld [vmem:[%s17385_s21 + $0x664] ss:$8 sps:$4 sm:$0xff]  }
 0xeb9   :  { %8969 = vmatprep.subr.bf16.mxu1 %v13833_v53  ;;  %v13912_v53 = vld [vmem:[%s17385_s21 + $0x660] ss:$8 sps:$4 sm:$0xff]  }
 0xebc   :  { %8970 = vmatpush1.bf16.msra.mxu1 %v13831_v22  ;;  %v13917_v22 = vld [vmem:[%s17385_s21 + $0x674] ss:$8 sps:$4 sm:$0xff]  }
 0xebd   :  { %8971 = vmatprep.subr.bf16.mxu1 %v13836_v41  ;;  %v13915_v41 = vld [vmem:[%s17385_s21 + $0x670] ss:$8 sps:$4 sm:$0xff]  }
 0xec0   :  { %8972 = vmatpush1.bf16.msra.mxu1 %v13834_v49  ;;  %v13920_v49 = vld [vmem:[%s17385_s21 + $0x684] ss:$8 sps:$4 sm:$0xff]  }
 0xec1   :  { %8973 = vmatprep.subr.bf16.mxu1 %v13839_v57  ;;  %v13918_v57 = vld [vmem:[%s17385_s21 + $0x680] ss:$8 sps:$4 sm:$0xff]  }
 0xec4   :  { %8974 = vmatpush1.bf16.msra.mxu1 %v13837_v55  ;;  %v13923_v55 = vld [vmem:[%s17385_s21 + $0x694] ss:$8 sps:$4 sm:$0xff]  }
 0xec5   :  { %8975 = vmatprep.subr.bf16.mxu1 %v13842_v14  ;;  %v13921_v14 = vld [vmem:[%s17385_s21 + $0x690] ss:$8 sps:$4 sm:$0xff]  }
 0xec8   :  { %8976 = vmatpush1.bf16.msra.mxu1 %v13840_v63  ;;  %v13926_v63 = vld [vmem:[%s17385_s21 + $0x6a4] ss:$8 sps:$4 sm:$0xff]  }
 0xec9   :  { %8977 = vmatprep.subr.bf16.mxu1 %v13845_v2  ;;  %v13924_v2 = vld [vmem:[%s17385_s21 + $0x6a0] ss:$8 sps:$4 sm:$0xff]  }
 0xecc   :  { %8978 = vmatpush1.bf16.msra.mxu1 %v13843_v24  ;;  %v13929_v24 = vld [vmem:[%s17385_s21 + $0x6b4] ss:$8 sps:$4 sm:$0xff]  }
 0xecd   :  { %9189 = vmatprep.subr.bf16.mxu1 %v13848_v54  ;;  %v13927_v54 = vld [vmem:[%s17385_s21 + $0x6b0] ss:$8 sps:$4 sm:$0xff]  }
 0xecf   :  { %8980 = vmatmul.mubr.bf16.vlgmr.msra.gmra.mrb[108].mxu1 %v16661_v47  ;;  %v13900_v47 = vld [vmem:[%s17385_s21 + $0x620] ss:$8 sps:$4 sm:$0xff]  }
 0xed0   :  { %9190 = vmatpush1.bf16.msra.mxu1 %v13846_v3  ;;  %9221 = vmatprep.mubr.bf16.mxu1 %v9026_v61  ;;  %v13932_v3 = vld [vmem:[%s17385_s21 + $0x6c4] ss:$8 sps:$4 sm:$0xff]   ;;  %v13935_v61 = vld [vmem:[%s17385_s21 + $0x6d4] ss:$8 sps:$4 sm:$0xff]  }
 0xed1   :  { %9191 = vmatprep.subr.bf16.mxu1 %v13851_v20  ;;  %v13930_v20 = vld [vmem:[%s17385_s21 + $0x6c0] ss:$8 sps:$4 sm:$0xff]  }
 0xed4   :  { %9192 = vmatpush1.bf16.msra.mxu1 %v13849_v26  ;;  %v13933_v26 = vld [vmem:[%s17385_s21 + $0x6d0] ss:$8 sps:$4 sm:$0xff]  }
 0xed5   :  { %9193 = vmatprep.subr.bf16.mxu1 %v13854_v27  ;;  %v13938_v27 = vld [vmem:[%s17385_s21 + $0x6e4] ss:$8 sps:$4 sm:$0xff]  }
 0xed8   :  { %9194 = vmatpush1.bf16.msra.mxu1 %v13852_v28  ;;  %v13936_v28 = vld [vmem:[%s17385_s21 + $0x6e0] ss:$8 sps:$4 sm:$0xff]  }
 0xed9   :  { %9195 = vmatprep.subr.bf16.mxu1 %v13857_v1  ;;  %v13941_v1 = vld [vmem:[%s17385_s21 + $0x6f4] ss:$8 sps:$4 sm:$0xff]  }
 0xedc   :  { %9196 = vmatpush1.bf16.msra.mxu1 %v13855_v58  ;;  %v13939_v58 = vld [vmem:[%s17385_s21 + $0x6f0] ss:$8 sps:$4 sm:$0xff]  }
 0xedd   :  { %9197 = vmatprep.subr.bf16.mxu1 %v13860_v31  ;;  %v13944_v31 = vld [vmem:[%s17385_s21 + $0x704] ss:$8 sps:$4 sm:$0xff]  }
 0xee0   :  { %9198 = vmatpush1.bf16.msra.mxu1 %v13858_v18  ;;  %v13942_v18 = vld [vmem:[%s17385_s21 + $0x700] ss:$8 sps:$4 sm:$0xff]  }
 0xee1   :  { %9199 = vmatprep.subr.bf16.mxu1 %v13863_v40  ;;  %v13947_v40 = vld [vmem:[%s17385_s21 + $0x714] ss:$8 sps:$4 sm:$0xff]  }
 0xee4   :  { %9200 = vmatpush1.bf16.msra.mxu1 %v13861_v0  ;;  %v9504_v0 = vrot.slane %v16679_v52, 4 }
 0xee5   :  { %9201 = vmatprep.subr.bf16.mxu1 %v13866_v48  ;;  %v13945_v48 = vld [vmem:[%s17385_s21 + $0x710] ss:$8 sps:$4 sm:$0xff]  }
 0xee8   :  { %9202 = vmatpush1.bf16.msra.mxu1 %v13864_v21  ;;  %v13950_v21 = vld [vmem:[%s17385_s21 + $0x724] ss:$8 sps:$4 sm:$0xff]  }
 0xee9   :  { %9203 = vmatprep.subr.bf16.mxu1 %v13869_v4  ;;  %v13948_v4 = vld [vmem:[%s17385_s21 + $0x720] ss:$8 sps:$4 sm:$0xff]  }
 0xeec   :  { %9204 = vmatpush1.bf16.msra.mxu1 %v13867_v60  ;;  %v13951_v60 = vld [vmem:[%s17385_s21 + $0x730] ss:$8 sps:$4 sm:$0xff]  }
 0xeed   :  { %9205 = vmatprep.subr.bf16.mxu1 %v13872_v7  ;;  %v13956_v7 = vld [vmem:[%s17385_s21 + $0x744] ss:$8 sps:$4 sm:$0xff]  }
 0xef0   :  { %9206 = vmatpush1.bf16.msra.mxu1 %v13870_v8  ;;  %v13954_v8 = vld [vmem:[%s17385_s21 + $0x740] ss:$8 sps:$4 sm:$0xff]  }
 0xef1   :  { %9207 = vmatprep.subr.bf16.mxu1 %v13875_v36  ;;  %v13959_v36 = vld [vmem:[%s17385_s21 + $0x754] ss:$8 sps:$4 sm:$0xff]  }
 0xef4   :  { %9208 = vmatpush1.bf16.msra.mxu1 %v13873_v23  ;;  %v13957_v23 = vld [vmem:[%s17385_s21 + $0x750] ss:$8 sps:$4 sm:$0xff]  }
 0xef5   :  { %9209 = vmatprep.subr.bf16.mxu1 %v13878_v43  ;;  %v13962_v43 = vld [vmem:[%s17385_s21 + $0x764] ss:$8 sps:$4 sm:$0xff]  }
 0xef8   :  { %9210 = vmatpush1.bf16.msra.mxu1 %v13876_v42  ;;  %v13960_v42 = vld [vmem:[%s17385_s21 + $0x760] ss:$8 sps:$4 sm:$0xff]  }
 0xef9   :  { %9211 = vmatprep.subr.bf16.mxu1 %v13881_v33  ;;  %v13965_v33 = vld [vmem:[%s17385_s21 + $0x774] ss:$8 sps:$4 sm:$0xff]  }
 0xefc   :  { %9212 = vmatpush1.bf16.msra.mxu1 %v13879_v19  ;;  %v13963_v19 = vld [vmem:[%s17385_s21 + $0x770] ss:$8 sps:$4 sm:$0xff]  }
 0xefd   :  { %9213 = vmatprep.subr.bf16.mxu1 %v13884_v10  ;;  %v13968_v10 = vld [vmem:[%s17385_s21 + $0x784] ss:$8 sps:$4 sm:$0xff]  }
 0xf00   :  { %9214 = vmatpush1.bf16.msra.mxu1 %v13882_v62  ;;  %v13966_v62 = vld [vmem:[%s17385_s21 + $0x780] ss:$8 sps:$4 sm:$0xff]  }
 0xf01   :  { %9215 = vmatprep.subr.bf16.mxu1 %v13887_v30  ;;  %v13971_v30 = vld [vmem:[%s17385_s21 + $0x794] ss:$8 sps:$4 sm:$0xff]  }
 0xf04   :  { %9216 = vmatpush1.bf16.msra.mxu1 %v13885_v50  ;;  %v13969_v50 = vld [vmem:[%s17385_s21 + $0x790] ss:$8 sps:$4 sm:$0xff]  }
 0xf05   :  { %9217 = vmatprep.subr.bf16.mxu1 %v13890_v29  ;;  %v13974_v29 = vld [vmem:[%s17385_s21 + $0x7a4] ss:$8 sps:$4 sm:$0xff]  }
 0xf08   :  { %9218 = vmatpush1.bf16.msra.mxu1 %v13888_v5  ;;  %v13972_v5 = vld [vmem:[%s17385_s21 + $0x7a0] ss:$8 sps:$4 sm:$0xff]  }
 0xf09   :  { %9219 = vmatprep.subr.bf16.mxu1 %v13893_v39  ;;  %v13977_v39 = vld [vmem:[%s17385_s21 + $0x7b4] ss:$8 sps:$4 sm:$0xff]  }
 0xf0c   :  { %9220 = vmatpush1.bf16.msra.mxu1 %v13891_v51  ;;  %v13975_v51 = vld [vmem:[%s17385_s21 + $0x7b0] ss:$8 sps:$4 sm:$0xff]  }
 0xf0d   :  { %9425 = vmatprep.subr.bf16.mxu1 %v13896_v17  ;;  %v13980_v17 = vld [vmem:[%s17385_s21 + $0x7c4] ss:$8 sps:$4 sm:$0xff]  }
 0xf0f   :  { %9222 = vmatmul.mubr.bf16.vlgmr.msra.gmra.mrb[108].mxu1 %v9025_v13  ;;  %v13983_v13 = vld [vmem:[%s17385_s21 + $0x7d4] ss:$8 sps:$4 sm:$0xff]  }
 0xf10   :  { %9426 = vmatpush1.bf16.msra.mxu1 %v13894_v59  ;;  %9457 = vmatprep.mubr.bf16.mxu1 %v16679_v52  ;;  %v13953_v52 = vld [vmem:[%s17385_s21 + $0x734] ss:$8 sps:$4 sm:$0xff]   ;;  %v13978_v59 = vld [vmem:[%s17385_s21 + $0x7c0] ss:$8 sps:$4 sm:$0xff]  }
 0xf11   :  { %9427 = vmatprep.subr.bf16.mxu1 %v13899_v35  ;;  %v13981_v35 = vld [vmem:[%s17385_s21 + $0x7d0] ss:$8 sps:$4 sm:$0xff]  }
 0xf14   :  { %9428 = vmatpush1.bf16.msra.mxu1 %v13897_v38  ;;  %v13986_v38 = vld [vmem:[%s17385_s21 + $0x7e4] ss:$8 sps:$4 sm:$0xff]  }
 0xf15   :  { %9429 = vmatprep.subr.bf16.mxu1 %v13902_v37  ;;  %v13984_v37 = vld [vmem:[%s17385_s21 + $0x7e0] ss:$8 sps:$4 sm:$0xff]  }
 0xf18   :  { %9430 = vmatpush1.bf16.msra.mxu1 %v13900_v47  ;;  %v13989_v47 = vld [vmem:[%s17385_s21 + $0x7f4] ss:$8 sps:$4 sm:$0xff]  }
 0xf19   :  { %9431 = vmatprep.subr.bf16.mxu1 %v13905_v34  ;;  %v13987_v34 = vld [vmem:[%s17385_s21 + $0x7f0] ss:$8 sps:$4 sm:$0xff]  }
 0xf1c   :  { %9432 = vmatpush1.bf16.msra.mxu1 %v13903_v32  ;;  %v13992_v32 = vld [vmem:[%s17385_s21 + $0x804] ss:$8 sps:$4 sm:$0xff]  }
 0xf1d   :  { %9433 = vmatprep.subr.bf16.mxu1 %v13908_v56  ;;  %v13990_v56 = vld [vmem:[%s17385_s21 + $0x800] ss:$8 sps:$4 sm:$0xff]  }
 0xf20   :  { %9434 = vmatpush1.bf16.msra.mxu1 %v13906_v45  ;;  %v9503_v45 = vrot.slane %v16677_v46, 4 }
 0xf21   :  { %9435 = vmatprep.subr.bf16.mxu1 %v13911_v44  ;;  %v13995_v44 = vld [vmem:[%s17385_s21 + $0x814] ss:$8 sps:$4 sm:$0xff]  }
 0xf24   :  { %9436 = vmatpush1.bf16.msra.mxu1 %v13909_v15  ;;  %v7802_v15 = vpack.c.bf16 %v16692_v6, %v16692_v6  ;;  %v14001_v6 = vld [vmem:[%s17385_s21 + $0x834] ss:$8 sps:$4 sm:$0xff]  }
 0xf25   :  { %9437 = vmatprep.subr.bf16.mxu1 %v13914_v25  ;;  %v13993_v25 = vld [vmem:[%s17385_s21 + $0x810] ss:$8 sps:$4 sm:$0xff]  }
 0xf28   :  { %9438 = vmatpush1.bf16.msra.mxu1 %v13912_v53  ;;  %v13996_v53 = vld [vmem:[%s17385_s21 + $0x820] ss:$8 sps:$4 sm:$0xff]  }
 0xf29   :  { %9439 = vmatprep.subr.bf16.mxu1 %v13917_v22  ;;  %v13999_v22 = vld [vmem:[%s17385_s21 + $0x830] ss:$8 sps:$4 sm:$0xff]  }
 0xf2c   :  { %9440 = vmatpush1.bf16.msra.mxu1 %v13915_v41  ;;  %v14004_v41 = vld [vmem:[%s17385_s21 + $0x844] ss:$8 sps:$4 sm:$0xff]  }
 0xf2d   :  { %9441 = vmatprep.subr.bf16.mxu1 %v13920_v49  ;;  %v14002_v49 = vld [vmem:[%s17385_s21 + $0x840] ss:$8 sps:$4 sm:$0xff]  }
 0xf30   :  { %9442 = vmatpush1.bf16.msra.mxu1 %v13918_v57  ;;  %v14007_v57 = vld [vmem:[%s17385_s21 + $0x854] ss:$8 sps:$4 sm:$0xff]  }
 0xf31   :  { %9443 = vmatprep.subr.bf16.mxu1 %v13923_v55  ;;  %v14005_v55 = vld [vmem:[%s17385_s21 + $0x850] ss:$8 sps:$4 sm:$0xff]  }
 0xf34   :  { %9444 = vmatpush1.bf16.msra.mxu1 %v13921_v14  ;;  %v14010_v14 = vld [vmem:[%s17385_s21 + $0x864] ss:$8 sps:$4 sm:$0xff]  }
 0xf35   :  { %9445 = vmatprep.subr.bf16.mxu1 %v13926_v63  ;;  %v14008_v63 = vld [vmem:[%s17385_s21 + $0x860] ss:$8 sps:$4 sm:$0xff]  }
 0xf38   :  { %9446 = vmatpush1.bf16.msra.mxu1 %v13924_v2  ;;  %v14013_v2 = vld [vmem:[%s17385_s21 + $0x874] ss:$8 sps:$4 sm:$0xff]  }
 0xf39   :  { %9447 = vmatprep.subr.bf16.mxu1 %v13929_v24  ;;  %v14011_v24 = vld [vmem:[%s17385_s21 + $0x870] ss:$8 sps:$4 sm:$0xff]  }
 0xf3c   :  { %9448 = vmatpush1.bf16.msra.mxu1 %v13927_v54  ;;  %v14016_v54 = vld [vmem:[%s17385_s21 + $0x884] ss:$8 sps:$4 sm:$0xff]  }
 0xf3d   :  { %9449 = vmatprep.subr.bf16.mxu1 %v13932_v3  ;;  %v14014_v3 = vld [vmem:[%s17385_s21 + $0x880] ss:$8 sps:$4 sm:$0xff]  }
 0xf40   :  { %9450 = vmatpush1.bf16.msra.mxu1 %v13930_v20  ;;  %v14019_v20 = vld [vmem:[%s17385_s21 + $0x894] ss:$8 sps:$4 sm:$0xff]  }
 0xf41   :  { %9451 = vmatprep.subr.bf16.mxu1 %v13935_v61  ;;  %v14017_v61 = vld [vmem:[%s17385_s21 + $0x890] ss:$8 sps:$4 sm:$0xff]  }
 0xf44   :  { %9452 = vmatpush1.bf16.msra.mxu1 %v13933_v26  ;;  %v14022_v26 = vld [vmem:[%s17385_s21 + $0x8a4] ss:$8 sps:$4 sm:$0xff]  }
 0xf45   :  { %9453 = vmatprep.subr.bf16.mxu1 %v13938_v27  ;;  %v14020_v27 = vld [vmem:[%s17385_s21 + $0x8a0] ss:$8 sps:$4 sm:$0xff]  }
 0xf48   :  { %9454 = vmatpush1.bf16.msra.mxu1 %v13936_v28  ;;  %v14025_v28 = vld [vmem:[%s17385_s21 + $0x8b4] ss:$8 sps:$4 sm:$0xff]  }
 0xf49   :  { %9455 = vmatprep.subr.bf16.mxu1 %v13941_v1  ;;  %v14023_v1 = vld [vmem:[%s17385_s21 + $0x8b0] ss:$8 sps:$4 sm:$0xff]  }
 0xf4c   :  { %9456 = vmatpush1.bf16.msra.mxu1 %v13939_v58  ;;  %v14028_v58 = vld [vmem:[%s17385_s21 + $0x8c4] ss:$8 sps:$4 sm:$0xff]  }
 0xf4d   :  { %9667 = vmatprep.subr.bf16.mxu1 %v13944_v31  ;;  %v14026_v31 = vld [vmem:[%s17385_s21 + $0x8c0] ss:$8 sps:$4 sm:$0xff]  }
 0xf4f   :  { %9458 = vmatmul.mubr.bf16.vlgmr.msra.gmra.mrb[108].mxu1 %v16677_v46  ;;  %v13998_v46 = vld [vmem:[%s17385_s21 + $0x824] ss:$8 sps:$4 sm:$0xff]  }
 0xf50   :  { %9668 = vmatpush1.bf16.msra.mxu1 %v13942_v18  ;;  %9699 = vmatprep.mubr.bf16.mxu1 %v9504_v0  ;;  %v14031_v18 = vld [vmem:[%s17385_s21 + $0x8d4] ss:$8 sps:$4 sm:$0xff]   ;;  %v14034_v0 = vld [vmem:[%s17385_s21 + $0x8e4] ss:$8 sps:$4 sm:$0xff]  }
 0xf51   :  { %9669 = vmatprep.subr.bf16.mxu1 %v13947_v40  ;;  %v14029_v40 = vld [vmem:[%s17385_s21 + $0x8d0] ss:$8 sps:$4 sm:$0xff]  }
 0xf54   :  { %9670 = vmatpush1.bf16.msra.mxu1 %v13945_v48  ;;  %v14032_v48 = vld [vmem:[%s17385_s21 + $0x8e0] ss:$8 sps:$4 sm:$0xff]  }
 0xf55   :  { %9671 = vmatprep.subr.bf16.mxu1 %v13950_v21  ;;  %v14037_v21 = vld [vmem:[%s17385_s21 + $0x8f4] ss:$8 sps:$4 sm:$0xff]  }
 0xf58   :  { %9672 = vmatpush1.bf16.msra.mxu1 %v13948_v4  ;;  %v14035_v4 = vld [vmem:[%s17385_s21 + $0x8f0] ss:$8 sps:$4 sm:$0xff]  }
 0xf59   :  { %9673 = vmatprep.subr.bf16.mxu1 %v13953_v52  ;;  %v7801_v52 = vpack.c.bf16 %v16687_v9, %v16687_v9 }
 0xf5c   :  { %9674 = vmatpush1.bf16.msra.mxu1 %v13951_v60 }
 0xf5d   :  { %9675 = vmatprep.subr.bf16.mxu1 %v13956_v7 }
 0xf60   :  { %9676 = vmatpush1.bf16.msra.mxu1 %v13954_v8 }
 0xf61   :  { %9677 = vmatprep.subr.bf16.mxu1 %v13959_v36 }
 0xf64   :  { %9678 = vmatpush1.bf16.msra.mxu1 %v13957_v23 }
 0xf65   :  { %9679 = vmatprep.subr.bf16.mxu1 %v13962_v43 }
 0xf68   :  { %9680 = vmatpush1.bf16.msra.mxu1 %v13960_v42 }
 0xf69   :  { %9681 = vmatprep.subr.bf16.mxu1 %v13965_v33 }
 0xf6c   :  { %9682 = vmatpush1.bf16.msra.mxu1 %v13963_v19 }
 0xf6d   :  { %9683 = vmatprep.subr.bf16.mxu1 %v13968_v10 }
 0xf70   :  { %9684 = vmatpush1.bf16.msra.mxu1 %v13966_v62 }
 0xf71   :  { %9685 = vmatprep.subr.bf16.mxu1 %v13971_v30 }
 0xf74   :  { %9686 = vmatpush1.bf16.msra.mxu1 %v13969_v50 }
 0xf75   :  { %9687 = vmatprep.subr.bf16.mxu1 %v13974_v29 }
 0xf78   :  { %9688 = vmatpush1.bf16.msra.mxu1 %v13972_v5 }
 0xf79   :  { %9689 = vmatprep.subr.bf16.mxu1 %v13977_v39 }
 0xf7c   :  { %9690 = vmatpush1.bf16.msra.mxu1 %v13975_v51 }
 0xf7d   :  { %9691 = vmatprep.subr.bf16.mxu1 %v13980_v17 }
 0xf80   :  { %9692 = vmatpush1.bf16.msra.mxu1 %v13978_v59 }
 0xf81   :  { %9693 = vmatprep.subr.bf16.mxu1 %v13983_v13 }
 0xf84   :  { %9694 = vmatpush1.bf16.msra.mxu1 %v13981_v35 }
 0xf85   :  { %9695 = vmatprep.subr.bf16.mxu1 %v13986_v38 }
 0xf88   :  { %9696 = vmatpush1.bf16.msra.mxu1 %v13984_v37 }
 0xf89   :  { %9697 = vmatprep.subr.bf16.mxu1 %v13989_v47 }
 0xf8c   :  { %9698 = vmatpush1.bf16.msra.mxu1 %v13987_v34 }
 0xf8d   :  { %9903 = vmatprep.subr.bf16.mxu1 %v13992_v32 }
 0xf8f   :  { %9700 = vmatmul.mubr.bf16.vlgmr.msra.gmra.mrb[108].mxu1 %v9503_v45 }
 0xf90   :  { %9904 = vmatpush1.bf16.msra.mxu1 %v13990_v56  ;;  %9935 = vmatprep.mubr.bf16.mxu1 %v7802_v15 }
 0xf91   :  { %9905 = vmatprep.subr.bf16.mxu1 %v13995_v44 }
 0xf94   :  { %9906 = vmatpush1.bf16.msra.mxu1 %v13993_v25 }
 0xf95   :  { %9907 = vmatprep.subr.bf16.mxu1 %v13998_v46 }
 0xf98   :  { %9908 = vmatpush1.bf16.msra.mxu1 %v13996_v53 }
 0xf99   :  { %9909 = vmatprep.subr.bf16.mxu1 %v14001_v6 }
 0xf9c   :  { %9910 = vmatpush1.bf16.msra.mxu1 %v13999_v22 }
 0xf9d   :  { %9911 = vmatprep.subr.bf16.mxu1 %v14004_v41 }
 0xfa0   :  { %9912 = vmatpush1.bf16.msra.mxu1 %v14002_v49 }
 0xfa1   :  { %9913 = vmatprep.subr.bf16.mxu1 %v14007_v57 }
 0xfa4   :  { %9914 = vmatpush1.bf16.msra.mxu1 %v14005_v55 }
 0xfa5   :  { %9915 = vmatprep.subr.bf16.mxu1 %v14010_v14 }
 0xfa8   :  { %9916 = vmatpush1.bf16.msra.mxu1 %v14008_v63 }
 0xfa9   :  { %9917 = vmatprep.subr.bf16.mxu1 %v14013_v2  ;;  %v9986_v2 = vld [vmem:[%s17388_s22] sm:$0x3] }
 0xfac   :  { %9918 = vmatpush1.bf16.msra.mxu1 %v14011_v24  ;;  %v9991_v24 = vrot.slane %v9986_v2, %v14359_v12 }
 0xfad   :  { %9919 = vmatprep.subr.bf16.mxu1 %v14016_v54  ;;  %v9995_v54 = vrot.slane %v9986_v2, %v16389_v16 }
 0xfb0   :  { %9920 = vmatpush1.bf16.msra.mxu1 %v14014_v3 }
 0xfb1   :  { %9921 = vmatprep.subr.bf16.mxu1 %v14019_v20 }
 0xfb4   :  { %9922 = vmatpush1.bf16.msra.mxu1 %v14017_v61 }
 0xfb5   :  { %9923 = vmatprep.subr.bf16.mxu1 %v14022_v26 }
 0xfb8   :  { %9924 = vmatpush1.bf16.msra.mxu1 %v14020_v27 }
 0xfb9   :  { %9925 = vmatprep.subr.bf16.mxu1 %v14025_v28 }
 0xfbc   :  { %9926 = vmatpush1.bf16.msra.mxu1 %v14023_v1 }
 0xfbd   :  { %9927 = vmatprep.subr.bf16.mxu1 %v14028_v58 }
 0xfc0   :  { %9928 = vmatpush1.bf16.msra.mxu1 %v14026_v31  ;;  %v10000_v31 = vld [vmem:[%s17389_s23] sm:$0x3] }
 0xfc1   :  { %9929 = vmatprep.subr.bf16.mxu1 %v14031_v18 }
 0xfc4   :  { %9930 = vmatpush1.bf16.msra.mxu1 %v14029_v40 }
 0xfc5   :  { %9931 = vmatprep.subr.bf16.mxu1 %v14034_v0 }
 0xfc8   :  { %9932 = vmatpush1.bf16.msra.mxu1 %v14032_v48 }
 0xfc9   :  { %9933 = vmatprep.subr.bf16.mxu1 %v14037_v21 }
 0xfcc   :  { %9934 = vmatpush1.bf16.msra.mxu1 %v14035_v4 }
 0xfcf   :  { %9936 = vmatmul.mubr.bf16.vlgmr.msra.gmra.mrb[108].mxu1 %v7801_v52 }
0x10a2   :  { %v9937_v60 = vpop.f32.mrb[108].mxu1 }
0x10a3   :  { %v9946_v7 = vrot.slane %v9937_v60, 4  ;;  %v9960_v8 = vmul.f32 %v9937_v60, %v9937_v60  ;;  %v9939_v36 = vpop.f32.mrb[109].mxu1 }
0x10a4   :  { %v9952_v23 = vrot.slane %v9939_v36, 4  ;;  %v9961_v43 = vmul.f32 %v9939_v36, %v9939_v36  ;;  %v9941_v42 = vpop.f32.mrb[110].mxu1 }
0x10a5   :  { %v9947_v33 = vadd.f32 %v9946_v7, %v9937_v60  ;;  %v9962_v19 = vrot.slane %v9960_v8, 4  ;;  %v9942_v10 = vpop.f32.mrb[111].mxu1  ;;  %v10052_v42 = vld [vmem:[%s17390_s24 + $0x8] sm:$0xff] }
0x10a6   :  { %v9953_v62 = vadd.f32 %v9952_v23, %v9939_v36  ;;  %v9968_v30 = vrot.slane %v9961_v43, 4  ;;  %v33_v10 = vstv %s17392_s26 }
0x10a7   :  { %v9948_v50 = vrot.slane %v9947_v33, 2  ;;  %v9963_v29 = vadd.f32 %v9962_v19, %v9960_v8  ;;  %34 = vst [vmem:[#allocation2] sm:$0x1] %v33_v10 }
0x10a8   :  { %v9954_v5 = vrot.slane %v9953_v62, 2  ;;  %v9969_v39 = vadd.f32 %v9968_v30, %v9961_v43  ;;  %v10051_v43 = vld [vmem:[%s17390_s24] sm:$0xff] }
0x10a9   :  { %v9949_v51 = vadd.f32 %v9948_v50, %v9947_v33  ;;  %v9964_v17 = vrot.slane %v9963_v29, 2 }
0x10aa   :  { %v9955_v9 = vadd.f32 %v9954_v5, %v9953_v62  ;;  %v9970_v59 = vrot.slane %v9969_v39, 2  ;;  %v35_v62 = vstv %s17393_s27 }
0x10ab   :  { %v9950_v13 = vrot.slane %v9949_v51, 1  ;;  %v9965_v35 = vadd.f32 %v9964_v17, %v9963_v29  ;;  %36 = vst [vmem:[#allocation3] sm:$0x1] %v35_v62 }
0x10ac   :  { %v9956_v38 = vrot.slane %v9955_v9, 1  ;;  %v9971_v37 = vadd.f32 %v9970_v59, %v9969_v39 }
0x10ad   :  { %v9951_v47 = vadd.f32 %v9950_v13, %v9949_v51  ;;  %v9966_v34 = vrot.slane %v9965_v35, 1 }
0x10ae   :  { %v9957_v32 = vadd.f32 %v9956_v38, %v9955_v9  ;;  %v9972_v56 = vrot.slane %v9971_v37, 1 }
0x10af   :  { %v9958_v45 = vmul.f32 0.125, %v9951_v47  ;;  %v9967_v44 = vadd.f32 %v9966_v34, %v9965_v35 }
0x10b0   :  { %v9959_v15 = vmul.f32 0.125, %v9957_v32  ;;  %v9973_v25 = vadd.f32 %v9972_v56, %v9971_v37 }
0x10b1   :  { %v9974_v46 = vmul.f32 0.125, %v9967_v44  ;;  %v9976_v53 = vmul.f32 %v9958_v45, %v9958_v45 }
0x10b2   :  { %v9975_v6 = vmul.f32 0.125, %v9973_v25  ;;  %v9977_v22 = vmul.f32 %v9959_v15, %v9959_v15  ;;  %v11660_v2 = vld [vmem:[#allocation3] ss:$0 sm:$0xff] }
0x10b3   :  { %v9978_v41 = vsub.f32 %v9974_v46, %v9976_v53 }
0x10b4   :  { %v9979_v49 = vsub.f32 %v9975_v6, %v9977_v22 }
0x10b5   :  { %v9980_v57 = vmax.f32 %v9978_v41, 0.0 }
0x10b6   :  { %v9981_v55 = vmax.f32 %v9979_v49, 0.0 }
0x10b7   :  { %v9982_v14 = vadd.f32 1e-05, %v9980_v57 }
0x10b8   :  { %v9983_v63 = vadd.f32 1e-05, %v9981_v55 }
0x10b9   :  { %14050 = vrsqrt.f32 %v9982_v14  ;;  %v11659_v14 = vld [vmem:[#allocation2] ss:$0 sm:$0xff] }
0x10ba   :  { %14052 = vrsqrt.f32 %v9983_v63 }
0x10c3   :  { %v14051_v3 = vpop.eup %14050 }
0x10c4   :  { %v14053_v20 = vpop.eup %14052  ;;  %v9998_v61 = vmul.f32 %v14051_v3, %v9991_v24 }
0x10c5   :  { %v9999_v26 = vmul.f32 %v14053_v20, %v9995_v54 }
0x10c6   :  { %v10001_v27 = vmul.f32 %v9998_v61, %v9958_v45  ;;  %v10025_v18 = vrot.slane %v9998_v61, %v14359_v12 }
0x10c7   :  { %v10002_v28 = vmul.f32 %v9999_v26, %v9959_v15  ;;  %v10029_v0 = vrot.slane %v9999_v26, %v14359_v12 }
0x10c8   :  { %v10030_v21 = vmul.f32 %v10025_v18, %v9937_v60 }
0x10c9   :  { %v10005_v1 = vcombine.low %v10001_v27, %v10002_v28  ;;  %v10031_v4 = vmul.f32 %v10029_v0, %v9939_v36 }
0x10cb   :  { %v10012_v58 = vrot.slane %v10005_v1, %v16394_v11 }
0x10cd   :  { %v10019_v40 = vrot.slane %v10012_v58, %v16394_v11 }
0x10cf   :  { %v10021_v48 = vsub.f32 %v10000_v31, %v10019_v40 }
0x10d1   :  { %v10036_v52 = vrot.slane %v10021_v48, %v14359_v12  ;;  %v10040_v7 = vrot.slane %v10021_v48, %v16389_v16  ;;  %v10055_v16 = vld [vmem:[%s17391_s25] sm:$0x3] }
0x10d3   :  { %v10044_v8 = vadd.f32 %v10040_v7, %v10031_v4  ;;  %v10043_v23 = vadd.f32 %v10036_v52, %v10030_v21 }
0x10d5   :  { %vm10046_vm0 = vcmp.ge.f32.partialorder %v10044_v8, 0.0  ;;  %v10048_v11 = vmul.f32 0.01, %v10044_v8  ;;  %vm10045_vm6 = vcmp.ge.f32.partialorder %v10043_v23, 0.0  ;;  %v10047_v33 = vmul.f32 0.01, %v10043_v23 }
0x10d7   :  { %v10050_v60 = vsel %vm10046_vm0, %v10044_v8, %v10048_v11  ;;  %v10049_v36 = vsel %vm10045_vm6, %v10043_v23, %v10047_v33 }
0x10d8   :  { %v10054_v19 = vmul.f32 %v10052_v42, %v10050_v60  ;;  %v10053_v12 = vmul.f32 %v10051_v43, %v10049_v36 }
0x10da   :  { %10059 = vmatprep.subr.mxu0 %v10054_v19 }
0x10db   :  { %10060 = vmatpush1.msra.mxu0 %v10053_v12 }
0x10dc   :  { %11658 = vmatmul.mubr.msk.f32.vlgmr.msra.gmra.mrb[208].mxu0 %vm7690_vm5, %v10055_v16 }
0x11af   :  { %v10125_v30 = vpop.f32.mrb[208].mxu0 }
0x11b0   :  { %v10131_v50 = vsel %vm10130_vm7, %v10125_v30, 0.0  ;;  %v10127_v29 = vpop.f32.mrb[209].mxu0 }
0x11b1   :  { %v10132_v5 = vsel %vm10130_vm7, %v10127_v29, 0.0 }
0x11b2   :  { %v10133_v39 = vadd.f32 %v10132_v5, %v10131_v50 }
0x11b4   :  { %10134 = vadd.xlane.f32.xlu0 %v10133_v39 }
0x1241   :  { %v10135_v51 = vpop.xlane.xlu0 %10134 }
0x1242   :  { %v10136_v17 = vsel %vm10130_vm7, %v10135_v51, 0.0  ;;  %v10144_v9 = vmul.f32 %v10135_v51, %v10135_v51 }
0x1243   :  { %v10137_v59 = vrot.slane %v10136_v17, 4 }
0x1244   :  { %v10145_v13 = vsel %vm10130_vm7, %v10144_v9, 0.0 }
0x1245   :  { %v10138_v35 = vadd.f32 %v10137_v59, %v10136_v17  ;;  %v10146_v38 = vrot.slane %v10145_v13, 4 }
0x1247   :  { %v10139_v37 = vrot.slane %v10138_v35, 2  ;;  %v10147_v47 = vadd.f32 %v10146_v38, %v10145_v13 }
0x1249   :  { %v10140_v34 = vadd.f32 %v10139_v37, %v10138_v35  ;;  %v10148_v32 = vrot.slane %v10147_v47, 2 }
0x124b   :  { %v10141_v56 = vrot.slane %v10140_v34, 1  ;;  %v10149_v45 = vadd.f32 %v10148_v32, %v10147_v47 }
0x124d   :  { %v10142_v44 = vadd.f32 %v10141_v56, %v10140_v34  ;;  %v10150_v15 = vrot.slane %v10149_v45, 1 }
0x124f   :  { %v10143_v25 = vmul.f32 0.5, %v10142_v44  ;;  %v10151_v46 = vadd.f32 %v10150_v15, %v10149_v45 }
0x1251   :  { %v10152_v53 = vmul.f32 0.5, %v10151_v46  ;;  %v10153_v6 = vmul.f32 %v10143_v25, %v10143_v25  ;;  %v10156_v57 = vsub.f32 %v10135_v51, %v10143_v25 }
0x1253   :  { %v10154_v22 = vsub.f32 %v10152_v53, %v10153_v6 }
0x1255   :  { %v10155_v41 = vmax.f32 %v10154_v22, 0.0 }
0x1257   :  { %v10157_v49 = vadd.f32 1e-05, %v10155_v41 }
0x1259   :  { %14054 = vrsqrt.f32 %v10157_v49 }
0x1263   :  { %v14055_v55 = vpop.eup %14054 }
0x1264   :  { %v10159_v63 = vmul.f32 %v14055_v55, %v10156_v57 }
0x1266   :  { %v10167_v24 = vmul.f32 %v11659_v14, %v10159_v63 }
0x1268   :  { %v10175_v54 = vadd.f32 %v11660_v2, %v10167_v24 }
0x126a   :  { %v11661_v3 = vmul.f32 -1.442695, %v10175_v54 }
0x126c   :  { %14056 = vpow2.f32 %v11661_v3 }
0x1276   :  { %v14057_v20 = vpop.eup %14056 }
0x1277   :  { %v10179_v61 = vadd.f32 1.0, %v14057_v20 }
0x1279   :  { %14058 = vrcp.f32 %v10179_v61 }
0x1283   :  { %v14059_v26 = vpop.eup %14058 }
0x1284   :  { %10183 = vst.msk [vmem:[%s17394_s28] sm:$0x3] %vm10182_vm8, %v14059_v26 }

</bundles_post_ra>
